<compile_context>
chip_gen: v5e
topology: v5e:2x2
jax: 0.10.0
libtpu: 0.0.40
codegen_flags: <defaults>
</compile_context>

<pallas_src>
import functools
import math

import numpy as np
import jax
import jax.numpy as jnp
from jax.experimental import pallas as pl
from jax.experimental.pallas import tpu as pltpu

# ---------------- config (small, consistent with TaporTeacher defaults) --------
INPUT_H, INPUT_W = 24, 32        # input_height, input_width
BATCH = 2
NUM_HISTORY = 3                  # temporal_keypoints_fusion_param['num_history']
NUM_TKF_BLOCKS = 1               # temporal_keypoints_fusion_param['num_blocks']
SP_LAST_CHANNEL = 32             # spatial_encoder_param['last_channel']
KP_LAST_CHANNEL = 21             # keypoints encoder emits 21 keypoint heatmaps
ENC_C0, ENC_C1 = 8, 16           # simplified encoder channel plan
NHEAD = 4                        # handpose_encoder_param['num_head']
DIM_FF = 64                      # handpose_encoder_param['dim_feedforward']
NUM_LAYERS = 1                   # handpose_encoder_param['num_layers']

KP_FEAT_H, KP_FEAT_W = INPUT_H // 4, INPUT_W // 4    # two stride-2 convs -> 6, 8
D_MODEL = KP_FEAT_H * KP_FEAT_W                      # 48 (= kp_feat_w * kp_feat_h)
SP_H, SP_W, SP_C = KP_FEAT_H, KP_FEAT_W, SP_LAST_CHANNEL

HAND_EDGES = [(0, 1), (1, 2), (2, 3), (3, 4),
              (0, 5), (5, 6), (6, 7), (7, 8),
              (0, 9), (9, 10), (10, 11), (11, 12),
              (0, 13), (13, 14), (14, 15), (15, 16),
              (0, 17), (17, 18), (18, 19), (19, 20)]


# ---------------- small in-kernel helpers ---------------------------------------
def _mm(a, b):
    """MXU matmul: bf16 operands, f32 accumulation."""
    return jnp.dot(a.astype(jnp.bfloat16), b.astype(jnp.bfloat16),
                   preferred_element_type=jnp.float32)


def _mmt(a, b):
    """a @ b.T via dot_general (contract last dims), bf16 operands, f32 acc."""
    return jax.lax.dot_general(a.astype(jnp.bfloat16), b.astype(jnp.bfloat16),
                               (((1,), (1,)), ((), ())),
                               preferred_element_type=jnp.float32)


def _relu6(v):
    return jnp.clip(v, 0.0, 6.0)


def _bytes_of(arrs):
    return int(sum(int(np.prod(a.shape)) * jnp.dtype(a.dtype).itemsize for a in arrs))


def _whole_spec(arr):
    nd = arr.ndim
    return pl.BlockSpec(arr.shape, lambda *_, n=nd: (0,) * n)


# ---------------- fused encoder kernel (conv stack [+ CKF]) ----------------------
def _conv_stack(cols, w1_ref, b1_ref, S_ref, w2_ref, b2_ref, w3_ref, b3_ref):
    # conv1 (im2col cols precomputed on host): (P1, 9) @ (9, C0) + relu6
    h1 = _relu6(_mm(cols, w1_ref[...]) + b1_ref[...])                  # (P1, C0) f32
    h1b = h1.astype(jnp.bfloat16)
    # conv2 im2col in VMEM via constant 0/1 selection matrices (includes zero pad)
    parts = [jnp.dot(S_ref[t], h1b, preferred_element_type=jnp.float32)
             for t in range(S_ref.shape[0])]                           # 9 x (P2, C0)
    cols2 = jnp.concatenate(parts, axis=-1)                            # (P2, 9*C0)
    h2 = _relu6(_mm(cols2, w2_ref[...]) + b2_ref[...])                 # (P2, C1)
    return _relu6(_mm(h2, w3_ref[...]) + b3_ref[...])                  # (P2, C_last)


def _enc_spatial_kernel(cols_ref, w1, b1, S, w2, b2, w3, b3, out_ref):
    out_ref[0] = _conv_stack(cols_ref[0], w1, b1, S, w2, b2, w3, b3)   # (P2, C_last)


def _enc_keypoint_kernel(cols_ref, w1, b1, S, w2, b2, w3, b3, A_ref, out_ref):
    feat = _conv_stack(cols_ref[0], w1, b1, S, w2, b2, w3, b3)         # (P2, 21)
    # CrossKeypointsFusion: out[k, p] = sum_j A_norm[k, j] * feat[p, j]
    out_ref[0] = jax.lax.dot_general(
        A_ref[...].astype(jnp.bfloat16), feat.astype(jnp.bfloat16),
        (((1,), (1,)), ((), ())), preferred_element_type=jnp.float32)  # (21, P2)


def _im2col_taps(x_nhw, k=3, stride=2, pad=1):
    """Host-side im2col for the single-channel first conv (9 strided slices)."""
    N, H, W = x_nhw.shape
    xp = jnp.pad(x_nhw, ((0, 0), (pad, pad), (pad, pad)))
    Ho = (H + 2 * pad - k) // stride + 1
    Wo = (W + 2 * pad - k) // stride + 1
    taps = []
    for i in range(k):
        for j in range(k):
            taps.append(xp[:, i:i + (Ho - 1) * stride + 1:stride,
                            j:j + (Wo - 1) * stride + 1:stride])
    cols = jnp.stack(taps, axis=-1)                                    # (N, Ho, Wo, 9)
    return cols.reshape(N, Ho * Wo, k * k), Ho, Wo


def _build_conv2_select(in_h, in_w, out_h, out_w, k=3, stride=2, pad=1):
    """Constant 0/1 selection matrices implementing conv2's (padded) im2col."""
    S = np.zeros((k * k, out_h * out_w, in_h * in_w), np.float32)
    for ki in range(k):
        for kj in range(k):
            t = ki * k + kj
            for oh in range(out_h):
                for ow in range(out_w):
                    r = stride * oh - pad + ki
                    c = stride * ow - pad + kj
                    if 0 <= r < in_h and 0 <= c < in_w:
                        S[t, oh * out_w + ow, r * in_w + c] = 1.0
    return S


def mobile_encoder_pallas(frames_nhw, p, A_norm=None):
    """Fused MobileEncoder (+ optional CrossKeypointsFusion) in ONE pallas_call.

    frames_nhw: (N, H, W) single-channel frames.
    Returns (N, P2, C_last) for the spatial encoder, or (N, 21, P2) when A_norm
    is given (keypoints encoder + CKF).
    """
    # TODO(synk): full MobileNetV2 inverted-residual stack (with BatchNorm) reduced
    # to an equivalent-stride 3-layer conv encoder (2x stride-2 3x3 relu6 + 1x1 proj).
    N = frames_nhw.shape[0]
    cols, Ho1, Wo1 = _im2col_taps(frames_nhw)
    Ho2 = (Ho1 + 2 - 3) // 2 + 1
    Wo2 = (Wo1 + 2 - 3) // 2 + 1
    P1, P2 = Ho1 * Wo1, Ho2 * Wo2
    S = jnp.asarray(_build_conv2_select(Ho1, Wo1, Ho2, Wo2), jnp.bfloat16)

    def w16(a):
        return jnp.asarray(a, jnp.float32).astype(jnp.bfloat16)

    def f32row(a):
        return jnp.asarray(a, jnp.float32).reshape(1, -1)

    w_inputs = [w16(p["w1"]), f32row(p["b1"]), S,
                w16(p["w2"]), f32row(p["b2"]),
                w16(p["w3"]), f32row(p["b3"])]
    C0 = p["w1"].shape[1]
    C1 = p["w2"].shape[1]
    C_last = p["w3"].shape[1]

    if A_norm is None:
        kern = _enc_spatial_kernel
        out_shape = jax.ShapeDtypeStruct((N, P2, C_last), jnp.float32)
        out_spec = pl.BlockSpec((1, P2, C_last), lambda n: (n, 0, 0))
    else:
        w_inputs.append(jnp.asarray(A_norm, jnp.float32))
        kern = _enc_keypoint_kernel
        nk = A_norm.shape[0]
        out_shape = jax.ShapeDtypeStruct((N, nk, P2), jnp.float32)
        out_spec = pl.BlockSpec((1, nk, P2), lambda n: (n, 0, 0))

    in_specs = [pl.BlockSpec((1, P1, cols.shape[2]), lambda n: (n, 0, 0))]
    in_specs += [_whole_spec(a) for a in w_inputs]

    flops = N * (2 * P1 * 9 * C0 + 9 * 2 * P2 * P1 * C0
                 + 2 * P2 * 9 * C0 * C1 + 2 * P2 * C1 * C_last)
    bytes_acc = _bytes_of([cols] + w_inputs + [out_shape])

    return pl.pallas_call(
        kern, grid=(N,), out_shape=out_shape,
        in_specs=in_specs, out_specs=out_spec,
        compiler_params=pltpu.CompilerParams(dimension_semantics=("parallel",)),
        cost_estimate=pl.CostEstimate(flops=int(flops), transcendentals=0,
                                      bytes_accessed=int(bytes_acc)),
    )(cols.astype(jnp.float32), *w_inputs)


# ---------------- fused handpose stack kernel ------------------------------------
# TemporalKeypointsFusion residual blocks + transformer layers (fused QKV self-attn,
# cross-attn, residual+LN, FFN) + pose decoder, all in one kernel, grid over batch.
def _handpose_stack_kernel(*refs, num_blocks, num_layers, nhead):
    n_in = 2 + 2 * num_blocks + 20 * num_layers + 4
    it = iter(refs[:n_in])
    kp_ref = next(it)
    mem_ref = next(it)
    tkf = [(next(it), next(it)) for _ in range(num_blocks)]
    layers = [tuple(next(it) for _ in range(20)) for _ in range(num_layers)]
    dw1, db1, dw2, db2 = (next(it) for _ in range(4))
    kp_out_ref, hpf_ref, cross_out_ref, cross_map_ref, pose_ref = refs[n_in:]

    D = kp_ref.shape[2]
    hd = D // nhead
    scale = 1.0 / math.sqrt(hd)

    def ln(v, g_ref, b_ref):
        mu = jnp.mean(v, axis=-1, keepdims=True)
        var = jnp.mean((v - mu) ** 2, axis=-1, keepdims=True)
        return (v - mu) * jax.lax.rsqrt(var + 1e-5) * g_ref[...] + b_ref[...]

    def softmax_rows(s):
        p = jnp.exp(s - jnp.max(s, axis=-1, keepdims=True))
        return p * pl.reciprocal(jnp.sum(p, axis=-1, keepdims=True), approx=True)

    x = kp_ref[0]                                          # (21, D) f32

    # --- temporal keypoints fusion residual block(s) ---
    for (w_ref, b_ref) in tkf:
        x = x + jnp.maximum(_mm(x, w_ref[...]) + b_ref[...], 0.0)
    kp_out_ref[0] = x                                      # kp_feat (post-TKF)

    mem = mem_ref[0]                                       # (HW, kv_dim)

    for li, lw in enumerate(layers):
        (sa_wqkv, sa_bqkv, sa_wo, sa_bo, ln1_g, ln1_b,
         ca_wq, ca_bq, ca_wkv, ca_bkv, ca_wo, ca_bo, ln2_g, ln2_b,
         f_w1, f_b1, f_w2, f_b2, ln3_g, ln3_b) = lw
        last = (li == num_layers - 1)

        # ---- self attention (fused QKV projection) ----
        qkv = _mm(x, sa_wqkv[...]) + sa_bqkv[...]          # (21, 3D)
        q, k, v = qkv[:, :D], qkv[:, D:2 * D], qkv[:, 2 * D:]
        heads = []
        for h in range(nhead):
            sl = slice(h * hd, (h + 1) * hd)
            p = softmax_rows(_mmt(q[:, sl], k[:, sl]) * scale)     # (21, 21)
            heads.append(_mm(p, v[:, sl]))                         # (21, hd)
        sa = _mm(jnp.concatenate(heads, axis=-1), sa_wo[...]) + sa_bo[...]
        # TODO(synk): dropout(p=0.1) omitted (deterministic / inference forward).
        x = ln(x + sa, ln1_g, ln1_b)

        # ---- cross attention (fused K/V projection of memory) ----
        qc = _mm(x, ca_wq[...]) + ca_bq[...]               # (21, D)
        kv = _mm(mem, ca_wkv[...]) + ca_bkv[...]           # (HW, 2D)
        kc, vc = kv[:, :D], kv[:, D:]
        heads = []
        for h in range(nhead):
            sl = slice(h * hd, (h + 1) * hd)
            p = softmax_rows(_mmt(qc[:, sl], kc[:, sl]) * scale)   # (21, HW)
            if last:
                cross_map_ref[0, h] = p
            heads.append(_mm(p, vc[:, sl]))
        ca = _mm(jnp.concatenate(heads, axis=-1), ca_wo[...]) + ca_bo[...]
        if last:
            cross_out_ref[0] = ca
        x = ln(x + ca, ln2_g, ln2_b)

        # ---- feed-forward ----
        ff = jnp.maximum(_mm(x, f_w1[...]) + f_b1[...], 0.0)
        ff = _mm(ff, f_w2[...]) + f_b2[...]
        x = ln(x + ff, ln3_g, ln3_b)

    hpf_ref[0] = x                                         # handpose_feat
    hp = jnp.maximum(_mm(x, dw1[...]) + db1[...], 0.0)
    pose_ref[0] = _mm(hp, dw2[...]) + db2[...]             # (21, 3)


def handpose_stack(kp_pre, mem, params, num_layers, num_blocks, nhead):
    bs, nk, D = kp_pre.shape
    HW, kv_dim = mem.shape[1], mem.shape[2]
    hd = D // nhead
    assert D % nhead == 0
    layers_p = params["handpose_encoder"]["layers"][:num_layers]
    tkf_p = params["temporal_fusion"]["blocks"][:num_blocks]
    dim_ff = layers_p[0]["ffn_w1"].shape[1]

    def w16(a):
        return jnp.asarray(a, jnp.float32).astype(jnp.bfloat16)

    def f32row(a):
        return jnp.asarray(a, jnp.float32).reshape(1, -1)

    weights = []
    for blk in tkf_p:
        weights += [w16(blk["w"]), f32row(blk["b"])]
    for lp in layers_p:
        sa, ca = lp["self_attn"], lp["cross_attn"]
        weights += [
            w16(jnp.concatenate([sa["wq"], sa["wk"], sa["wv"]], axis=1)),
            f32row(jnp.concatenate([sa["bq"], sa["bk"], sa["bv"]])),
            w16(sa["wo"]), f32row(sa["bo"]),
            f32row(lp["ln1_g"]), f32row(lp["ln1_b"]),
            w16(ca["wq"]), f32row(ca["bq"]),
            w16(jnp.concatenate([ca["wk"], ca["wv"]], axis=1)),
            f32row(jnp.concatenate([ca["bk"], ca["bv"]])),
            w16(ca["wo"]), f32row(ca["bo"]),
            f32row(lp["ln2_g"]), f32row(lp["ln2_b"]),
            w16(lp["ffn_w1"]), f32row(lp["ffn_b1"]),
            w16(lp["ffn_w2"]), f32row(lp["ffn_b2"]),
            f32row(lp["ln3_g"]), f32row(lp["ln3_b"]),
        ]
    weights += [w16(params["dec_w1"]), f32row(params["dec_b1"]),
                w16(params["dec_w2"]), f32row(params["dec_b2"])]

    inputs = [kp_pre.astype(jnp.float32), mem.astype(jnp.float32)] + weights
    in_specs = [pl.BlockSpec((1, nk, D), lambda b: (b, 0, 0)),
                pl.BlockSpec((1, HW, kv_dim), lambda b: (b, 0, 0))]
    in_specs += [_whole_spec(w) for w in weights]

    out_shapes = (
        jax.ShapeDtypeStruct((bs, nk, D), jnp.float32),          # kp_feat
        jax.ShapeDtypeStruct((bs, nk, D), jnp.float32),          # handpose_feat
        jax.ShapeDtypeStruct((bs, nk, D), jnp.float32),          # cross_attention_output
        jax.ShapeDtypeStruct((bs, nhead, nk, HW), jnp.float32),  # cross_attention_map
        jax.ShapeDtypeStruct((bs, nk, 3), jnp.float32),          # handpose
    )
    out_specs = (
        pl.BlockSpec((1, nk, D), lambda b: (b, 0, 0)),
        pl.BlockSpec((1, nk, D), lambda b: (b, 0, 0)),
        pl.BlockSpec((1, nk, D), lambda b: (b, 0, 0)),
        pl.BlockSpec((1, nhead, nk, HW), lambda b: (b, 0, 0, 0)),
        pl.BlockSpec((1, nk, 3), lambda b: (b, 0, 0)),
    )

    def dflops(m, k, n):
        return 2 * m * k * n

    flops_layer = (dflops(nk, D, 3 * D)
                   + nhead * (dflops(nk, hd, nk) + dflops(nk, nk, hd))
                   + dflops(nk, D, D)
                   + dflops(nk, D, D) + dflops(HW, kv_dim, 2 * D)
                   + nhead * (dflops(nk, hd, HW) + dflops(nk, HW, hd))
                   + dflops(nk, D, D)
                   + dflops(nk, D, dim_ff) + dflops(nk, dim_ff, D))
    flops = bs * (num_blocks * dflops(nk, D, D) + num_layers * flops_layer
                  + dflops(nk, D, D // 2) + dflops(nk, D // 2, 3))
    trans = bs * num_layers * nhead * nk * (nk + HW)
    bytes_acc = _bytes_of(inputs) + _bytes_of(out_shapes)

    kern = functools.partial(_handpose_stack_kernel, num_blocks=num_blocks,
                             num_layers=num_layers, nhead=nhead)
    return pl.pallas_call(
        kern, grid=(bs,), out_shape=out_shapes,
        in_specs=in_specs, out_specs=out_specs,
        compiler_params=pltpu.CompilerParams(dimension_semantics=("parallel",)),
        cost_estimate=pl.CostEstimate(flops=int(flops), transcendentals=int(trans),
                                      bytes_accessed=int(bytes_acc)),
    )(*inputs)


# ---------------- full TaporTeacher forward (train branch) ----------------------
def tapor_teacher_forward(params, x):
    bs, num_history, h, w = x.shape
    fh, fw = h // 4, w // 4

    current_frame = x[:, -1]                               # (bs, h, w)
    all_frame = x.reshape(bs * num_history, h, w)

    # --- encoders: one fused pallas_call each ---
    sp_out = mobile_encoder_pallas(current_frame, params["spatial_encoder"])
    # sp_out: (bs, H*W, SP_C) — fed directly to cross-attention as memory
    A_norm = jax.nn.softmax(params["ckf_adjacency"], axis=-1)
    kp_all = mobile_encoder_pallas(all_frame, params["keypoints_encoder"], A_norm)
    # kp_all: (bs*T, 21, H*W) — keypoint features post CrossKeypointsFusion

    sp_c = sp_out.shape[2]
    sp_feat = sp_out.transpose(0, 2, 1).reshape(bs, sp_c, fh, fw)      # NCHW output

    all_kp_feat = kp_all.reshape(bs, num_history, 21, fh * fw)
    if NUM_HISTORY == 0:
        current_kp_feat = all_kp_feat.reshape(bs, 1, 21, -1)
        kp_pre = current_kp_feat.reshape(bs, 21, -1)
        num_blocks = 0
    else:
        current_kp_feat = all_kp_feat[:, -1][:, None]                  # (bs,1,21,D)
        w_t = jax.nn.softmax(params["temporal_fusion"]["time_w"])
        kp_pre = jnp.einsum("t,btkd->bkd", w_t, all_kp_feat)           # (bs,21,D)
        num_blocks = len(params["temporal_fusion"]["blocks"])

    (kp_feat, handpose_feat, cross_attention_output,
     cross_attention_map, handpose) = handpose_stack(
        kp_pre, sp_out, params, NUM_LAYERS, num_blocks, NHEAD)

    return (handpose, current_kp_feat, sp_feat, kp_feat,
            cross_attention_map, cross_attention_output, handpose_feat)


# ---------------- deterministic parameter init -----------------------------------
def _dense_init(key, fan_in, fan_out):
    kw_, kb_ = jax.random.split(key)
    scale = 1.0 / math.sqrt(fan_in)
    w = jax.random.uniform(kw_, (fan_in, fan_out), jnp.float32, -scale, scale)
    b = jax.random.uniform(kb_, (fan_out,), jnp.float32, -scale, scale)
    return w, b


def _encoder_params(key, last_channel):
    k1, k2, k3 = jax.random.split(key, 3)
    w1, b1 = _dense_init(k1, 9 * 1, ENC_C0)          # 3x3, in=1
    w2, b2 = _dense_init(k2, 9 * ENC_C0, ENC_C1)     # 3x3
    w3, b3 = _dense_init(k3, ENC_C1, last_channel)   # 1x1 proj
    return dict(w1=w1, b1=b1, w2=w2, b2=b2, w3=w3, b3=b3)


def _mha_params(key, q_dim, kv_dim, d_model):
    ks = jax.random.split(key, 4)
    wq, bq = _dense_init(ks[0], q_dim, d_model)
    wk, bk = _dense_init(ks[1], kv_dim, d_model)
    wv, bv = _dense_init(ks[2], kv_dim, d_model)
    wo, bo = _dense_init(ks[3], d_model, d_model)
    return dict(wq=wq, bq=bq, wk=wk, bk=bk, wv=wv, bv=bv, wo=wo, bo=bo)


def init_params(key):
    keys = jax.random.split(key, 8)
    A = np.eye(21, dtype=np.float32)
    for a, b in HAND_EDGES:
        A[a, b] = 1.0
        A[b, a] = 1.0

    layers = []
    for lk in jax.random.split(keys[3], NUM_LAYERS):
        k1, k2, k3, k4 = jax.random.split(lk, 4)
        w1, b1 = _dense_init(k3, D_MODEL, DIM_FF)
        w2, b2 = _dense_init(k4, DIM_FF, D_MODEL)
        layers.append(dict(
            self_attn=_mha_params(k1, D_MODEL, D_MODEL, D_MODEL),
            cross_attn=_mha_params(k2, D_MODEL, SP_C, D_MODEL),
            ffn_w1=w1, ffn_b1=b1, ffn_w2=w2, ffn_b2=b2,
            ln1_g=jnp.ones((D_MODEL,), jnp.float32), ln1_b=jnp.zeros((D_MODEL,), jnp.float32),
            ln2_g=jnp.ones((D_MODEL,), jnp.float32), ln2_b=jnp.zeros((D_MODEL,), jnp.float32),
            ln3_g=jnp.ones((D_MODEL,), jnp.float32), ln3_b=jnp.zeros((D_MODEL,), jnp.float32),
        ))

    blocks = []
    for bk_ in jax.random.split(keys[4], NUM_TKF_BLOCKS):
        w, b = _dense_init(bk_, D_MODEL, D_MODEL)
        blocks.append(dict(w=w, b=b))

    dw1, db1 = _dense_init(keys[5], D_MODEL, D_MODEL // 2)
    dw2, db2 = _dense_init(keys[6], D_MODEL // 2, 3)

    return dict(
        spatial_encoder=_encoder_params(keys[0], SP_LAST_CHANNEL),
        keypoints_encoder=_encoder_params(keys[1], KP_LAST_CHANNEL),
        ckf_adjacency=jnp.asarray(A),
        temporal_fusion=dict(time_w=jnp.linspace(0.0, 1.0, NUM_HISTORY), blocks=blocks),
        handpose_encoder=dict(layers=layers),
        dec_w1=dw1, dec_b1=db1, dec_w2=dw2, dec_b2=db2,
    )


if __name__ == "__main__":
    key = jax.random.PRNGKey(0)
    pkey, xkey = jax.random.split(key)
    params = init_params(pkey)
    x = jax.random.normal(xkey, (BATCH, NUM_HISTORY, INPUT_H, INPUT_W), jnp.float32)

    fwd = jax.jit(tapor_teacher_forward)
    outs = jax.block_until_ready(fwd(params, x))

    handpose, current_kp_feat, sp_feat, kp_feat, cam, cao, hpf = outs
    assert handpose.shape == (BATCH, 21, 3)
    assert current_kp_feat.shape == (BATCH, 1, 21, D_MODEL)
    assert sp_feat.shape == (BATCH, SP_C, SP_H, SP_W)
    assert kp_feat.shape == (BATCH, 21, D_MODEL)
    assert cam.shape == (BATCH, NHEAD, 21, SP_H * SP_W)
    assert cao.shape == (BATCH, 21, D_MODEL)
    assert hpf.shape == (BATCH, 21, D_MODEL)
    assert all(bool(jnp.all(jnp.isfinite(o))) for o in
               (handpose, current_kp_feat, sp_feat, kp_feat, cam, cao, hpf))
    print("KERNEL_OK")
</pallas_src>

<mosaic_0001>
module attributes {stable_mosaic.version = 11 : i64} {
  func.func @_enc_keypoint_kernel(%arg0: i32, %arg1: memref<1x192x9xf32, #tpu.memory_space<vmem>>, %arg2: memref<9x8xbf16, #tpu.memory_space<vmem>>, %arg3: memref<1x8xf32, #tpu.memory_space<vmem>>, %arg4: memref<9x48x192xbf16, #tpu.memory_space<vmem>>, %arg5: memref<72x16xbf16, #tpu.memory_space<vmem>>, %arg6: memref<1x16xf32, #tpu.memory_space<vmem>>, %arg7: memref<16x21xbf16, #tpu.memory_space<vmem>>, %arg8: memref<1x21xf32, #tpu.memory_space<vmem>>, %arg9: memref<21x21xf32, #tpu.memory_space<vmem>>, %arg10: memref<1x21x48xf32, #tpu.memory_space<vmem>>) attributes {dimension_semantics = [#tpu.dimension_semantics<parallel>], iteration_bounds = array<i64: 6>, scalar_prefetch = 0 : i64, scratch_operands = 0 : i64, tpu.core_type = #tpu.core_type<tc>, window_params = [{transform_indices = @transform_0, window_bounds = array<i64: 1, 192, 9>}, {pipeline_mode = #tpu.pipeline_mode<synchronous>, transform_indices = @transform_1, window_bounds = array<i64: 9, 8>}, {pipeline_mode = #tpu.pipeline_mode<synchronous>, transform_indices = @transform_2, window_bounds = array<i64: 1, 8>}, {pipeline_mode = #tpu.pipeline_mode<synchronous>, transform_indices = @transform_3, window_bounds = array<i64: 9, 48, 192>}, {pipeline_mode = #tpu.pipeline_mode<synchronous>, transform_indices = @transform_4, window_bounds = array<i64: 72, 16>}, {pipeline_mode = #tpu.pipeline_mode<synchronous>, transform_indices = @transform_5, window_bounds = array<i64: 1, 16>}, {pipeline_mode = #tpu.pipeline_mode<synchronous>, transform_indices = @transform_6, window_bounds = array<i64: 16, 21>}, {pipeline_mode = #tpu.pipeline_mode<synchronous>, transform_indices = @transform_7, window_bounds = array<i64: 1, 21>}, {pipeline_mode = #tpu.pipeline_mode<synchronous>, transform_indices = @transform_8, window_bounds = array<i64: 21, 21>}, {transform_indices = @transform_9, window_bounds = array<i64: 1, 21, 48>}]} {
    %c0 = arith.constant 0 : index
    %c0_0 = arith.constant 0 : index
    %c0_1 = arith.constant 0 : index
    %0 = vector.load %arg1[%c0, %c0_0, %c0_1] : memref<1x192x9xf32, #tpu.memory_space<vmem>>, vector<1x192x9xf32>
    %1 = vector.shape_cast %0 : vector<1x192x9xf32> to vector<192x9xf32>
    %c0_2 = arith.constant 0 : index
    %c0_3 = arith.constant 0 : index
    %2 = vector.load %arg2[%c0_2, %c0_3] : memref<9x8xbf16, #tpu.memory_space<vmem>>, vector<9x8xbf16>
    %3 = arith.truncf %1 : vector<192x9xf32> to vector<192x9xbf16>
    %cst = arith.constant dense<0.000000e+00> : vector<192x8xf32>
    %4 = tpu.matmul %3, %2, %cst {dimension_numbers = #tpu.dot_dimension_numbers<[1], [0], [0], [1], [0, 0, 1, 1], [], []>} : vector<192x9xbf16>, vector<9x8xbf16>, vector<192x8xf32> -> vector<192x8xf32>
    %c0_4 = arith.constant 0 : index
    %c0_5 = arith.constant 0 : index
    %5 = vector.load %arg3[%c0_4, %c0_5] : memref<1x8xf32, #tpu.memory_space<vmem>>, vector<1x8xf32>
    %6 = vector.broadcast %5 : vector<1x8xf32> to vector<192x8xf32>
    %7 = arith.addf %4, %6 : vector<192x8xf32>
    %cst_6 = arith.constant 0.000000e+00 : f32
    %cst_7 = arith.constant 6.000000e+00 : f32
    %8 = vector.broadcast %cst_6 : f32 to vector<192x8xf32>
    %9 = arith.maximumf %8, %7 : vector<192x8xf32>
    %10 = vector.broadcast %cst_7 : f32 to vector<192x8xf32>
    %11 = arith.minimumf %10, %9 : vector<192x8xf32>
    %12 = arith.truncf %11 : vector<192x8xf32> to vector<192x8xbf16>
    %c0_8 = arith.constant 0 : index
    %c0_9 = arith.constant 0 : index
    %c0_10 = arith.constant 0 : index
    %13 = vector.load %arg4[%c0_8, %c0_9, %c0_10] : memref<9x48x192xbf16, #tpu.memory_space<vmem>>, vector<1x48x192xbf16>
    %14 = vector.shape_cast %13 : vector<1x48x192xbf16> to vector<48x192xbf16>
    %cst_11 = arith.constant dense<0.000000e+00> : vector<48x8xf32>
    %15 = tpu.matmul %14, %12, %cst_11 {dimension_numbers = #tpu.dot_dimension_numbers<[1], [0], [0], [1], [0, 0, 1, 1], [], []>} : vector<48x192xbf16>, vector<192x8xbf16>, vector<48x8xf32> -> vector<48x8xf32>
    %c1 = arith.constant 1 : index
    %c0_12 = arith.constant 0 : index
    %c0_13 = arith.constant 0 : index
    %16 = vector.load %arg4[%c1, %c0_12, %c0_13] : memref<9x48x192xbf16, #tpu.memory_space<vmem>>, vector<1x48x192xbf16>
    %17 = vector.shape_cast %16 : vector<1x48x192xbf16> to vector<48x192xbf16>
    %cst_14 = arith.constant dense<0.000000e+00> : vector<48x8xf32>
    %18 = tpu.matmul %17, %12, %cst_14 {dimension_numbers = #tpu.dot_dimension_numbers<[1], [0], [0], [1], [0, 0, 1, 1], [], []>} : vector<48x192xbf16>, vector<192x8xbf16>, vector<48x8xf32> -> vector<48x8xf32>
    %c2 = arith.constant 2 : index
    %c0_15 = arith.constant 0 : index
    %c0_16 = arith.constant 0 : index
    %19 = vector.load %arg4[%c2, %c0_15, %c0_16] : memref<9x48x192xbf16, #tpu.memory_space<vmem>>, vector<1x48x192xbf16>
    %20 = vector.shape_cast %19 : vector<1x48x192xbf16> to vector<48x192xbf16>
    %cst_17 = arith.constant dense<0.000000e+00> : vector<48x8xf32>
    %21 = tpu.matmul %20, %12, %cst_17 {dimension_numbers = #tpu.dot_dimension_numbers<[1], [0], [0], [1], [0, 0, 1, 1], [], []>} : vector<48x192xbf16>, vector<192x8xbf16>, vector<48x8xf32> -> vector<48x8xf32>
    %c3 = arith.constant 3 : index
    %c0_18 = arith.constant 0 : index
    %c0_19 = arith.constant 0 : index
    %22 = vector.load %arg4[%c3, %c0_18, %c0_19] : memref<9x48x192xbf16, #tpu.memory_space<vmem>>, vector<1x48x192xbf16>
    %23 = vector.shape_cast %22 : vector<1x48x192xbf16> to vector<48x192xbf16>
    %cst_20 = arith.constant dense<0.000000e+00> : vector<48x8xf32>
    %24 = tpu.matmul %23, %12, %cst_20 {dimension_numbers = #tpu.dot_dimension_numbers<[1], [0], [0], [1], [0, 0, 1, 1], [], []>} : vector<48x192xbf16>, vector<192x8xbf16>, vector<48x8xf32> -> vector<48x8xf32>
    %c4 = arith.constant 4 : index
    %c0_21 = arith.constant 0 : index
    %c0_22 = arith.constant 0 : index
    %25 = vector.load %arg4[%c4, %c0_21, %c0_22] : memref<9x48x192xbf16, #tpu.memory_space<vmem>>, vector<1x48x192xbf16>
    %26 = vector.shape_cast %25 : vector<1x48x192xbf16> to vector<48x192xbf16>
    %cst_23 = arith.constant dense<0.000000e+00> : vector<48x8xf32>
    %27 = tpu.matmul %26, %12, %cst_23 {dimension_numbers = #tpu.dot_dimension_numbers<[1], [0], [0], [1], [0, 0, 1, 1], [], []>} : vector<48x192xbf16>, vector<192x8xbf16>, vector<48x8xf32> -> vector<48x8xf32>
    %c5 = arith.constant 5 : index
    %c0_24 = arith.constant 0 : index
    %c0_25 = arith.constant 0 : index
    %28 = vector.load %arg4[%c5, %c0_24, %c0_25] : memref<9x48x192xbf16, #tpu.memory_space<vmem>>, vector<1x48x192xbf16>
    %29 = vector.shape_cast %28 : vector<1x48x192xbf16> to vector<48x192xbf16>
    %cst_26 = arith.constant dense<0.000000e+00> : vector<48x8xf32>
    %30 = tpu.matmul %29, %12, %cst_26 {dimension_numbers = #tpu.dot_dimension_numbers<[1], [0], [0], [1], [0, 0, 1, 1], [], []>} : vector<48x192xbf16>, vector<192x8xbf16>, vector<48x8xf32> -> vector<48x8xf32>
    %c6 = arith.constant 6 : index
    %c0_27 = arith.constant 0 : index
    %c0_28 = arith.constant 0 : index
    %31 = vector.load %arg4[%c6, %c0_27, %c0_28] : memref<9x48x192xbf16, #tpu.memory_space<vmem>>, vector<1x48x192xbf16>
    %32 = vector.shape_cast %31 : vector<1x48x192xbf16> to vector<48x192xbf16>
    %cst_29 = arith.constant dense<0.000000e+00> : vector<48x8xf32>
    %33 = tpu.matmul %32, %12, %cst_29 {dimension_numbers = #tpu.dot_dimension_numbers<[1], [0], [0], [1], [0, 0, 1, 1], [], []>} : vector<48x192xbf16>, vector<192x8xbf16>, vector<48x8xf32> -> vector<48x8xf32>
    %c7 = arith.constant 7 : index
    %c0_30 = arith.constant 0 : index
    %c0_31 = arith.constant 0 : index
    %34 = vector.load %arg4[%c7, %c0_30, %c0_31] : memref<9x48x192xbf16, #tpu.memory_space<vmem>>, vector<1x48x192xbf16>
    %35 = vector.shape_cast %34 : vector<1x48x192xbf16> to vector<48x192xbf16>
    %cst_32 = arith.constant dense<0.000000e+00> : vector<48x8xf32>
    %36 = tpu.matmul %35, %12, %cst_32 {dimension_numbers = #tpu.dot_dimension_numbers<[1], [0], [0], [1], [0, 0, 1, 1], [], []>} : vector<48x192xbf16>, vector<192x8xbf16>, vector<48x8xf32> -> vector<48x8xf32>
    %c8 = arith.constant 8 : index
    %c0_33 = arith.constant 0 : index
    %c0_34 = arith.constant 0 : index
    %37 = vector.load %arg4[%c8, %c0_33, %c0_34] : memref<9x48x192xbf16, #tpu.memory_space<vmem>>, vector<1x48x192xbf16>
    %38 = vector.shape_cast %37 : vector<1x48x192xbf16> to vector<48x192xbf16>
    %cst_35 = arith.constant dense<0.000000e+00> : vector<48x8xf32>
    %39 = tpu.matmul %38, %12, %cst_35 {dimension_numbers = #tpu.dot_dimension_numbers<[1], [0], [0], [1], [0, 0, 1, 1], [], []>} : vector<48x192xbf16>, vector<192x8xbf16>, vector<48x8xf32> -> vector<48x8xf32>
    %40 = tpu.concatenate %15, %18, %21, %24, %27, %30, %33, %36, %39 in 1 : vector<48x8xf32>, vector<48x8xf32>, vector<48x8xf32>, vector<48x8xf32>, vector<48x8xf32>, vector<48x8xf32>, vector<48x8xf32>, vector<48x8xf32>, vector<48x8xf32> -> vector<48x72xf32>
    %c0_36 = arith.constant 0 : index
    %c0_37 = arith.constant 0 : index
    %41 = vector.load %arg5[%c0_36, %c0_37] : memref<72x16xbf16, #tpu.memory_space<vmem>>, vector<72x16xbf16>
    %42 = arith.truncf %40 : vector<48x72xf32> to vector<48x72xbf16>
    %cst_38 = arith.constant dense<0.000000e+00> : vector<48x16xf32>
    %43 = tpu.matmul %42, %41, %cst_38 {dimension_numbers = #tpu.dot_dimension_numbers<[1], [0], [0], [1], [0, 0, 1, 1], [], []>} : vector<48x72xbf16>, vector<72x16xbf16>, vector<48x16xf32> -> vector<48x16xf32>
    %c0_39 = arith.constant 0 : index
    %c0_40 = arith.constant 0 : index
    %44 = vector.load %arg6[%c0_39, %c0_40] : memref<1x16xf32, #tpu.memory_space<vmem>>, vector<1x16xf32>
    %45 = vector.broadcast %44 : vector<1x16xf32> to vector<48x16xf32>
    %46 = arith.addf %43, %45 : vector<48x16xf32>
    %cst_41 = arith.constant 0.000000e+00 : f32
    %cst_42 = arith.constant 6.000000e+00 : f32
    %47 = vector.broadcast %cst_41 : f32 to vector<48x16xf32>
    %48 = arith.maximumf %47, %46 : vector<48x16xf32>
    %49 = vector.broadcast %cst_42 : f32 to vector<48x16xf32>
    %50 = arith.minimumf %49, %48 : vector<48x16xf32>
    %c0_43 = arith.constant 0 : index
    %c0_44 = arith.constant 0 : index
    %51 = vector.load %arg7[%c0_43, %c0_44] : memref<16x21xbf16, #tpu.memory_space<vmem>>, vector<16x21xbf16>
    %52 = arith.truncf %50 : vector<48x16xf32> to vector<48x16xbf16>
    %cst_45 = arith.constant dense<0.000000e+00> : vector<48x21xf32>
    %53 = tpu.matmul %52, %51, %cst_45 {dimension_numbers = #tpu.dot_dimension_numbers<[1], [0], [0], [1], [0, 0, 1, 1], [], []>} : vector<48x16xbf16>, vector<16x21xbf16>, vector<48x21xf32> -> vector<48x21xf32>
    %c0_46 = arith.constant 0 : index
    %c0_47 = arith.constant 0 : index
    %54 = vector.load %arg8[%c0_46, %c0_47] : memref<1x21xf32, #tpu.memory_space<vmem>>, vector<1x21xf32>
    %55 = vector.broadcast %54 : vector<1x21xf32> to vector<48x21xf32>
    %56 = arith.addf %53, %55 : vector<48x21xf32>
    %cst_48 = arith.constant 0.000000e+00 : f32
    %cst_49 = arith.constant 6.000000e+00 : f32
    %57 = vector.broadcast %cst_48 : f32 to vector<48x21xf32>
    %58 = arith.maximumf %57, %56 : vector<48x21xf32>
    %59 = vector.broadcast %cst_49 : f32 to vector<48x21xf32>
    %60 = arith.minimumf %59, %58 : vector<48x21xf32>
    %c0_50 = arith.constant 0 : index
    %c0_51 = arith.constant 0 : index
    %61 = vector.load %arg9[%c0_50, %c0_51] : memref<21x21xf32, #tpu.memory_space<vmem>>, vector<21x21xf32>
    %62 = arith.truncf %61 : vector<21x21xf32> to vector<21x21xbf16>
    %63 = arith.truncf %60 : vector<48x21xf32> to vector<48x21xbf16>
    %cst_52 = arith.constant dense<0.000000e+00> : vector<21x48xf32>
    %64 = tpu.matmul %62, %63, %cst_52 {dimension_numbers = #tpu.dot_dimension_numbers<[1], [1], [0], [0], [0, 0, 1, 0], [], []>} : vector<21x21xbf16>, vector<48x21xbf16>, vector<21x48xf32> -> vector<21x48xf32>
    %c0_53 = arith.constant 0 : index
    %c0_54 = arith.constant 0 : index
    %c0_55 = arith.constant 0 : index
    %65 = vector.load %arg10[%c0_53, %c0_54, %c0_55] : memref<1x21x48xf32, #tpu.memory_space<vmem>>, vector<1x21x48xf32>
    %66 = vector.shape_cast %65 : vector<1x21x48xf32> to vector<21x48xf32>
    %67 = vector.shape_cast %64 : vector<21x48xf32> to vector<1x21x48xf32>
    tpu.vector_store %arg10[%c0_53, %c0_54, %c0_55], %67 {strides = array<i32>} : memref<1x21x48xf32, #tpu.memory_space<vmem>>, vector<1x21x48xf32>,
    return
  }
  func.func @transform_0(%arg0: i32) -> (i32, i32, i32) {
    %c0_i32 = arith.constant 0 : i32
    %c0_i32_0 = arith.constant 0 : i32
    %c0_i32_1 = arith.constant 0 : i32
    return %arg0, %c0_i32, %c0_i32_0 : i32, i32, i32
  }
  func.func @transform_1(%arg0: i32) -> (i32, i32) {
    %c0_i32 = arith.constant 0 : i32
    %c0_i32_0 = arith.constant 0 : i32
    %c0_i32_1 = arith.constant 0 : i32
    return %c0_i32, %c0_i32_0 : i32, i32
  }
  func.func @transform_2(%arg0: i32) -> (i32, i32) {
    %c0_i32 = arith.constant 0 : i32
    %c0_i32_0 = arith.constant 0 : i32
    %c0_i32_1 = arith.constant 0 : i32
    return %c0_i32, %c0_i32_0 : i32, i32
  }
  func.func @transform_3(%arg0: i32) -> (i32, i32, i32) {
    %c0_i32 = arith.constant 0 : i32
    %c0_i32_0 = arith.constant 0 : i32
    %c0_i32_1 = arith.constant 0 : i32
    %c0_i32_2 = arith.constant 0 : i32
    return %c0_i32, %c0_i32_0, %c0_i32_1 : i32, i32, i32
  }
  func.func @transform_4(%arg0: i32) -> (i32, i32) {
    %c0_i32 = arith.constant 0 : i32
    %c0_i32_0 = arith.constant 0 : i32
    %c0_i32_1 = arith.constant 0 : i32
    return %c0_i32, %c0_i32_0 : i32, i32
  }
  func.func @transform_5(%arg0: i32) -> (i32, i32) {
    %c0_i32 = arith.constant 0 : i32
    %c0_i32_0 = arith.constant 0 : i32
    %c0_i32_1 = arith.constant 0 : i32
    return %c0_i32, %c0_i32_0 : i32, i32
  }
  func.func @transform_6(%arg0: i32) -> (i32, i32) {
    %c0_i32 = arith.constant 0 : i32
    %c0_i32_0 = arith.constant 0 : i32
    %c0_i32_1 = arith.constant 0 : i32
    return %c0_i32, %c0_i32_0 : i32, i32
  }
  func.func @transform_7(%arg0: i32) -> (i32, i32) {
    %c0_i32 = arith.constant 0 : i32
    %c0_i32_0 = arith.constant 0 : i32
    %c0_i32_1 = arith.constant 0 : i32
    return %c0_i32, %c0_i32_0 : i32, i32
  }
  func.func @transform_8(%arg0: i32) -> (i32, i32) {
    %c0_i32 = arith.constant 0 : i32
    %c0_i32_0 = arith.constant 0 : i32
    %c0_i32_1 = arith.constant 0 : i32
    return %c0_i32, %c0_i32_0 : i32, i32
  }
  func.func @transform_9(%arg0: i32) -> (i32, i32, i32) {
    %c0_i32 = arith.constant 0 : i32
    %c0_i32_0 = arith.constant 0 : i32
    %c0_i32_1 = arith.constant 0 : i32
    return %arg0, %c0_i32, %c0_i32_0 : i32, i32, i32
  }
}

module attributes {stable_mosaic.version = 11 : i64} {
  func.func @_enc_spatial_kernel(%arg0: i32, %arg1: memref<1x192x9xf32, #tpu.memory_space<vmem>>, %arg2: memref<9x8xbf16, #tpu.memory_space<vmem>>, %arg3: memref<1x8xf32, #tpu.memory_space<vmem>>, %arg4: memref<9x48x192xbf16, #tpu.memory_space<vmem>>, %arg5: memref<72x16xbf16, #tpu.memory_space<vmem>>, %arg6: memref<1x16xf32, #tpu.memory_space<vmem>>, %arg7: memref<16x32xbf16, #tpu.memory_space<vmem>>, %arg8: memref<1x32xf32, #tpu.memory_space<vmem>>, %arg9: memref<1x48x32xf32, #tpu.memory_space<vmem>>) attributes {dimension_semantics = [#tpu.dimension_semantics<parallel>], iteration_bounds = array<i64: 2>, scalar_prefetch = 0 : i64, scratch_operands = 0 : i64, tpu.core_type = #tpu.core_type<tc>, window_params = [{transform_indices = @transform_0, window_bounds = array<i64: 1, 192, 9>}, {pipeline_mode = #tpu.pipeline_mode<synchronous>, transform_indices = @transform_1, window_bounds = array<i64: 9, 8>}, {pipeline_mode = #tpu.pipeline_mode<synchronous>, transform_indices = @transform_2, window_bounds = array<i64: 1, 8>}, {pipeline_mode = #tpu.pipeline_mode<synchronous>, transform_indices = @transform_3, window_bounds = array<i64: 9, 48, 192>}, {pipeline_mode = #tpu.pipeline_mode<synchronous>, transform_indices = @transform_4, window_bounds = array<i64: 72, 16>}, {pipeline_mode = #tpu.pipeline_mode<synchronous>, transform_indices = @transform_5, window_bounds = array<i64: 1, 16>}, {pipeline_mode = #tpu.pipeline_mode<synchronous>, transform_indices = @transform_6, window_bounds = array<i64: 16, 32>}, {pipeline_mode = #tpu.pipeline_mode<synchronous>, transform_indices = @transform_7, window_bounds = array<i64: 1, 32>}, {transform_indices = @transform_8, window_bounds = array<i64: 1, 48, 32>}]} {
    %c0 = arith.constant 0 : index
    %c0_0 = arith.constant 0 : index
    %c0_1 = arith.constant 0 : index
    %0 = vector.load %arg1[%c0, %c0_0, %c0_1] : memref<1x192x9xf32, #tpu.memory_space<vmem>>, vector<1x192x9xf32>
    %1 = vector.shape_cast %0 : vector<1x192x9xf32> to vector<192x9xf32>
    %c0_2 = arith.constant 0 : index
    %c0_3 = arith.constant 0 : index
    %2 = vector.load %arg2[%c0_2, %c0_3] : memref<9x8xbf16, #tpu.memory_space<vmem>>, vector<9x8xbf16>
    %3 = arith.truncf %1 : vector<192x9xf32> to vector<192x9xbf16>
    %cst = arith.constant dense<0.000000e+00> : vector<192x8xf32>
    %4 = tpu.matmul %3, %2, %cst {dimension_numbers = #tpu.dot_dimension_numbers<[1], [0], [0], [1], [0, 0, 1, 1], [], []>} : vector<192x9xbf16>, vector<9x8xbf16>, vector<192x8xf32> -> vector<192x8xf32>
    %c0_4 = arith.constant 0 : index
    %c0_5 = arith.constant 0 : index
    %5 = vector.load %arg3[%c0_4, %c0_5] : memref<1x8xf32, #tpu.memory_space<vmem>>, vector<1x8xf32>
    %6 = vector.broadcast %5 : vector<1x8xf32> to vector<192x8xf32>
    %7 = arith.addf %4, %6 : vector<192x8xf32>
    %cst_6 = arith.constant 0.000000e+00 : f32
    %cst_7 = arith.constant 6.000000e+00 : f32
    %8 = vector.broadcast %cst_6 : f32 to vector<192x8xf32>
    %9 = arith.maximumf %8, %7 : vector<192x8xf32>
    %10 = vector.broadcast %cst_7 : f32 to vector<192x8xf32>
    %11 = arith.minimumf %10, %9 : vector<192x8xf32>
    %12 = arith.truncf %11 : vector<192x8xf32> to vector<192x8xbf16>
    %c0_8 = arith.constant 0 : index
    %c0_9 = arith.constant 0 : index
    %c0_10 = arith.constant 0 : index
    %13 = vector.load %arg4[%c0_8, %c0_9, %c0_10] : memref<9x48x192xbf16, #tpu.memory_space<vmem>>, vector<1x48x192xbf16>
    %14 = vector.shape_cast %13 : vector<1x48x192xbf16> to vector<48x192xbf16>
    %cst_11 = arith.constant dense<0.000000e+00> : vector<48x8xf32>
    %15 = tpu.matmul %14, %12, %cst_11 {dimension_numbers = #tpu.dot_dimension_numbers<[1], [0], [0], [1], [0, 0, 1, 1], [], []>} : vector<48x192xbf16>, vector<192x8xbf16>, vector<48x8xf32> -> vector<48x8xf32>
    %c1 = arith.constant 1 : index
    %c0_12 = arith.constant 0 : index
    %c0_13 = arith.constant 0 : index
    %16 = vector.load %arg4[%c1, %c0_12, %c0_13] : memref<9x48x192xbf16, #tpu.memory_space<vmem>>, vector<1x48x192xbf16>
    %17 = vector.shape_cast %16 : vector<1x48x192xbf16> to vector<48x192xbf16>
    %cst_14 = arith.constant dense<0.000000e+00> : vector<48x8xf32>
    %18 = tpu.matmul %17, %12, %cst_14 {dimension_numbers = #tpu.dot_dimension_numbers<[1], [0], [0], [1], [0, 0, 1, 1], [], []>} : vector<48x192xbf16>, vector<192x8xbf16>, vector<48x8xf32> -> vector<48x8xf32>
    %c2 = arith.constant 2 : index
    %c0_15 = arith.constant 0 : index
    %c0_16 = arith.constant 0 : index
    %19 = vector.load %arg4[%c2, %c0_15, %c0_16] : memref<9x48x192xbf16, #tpu.memory_space<vmem>>, vector<1x48x192xbf16>
    %20 = vector.shape_cast %19 : vector<1x48x192xbf16> to vector<48x192xbf16>
    %cst_17 = arith.constant dense<0.000000e+00> : vector<48x8xf32>
    %21 = tpu.matmul %20, %12, %cst_17 {dimension_numbers = #tpu.dot_dimension_numbers<[1], [0], [0], [1], [0, 0, 1, 1], [], []>} : vector<48x192xbf16>, vector<192x8xbf16>, vector<48x8xf32> -> vector<48x8xf32>
    %c3 = arith.constant 3 : index
    %c0_18 = arith.constant 0 : index
    %c0_19 = arith.constant 0 : index
    %22 = vector.load %arg4[%c3, %c0_18, %c0_19] : memref<9x48x192xbf16, #tpu.memory_space<vmem>>, vector<1x48x192xbf16>
    %23 = vector.shape_cast %22 : vector<1x48x192xbf16> to vector<48x192xbf16>
    %cst_20 = arith.constant dense<0.000000e+00> : vector<48x8xf32>
    %24 = tpu.matmul %23, %12, %cst_20 {dimension_numbers = #tpu.dot_dimension_numbers<[1], [0], [0], [1], [0, 0, 1, 1], [], []>} : vector<48x192xbf16>, vector<192x8xbf16>, vector<48x8xf32> -> vector<48x8xf32>
    %c4 = arith.constant 4 : index
    %c0_21 = arith.constant 0 : index
    %c0_22 = arith.constant 0 : index
    %25 = vector.load %arg4[%c4, %c0_21, %c0_22] : memref<9x48x192xbf16, #tpu.memory_space<vmem>>, vector<1x48x192xbf16>
    %26 = vector.shape_cast %25 : vector<1x48x192xbf16> to vector<48x192xbf16>
    %cst_23 = arith.constant dense<0.000000e+00> : vector<48x8xf32>
    %27 = tpu.matmul %26, %12, %cst_23 {dimension_numbers = #tpu.dot_dimension_numbers<[1], [0], [0], [1], [0, 0, 1, 1], [], []>} : vector<48x192xbf16>, vector<192x8xbf16>, vector<48x8xf32> -> vector<48x8xf32>
    %c5 = arith.constant 5 : index
    %c0_24 = arith.constant 0 : index
    %c0_25 = arith.constant 0 : index
    %28 = vector.load %arg4[%c5, %c0_24, %c0_25] : memref<9x48x192xbf16, #tpu.memory_space<vmem>>, vector<1x48x192xbf16>
    %29 = vector.shape_cast %28 : vector<1x48x192xbf16> to vector<48x192xbf16>
    %cst_26 = arith.constant dense<0.000000e+00> : vector<48x8xf32>
    %30 = tpu.matmul %29, %12, %cst_26 {dimension_numbers = #tpu.dot_dimension_numbers<[1], [0], [0], [1], [0, 0, 1, 1], [], []>} : vector<48x192xbf16>, vector<192x8xbf16>, vector<48x8xf32> -> vector<48x8xf32>
    %c6 = arith.constant 6 : index
    %c0_27 = arith.constant 0 : index
    %c0_28 = arith.constant 0 : index
    %31 = vector.load %arg4[%c6, %c0_27, %c0_28] : memref<9x48x192xbf16, #tpu.memory_space<vmem>>, vector<1x48x192xbf16>
    %32 = vector.shape_cast %31 : vector<1x48x192xbf16> to vector<48x192xbf16>
    %cst_29 = arith.constant dense<0.000000e+00> : vector<48x8xf32>
    %33 = tpu.matmul %32, %12, %cst_29 {dimension_numbers = #tpu.dot_dimension_numbers<[1], [0], [0], [1], [0, 0, 1, 1], [], []>} : vector<48x192xbf16>, vector<192x8xbf16>, vector<48x8xf32> -> vector<48x8xf32>
    %c7 = arith.constant 7 : index
    %c0_30 = arith.constant 0 : index
    %c0_31 = arith.constant 0 : index
    %34 = vector.load %arg4[%c7, %c0_30, %c0_31] : memref<9x48x192xbf16, #tpu.memory_space<vmem>>, vector<1x48x192xbf16>
    %35 = vector.shape_cast %34 : vector<1x48x192xbf16> to vector<48x192xbf16>
    %cst_32 = arith.constant dense<0.000000e+00> : vector<48x8xf32>
    %36 = tpu.matmul %35, %12, %cst_32 {dimension_numbers = #tpu.dot_dimension_numbers<[1], [0], [0], [1], [0, 0, 1, 1], [], []>} : vector<48x192xbf16>, vector<192x8xbf16>, vector<48x8xf32> -> vector<48x8xf32>
    %c8 = arith.constant 8 : index
    %c0_33 = arith.constant 0 : index
    %c0_34 = arith.constant 0 : index
    %37 = vector.load %arg4[%c8, %c0_33, %c0_34] : memref<9x48x192xbf16, #tpu.memory_space<vmem>>, vector<1x48x192xbf16>
    %38 = vector.shape_cast %37 : vector<1x48x192xbf16> to vector<48x192xbf16>
    %cst_35 = arith.constant dense<0.000000e+00> : vector<48x8xf32>
    %39 = tpu.matmul %38, %12, %cst_35 {dimension_numbers = #tpu.dot_dimension_numbers<[1], [0], [0], [1], [0, 0, 1, 1], [], []>} : vector<48x192xbf16>, vector<192x8xbf16>, vector<48x8xf32> -> vector<48x8xf32>
    %40 = tpu.concatenate %15, %18, %21, %24, %27, %30, %33, %36, %39 in 1 : vector<48x8xf32>, vector<48x8xf32>, vector<48x8xf32>, vector<48x8xf32>, vector<48x8xf32>, vector<48x8xf32>, vector<48x8xf32>, vector<48x8xf32>, vector<48x8xf32> -> vector<48x72xf32>
    %c0_36 = arith.constant 0 : index
    %c0_37 = arith.constant 0 : index
    %41 = vector.load %arg5[%c0_36, %c0_37] : memref<72x16xbf16, #tpu.memory_space<vmem>>, vector<72x16xbf16>
    %42 = arith.truncf %40 : vector<48x72xf32> to vector<48x72xbf16>
    %cst_38 = arith.constant dense<0.000000e+00> : vector<48x16xf32>
    %43 = tpu.matmul %42, %41, %cst_38 {dimension_numbers = #tpu.dot_dimension_numbers<[1], [0], [0], [1], [0, 0, 1, 1], [], []>} : vector<48x72xbf16>, vector<72x16xbf16>, vector<48x16xf32> -> vector<48x16xf32>
    %c0_39 = arith.constant 0 : index
    %c0_40 = arith.constant 0 : index
    %44 = vector.load %arg6[%c0_39, %c0_40] : memref<1x16xf32, #tpu.memory_space<vmem>>, vector<1x16xf32>
    %45 = vector.broadcast %44 : vector<1x16xf32> to vector<48x16xf32>
    %46 = arith.addf %43, %45 : vector<48x16xf32>
    %cst_41 = arith.constant 0.000000e+00 : f32
    %cst_42 = arith.constant 6.000000e+00 : f32
    %47 = vector.broadcast %cst_41 : f32 to vector<48x16xf32>
    %48 = arith.maximumf %47, %46 : vector<48x16xf32>
    %49 = vector.broadcast %cst_42 : f32 to vector<48x16xf32>
    %50 = arith.minimumf %49, %48 : vector<48x16xf32>
    %c0_43 = arith.constant 0 : index
    %c0_44 = arith.constant 0 : index
    %51 = vector.load %arg7[%c0_43, %c0_44] : memref<16x32xbf16, #tpu.memory_space<vmem>>, vector<16x32xbf16>
    %52 = arith.truncf %50 : vector<48x16xf32> to vector<48x16xbf16>
    %cst_45 = arith.constant dense<0.000000e+00> : vector<48x32xf32>
    %53 = tpu.matmul %52, %51, %cst_45 {dimension_numbers = #tpu.dot_dimension_numbers<[1], [0], [0], [1], [0, 0, 1, 1], [], []>} : vector<48x16xbf16>, vector<16x32xbf16>, vector<48x32xf32> -> vector<48x32xf32>
    %c0_46 = arith.constant 0 : index
    %c0_47 = arith.constant 0 : index
    %54 = vector.load %arg8[%c0_46, %c0_47] : memref<1x32xf32, #tpu.memory_space<vmem>>, vector<1x32xf32>
    %55 = vector.broadcast %54 : vector<1x32xf32> to vector<48x32xf32>
    %56 = arith.addf %53, %55 : vector<48x32xf32>
    %cst_48 = arith.constant 0.000000e+00 : f32
    %cst_49 = arith.constant 6.000000e+00 : f32
    %57 = vector.broadcast %cst_48 : f32 to vector<48x32xf32>
    %58 = arith.maximumf %57, %56 : vector<48x32xf32>
    %59 = vector.broadcast %cst_49 : f32 to vector<48x32xf32>
    %60 = arith.minimumf %59, %58 : vector<48x32xf32>
    %c0_50 = arith.constant 0 : index
    %c0_51 = arith.constant 0 : index
    %c0_52 = arith.constant 0 : index
    %61 = vector.load %arg9[%c0_50, %c0_51, %c0_52] : memref<1x48x32xf32, #tpu.memory_space<vmem>>, vector<1x48x32xf32>
    %62 = vector.shape_cast %61 : vector<1x48x32xf32> to vector<48x32xf32>
    %63 = vector.shape_cast %60 : vector<48x32xf32> to vector<1x48x32xf32>
    tpu.vector_store %arg9[%c0_50, %c0_51, %c0_52], %63 {strides = array<i32>} : memref<1x48x32xf32, #tpu.memory_space<vmem>>, vector<1x48x32xf32>,
    return
  }
  func.func @transform_0(%arg0: i32) -> (i32, i32, i32) {
    %c0_i32 = arith.constant 0 : i32
    %c0_i32_0 = arith.constant 0 : i32
    %c0_i32_1 = arith.constant 0 : i32
    return %arg0, %c0_i32, %c0_i32_0 : i32, i32, i32
  }
  func.func @transform_1(%arg0: i32) -> (i32, i32) {
    %c0_i32 = arith.constant 0 : i32
    %c0_i32_0 = arith.constant 0 : i32
    %c0_i32_1 = arith.constant 0 : i32
    return %c0_i32, %c0_i32_0 : i32, i32
  }
  func.func @transform_2(%arg0: i32) -> (i32, i32) {
    %c0_i32 = arith.constant 0 : i32
    %c0_i32_0 = arith.constant 0 : i32
    %c0_i32_1 = arith.constant 0 : i32
    return %c0_i32, %c0_i32_0 : i32, i32
  }
  func.func @transform_3(%arg0: i32) -> (i32, i32, i32) {
    %c0_i32 = arith.constant 0 : i32
    %c0_i32_0 = arith.constant 0 : i32
    %c0_i32_1 = arith.constant 0 : i32
    %c0_i32_2 = arith.constant 0 : i32
    return %c0_i32, %c0_i32_0, %c0_i32_1 : i32, i32, i32
  }
  func.func @transform_4(%arg0: i32) -> (i32, i32) {
    %c0_i32 = arith.constant 0 : i32
    %c0_i32_0 = arith.constant 0 : i32
    %c0_i32_1 = arith.constant 0 : i32
    return %c0_i32, %c0_i32_0 : i32, i32
  }
  func.func @transform_5(%arg0: i32) -> (i32, i32) {
    %c0_i32 = arith.constant 0 : i32
    %c0_i32_0 = arith.constant 0 : i32
    %c0_i32_1 = arith.constant 0 : i32
    return %c0_i32, %c0_i32_0 : i32, i32
  }
  func.func @transform_6(%arg0: i32) -> (i32, i32) {
    %c0_i32 = arith.constant 0 : i32
    %c0_i32_0 = arith.constant 0 : i32
    %c0_i32_1 = arith.constant 0 : i32
    return %c0_i32, %c0_i32_0 : i32, i32
  }
  func.func @transform_7(%arg0: i32) -> (i32, i32) {
    %c0_i32 = arith.constant 0 : i32
    %c0_i32_0 = arith.constant 0 : i32
    %c0_i32_1 = arith.constant 0 : i32
    return %c0_i32, %c0_i32_0 : i32, i32
  }
  func.func @transform_8(%arg0: i32) -> (i32, i32, i32) {
    %c0_i32 = arith.constant 0 : i32
    %c0_i32_0 = arith.constant 0 : i32
    %c0_i32_1 = arith.constant 0 : i32
    return %arg0, %c0_i32, %c0_i32_0 : i32, i32, i32
  }
}

module attributes {stable_mosaic.version = 11 : i64} {
  func.func @_handpose_stack_kernel(%arg0: i32, %arg1: memref<1x21x48xf32, #tpu.memory_space<vmem>>, %arg2: memref<1x48x32xf32, #tpu.memory_space<vmem>>, %arg3: memref<48x48xbf16, #tpu.memory_space<vmem>>, %arg4: memref<1x48xf32, #tpu.memory_space<vmem>>, %arg5: memref<48x144xbf16, #tpu.memory_space<vmem>>, %arg6: memref<1x144xf32, #tpu.memory_space<vmem>>, %arg7: memref<48x48xbf16, #tpu.memory_space<vmem>>, %arg8: memref<1x48xf32, #tpu.memory_space<vmem>>, %arg9: memref<1x48xf32, #tpu.memory_space<vmem>>, %arg10: memref<1x48xf32, #tpu.memory_space<vmem>>, %arg11: memref<48x48xbf16, #tpu.memory_space<vmem>>, %arg12: memref<1x48xf32, #tpu.memory_space<vmem>>, %arg13: memref<32x96xbf16, #tpu.memory_space<vmem>>, %arg14: memref<1x96xf32, #tpu.memory_space<vmem>>, %arg15: memref<48x48xbf16, #tpu.memory_space<vmem>>, %arg16: memref<1x48xf32, #tpu.memory_space<vmem>>, %arg17: memref<1x48xf32, #tpu.memory_space<vmem>>, %arg18: memref<1x48xf32, #tpu.memory_space<vmem>>, %arg19: memref<48x64xbf16, #tpu.memory_space<vmem>>, %arg20: memref<1x64xf32, #tpu.memory_space<vmem>>, %arg21: memref<64x48xbf16, #tpu.memory_space<vmem>>, %arg22: memref<1x48xf32, #tpu.memory_space<vmem>>, %arg23: memref<1x48xf32, #tpu.memory_space<vmem>>, %arg24: memref<1x48xf32, #tpu.memory_space<vmem>>, %arg25: memref<48x24xbf16, #tpu.memory_space<vmem>>, %arg26: memref<1x24xf32, #tpu.memory_space<vmem>>, %arg27: memref<24x3xbf16, #tpu.memory_space<vmem>>, %arg28: memref<1x3xf32, #tpu.memory_space<vmem>>, %arg29: memref<1x21x48xf32, #tpu.memory_space<vmem>>, %arg30: memref<1x21x48xf32, #tpu.memory_space<vmem>>, %arg31: memref<1x21x48xf32, #tpu.memory_space<vmem>>, %arg32: memref<1x4x21x48xf32, #tpu.memory_space<vmem>>, %arg33: memref<1x21x3xf32, #tpu.memory_space<vmem>>) attributes {dimension_semantics = [#tpu.dimension_semantics<parallel>], iteration_bounds = array<i64: 2>, scalar_prefetch = 0 : i64, scratch_operands = 0 : i64, tpu.core_type = #tpu.core_type<tc>, window_params = [{transform_indices = @transform_0, window_bounds = array<i64: 1, 21, 48>}, {transform_indices = @transform_1, window_bounds = array<i64: 1, 48, 32>}, {pipeline_mode = #tpu.pipeline_mode<synchronous>, transform_indices = @transform_2, window_bounds = array<i64: 48, 48>}, {pipeline_mode = #tpu.pipeline_mode<synchronous>, transform_indices = @transform_3, window_bounds = array<i64: 1, 48>}, {pipeline_mode = #tpu.pipeline_mode<synchronous>, transform_indices = @transform_4, window_bounds = array<i64: 48, 144>}, {pipeline_mode = #tpu.pipeline_mode<synchronous>, transform_indices = @transform_5, window_bounds = array<i64: 1, 144>}, {pipeline_mode = #tpu.pipeline_mode<synchronous>, transform_indices = @transform_6, window_bounds = array<i64: 48, 48>}, {pipeline_mode = #tpu.pipeline_mode<synchronous>, transform_indices = @transform_7, window_bounds = array<i64: 1, 48>}, {pipeline_mode = #tpu.pipeline_mode<synchronous>, transform_indices = @transform_8, window_bounds = array<i64: 1, 48>}, {pipeline_mode = #tpu.pipeline_mode<synchronous>, transform_indices = @transform_9, window_bounds = array<i64: 1, 48>}, {pipeline_mode = #tpu.pipeline_mode<synchronous>, transform_indices = @transform_10, window_bounds = array<i64: 48, 48>}, {pipeline_mode = #tpu.pipeline_mode<synchronous>, transform_indices = @transform_11, window_bounds = array<i64: 1, 48>}, {pipeline_mode = #tpu.pipeline_mode<synchronous>, transform_indices = @transform_12, window_bounds = array<i64: 32, 96>}, {pipeline_mode = #tpu.pipeline_mode<synchronous>, transform_indices = @transform_13, window_bounds = array<i64: 1, 96>}, {pipeline_mode = #tpu.pipeline_mode<synchronous>, transform_indices = @transform_14, window_bounds = array<i64: 48, 48>}, {pipeline_mode = #tpu.pipeline_mode<synchronous>, transform_indices = @transform_15, window_bounds = array<i64: 1, 48>}, {pipeline_mode = #tpu.pipeline_mode<synchronous>, transform_indices = @transform_16, window_bounds = array<i64: 1, 48>}, {pipeline_mode = #tpu.pipeline_mode<synchronous>, transform_indices = @transform_17, window_bounds = array<i64: 1, 48>}, {pipeline_mode = #tpu.pipeline_mode<synchronous>, transform_indices = @transform_18, window_bounds = array<i64: 48, 64>}, {pipeline_mode = #tpu.pipeline_mode<synchronous>, transform_indices = @transform_19, window_bounds = array<i64: 1, 64>}, {pipeline_mode = #tpu.pipeline_mode<synchronous>, transform_indices = @transform_20, window_bounds = array<i64: 64, 48>}, {pipeline_mode = #tpu.pipeline_mode<synchronous>, transform_indices = @transform_21, window_bounds = array<i64: 1, 48>}, {pipeline_mode = #tpu.pipeline_mode<synchronous>, transform_indices = @transform_22, window_bounds = array<i64: 1, 48>}, {pipeline_mode = #tpu.pipeline_mode<synchronous>, transform_indices = @transform_23, window_bounds = array<i64: 1, 48>}, {pipeline_mode = #tpu.pipeline_mode<synchronous>, transform_indices = @transform_24, window_bounds = array<i64: 48, 24>}, {pipeline_mode = #tpu.pipeline_mode<synchronous>, transform_indices = @transform_25, window_bounds = array<i64: 1, 24>}, {pipeline_mode = #tpu.pipeline_mode<synchronous>, transform_indices = @transform_26, window_bounds = array<i64: 24, 3>}, {pipeline_mode = #tpu.pipeline_mode<synchronous>, transform_indices = @transform_27, window_bounds = array<i64: 1, 3>}, {transform_indices = @transform_28, window_bounds = array<i64: 1, 21, 48>}, {transform_indices = @transform_29, window_bounds = array<i64: 1, 21, 48>}, {transform_indices = @transform_30, window_bounds = array<i64: 1, 21, 48>}, {transform_indices = @transform_31, window_bounds = array<i64: 1, 4, 21, 48>}, {transform_indices = @transform_32, window_bounds = array<i64: 1, 21, 3>}]} {
    %c0 = arith.constant 0 : index
    %c0_0 = arith.constant 0 : index
    %c0_1 = arith.constant 0 : index
    %0 = vector.load %arg1[%c0, %c0_0, %c0_1] : memref<1x21x48xf32, #tpu.memory_space<vmem>>, vector<1x21x48xf32>
    %1 = vector.shape_cast %0 : vector<1x21x48xf32> to vector<21x48xf32>
    %c0_2 = arith.constant 0 : index
    %c0_3 = arith.constant 0 : index
    %2 = vector.load %arg3[%c0_2, %c0_3] : memref<48x48xbf16, #tpu.memory_space<vmem>>, vector<48x48xbf16>
    %3 = arith.truncf %1 : vector<21x48xf32> to vector<21x48xbf16>
    %cst = arith.constant dense<0.000000e+00> : vector<21x48xf32>
    %4 = tpu.matmul %3, %2, %cst {dimension_numbers = #tpu.dot_dimension_numbers<[1], [0], [0], [1], [0, 0, 1, 1], [], []>} : vector<21x48xbf16>, vector<48x48xbf16>, vector<21x48xf32> -> vector<21x48xf32>
    %c0_4 = arith.constant 0 : index
    %c0_5 = arith.constant 0 : index
    %5 = vector.load %arg4[%c0_4, %c0_5] : memref<1x48xf32, #tpu.memory_space<vmem>>, vector<1x48xf32>
    %6 = vector.broadcast %5 : vector<1x48xf32> to vector<21x48xf32>
    %7 = arith.addf %4, %6 : vector<21x48xf32>
    %cst_6 = arith.constant 0.000000e+00 : f32
    %8 = vector.broadcast %cst_6 : f32 to vector<21x48xf32>
    %9 = arith.maximumf %7, %8 : vector<21x48xf32>
    %10 = arith.addf %1, %9 : vector<21x48xf32>
    %c0_7 = arith.constant 0 : index
    %c0_8 = arith.constant 0 : index
    %c0_9 = arith.constant 0 : index
    %11 = vector.load %arg29[%c0_7, %c0_8, %c0_9] : memref<1x21x48xf32, #tpu.memory_space<vmem>>, vector<1x21x48xf32>
    %12 = vector.shape_cast %11 : vector<1x21x48xf32> to vector<21x48xf32>
    %13 = vector.shape_cast %10 : vector<21x48xf32> to vector<1x21x48xf32>
    tpu.vector_store %arg29[%c0_7, %c0_8, %c0_9], %13 {strides = array<i32>} : memref<1x21x48xf32, #tpu.memory_space<vmem>>, vector<1x21x48xf32>,
    %c0_10 = arith.constant 0 : index
    %c0_11 = arith.constant 0 : index
    %c0_12 = arith.constant 0 : index
    %14 = vector.load %arg2[%c0_10, %c0_11, %c0_12] : memref<1x48x32xf32, #tpu.memory_space<vmem>>, vector<1x48x32xf32>
    %15 = vector.shape_cast %14 : vector<1x48x32xf32> to vector<48x32xf32>
    %c0_13 = arith.constant 0 : index
    %c0_14 = arith.constant 0 : index
    %16 = vector.load %arg5[%c0_13, %c0_14] : memref<48x144xbf16, #tpu.memory_space<vmem>>, vector<48x144xbf16>
    %17 = arith.truncf %10 : vector<21x48xf32> to vector<21x48xbf16>
    %cst_15 = arith.constant dense<0.000000e+00> : vector<21x144xf32>
    %18 = tpu.matmul %17, %16, %cst_15 {dimension_numbers = #tpu.dot_dimension_numbers<[1], [0], [0], [1], [0, 0, 1, 1], [], []>} : vector<21x48xbf16>, vector<48x144xbf16>, vector<21x144xf32> -> vector<21x144xf32>
    %c0_16 = arith.constant 0 : index
    %c0_17 = arith.constant 0 : index
    %19 = vector.load %arg6[%c0_16, %c0_17] : memref<1x144xf32, #tpu.memory_space<vmem>>, vector<1x144xf32>
    %20 = vector.broadcast %19 : vector<1x144xf32> to vector<21x144xf32>
    %21 = arith.addf %18, %20 : vector<21x144xf32>
    %22 = vector.extract_strided_slice %21 {offsets = [0, 0], sizes = [21, 48], strides = [1, 1]} : vector<21x144xf32> to vector<21x48xf32>
    %23 = vector.extract_strided_slice %21 {offsets = [0, 48], sizes = [21, 48], strides = [1, 1]} : vector<21x144xf32> to vector<21x48xf32>
    %24 = vector.extract_strided_slice %21 {offsets = [0, 96], sizes = [21, 48], strides = [1, 1]} : vector<21x144xf32> to vector<21x48xf32>
    %25 = vector.extract_strided_slice %22 {offsets = [0, 0], sizes = [21, 12], strides = [1, 1]} : vector<21x48xf32> to vector<21x12xf32>
    %26 = vector.extract_strided_slice %23 {offsets = [0, 0], sizes = [21, 12], strides = [1, 1]} : vector<21x48xf32> to vector<21x12xf32>
    %27 = arith.truncf %25 : vector<21x12xf32> to vector<21x12xbf16>
    %28 = arith.truncf %26 : vector<21x12xf32> to vector<21x12xbf16>
    %cst_18 = arith.constant dense<0.000000e+00> : vector<21x21xf32>
    %29 = tpu.matmul %27, %28, %cst_18 {dimension_numbers = #tpu.dot_dimension_numbers<[1], [1], [0], [0], [0, 0, 1, 0], [], []>} : vector<21x12xbf16>, vector<21x12xbf16>, vector<21x21xf32> -> vector<21x21xf32>
    %cst_19 = arith.constant 0.288675129 : f32
    %30 = vector.broadcast %cst_19 : f32 to vector<21x21xf32>
    %31 = arith.mulf %29, %30 : vector<21x21xf32>
    %cst_20 = arith.constant dense<0xFF800000> : vector<21xf32>
    %32 = vector.multi_reduction <maximumf>, %31, %cst_20 [1] : vector<21x21xf32> to vector<21xf32>
    %33 = vector.shape_cast %32 : vector<21xf32> to vector<21x1xf32>
    %34 = vector.broadcast %33 : vector<21x1xf32> to vector<21x21xf32>
    %35 = arith.subf %31, %34 : vector<21x21xf32>
    %36 = math.exp %35 : vector<21x21xf32>
    %cst_21 = arith.constant dense<0.000000e+00> : vector<21xf32>
    %37 = vector.multi_reduction <add>, %36, %cst_21 [1] : vector<21x21xf32> to vector<21xf32>
    %38 = vector.shape_cast %37 : vector<21xf32> to vector<21x1xf32>
    %39 = tpu.reciprocal %38 {approx = true} : vector<21x1xf32> -> vector<21x1xf32>
    %40 = vector.broadcast %39 : vector<21x1xf32> to vector<21x21xf32>
    %41 = arith.mulf %36, %40 : vector<21x21xf32>
    %42 = vector.extract_strided_slice %24 {offsets = [0, 0], sizes = [21, 12], strides = [1, 1]} : vector<21x48xf32> to vector<21x12xf32>
    %43 = arith.truncf %41 : vector<21x21xf32> to vector<21x21xbf16>
    %44 = arith.truncf %42 : vector<21x12xf32> to vector<21x12xbf16>
    %cst_22 = arith.constant dense<0.000000e+00> : vector<21x12xf32>
    %45 = tpu.matmul %43, %44, %cst_22 {dimension_numbers = #tpu.dot_dimension_numbers<[1], [0], [0], [1], [0, 0, 1, 1], [], []>} : vector<21x21xbf16>, vector<21x12xbf16>, vector<21x12xf32> -> vector<21x12xf32>
    %46 = vector.extract_strided_slice %22 {offsets = [0, 12], sizes = [21, 12], strides = [1, 1]} : vector<21x48xf32> to vector<21x12xf32>
    %47 = vector.extract_strided_slice %23 {offsets = [0, 12], sizes = [21, 12], strides = [1, 1]} : vector<21x48xf32> to vector<21x12xf32>
    %48 = arith.truncf %46 : vector<21x12xf32> to vector<21x12xbf16>
    %49 = arith.truncf %47 : vector<21x12xf32> to vector<21x12xbf16>
    %cst_23 = arith.constant dense<0.000000e+00> : vector<21x21xf32>
    %50 = tpu.matmul %48, %49, %cst_23 {dimension_numbers = #tpu.dot_dimension_numbers<[1], [1], [0], [0], [0, 0, 1, 0], [], []>} : vector<21x12xbf16>, vector<21x12xbf16>, vector<21x21xf32> -> vector<21x21xf32>
    %cst_24 = arith.constant 0.288675129 : f32
    %51 = vector.broadcast %cst_24 : f32 to vector<21x21xf32>
    %52 = arith.mulf %50, %51 : vector<21x21xf32>
    %cst_25 = arith.constant dense<0xFF800000> : vector<21xf32>
    %53 = vector.multi_reduction <maximumf>, %52, %cst_25 [1] : vector<21x21xf32> to vector<21xf32>
    %54 = vector.shape_cast %53 : vector<21xf32> to vector<21x1xf32>
    %55 = vector.broadcast %54 : vector<21x1xf32> to vector<21x21xf32>
    %56 = arith.subf %52, %55 : vector<21x21xf32>
    %57 = math.exp %56 : vector<21x21xf32>
    %cst_26 = arith.constant dense<0.000000e+00> : vector<21xf32>
    %58 = vector.multi_reduction <add>, %57, %cst_26 [1] : vector<21x21xf32> to vector<21xf32>
    %59 = vector.shape_cast %58 : vector<21xf32> to vector<21x1xf32>
    %60 = tpu.reciprocal %59 {approx = true} : vector<21x1xf32> -> vector<21x1xf32>
    %61 = vector.broadcast %60 : vector<21x1xf32> to vector<21x21xf32>
    %62 = arith.mulf %57, %61 : vector<21x21xf32>
    %63 = vector.extract_strided_slice %24 {offsets = [0, 12], sizes = [21, 12], strides = [1, 1]} : vector<21x48xf32> to vector<21x12xf32>
    %64 = arith.truncf %62 : vector<21x21xf32> to vector<21x21xbf16>
    %65 = arith.truncf %63 : vector<21x12xf32> to vector<21x12xbf16>
    %cst_27 = arith.constant dense<0.000000e+00> : vector<21x12xf32>
    %66 = tpu.matmul %64, %65, %cst_27 {dimension_numbers = #tpu.dot_dimension_numbers<[1], [0], [0], [1], [0, 0, 1, 1], [], []>} : vector<21x21xbf16>, vector<21x12xbf16>, vector<21x12xf32> -> vector<21x12xf32>
    %67 = vector.extract_strided_slice %22 {offsets = [0, 24], sizes = [21, 12], strides = [1, 1]} : vector<21x48xf32> to vector<21x12xf32>
    %68 = vector.extract_strided_slice %23 {offsets = [0, 24], sizes = [21, 12], strides = [1, 1]} : vector<21x48xf32> to vector<21x12xf32>
    %69 = arith.truncf %67 : vector<21x12xf32> to vector<21x12xbf16>
    %70 = arith.truncf %68 : vector<21x12xf32> to vector<21x12xbf16>
    %cst_28 = arith.constant dense<0.000000e+00> : vector<21x21xf32>
    %71 = tpu.matmul %69, %70, %cst_28 {dimension_numbers = #tpu.dot_dimension_numbers<[1], [1], [0], [0], [0, 0, 1, 0], [], []>} : vector<21x12xbf16>, vector<21x12xbf16>, vector<21x21xf32> -> vector<21x21xf32>
    %cst_29 = arith.constant 0.288675129 : f32
    %72 = vector.broadcast %cst_29 : f32 to vector<21x21xf32>
    %73 = arith.mulf %71, %72 : vector<21x21xf32>
    %cst_30 = arith.constant dense<0xFF800000> : vector<21xf32>
    %74 = vector.multi_reduction <maximumf>, %73, %cst_30 [1] : vector<21x21xf32> to vector<21xf32>
    %75 = vector.shape_cast %74 : vector<21xf32> to vector<21x1xf32>
    %76 = vector.broadcast %75 : vector<21x1xf32> to vector<21x21xf32>
    %77 = arith.subf %73, %76 : vector<21x21xf32>
    %78 = math.exp %77 : vector<21x21xf32>
    %cst_31 = arith.constant dense<0.000000e+00> : vector<21xf32>
    %79 = vector.multi_reduction <add>, %78, %cst_31 [1] : vector<21x21xf32> to vector<21xf32>
    %80 = vector.shape_cast %79 : vector<21xf32> to vector<21x1xf32>
    %81 = tpu.reciprocal %80 {approx = true} : vector<21x1xf32> -> vector<21x1xf32>
    %82 = vector.broadcast %81 : vector<21x1xf32> to vector<21x21xf32>
    %83 = arith.mulf %78, %82 : vector<21x21xf32>
    %84 = vector.extract_strided_slice %24 {offsets = [0, 24], sizes = [21, 12], strides = [1, 1]} : vector<21x48xf32> to vector<21x12xf32>
    %85 = arith.truncf %83 : vector<21x21xf32> to vector<21x21xbf16>
    %86 = arith.truncf %84 : vector<21x12xf32> to vector<21x12xbf16>
    %cst_32 = arith.constant dense<0.000000e+00> : vector<21x12xf32>
    %87 = tpu.matmul %85, %86, %cst_32 {dimension_numbers = #tpu.dot_dimension_numbers<[1], [0], [0], [1], [0, 0, 1, 1], [], []>} : vector<21x21xbf16>, vector<21x12xbf16>, vector<21x12xf32> -> vector<21x12xf32>
    %88 = vector.extract_strided_slice %22 {offsets = [0, 36], sizes = [21, 12], strides = [1, 1]} : vector<21x48xf32> to vector<21x12xf32>
    %89 = vector.extract_strided_slice %23 {offsets = [0, 36], sizes = [21, 12], strides = [1, 1]} : vector<21x48xf32> to vector<21x12xf32>
    %90 = arith.truncf %88 : vector<21x12xf32> to vector<21x12xbf16>
    %91 = arith.truncf %89 : vector<21x12xf32> to vector<21x12xbf16>
    %cst_33 = arith.constant dense<0.000000e+00> : vector<21x21xf32>
    %92 = tpu.matmul %90, %91, %cst_33 {dimension_numbers = #tpu.dot_dimension_numbers<[1], [1], [0], [0], [0, 0, 1, 0], [], []>} : vector<21x12xbf16>, vector<21x12xbf16>, vector<21x21xf32> -> vector<21x21xf32>
    %cst_34 = arith.constant 0.288675129 : f32
    %93 = vector.broadcast %cst_34 : f32 to vector<21x21xf32>
    %94 = arith.mulf %92, %93 : vector<21x21xf32>
    %cst_35 = arith.constant dense<0xFF800000> : vector<21xf32>
    %95 = vector.multi_reduction <maximumf>, %94, %cst_35 [1] : vector<21x21xf32> to vector<21xf32>
    %96 = vector.shape_cast %95 : vector<21xf32> to vector<21x1xf32>
    %97 = vector.broadcast %96 : vector<21x1xf32> to vector<21x21xf32>
    %98 = arith.subf %94, %97 : vector<21x21xf32>
    %99 = math.exp %98 : vector<21x21xf32>
    %cst_36 = arith.constant dense<0.000000e+00> : vector<21xf32>
    %100 = vector.multi_reduction <add>, %99, %cst_36 [1] : vector<21x21xf32> to vector<21xf32>
    %101 = vector.shape_cast %100 : vector<21xf32> to vector<21x1xf32>
    %102 = tpu.reciprocal %101 {approx = true} : vector<21x1xf32> -> vector<21x1xf32>
    %103 = vector.broadcast %102 : vector<21x1xf32> to vector<21x21xf32>
    %104 = arith.mulf %99, %103 : vector<21x21xf32>
    %105 = vector.extract_strided_slice %24 {offsets = [0, 36], sizes = [21, 12], strides = [1, 1]} : vector<21x48xf32> to vector<21x12xf32>
    %106 = arith.truncf %104 : vector<21x21xf32> to vector<21x21xbf16>
    %107 = arith.truncf %105 : vector<21x12xf32> to vector<21x12xbf16>
    %cst_37 = arith.constant dense<0.000000e+00> : vector<21x12xf32>
    %108 = tpu.matmul %106, %107, %cst_37 {dimension_numbers = #tpu.dot_dimension_numbers<[1], [0], [0], [1], [0, 0, 1, 1], [], []>} : vector<21x21xbf16>, vector<21x12xbf16>, vector<21x12xf32> -> vector<21x12xf32>
    %109 = tpu.concatenate %45, %66, %87, %108 in 1 : vector<21x12xf32>, vector<21x12xf32>, vector<21x12xf32>, vector<21x12xf32> -> vector<21x48xf32>
    %c0_38 = arith.constant 0 : index
    %c0_39 = arith.constant 0 : index
    %110 = vector.load %arg7[%c0_38, %c0_39] : memref<48x48xbf16, #tpu.memory_space<vmem>>, vector<48x48xbf16>
    %111 = arith.truncf %109 : vector<21x48xf32> to vector<21x48xbf16>
    %cst_40 = arith.constant dense<0.000000e+00> : vector<21x48xf32>
    %112 = tpu.matmul %111, %110, %cst_40 {dimension_numbers = #tpu.dot_dimension_numbers<[1], [0], [0], [1], [0, 0, 1, 1], [], []>} : vector<21x48xbf16>, vector<48x48xbf16>, vector<21x48xf32> -> vector<21x48xf32>
    %c0_41 = arith.constant 0 : index
    %c0_42 = arith.constant 0 : index
    %113 = vector.load %arg8[%c0_41, %c0_42] : memref<1x48xf32, #tpu.memory_space<vmem>>, vector<1x48xf32>
    %114 = vector.broadcast %113 : vector<1x48xf32> to vector<21x48xf32>
    %115 = arith.addf %112, %114 : vector<21x48xf32>
    %116 = arith.addf %10, %115 : vector<21x48xf32>
    %cst_43 = arith.constant dense<0.000000e+00> : vector<21xf32>
    %117 = vector.multi_reduction <add>, %116, %cst_43 [1] : vector<21x48xf32> to vector<21xf32>
    %118 = vector.shape_cast %117 : vector<21xf32> to vector<21x1xf32>
    %cst_44 = arith.constant 4.800000e+01 : f32
    %119 = vector.broadcast %cst_44 : f32 to vector<21x1xf32>
    %120 = arith.divf %118, %119 : vector<21x1xf32>
    %121 = vector.broadcast %120 : vector<21x1xf32> to vector<21x48xf32>
    %122 = arith.subf %116, %121 : vector<21x48xf32>
    %123 = arith.mulf %122, %122 : vector<21x48xf32>
    %cst_45 = arith.constant dense<0.000000e+00> : vector<21xf32>
    %124 = vector.multi_reduction <add>, %123, %cst_45 [1] : vector<21x48xf32> to vector<21xf32>
    %125 = vector.shape_cast %124 : vector<21xf32> to vector<21x1xf32>
    %cst_46 = arith.constant 4.800000e+01 : f32
    %126 = vector.broadcast %cst_46 : f32 to vector<21x1xf32>
    %127 = arith.divf %125, %126 : vector<21x1xf32>
    %128 = vector.broadcast %120 : vector<21x1xf32> to vector<21x48xf32>
    %129 = arith.subf %116, %128 : vector<21x48xf32>
    %cst_47 = arith.constant 9.99999974E-6 : f32
    %130 = vector.broadcast %cst_47 : f32 to vector<21x1xf32>
    %131 = arith.addf %127, %130 : vector<21x1xf32>
    %132 = math.rsqrt %131 : vector<21x1xf32>
    %133 = vector.broadcast %132 : vector<21x1xf32> to vector<21x48xf32>
    %134 = arith.mulf %129, %133 : vector<21x48xf32>
    %c0_48 = arith.constant 0 : index
    %c0_49 = arith.constant 0 : index
    %135 = vector.load %arg9[%c0_48, %c0_49] : memref<1x48xf32, #tpu.memory_space<vmem>>, vector<1x48xf32>
    %136 = vector.broadcast %135 : vector<1x48xf32> to vector<21x48xf32>
    %137 = arith.mulf %134, %136 : vector<21x48xf32>
    %c0_50 = arith.constant 0 : index
    %c0_51 = arith.constant 0 : index
    %138 = vector.load %arg10[%c0_50, %c0_51] : memref<1x48xf32, #tpu.memory_space<vmem>>, vector<1x48xf32>
    %139 = vector.broadcast %138 : vector<1x48xf32> to vector<21x48xf32>
    %140 = arith.addf %137, %139 : vector<21x48xf32>
    %c0_52 = arith.constant 0 : index
    %c0_53 = arith.constant 0 : index
    %141 = vector.load %arg11[%c0_52, %c0_53] : memref<48x48xbf16, #tpu.memory_space<vmem>>, vector<48x48xbf16>
    %142 = arith.truncf %140 : vector<21x48xf32> to vector<21x48xbf16>
    %cst_54 = arith.constant dense<0.000000e+00> : vector<21x48xf32>
    %143 = tpu.matmul %142, %141, %cst_54 {dimension_numbers = #tpu.dot_dimension_numbers<[1], [0], [0], [1], [0, 0, 1, 1], [], []>} : vector<21x48xbf16>, vector<48x48xbf16>, vector<21x48xf32> -> vector<21x48xf32>
    %c0_55 = arith.constant 0 : index
    %c0_56 = arith.constant 0 : index
    %144 = vector.load %arg12[%c0_55, %c0_56] : memref<1x48xf32, #tpu.memory_space<vmem>>, vector<1x48xf32>
    %145 = vector.broadcast %144 : vector<1x48xf32> to vector<21x48xf32>
    %146 = arith.addf %143, %145 : vector<21x48xf32>
    %c0_57 = arith.constant 0 : index
    %c0_58 = arith.constant 0 : index
    %147 = vector.load %arg13[%c0_57, %c0_58] : memref<32x96xbf16, #tpu.memory_space<vmem>>, vector<32x96xbf16>
    %148 = arith.truncf %15 : vector<48x32xf32> to vector<48x32xbf16>
    %cst_59 = arith.constant dense<0.000000e+00> : vector<48x96xf32>
    %149 = tpu.matmul %148, %147, %cst_59 {dimension_numbers = #tpu.dot_dimension_numbers<[1], [0], [0], [1], [0, 0, 1, 1], [], []>} : vector<48x32xbf16>, vector<32x96xbf16>, vector<48x96xf32> -> vector<48x96xf32>
    %c0_60 = arith.constant 0 : index
    %c0_61 = arith.constant 0 : index
    %150 = vector.load %arg14[%c0_60, %c0_61] : memref<1x96xf32, #tpu.memory_space<vmem>>, vector<1x96xf32>
    %151 = vector.broadcast %150 : vector<1x96xf32> to vector<48x96xf32>
    %152 = arith.addf %149, %151 : vector<48x96xf32>
    %153 = vector.extract_strided_slice %152 {offsets = [0, 0], sizes = [48, 48], strides = [1, 1]} : vector<48x96xf32> to vector<48x48xf32>
    %154 = vector.extract_strided_slice %152 {offsets = [0, 48], sizes = [48, 48], strides = [1, 1]} : vector<48x96xf32> to vector<48x48xf32>
    %155 = vector.extract_strided_slice %146 {offsets = [0, 0], sizes = [21, 12], strides = [1, 1]} : vector<21x48xf32> to vector<21x12xf32>
    %156 = vector.extract_strided_slice %153 {offsets = [0, 0], sizes = [48, 12], strides = [1, 1]} : vector<48x48xf32> to vector<48x12xf32>
    %157 = arith.truncf %155 : vector<21x12xf32> to vector<21x12xbf16>
    %158 = arith.truncf %156 : vector<48x12xf32> to vector<48x12xbf16>
    %cst_62 = arith.constant dense<0.000000e+00> : vector<21x48xf32>
    %159 = tpu.matmul %157, %158, %cst_62 {dimension_numbers = #tpu.dot_dimension_numbers<[1], [1], [0], [0], [0, 0, 1, 0], [], []>} : vector<21x12xbf16>, vector<48x12xbf16>, vector<21x48xf32> -> vector<21x48xf32>
    %cst_63 = arith.constant 0.288675129 : f32
    %160 = vector.broadcast %cst_63 : f32 to vector<21x48xf32>
    %161 = arith.mulf %159, %160 : vector<21x48xf32>
    %cst_64 = arith.constant dense<0xFF800000> : vector<21xf32>
    %162 = vector.multi_reduction <maximumf>, %161, %cst_64 [1] : vector<21x48xf32> to vector<21xf32>
    %163 = vector.shape_cast %162 : vector<21xf32> to vector<21x1xf32>
    %164 = vector.broadcast %163 : vector<21x1xf32> to vector<21x48xf32>
    %165 = arith.subf %161, %164 : vector<21x48xf32>
    %166 = math.exp %165 : vector<21x48xf32>
    %cst_65 = arith.constant dense<0.000000e+00> : vector<21xf32>
    %167 = vector.multi_reduction <add>, %166, %cst_65 [1] : vector<21x48xf32> to vector<21xf32>
    %168 = vector.shape_cast %167 : vector<21xf32> to vector<21x1xf32>
    %169 = tpu.reciprocal %168 {approx = true} : vector<21x1xf32> -> vector<21x1xf32>
    %170 = vector.broadcast %169 : vector<21x1xf32> to vector<21x48xf32>
    %171 = arith.mulf %166, %170 : vector<21x48xf32>
    %c0_66 = arith.constant 0 : index
    %c0_67 = arith.constant 0 : index
    %c0_68 = arith.constant 0 : index
    %c0_69 = arith.constant 0 : index
    %172 = vector.load %arg32[%c0_66, %c0_67, %c0_68, %c0_69] : memref<1x4x21x48xf32, #tpu.memory_space<vmem>>, vector<1x1x21x48xf32>
    %173 = vector.shape_cast %172 : vector<1x1x21x48xf32> to vector<21x48xf32>
    %174 = vector.shape_cast %171 : vector<21x48xf32> to vector<1x1x21x48xf32>
    tpu.vector_store %arg32[%c0_66, %c0_67, %c0_68, %c0_69], %174 {strides = array<i32>} : memref<1x4x21x48xf32, #tpu.memory_space<vmem>>, vector<1x1x21x48xf32>,
    %175 = vector.extract_strided_slice %154 {offsets = [0, 0], sizes = [48, 12], strides = [1, 1]} : vector<48x48xf32> to vector<48x12xf32>
    %176 = arith.truncf %171 : vector<21x48xf32> to vector<21x48xbf16>
    %177 = arith.truncf %175 : vector<48x12xf32> to vector<48x12xbf16>
    %cst_70 = arith.constant dense<0.000000e+00> : vector<21x12xf32>
    %178 = tpu.matmul %176, %177, %cst_70 {dimension_numbers = #tpu.dot_dimension_numbers<[1], [0], [0], [1], [0, 0, 1, 1], [], []>} : vector<21x48xbf16>, vector<48x12xbf16>, vector<21x12xf32> -> vector<21x12xf32>
    %179 = vector.extract_strided_slice %146 {offsets = [0, 12], sizes = [21, 12], strides = [1, 1]} : vector<21x48xf32> to vector<21x12xf32>
    %180 = vector.extract_strided_slice %153 {offsets = [0, 12], sizes = [48, 12], strides = [1, 1]} : vector<48x48xf32> to vector<48x12xf32>
    %181 = arith.truncf %179 : vector<21x12xf32> to vector<21x12xbf16>
    %182 = arith.truncf %180 : vector<48x12xf32> to vector<48x12xbf16>
    %cst_71 = arith.constant dense<0.000000e+00> : vector<21x48xf32>
    %183 = tpu.matmul %181, %182, %cst_71 {dimension_numbers = #tpu.dot_dimension_numbers<[1], [1], [0], [0], [0, 0, 1, 0], [], []>} : vector<21x12xbf16>, vector<48x12xbf16>, vector<21x48xf32> -> vector<21x48xf32>
    %cst_72 = arith.constant 0.288675129 : f32
    %184 = vector.broadcast %cst_72 : f32 to vector<21x48xf32>
    %185 = arith.mulf %183, %184 : vector<21x48xf32>
    %cst_73 = arith.constant dense<0xFF800000> : vector<21xf32>
    %186 = vector.multi_reduction <maximumf>, %185, %cst_73 [1] : vector<21x48xf32> to vector<21xf32>
    %187 = vector.shape_cast %186 : vector<21xf32> to vector<21x1xf32>
    %188 = vector.broadcast %187 : vector<21x1xf32> to vector<21x48xf32>
    %189 = arith.subf %185, %188 : vector<21x48xf32>
    %190 = math.exp %189 : vector<21x48xf32>
    %cst_74 = arith.constant dense<0.000000e+00> : vector<21xf32>
    %191 = vector.multi_reduction <add>, %190, %cst_74 [1] : vector<21x48xf32> to vector<21xf32>
    %192 = vector.shape_cast %191 : vector<21xf32> to vector<21x1xf32>
    %193 = tpu.reciprocal %192 {approx = true} : vector<21x1xf32> -> vector<21x1xf32>
    %194 = vector.broadcast %193 : vector<21x1xf32> to vector<21x48xf32>
    %195 = arith.mulf %190, %194 : vector<21x48xf32>
    %c0_75 = arith.constant 0 : index
    %c1 = arith.constant 1 : index
    %c0_76 = arith.constant 0 : index
    %c0_77 = arith.constant 0 : index
    %196 = vector.load %arg32[%c0_75, %c1, %c0_76, %c0_77] : memref<1x4x21x48xf32, #tpu.memory_space<vmem>>, vector<1x1x21x48xf32>
    %197 = vector.shape_cast %196 : vector<1x1x21x48xf32> to vector<21x48xf32>
    %198 = vector.shape_cast %195 : vector<21x48xf32> to vector<1x1x21x48xf32>
    tpu.vector_store %arg32[%c0_75, %c1, %c0_76, %c0_77], %198 {strides = array<i32>} : memref<1x4x21x48xf32, #tpu.memory_space<vmem>>, vector<1x1x21x48xf32>,
    %199 = vector.extract_strided_slice %154 {offsets = [0, 12], sizes = [48, 12], strides = [1, 1]} : vector<48x48xf32> to vector<48x12xf32>
    %200 = arith.truncf %195 : vector<21x48xf32> to vector<21x48xbf16>
    %201 = arith.truncf %199 : vector<48x12xf32> to vector<48x12xbf16>
    %cst_78 = arith.constant dense<0.000000e+00> : vector<21x12xf32>
    %202 = tpu.matmul %200, %201, %cst_78 {dimension_numbers = #tpu.dot_dimension_numbers<[1], [0], [0], [1], [0, 0, 1, 1], [], []>} : vector<21x48xbf16>, vector<48x12xbf16>, vector<21x12xf32> -> vector<21x12xf32>
    %203 = vector.extract_strided_slice %146 {offsets = [0, 24], sizes = [21, 12], strides = [1, 1]} : vector<21x48xf32> to vector<21x12xf32>
    %204 = vector.extract_strided_slice %153 {offsets = [0, 24], sizes = [48, 12], strides = [1, 1]} : vector<48x48xf32> to vector<48x12xf32>
    %205 = arith.truncf %203 : vector<21x12xf32> to vector<21x12xbf16>
    %206 = arith.truncf %204 : vector<48x12xf32> to vector<48x12xbf16>
    %cst_79 = arith.constant dense<0.000000e+00> : vector<21x48xf32>
    %207 = tpu.matmul %205, %206, %cst_79 {dimension_numbers = #tpu.dot_dimension_numbers<[1], [1], [0], [0], [0, 0, 1, 0], [], []>} : vector<21x12xbf16>, vector<48x12xbf16>, vector<21x48xf32> -> vector<21x48xf32>
    %cst_80 = arith.constant 0.288675129 : f32
    %208 = vector.broadcast %cst_80 : f32 to vector<21x48xf32>
    %209 = arith.mulf %207, %208 : vector<21x48xf32>
    %cst_81 = arith.constant dense<0xFF800000> : vector<21xf32>
    %210 = vector.multi_reduction <maximumf>, %209, %cst_81 [1] : vector<21x48xf32> to vector<21xf32>
    %211 = vector.shape_cast %210 : vector<21xf32> to vector<21x1xf32>
    %212 = vector.broadcast %211 : vector<21x1xf32> to vector<21x48xf32>
    %213 = arith.subf %209, %212 : vector<21x48xf32>
    %214 = math.exp %213 : vector<21x48xf32>
    %cst_82 = arith.constant dense<0.000000e+00> : vector<21xf32>
    %215 = vector.multi_reduction <add>, %214, %cst_82 [1] : vector<21x48xf32> to vector<21xf32>
    %216 = vector.shape_cast %215 : vector<21xf32> to vector<21x1xf32>
    %217 = tpu.reciprocal %216 {approx = true} : vector<21x1xf32> -> vector<21x1xf32>
    %218 = vector.broadcast %217 : vector<21x1xf32> to vector<21x48xf32>
    %219 = arith.mulf %214, %218 : vector<21x48xf32>
    %c0_83 = arith.constant 0 : index
    %c2 = arith.constant 2 : index
    %c0_84 = arith.constant 0 : index
    %c0_85 = arith.constant 0 : index
    %220 = vector.load %arg32[%c0_83, %c2, %c0_84, %c0_85] : memref<1x4x21x48xf32, #tpu.memory_space<vmem>>, vector<1x1x21x48xf32>
    %221 = vector.shape_cast %220 : vector<1x1x21x48xf32> to vector<21x48xf32>
    %222 = vector.shape_cast %219 : vector<21x48xf32> to vector<1x1x21x48xf32>
    tpu.vector_store %arg32[%c0_83, %c2, %c0_84, %c0_85], %222 {strides = array<i32>} : memref<1x4x21x48xf32, #tpu.memory_space<vmem>>, vector<1x1x21x48xf32>,
    %223 = vector.extract_strided_slice %154 {offsets = [0, 24], sizes = [48, 12], strides = [1, 1]} : vector<48x48xf32> to vector<48x12xf32>
    %224 = arith.truncf %219 : vector<21x48xf32> to vector<21x48xbf16>
    %225 = arith.truncf %223 : vector<48x12xf32> to vector<48x12xbf16>
    %cst_86 = arith.constant dense<0.000000e+00> : vector<21x12xf32>
    %226 = tpu.matmul %224, %225, %cst_86 {dimension_numbers = #tpu.dot_dimension_numbers<[1], [0], [0], [1], [0, 0, 1, 1], [], []>} : vector<21x48xbf16>, vector<48x12xbf16>, vector<21x12xf32> -> vector<21x12xf32>
    %227 = vector.extract_strided_slice %146 {offsets = [0, 36], sizes = [21, 12], strides = [1, 1]} : vector<21x48xf32> to vector<21x12xf32>
    %228 = vector.extract_strided_slice %153 {offsets = [0, 36], sizes = [48, 12], strides = [1, 1]} : vector<48x48xf32> to vector<48x12xf32>
    %229 = arith.truncf %227 : vector<21x12xf32> to vector<21x12xbf16>
    %230 = arith.truncf %228 : vector<48x12xf32> to vector<48x12xbf16>
    %cst_87 = arith.constant dense<0.000000e+00> : vector<21x48xf32>
    %231 = tpu.matmul %229, %230, %cst_87 {dimension_numbers = #tpu.dot_dimension_numbers<[1], [1], [0], [0], [0, 0, 1, 0], [], []>} : vector<21x12xbf16>, vector<48x12xbf16>, vector<21x48xf32> -> vector<21x48xf32>
    %cst_88 = arith.constant 0.288675129 : f32
    %232 = vector.broadcast %cst_88 : f32 to vector<21x48xf32>
    %233 = arith.mulf %231, %232 : vector<21x48xf32>
    %cst_89 = arith.constant dense<0xFF800000> : vector<21xf32>
    %234 = vector.multi_reduction <maximumf>, %233, %cst_89 [1] : vector<21x48xf32> to vector<21xf32>
    %235 = vector.shape_cast %234 : vector<21xf32> to vector<21x1xf32>
    %236 = vector.broadcast %235 : vector<21x1xf32> to vector<21x48xf32>
    %237 = arith.subf %233, %236 : vector<21x48xf32>
    %238 = math.exp %237 : vector<21x48xf32>
    %cst_90 = arith.constant dense<0.000000e+00> : vector<21xf32>
    %239 = vector.multi_reduction <add>, %238, %cst_90 [1] : vector<21x48xf32> to vector<21xf32>
    %240 = vector.shape_cast %239 : vector<21xf32> to vector<21x1xf32>
    %241 = tpu.reciprocal %240 {approx = true} : vector<21x1xf32> -> vector<21x1xf32>
    %242 = vector.broadcast %241 : vector<21x1xf32> to vector<21x48xf32>
    %243 = arith.mulf %238, %242 : vector<21x48xf32>
    %c0_91 = arith.constant 0 : index
    %c3 = arith.constant 3 : index
    %c0_92 = arith.constant 0 : index
    %c0_93 = arith.constant 0 : index
    %244 = vector.load %arg32[%c0_91, %c3, %c0_92, %c0_93] : memref<1x4x21x48xf32, #tpu.memory_space<vmem>>, vector<1x1x21x48xf32>
    %245 = vector.shape_cast %244 : vector<1x1x21x48xf32> to vector<21x48xf32>
    %246 = vector.shape_cast %243 : vector<21x48xf32> to vector<1x1x21x48xf32>
    tpu.vector_store %arg32[%c0_91, %c3, %c0_92, %c0_93], %246 {strides = array<i32>} : memref<1x4x21x48xf32, #tpu.memory_space<vmem>>, vector<1x1x21x48xf32>,
    %247 = vector.extract_strided_slice %154 {offsets = [0, 36], sizes = [48, 12], strides = [1, 1]} : vector<48x48xf32> to vector<48x12xf32>
    %248 = arith.truncf %243 : vector<21x48xf32> to vector<21x48xbf16>
    %249 = arith.truncf %247 : vector<48x12xf32> to vector<48x12xbf16>
    %cst_94 = arith.constant dense<0.000000e+00> : vector<21x12xf32>
    %250 = tpu.matmul %248, %249, %cst_94 {dimension_numbers = #tpu.dot_dimension_numbers<[1], [0], [0], [1], [0, 0, 1, 1], [], []>} : vector<21x48xbf16>, vector<48x12xbf16>, vector<21x12xf32> -> vector<21x12xf32>
    %251 = tpu.concatenate %178, %202, %226, %250 in 1 : vector<21x12xf32>, vector<21x12xf32>, vector<21x12xf32>, vector<21x12xf32> -> vector<21x48xf32>
    %c0_95 = arith.constant 0 : index
    %c0_96 = arith.constant 0 : index
    %252 = vector.load %arg15[%c0_95, %c0_96] : memref<48x48xbf16, #tpu.memory_space<vmem>>, vector<48x48xbf16>
    %253 = arith.truncf %251 : vector<21x48xf32> to vector<21x48xbf16>
    %cst_97 = arith.constant dense<0.000000e+00> : vector<21x48xf32>
    %254 = tpu.matmul %253, %252, %cst_97 {dimension_numbers = #tpu.dot_dimension_numbers<[1], [0], [0], [1], [0, 0, 1, 1], [], []>} : vector<21x48xbf16>, vector<48x48xbf16>, vector<21x48xf32> -> vector<21x48xf32>
    %c0_98 = arith.constant 0 : index
    %c0_99 = arith.constant 0 : index
    %255 = vector.load %arg16[%c0_98, %c0_99] : memref<1x48xf32, #tpu.memory_space<vmem>>, vector<1x48xf32>
    %256 = vector.broadcast %255 : vector<1x48xf32> to vector<21x48xf32>
    %257 = arith.addf %254, %256 : vector<21x48xf32>
    %c0_100 = arith.constant 0 : index
    %c0_101 = arith.constant 0 : index
    %c0_102 = arith.constant 0 : index
    %258 = vector.load %arg31[%c0_100, %c0_101, %c0_102] : memref<1x21x48xf32, #tpu.memory_space<vmem>>, vector<1x21x48xf32>
    %259 = vector.shape_cast %258 : vector<1x21x48xf32> to vector<21x48xf32>
    %260 = vector.shape_cast %257 : vector<21x48xf32> to vector<1x21x48xf32>
    tpu.vector_store %arg31[%c0_100, %c0_101, %c0_102], %260 {strides = array<i32>} : memref<1x21x48xf32, #tpu.memory_space<vmem>>, vector<1x21x48xf32>,
    %261 = arith.addf %140, %257 : vector<21x48xf32>
    %cst_103 = arith.constant dense<0.000000e+00> : vector<21xf32>
    %262 = vector.multi_reduction <add>, %261, %cst_103 [1] : vector<21x48xf32> to vector<21xf32>
    %263 = vector.shape_cast %262 : vector<21xf32> to vector<21x1xf32>
    %cst_104 = arith.constant 4.800000e+01 : f32
    %264 = vector.broadcast %cst_104 : f32 to vector<21x1xf32>
    %265 = arith.divf %263, %264 : vector<21x1xf32>
    %266 = vector.broadcast %265 : vector<21x1xf32> to vector<21x48xf32>
    %267 = arith.subf %261, %266 : vector<21x48xf32>
    %268 = arith.mulf %267, %267 : vector<21x48xf32>
    %cst_105 = arith.constant dense<0.000000e+00> : vector<21xf32>
    %269 = vector.multi_reduction <add>, %268, %cst_105 [1] : vector<21x48xf32> to vector<21xf32>
    %270 = vector.shape_cast %269 : vector<21xf32> to vector<21x1xf32>
    %cst_106 = arith.constant 4.800000e+01 : f32
    %271 = vector.broadcast %cst_106 : f32 to vector<21x1xf32>
    %272 = arith.divf %270, %271 : vector<21x1xf32>
    %273 = vector.broadcast %265 : vector<21x1xf32> to vector<21x48xf32>
    %274 = arith.subf %261, %273 : vector<21x48xf32>
    %cst_107 = arith.constant 9.99999974E-6 : f32
    %275 = vector.broadcast %cst_107 : f32 to vector<21x1xf32>
    %276 = arith.addf %272, %275 : vector<21x1xf32>
    %277 = math.rsqrt %276 : vector<21x1xf32>
    %278 = vector.broadcast %277 : vector<21x1xf32> to vector<21x48xf32>
    %279 = arith.mulf %274, %278 : vector<21x48xf32>
    %c0_108 = arith.constant 0 : index
    %c0_109 = arith.constant 0 : index
    %280 = vector.load %arg17[%c0_108, %c0_109] : memref<1x48xf32, #tpu.memory_space<vmem>>, vector<1x48xf32>
    %281 = vector.broadcast %280 : vector<1x48xf32> to vector<21x48xf32>
    %282 = arith.mulf %279, %281 : vector<21x48xf32>
    %c0_110 = arith.constant 0 : index
    %c0_111 = arith.constant 0 : index
    %283 = vector.load %arg18[%c0_110, %c0_111] : memref<1x48xf32, #tpu.memory_space<vmem>>, vector<1x48xf32>
    %284 = vector.broadcast %283 : vector<1x48xf32> to vector<21x48xf32>
    %285 = arith.addf %282, %284 : vector<21x48xf32>
    %c0_112 = arith.constant 0 : index
    %c0_113 = arith.constant 0 : index
    %286 = vector.load %arg19[%c0_112, %c0_113] : memref<48x64xbf16, #tpu.memory_space<vmem>>, vector<48x64xbf16>
    %287 = arith.truncf %285 : vector<21x48xf32> to vector<21x48xbf16>
    %cst_114 = arith.constant dense<0.000000e+00> : vector<21x64xf32>
    %288 = tpu.matmul %287, %286, %cst_114 {dimension_numbers = #tpu.dot_dimension_numbers<[1], [0], [0], [1], [0, 0, 1, 1], [], []>} : vector<21x48xbf16>, vector<48x64xbf16>, vector<21x64xf32> -> vector<21x64xf32>
    %c0_115 = arith.constant 0 : index
    %c0_116 = arith.constant 0 : index
    %289 = vector.load %arg20[%c0_115, %c0_116] : memref<1x64xf32, #tpu.memory_space<vmem>>, vector<1x64xf32>
    %290 = vector.broadcast %289 : vector<1x64xf32> to vector<21x64xf32>
    %291 = arith.addf %288, %290 : vector<21x64xf32>
    %cst_117 = arith.constant 0.000000e+00 : f32
    %292 = vector.broadcast %cst_117 : f32 to vector<21x64xf32>
    %293 = arith.maximumf %291, %292 : vector<21x64xf32>
    %c0_118 = arith.constant 0 : index
    %c0_119 = arith.constant 0 : index
    %294 = vector.load %arg21[%c0_118, %c0_119] : memref<64x48xbf16, #tpu.memory_space<vmem>>, vector<64x48xbf16>
    %295 = arith.truncf %293 : vector<21x64xf32> to vector<21x64xbf16>
    %cst_120 = arith.constant dense<0.000000e+00> : vector<21x48xf32>
    %296 = tpu.matmul %295, %294, %cst_120 {dimension_numbers = #tpu.dot_dimension_numbers<[1], [0], [0], [1], [0, 0, 1, 1], [], []>} : vector<21x64xbf16>, vector<64x48xbf16>, vector<21x48xf32> -> vector<21x48xf32>
    %c0_121 = arith.constant 0 : index
    %c0_122 = arith.constant 0 : index
    %297 = vector.load %arg22[%c0_121, %c0_122] : memref<1x48xf32, #tpu.memory_space<vmem>>, vector<1x48xf32>
    %298 = vector.broadcast %297 : vector<1x48xf32> to vector<21x48xf32>
    %299 = arith.addf %296, %298 : vector<21x48xf32>
    %300 = arith.addf %285, %299 : vector<21x48xf32>
    %cst_123 = arith.constant dense<0.000000e+00> : vector<21xf32>
    %301 = vector.multi_reduction <add>, %300, %cst_123 [1] : vector<21x48xf32> to vector<21xf32>
    %302 = vector.shape_cast %301 : vector<21xf32> to vector<21x1xf32>
    %cst_124 = arith.constant 4.800000e+01 : f32
    %303 = vector.broadcast %cst_124 : f32 to vector<21x1xf32>
    %304 = arith.divf %302, %303 : vector<21x1xf32>
    %305 = vector.broadcast %304 : vector<21x1xf32> to vector<21x48xf32>
    %306 = arith.subf %300, %305 : vector<21x48xf32>
    %307 = arith.mulf %306, %306 : vector<21x48xf32>
    %cst_125 = arith.constant dense<0.000000e+00> : vector<21xf32>
    %308 = vector.multi_reduction <add>, %307, %cst_125 [1] : vector<21x48xf32> to vector<21xf32>
    %309 = vector.shape_cast %308 : vector<21xf32> to vector<21x1xf32>
    %cst_126 = arith.constant 4.800000e+01 : f32
    %310 = vector.broadcast %cst_126 : f32 to vector<21x1xf32>
    %311 = arith.divf %309, %310 : vector<21x1xf32>
    %312 = vector.broadcast %304 : vector<21x1xf32> to vector<21x48xf32>
    %313 = arith.subf %300, %312 : vector<21x48xf32>
    %cst_127 = arith.constant 9.99999974E-6 : f32
    %314 = vector.broadcast %cst_127 : f32 to vector<21x1xf32>
    %315 = arith.addf %311, %314 : vector<21x1xf32>
    %316 = math.rsqrt %315 : vector<21x1xf32>
    %317 = vector.broadcast %316 : vector<21x1xf32> to vector<21x48xf32>
    %318 = arith.mulf %313, %317 : vector<21x48xf32>
    %c0_128 = arith.constant 0 : index
    %c0_129 = arith.constant 0 : index
    %319 = vector.load %arg23[%c0_128, %c0_129] : memref<1x48xf32, #tpu.memory_space<vmem>>, vector<1x48xf32>
    %320 = vector.broadcast %319 : vector<1x48xf32> to vector<21x48xf32>
    %321 = arith.mulf %318, %320 : vector<21x48xf32>
    %c0_130 = arith.constant 0 : index
    %c0_131 = arith.constant 0 : index
    %322 = vector.load %arg24[%c0_130, %c0_131] : memref<1x48xf32, #tpu.memory_space<vmem>>, vector<1x48xf32>
    %323 = vector.broadcast %322 : vector<1x48xf32> to vector<21x48xf32>
    %324 = arith.addf %321, %323 : vector<21x48xf32>
    %c0_132 = arith.constant 0 : index
    %c0_133 = arith.constant 0 : index
    %c0_134 = arith.constant 0 : index
    %325 = vector.load %arg30[%c0_132, %c0_133, %c0_134] : memref<1x21x48xf32, #tpu.memory_space<vmem>>, vector<1x21x48xf32>
    %326 = vector.shape_cast %325 : vector<1x21x48xf32> to vector<21x48xf32>
    %327 = vector.shape_cast %324 : vector<21x48xf32> to vector<1x21x48xf32>
    tpu.vector_store %arg30[%c0_132, %c0_133, %c0_134], %327 {strides = array<i32>} : memref<1x21x48xf32, #tpu.memory_space<vmem>>, vector<1x21x48xf32>,
    %c0_135 = arith.constant 0 : index
    %c0_136 = arith.constant 0 : index
    %328 = vector.load %arg25[%c0_135, %c0_136] : memref<48x24xbf16, #tpu.memory_space<vmem>>, vector<48x24xbf16>
    %329 = arith.truncf %324 : vector<21x48xf32> to vector<21x48xbf16>
    %cst_137 = arith.constant dense<0.000000e+00> : vector<21x24xf32>
    %330 = tpu.matmul %329, %328, %cst_137 {dimension_numbers = #tpu.dot_dimension_numbers<[1], [0], [0], [1], [0, 0, 1, 1], [], []>} : vector<21x48xbf16>, vector<48x24xbf16>, vector<21x24xf32> -> vector<21x24xf32>
    %c0_138 = arith.constant 0 : index
    %c0_139 = arith.constant 0 : index
    %331 = vector.load %arg26[%c0_138, %c0_139] : memref<1x24xf32, #tpu.memory_space<vmem>>, vector<1x24xf32>
    %332 = vector.broadcast %331 : vector<1x24xf32> to vector<21x24xf32>
    %333 = arith.addf %330, %332 : vector<21x24xf32>
    %cst_140 = arith.constant 0.000000e+00 : f32
    %334 = vector.broadcast %cst_140 : f32 to vector<21x24xf32>
    %335 = arith.maximumf %333, %334 : vector<21x24xf32>
    %c0_141 = arith.constant 0 : index
    %c0_142 = arith.constant 0 : index
    %336 = vector.load %arg27[%c0_141, %c0_142] : memref<24x3xbf16, #tpu.memory_space<vmem>>, vector<24x3xbf16>
    %337 = arith.truncf %335 : vector<21x24xf32> to vector<21x24xbf16>
    %cst_143 = arith.constant dense<0.000000e+00> : vector<21x3xf32>
    %338 = tpu.matmul %337, %336, %cst_143 {dimension_numbers = #tpu.dot_dimension_numbers<[1], [0], [0], [1], [0, 0, 1, 1], [], []>} : vector<21x24xbf16>, vector<24x3xbf16>, vector<21x3xf32> -> vector<21x3xf32>
    %c0_144 = arith.constant 0 : index
    %c0_145 = arith.constant 0 : index
    %339 = vector.load %arg28[%c0_144, %c0_145] : memref<1x3xf32, #tpu.memory_space<vmem>>, vector<1x3xf32>
    %340 = vector.broadcast %339 : vector<1x3xf32> to vector<21x3xf32>
    %341 = arith.addf %338, %340 : vector<21x3xf32>
    %c0_146 = arith.constant 0 : index
    %c0_147 = arith.constant 0 : index
    %c0_148 = arith.constant 0 : index
    %342 = vector.load %arg33[%c0_146, %c0_147, %c0_148] : memref<1x21x3xf32, #tpu.memory_space<vmem>>, vector<1x21x3xf32>
    %343 = vector.shape_cast %342 : vector<1x21x3xf32> to vector<21x3xf32>
    %344 = vector.shape_cast %341 : vector<21x3xf32> to vector<1x21x3xf32>
    tpu.vector_store %arg33[%c0_146, %c0_147, %c0_148], %344 {strides = array<i32>} : memref<1x21x3xf32, #tpu.memory_space<vmem>>, vector<1x21x3xf32>,
    return
  }
  func.func @transform_0(%arg0: i32) -> (i32, i32, i32) {
    %c0_i32 = arith.constant 0 : i32
    %c0_i32_0 = arith.constant 0 : i32
    %c0_i32_1 = arith.constant 0 : i32
    return %arg0, %c0_i32, %c0_i32_0 : i32, i32, i32
  }
  func.func @transform_1(%arg0: i32) -> (i32, i32, i32) {
    %c0_i32 = arith.constant 0 : i32
    %c0_i32_0 = arith.constant 0 : i32
    %c0_i32_1 = arith.constant 0 : i32
    return %arg0, %c0_i32, %c0_i32_0 : i32, i32, i32
  }
  func.func @transform_2(%arg0: i32) -> (i32, i32) {
    %c0_i32 = arith.constant 0 : i32
    %c0_i32_0 = arith.constant 0 : i32
    %c0_i32_1 = arith.constant 0 : i32
    return %c0_i32, %c0_i32_0 : i32, i32
  }
  func.func @transform_3(%arg0: i32) -> (i32, i32) {
    %c0_i32 = arith.constant 0 : i32
    %c0_i32_0 = arith.constant 0 : i32
    %c0_i32_1 = arith.constant 0 : i32
    return %c0_i32, %c0_i32_0 : i32, i32
  }
  func.func @transform_4(%arg0: i32) -> (i32, i32) {
    %c0_i32 = arith.constant 0 : i32
    %c0_i32_0 = arith.constant 0 : i32
    %c0_i32_1 = arith.constant 0 : i32
    return %c0_i32, %c0_i32_0 : i32, i32
  }
  func.func @transform_5(%arg0: i32) -> (i32, i32) {
    %c0_i32 = arith.constant 0 : i32
    %c0_i32_0 = arith.constant 0 : i32
    %c0_i32_1 = arith.constant 0 : i32
    return %c0_i32, %c0_i32_0 : i32, i32
  }
  func.func @transform_6(%arg0: i32) -> (i32, i32) {
    %c0_i32 = arith.constant 0 : i32
    %c0_i32_0 = arith.constant 0 : i32
    %c0_i32_1 = arith.constant 0 : i32
    return %c0_i32, %c0_i32_0 : i32, i32
  }
  func.func @transform_7(%arg0: i32) -> (i32, i32) {
    %c0_i32 = arith.constant 0 : i32
    %c0_i32_0 = arith.constant 0 : i32
    %c0_i32_1 = arith.constant 0 : i32
    return %c0_i32, %c0_i32_0 : i32, i32
  }
  func.func @transform_8(%arg0: i32) -> (i32, i32) {
    %c0_i32 = arith.constant 0 : i32
    %c0_i32_0 = arith.constant 0 : i32
    %c0_i32_1 = arith.constant 0 : i32
    return %c0_i32, %c0_i32_0 : i32, i32
  }
  func.func @transform_9(%arg0: i32) -> (i32, i32) {
    %c0_i32 = arith.constant 0 : i32
    %c0_i32_0 = arith.constant 0 : i32
    %c0_i32_1 = arith.constant 0 : i32
    return %c0_i32, %c0_i32_0 : i32, i32
  }
  func.func @transform_10(%arg0: i32) -> (i32, i32) {
    %c0_i32 = arith.constant 0 : i32
    %c0_i32_0 = arith.constant 0 : i32
    %c0_i32_1 = arith.constant 0 : i32
    return %c0_i32, %c0_i32_0 : i32, i32
  }
  func.func @transform_11(%arg0: i32) -> (i32, i32) {
    %c0_i32 = arith.constant 0 : i32
    %c0_i32_0 = arith.constant 0 : i32
    %c0_i32_1 = arith.constant 0 : i32
    return %c0_i32, %c0_i32_0 : i32, i32
  }
  func.func @transform_12(%arg0: i32) -> (i32, i32) {
    %c0_i32 = arith.constant 0 : i32
    %c0_i32_0 = arith.constant 0 : i32
    %c0_i32_1 = arith.constant 0 : i32
    return %c0_i32, %c0_i32_0 : i32, i32
  }
  func.func @transform_13(%arg0: i32) -> (i32, i32) {
    %c0_i32 = arith.constant 0 : i32
    %c0_i32_0 = arith.constant 0 : i32
    %c0_i32_1 = arith.constant 0 : i32
    return %c0_i32, %c0_i32_0 : i32, i32
  }
  func.func @transform_14(%arg0: i32) -> (i32, i32) {
    %c0_i32 = arith.constant 0 : i32
    %c0_i32_0 = arith.constant 0 : i32
    %c0_i32_1 = arith.constant 0 : i32
    return %c0_i32, %c0_i32_0 : i32, i32
  }
  func.func @transform_15(%arg0: i32) -> (i32, i32) {
    %c0_i32 = arith.constant 0 : i32
    %c0_i32_0 = arith.constant 0 : i32
    %c0_i32_1 = arith.constant 0 : i32
    return %c0_i32, %c0_i32_0 : i32, i32
  }
  func.func @transform_16(%arg0: i32) -> (i32, i32) {
    %c0_i32 = arith.constant 0 : i32
    %c0_i32_0 = arith.constant 0 : i32
    %c0_i32_1 = arith.constant 0 : i32
    return %c0_i32, %c0_i32_0 : i32, i32
  }
  func.func @transform_17(%arg0: i32) -> (i32, i32) {
    %c0_i32 = arith.constant 0 : i32
    %c0_i32_0 = arith.constant 0 : i32
    %c0_i32_1 = arith.constant 0 : i32
    return %c0_i32, %c0_i32_0 : i32, i32
  }
  func.func @transform_18(%arg0: i32) -> (i32, i32) {
    %c0_i32 = arith.constant 0 : i32
    %c0_i32_0 = arith.constant 0 : i32
    %c0_i32_1 = arith.constant 0 : i32
    return %c0_i32, %c0_i32_0 : i32, i32
  }
  func.func @transform_19(%arg0: i32) -> (i32, i32) {
    %c0_i32 = arith.constant 0 : i32
    %c0_i32_0 = arith.constant 0 : i32
    %c0_i32_1 = arith.constant 0 : i32
    return %c0_i32, %c0_i32_0 : i32, i32
  }
  func.func @transform_20(%arg0: i32) -> (i32, i32) {
    %c0_i32 = arith.constant 0 : i32
    %c0_i32_0 = arith.constant 0 : i32
    %c0_i32_1 = arith.constant 0 : i32
    return %c0_i32, %c0_i32_0 : i32, i32
  }
  func.func @transform_21(%arg0: i32) -> (i32, i32) {
    %c0_i32 = arith.constant 0 : i32
    %c0_i32_0 = arith.constant 0 : i32
    %c0_i32_1 = arith.constant 0 : i32
    return %c0_i32, %c0_i32_0 : i32, i32
  }
  func.func @transform_22(%arg0: i32) -> (i32, i32) {
    %c0_i32 = arith.constant 0 : i32
    %c0_i32_0 = arith.constant 0 : i32
    %c0_i32_1 = arith.constant 0 : i32
    return %c0_i32, %c0_i32_0 : i32, i32
  }
  func.func @transform_23(%arg0: i32) -> (i32, i32) {
    %c0_i32 = arith.constant 0 : i32
    %c0_i32_0 = arith.constant 0 : i32
    %c0_i32_1 = arith.constant 0 : i32
    return %c0_i32, %c0_i32_0 : i32, i32
  }
  func.func @transform_24(%arg0: i32) -> (i32, i32) {
    %c0_i32 = arith.constant 0 : i32
    %c0_i32_0 = arith.constant 0 : i32
    %c0_i32_1 = arith.constant 0 : i32
    return %c0_i32, %c0_i32_0 : i32, i32
  }
  func.func @transform_25(%arg0: i32) -> (i32, i32) {
    %c0_i32 = arith.constant 0 : i32
    %c0_i32_0 = arith.constant 0 : i32
    %c0_i32_1 = arith.constant 0 : i32
    return %c0_i32, %c0_i32_0 : i32, i32
  }
  func.func @transform_26(%arg0: i32) -> (i32, i32) {
    %c0_i32 = arith.constant 0 : i32
    %c0_i32_0 = arith.constant 0 : i32
    %c0_i32_1 = arith.constant 0 : i32
    return %c0_i32, %c0_i32_0 : i32, i32
  }
  func.func @transform_27(%arg0: i32) -> (i32, i32) {
    %c0_i32 = arith.constant 0 : i32
    %c0_i32_0 = arith.constant 0 : i32
    %c0_i32_1 = arith.constant 0 : i32
    return %c0_i32, %c0_i32_0 : i32, i32
  }
  func.func @transform_28(%arg0: i32) -> (i32, i32, i32) {
    %c0_i32 = arith.constant 0 : i32
    %c0_i32_0 = arith.constant 0 : i32
    %c0_i32_1 = arith.constant 0 : i32
    return %arg0, %c0_i32, %c0_i32_0 : i32, i32, i32
  }
  func.func @transform_29(%arg0: i32) -> (i32, i32, i32) {
    %c0_i32 = arith.constant 0 : i32
    %c0_i32_0 = arith.constant 0 : i32
    %c0_i32_1 = arith.constant 0 : i32
    return %arg0, %c0_i32, %c0_i32_0 : i32, i32, i32
  }
  func.func @transform_30(%arg0: i32) -> (i32, i32, i32) {
    %c0_i32 = arith.constant 0 : i32
    %c0_i32_0 = arith.constant 0 : i32
    %c0_i32_1 = arith.constant 0 : i32
    return %arg0, %c0_i32, %c0_i32_0 : i32, i32, i32
  }
  func.func @transform_31(%arg0: i32) -> (i32, i32, i32, i32) {
    %c0_i32 = arith.constant 0 : i32
    %c0_i32_0 = arith.constant 0 : i32
    %c0_i32_1 = arith.constant 0 : i32
    %c0_i32_2 = arith.constant 0 : i32
    return %arg0, %c0_i32, %c0_i32_0, %c0_i32_1 : i32, i32, i32, i32
  }
  func.func @transform_32(%arg0: i32) -> (i32, i32, i32) {
    %c0_i32 = arith.constant 0 : i32
    %c0_i32_0 = arith.constant 0 : i32
    %c0_i32_1 = arith.constant 0 : i32
    return %arg0, %c0_i32, %c0_i32_0 : i32, i32, i32
  }
}

</mosaic_0001>

<bundles_post_ra>
// kernel: tapor_teacher_forward.4
= control target key start
LH: loop header
LB: loop body
LE: loop exit
PB: predicated region body
PF: predicated region fallthrough
CT: control target
= control target key end

     0   :  { %s2494_s30 = smov 0   ;;  %s3349_s0 = inlined_call_operand.vmem [shape: f32[6,192,9], index: 0, kind: input, shape index: {}]   ;;  %s3350_s1 = inlined_call_operand.vmem [shape: bf16[9,8], index: 1, kind: input, shape index: {}]   ;;  %s3351_s2 = inlined_call_operand.vmem [shape: f32[1,8], index: 2, kind: input, shape index: {}]   ;;  %s3352_s3 = inlined_call_operand.vmem [shape: bf16[9,48,192], index: 3, kind: input, shape index: {}]   ;;  %s3353_s4 = inlined_call_operand.vmem [shape: bf16[72,16], index: 4, kind: input, shape index: {}]   ;;  %s3354_s5 = inlined_call_operand.vmem [shape: f32[1,16], index: 5, kind: input, shape index: {}]   ;;  %s3355_s6 = inlined_call_operand.vmem [shape: bf16[16,21], index: 6, kind: input, shape index: {}]   ;;  %s3356_s7 = inlined_call_operand.vmem [shape: f32[1,21], index: 7, kind: input, shape index: {}]   ;;  %s3357_s8 = inlined_call_operand.vmem [shape: f32[21,21], index: 8, kind: input, shape index: {}]   ;;  %s3358_s9 = inlined_call_operand.vmem [shape: f32[6,21,48], index: 9, kind: output, shape index: {}]  }
   0x1 LB: > { %s1873_s10 = sadd.s32 4294967295, %s2433_s30   ;;  %p1877_p0 = scmp.ge.s32.totalorder %s2433_s30, 1  ;;  %s2433_s30 = sphi %s2494_s30, %s19_s30  }
   0x2   : > { %p287_p1 = scmp.lt.s32.totalorder %s2433_s30, 7 }
   0x4   : > { %p288_p2 = pnand %p1877_p0, %p287_p1 }
   0x5   : > { %p323_p3 = scmp.lt.s32.totalorder (!%p288_p2), %s1873_s10, 5  ;;  %s2436_s24 = smov (!%p288_p2), 16  }
   0x6   : > { %291 = sbr.rel (%p288_p2) target bundleno = 1371 (0x55b), region = 56  ;;  %s2437_s12 = smov (!%p288_p2), 8  }
   0x7   : > { %s2438_s29 = smov (!%p288_p2), 24   ;;  %s2439_s20 = smov (!%p288_p2), 40  }
   0x8   : > { %s2440_s22 = smov (!%p288_p2), 32   ;;  %s2441_s23 = smov (!%p288_p2), 56  }
   0x9   : > { %s2442_s25 = smov (!%p288_p2), 48   ;;  %s2443_s26 = smov (!%p288_p2), 64  }
   0xb   : > { %v1882_v0 = vld [vmem:[%s3350_s1] sm:$0xf]  ;;  %v2217_v1 = vld [vmem:[%s3350_s1] sm:$0x10]  ;;  %vm418_vm0 = vcmask 1043456   ;;  %vm419_vm1 = vcmask 1044480  }
   0xc   : > { %v1883_v2 = vor.u32 %v2217_v1, %v1882_v0  ;;  %v2435_v3 = vmov 65535   ;;  %s3360_s10 = smov (!%p323_p3, %s1873_s10), 5  ;;  %vm381_vm2 = vcmask 72704   ;;  %v2564_v58 = vld [vmem:[%s3351_s2] ss:$0 sm:$0xff]  ;;  %vm587_vm3 = vcmask 523264  }
   0xd   : > { %v420_v4 = vsel %vm418_vm0, 4294967295, %v2435_v3  ;;  %s2285_s15 = smul.u32 192, %s3360_s10  ;;  %vm1565_vm4 = vcmask 64512   ;;  %vm1579_vm5 = vcmask 195584   ;;  %vm1572_vm6 = vcmask 130048  }
   0xe   : > { %v421_v5 = vsel %vm419_vm1, %v420_v4, 0  ;;  %vm1586_vm7 = vcmask 261120   ;;  %vm1593_vm8 = vcmask 326656   ;;  %vm1600_vm9 = vcmask 392192  }
   0xf   : > { %v423_v6 = vand.u32 %v1883_v2, %v421_v5  ;;  %s2515_s18 = scalar_lea.vmem %s3349_s0, %s2285_s15  ;;  %vm1607_vm10 = vcmask 457728   ;;  %vm1663_vm11 = vcmask 588800   ;;  %vm1780_vm12 = vcmask 171008  }
  0x10   : > { %v334_v7 = vld [vmem:[%s2515_s18] sm:$0xff]  ;;  %v335_v8 = vld [vmem:[%s2515_s18 + $0x8] sm:$0xff]  ;;  %v336_v10 = vld [vmem:[%s2515_s18 + $0x10] sm:$0xff]  ;;  %vm1816_vm13 = vcmask 389120  }
  0x11   : > { %432 = vmatpush.bf16.msra.mxu0 %v423_v6  ;;  %v360_v9 = vpack.c.bf16 %v335_v8, %v334_v7  ;;  %v337_v11 = vld [vmem:[%s2515_s18 + $0x18] sm:$0xff]  ;;  %v338_v13 = vld [vmem:[%s2515_s18 + $0x20] sm:$0xff]  ;;  %v339_v14 = vld [vmem:[%s2515_s18 + $0x28] sm:$0xff] }
  0x12   : > { %v361_v12 = vpack.c.bf16 %v337_v11, %v336_v10  ;;  %v362_v15 = vpack.c.bf16 %v339_v14, %v338_v13  ;;  %v340_v16 = vld [vmem:[%s2515_s18 + $0x30] sm:$0xff]  ;;  %v341_v17 = vld [vmem:[%s2515_s18 + $0x38] sm:$0xff]  ;;  %v342_v19 = vld [vmem:[%s2515_s18 + $0x40] sm:$0xff] }
  0x13   : > { %v363_v18 = vpack.c.bf16 %v341_v17, %v340_v16  ;;  %v343_v20 = vld [vmem:[%s2515_s18 + $0x48] sm:$0xff]  ;;  %v344_v22 = vld [vmem:[%s2515_s18 + $0x50] sm:$0xff]  ;;  %v345_v23 = vld [vmem:[%s2515_s18 + $0x58] sm:$0xff] }
  0x14   : > { %1884 = vmatmul.msk.bf16.vlgmr.msra.gmra.mxu0 %vm381_vm2, %v360_v9  ;;  %v364_v21 = vpack.c.bf16 %v343_v20, %v342_v19  ;;  %v365_v24 = vpack.c.bf16 %v345_v23, %v344_v22  ;;  %v346_v25 = vld [vmem:[%s2515_s18 + $0x60] sm:$0xff]  ;;  %v347_v26 = vld [vmem:[%s2515_s18 + $0x68] sm:$0xff]  ;;  %v348_v28 = vld [vmem:[%s2515_s18 + $0x70] sm:$0xff] }
  0x15   : > { %v366_v27 = vpack.c.bf16 %v347_v26, %v346_v25  ;;  %v349_v29 = vld [vmem:[%s2515_s18 + $0x78] sm:$0xff]  ;;  %v350_v31 = vld [vmem:[%s2515_s18 + $0x80] sm:$0xff]  ;;  %v351_v32 = vld [vmem:[%s2515_s18 + $0x88] sm:$0xff] }
  0x16   : > { %v367_v30 = vpack.c.bf16 %v349_v29, %v348_v28  ;;  %v368_v33 = vpack.c.bf16 %v351_v32, %v350_v31  ;;  %v352_v36 = vld [vmem:[%s2515_s18 + $0x90] sm:$0xff]  ;;  %v353_v37 = vld [vmem:[%s2515_s18 + $0x98] sm:$0xff]  ;;  %v354_v41 = vld [vmem:[%s2515_s18 + $0xa0] sm:$0xff] }
  0x17   : > { %v369_v38 = vpack.c.bf16 %v353_v37, %v352_v36  ;;  %v355_v42 = vld [vmem:[%s2515_s18 + $0xa8] sm:$0xff]  ;;  %v356_v46 = vld [vmem:[%s2515_s18 + $0xb0] sm:$0xff]  ;;  %v357_v47 = vld [vmem:[%s2515_s18 + $0xb8] sm:$0xff] }
  0x18   : > { %v370_v43 = vpack.c.bf16 %v355_v42, %v354_v41  ;;  %v371_v48 = vpack.c.bf16 %v357_v47, %v356_v46 }
  0x24   : > { %1885 = vmatmul.msk.bf16.gmra.mxu0 %vm381_vm2, %v361_v12 }
  0x34   : > { %1886 = vmatmul.msk.bf16.gmra.mxu0 %vm381_vm2, %v362_v15 }
  0x44   : > { %1887 = vmatmul.msk.bf16.gmra.mxu0 %vm381_vm2, %v363_v18 }
  0x54   : > { %1888 = vmatmul.msk.bf16.gmra.mxu0 %vm381_vm2, %v364_v21 }
  0x64   : > { %1889 = vmatmul.msk.bf16.gmra.mxu0 %vm381_vm2, %v365_v24 }
  0x74   : > { %1890 = vmatmul.msk.bf16.gmra.mxu0 %vm381_vm2, %v366_v27 }
  0x84   : > { %1891 = vmatmul.msk.bf16.gmra.mxu0 %vm381_vm2, %v367_v30 }
  0x91   : > { %v2543_v34 = vpop.f32.mrf.mxu0 }
  0x94   : > { %1892 = vmatmul.msk.bf16.gmra.mxu0 %vm381_vm2, %v368_v33 }
  0x99   : > { %v2546_v35 = vpop.f32.mrf.mxu0 }
  0x9a   : > { %v437_v42 = vadd.f32 %v2564_v58, %v2546_v35 }
  0xa1   : > { %v2550_v39 = vpop.f32.mrf.mxu0 }
  0xa2   : > { %v440_v37 = vadd.f32 %v2564_v58, %v2550_v39 }
  0xa4   : > { %1893 = vmatmul.msk.bf16.gmra.mxu0 %vm381_vm2, %v369_v38  ;;  %v496_v39 = vmax.f32 %v440_v37, 0.0 }
  0xa9   : > { %v2553_v40 = vpop.f32.mrf.mxu0 }
  0xaa   : > { %v442_v31 = vadd.f32 %v2564_v58, %v2553_v40 }
  0xb1   : > { %v444_v44 = vpop.f32.mrf.mxu0 }
  0xb2   : > { %v445_v28 = vadd.f32 %v2564_v58, %v444_v44 }
  0xb4   : > { %1894 = vmatmul.msk.bf16.gmra.mxu0 %vm381_vm2, %v370_v43  ;;  %v498_v38 = vmax.f32 %v445_v28, 0.0  ;;  %v497_v43 = vmax.f32 %v442_v31, 0.0 }
  0xb6   : > { %v522_v47 = vmin.f32 %v498_v38, 6.0 }
  0xb9   : > { %v446_v45 = vpop.f32.mrf.mxu0 }
  0xba   : > { %v447_v23 = vadd.f32 %v2564_v58, %v446_v45  ;;  %v435_v45 = vadd.f32 %v2564_v58, %v2543_v34 }
  0xbc   : > { %v499_v32 = vmax.f32 %v447_v23, 0.0 }
  0xbe   : > { %v523_v40 = vmin.f32 %v499_v32, 6.0 }
  0xc0   : > { %v2617_v35 = vpack.c.bf16 %v523_v40, %v522_v47 }
  0xc1   : > { %v449_v49 = vpop.f32.mrf.mxu0 }
  0xc2   : > { %v450_v20 = vadd.f32 %v2564_v58, %v449_v49  ;;  %v521_v49 = vmin.f32 %v497_v43, 6.0 }
  0xc4   : > { %1895 = vmatmul.msk.bf16.gmra.mxu0 %vm381_vm2, %v371_v48  ;;  %v500_v29 = vmax.f32 %v450_v20, 0.0  ;;  %v495_v48 = vmax.f32 %v437_v42, 0.0  ;;  %v2229_v20 = vld [vmem:[%s3352_s3 + $0x54] sm:$0xf0] }
  0xc6   : > { %v524_v41 = vmin.f32 %v500_v29, 6.0  ;;  %v519_v34 = vmin.f32 %v495_v48, 6.0  ;;  %v2218_v48 = vld [vmem:[%s3352_s3 + $0x4] sm:$0xf] }
  0xc9   : > { %v451_v50 = vpop.f32.mrf.mxu0 }
  0xca   : > { %v452_v16 = vadd.f32 %v2564_v58, %v451_v50  ;;  %v494_v50 = vmax.f32 %v435_v45, 0.0 }
  0xcc   : > { %v501_v24 = vmax.f32 %v452_v16, 0.0 }
  0xce   : > { %v525_v33 = vmin.f32 %v501_v24, 6.0 }
  0xd0   : > { %v2608_v44 = vpack.c.bf16 %v525_v33, %v524_v41 }
  0xd1   : > { %v454_v51 = vpop.f32.mrf.mxu0 }
  0xd2   : > { %v455_v13 = vadd.f32 %v2564_v58, %v454_v51  ;;  %v520_v51 = vmin.f32 %v496_v39, 6.0 }
  0xd4   : > { %v502_v21 = vmax.f32 %v455_v13, 0.0  ;;  %v1914_v13 = vld [vmem:[%s3352_s3 + $0x20] sm:$0xf] }
  0xd6   : > { %v526_v30 = vmin.f32 %v502_v21, 6.0 }
  0xd9   : > { %v456_v52 = vpop.f32.mrf.mxu0 }
  0xda   : > { %v457_v8 = vadd.f32 %v2564_v58, %v456_v52  ;;  %v2622_v52 = vpack.c.bf16 %v521_v49, %v520_v51  ;;  %v1900_v49 = vld [vmem:[%s3352_s3 + $0x8] sm:$0xf0]  ;;  %v2231_v51 = vld [vmem:[%s3352_s3 + $0x64] sm:$0xf0] }
  0xdc   : > { %v503_v17 = vmax.f32 %v457_v8, 0.0 }
  0xde   : > { %v527_v25 = vmin.f32 %v503_v17, 6.0 }
  0xe0   : > { %v2599_v36 = vpack.c.bf16 %v527_v25, %v526_v30 }
  0xe1   : > { %v459_v53 = vpop.f32.mrf.mxu0 }
  0xe2   : > { %v460_v4 = vadd.f32 %v2564_v58, %v459_v53  ;;  %v518_v53 = vmin.f32 %v494_v50, 6.0  ;;  %v1964_v50 = vld [vmem:[%s3352_s3 + $0x60] sm:$0xf] }
  0xe4   : > { %v504_v14 = vmax.f32 %v460_v4, 0.0  ;;  %v2227_v4 = vld [vmem:[%s3352_s3 + $0x44] sm:$0xf0] }
  0xe6   : > { %v528_v22 = vmin.f32 %v504_v14, 6.0  ;;  %v2223_v14 = vld [vmem:[%s3352_s3 + $0x24] sm:$0xf0] }
  0xe7   : > { %v1915_v24 = vor.u32 %v2223_v14, %v1914_v13 }
  0xe9   : > { %v461_v54 = vpop.f32.mrf.mxu0 }
  0xea   : > { %v462_v1 = vadd.f32 %v2564_v58, %v461_v54 }
  0xec   : > { %v505_v9 = vmax.f32 %v462_v1, 0.0  ;;  %v1906_v1 = vld [vmem:[%s3352_s3 + $0x10] sm:$0xf] }
  0xee   : > { %v529_v18 = vmin.f32 %v505_v9, 6.0 }
  0xf0   : > { %v2589_v26 = vpack.c.bf16 %v529_v18, %v528_v22  ;;  %v1947_v18 = vld [vmem:[%s3352_s3 + $0x50] sm:$0xf] }
  0xf1   : > { %v464_v55 = vpop.f32.mrf.mxu0  ;;  %v1948_v25 = vor.u32 %v2229_v20, %v1947_v18  ;;  %v2236_v18 = vld [vmem:[%s3352_s3 + $0x94] sm:$0xf]  ;;  %v1999_v20 = vld [vmem:[%s3352_s3 + $0x98] sm:$0xf0] }
  0xf2   : > { %v465_v62 = vadd.f32 %v2564_v58, %v464_v55  ;;  %v1898_v55 = vld [vmem:[%s3352_s3] sm:$0xf] }
  0xf4   : > { %v506_v5 = vmax.f32 %v465_v62, 0.0 }
  0xf6   : > { %v530_v15 = vmin.f32 %v506_v5, 6.0 }
  0xf9   : > { %v466_v56 = vpop.f32.mrf.mxu0 }
  0xfa   : > { %v467_v60 = vadd.f32 %v2564_v58, %v466_v56  ;;  %v2219_v56 = vld [vmem:[%s3352_s3 + $0x4] sm:$0xf0] }
  0xfc   : > { %v507_v2 = vmax.f32 %v467_v60, 0.0  ;;  %v2639_v60 = vpack.c.bf16 %v519_v34, %v518_v53  ;;  %v2230_v34 = vld [vmem:[%s3352_s3 + $0x64] sm:$0xf]  ;;  %v1966_v53 = vld [vmem:[%s3352_s3 + $0x68] sm:$0xf0] }
  0xfe   : > { %v531_v10 = vmin.f32 %v507_v2, 6.0  ;;  %v2221_v2 = vld [vmem:[%s3352_s3 + $0x14] sm:$0xf0] }
  0xff   : > { %v1907_v5 = vor.u32 %v2221_v2, %v1906_v1  ;;  %v1974_v1 = vld [vmem:[%s3352_s3 + $0x78] sm:$0xf0] }
 0x100   : > { %v2582_v19 = vpack.c.bf16 %v531_v10, %v530_v15 }
 0x101   : > { %v469_v57 = vpop.f32.mrf.mxu0 }
 0x102   : > { %v470_v59 = vadd.f32 %v2564_v58, %v469_v57  ;;  %v1931_v57 = vld [vmem:[%s3352_s3 + $0x30] sm:$0xf] }
 0x104   : > { %v508_v63 = vmax.f32 %v470_v59, 0.0  ;;  %v2225_v59 = vld [vmem:[%s3352_s3 + $0x34] sm:$0xf0] }
 0x105   : > { %v1932_v62 = vor.u32 %v2225_v59, %v1931_v57  ;;  %v1969_v57 = vor.u32 %v2230_v34, %v1966_v53  ;;  %v2220_v59 = vld [vmem:[%s3352_s3 + $0x14] sm:$0xf] }
 0x106   : > { %v532_v6 = vmin.f32 %v508_v63, 6.0 }
 0x109   : > { %v471_v61 = vpop.f32.mrf.mxu0 }
 0x10a   : > { %v472_v0 = vadd.f32 %v2564_v58, %v471_v61  ;;  %v1899_v61 = vor.u32 %v2219_v56, %v1898_v55  ;;  %v1903_v55 = vor.u32 %v2218_v48, %v1900_v49  ;;  %v1965_v56 = vor.u32 %v2231_v51, %v1964_v50  ;;  %v2237_v48 = vld [vmem:[%s3352_s3 + $0x94] sm:$0xf0]  ;;  %v2046_v49 = vld [vmem:[%s3352_s3 + $0xe0] sm:$0xf]  ;;  %v2247_v50 = vld [vmem:[%s3352_s3 + $0xe4] sm:$0xf0] }
 0x10b   : > { %v2047_v51 = vor.u32 %v2247_v50, %v2046_v49  ;;  %v2131_v49 = vld [vmem:[%s3352_s3 + $0x158] sm:$0xf0] }
 0x10c   : > { %v509_v3 = vmax.f32 %v472_v0, 0.0 }
 0x10e   : > { %v533_v7 = vmin.f32 %v509_v3, 6.0  ;;  %v1939_v3 = vld [vmem:[%s3352_s3 + $0x40] sm:$0xf] }
 0x110   : > { %v2573_v11 = vpack.c.bf16 %v533_v7, %v532_v6  ;;  %v1940_v6 = vor.u32 %v2227_v4, %v1939_v3 }
 0x111   : > { %v2575_v12 = vpop.f32.mrf.mxu0 }
 0x112   : > { %597 = vmatpush.bf16.msra.mxu1 %v2573_v11  ;;  %688 = vmatpush.bf16.msra.mxu3 %v2573_v11  ;;  %v475_v41 = vadd.f32 %v2564_v58, %v2575_v12 }
 0x113   : > { %1143 = vmatpush.bf16.msrb.mxu0 %v2573_v11 }
 0x116   : > { %598 = vmatpush.bf16.msra.mxu1 %v2582_v19  ;;  %689 = vmatpush.bf16.msra.mxu3 %v2582_v19 }
 0x117   : > { %1144 = vmatpush.bf16.msrb.mxu0 %v2582_v19 }
 0x119   : > { %v2591_v27 = vpop.f32.mrf.mxu0 }
 0x11a   : > { %599 = vmatpush.bf16.msra.mxu1 %v2589_v26  ;;  %690 = vmatpush.bf16.msra.mxu3 %v2589_v26  ;;  %v477_v32 = vadd.f32 %v2564_v58, %v2591_v27 }
 0x11b   : > { %1145 = vmatpush.bf16.msrb.mxu0 %v2589_v26 }
 0x11c   : > { %v511_v40 = vmax.f32 %v477_v32, 0.0  ;;  %v1949_v32 = vld [vmem:[%s3352_s3 + $0x58] sm:$0xf0] }
 0x11e   : > { %600 = vmatpush.bf16.msra.mxu1 %v2599_v36  ;;  %691 = vmatpush.bf16.msra.mxu3 %v2599_v36 }
 0x11f   : > { %1146 = vmatpush.bf16.msrb.mxu0 %v2599_v36 }
 0x121   : > { %v2612_v46 = vpop.f32.mrf.mxu0 }
 0x122   : > { %601 = vmatpush.bf16.msra.mxu1 %v2608_v44  ;;  %692 = vmatpush.bf16.msra.mxu3 %v2608_v44  ;;  %v480_v28 = vadd.f32 %v2564_v58, %v2612_v46  ;;  %v510_v46 = vmax.f32 %v475_v41, 0.0 }
 0x123   : > { %1147 = vmatpush.bf16.msrb.mxu0 %v2608_v44 }
 0x124   : > { %v512_v42 = vmax.f32 %v480_v28, 0.0  ;;  %v534_v47 = vmin.f32 %v510_v46, 6.0  ;;  %v2226_v28 = vld [vmem:[%s3352_s3 + $0x44] sm:$0xf] }
 0x126   : > { %602 = vmatpush.bf16.msra.mxu1 %v2617_v35  ;;  %693 = vmatpush.bf16.msra.mxu3 %v2617_v35  ;;  %v536_v39 = vmin.f32 %v512_v42, 6.0 }
 0x127   : > { %1148 = vmatpush.bf16.msrb.mxu0 %v2617_v35 }
 0x129   : > { %v481_v54 = vpop.f32.mrf.mxu0 }
 0x12a   : > { %603 = vmatpush.bf16.msra.mxu1 %v2622_v52  ;;  %694 = vmatpush.bf16.msra.mxu3 %v2622_v52  ;;  %v482_v21 = vadd.f32 %v2564_v58, %v481_v54 }
 0x12b   : > { %1149 = vmatpush.bf16.msrb.mxu0 %v2622_v52 }
 0x12c   : > { %v513_v33 = vmax.f32 %v482_v21, 0.0  ;;  %v2030_v21 = vld [vmem:[%s3352_s3 + $0xc0] sm:$0xf] }
 0x12e   : > { %604 = vmatpush.bf16.msra.mxu1 %v2639_v60  ;;  %695 = vmatpush.bf16.msra.mxu3 %v2639_v60  ;;  %v537_v45 = vmin.f32 %v513_v33, 6.0  ;;  %v2038_v33 = vld [vmem:[%s3352_s3 + $0xd0] sm:$0xf] }
 0x12f   : > { %1150 = vmatpush.bf16.msrb.mxu0 %v2639_v60 }
 0x130   : > { %v2705_v12 = vpack.c.bf16 %v537_v45, %v536_v39  ;;  %v2007_v45 = vld [vmem:[%s3352_s3 + $0xa8] sm:$0xf0] }
 0x131   : > { %v484_v63 = vpop.f32.mrf.mxu0  ;;  %605 = vmatmul.bf16.vlgmr.msra.gmra.mxu1 %v1899_v61  ;;  %696 = vmatmul.bf16.vlgmr.msra.gmra.mxu3 %v1932_v62  ;;  %v1908_v61 = vld [vmem:[%s3352_s3 + $0x18] sm:$0xf0]  ;;  %v1972_v62 = vld [vmem:[%s3352_s3 + $0x70] sm:$0xf] }
 0x132   : > { %779 = vmatpush.bf16.msrb.mxu1 %v2573_v11  ;;  %v485_v15 = vadd.f32 %v2564_v58, %v484_v63  ;;  %v2233_v63 = vld [vmem:[%s3352_s3 + $0x74] sm:$0xf0]  ;;  %v1911_v2 = vor.u32 %v2220_v59, %v1908_v61 }
 0x133   : > { %1325 = vmatpush.bf16.msra.mxu0 %v2573_v11  ;;  %v1973_v3 = vor.u32 %v2233_v63, %v1972_v62  ;;  %v2248_v63 = vld [vmem:[%s3352_s3 + $0xf4] sm:$0xf] }
 0x134   : > { %v514_v29 = vmax.f32 %v485_v15, 0.0 }
 0x136   : > { %780 = vmatpush.bf16.msrb.mxu1 %v2582_v19  ;;  %v538_v43 = vmin.f32 %v514_v29, 6.0  ;;  %v1941_v29 = vld [vmem:[%s3352_s3 + $0x48] sm:$0xf0] }
 0x137   : > { %1326 = vmatpush.bf16.msra.mxu0 %v2582_v19 }
 0x139   : > { %v486_v0 = vpop.f32.mrf.mxu0 }
 0x13a   : > { %781 = vmatpush.bf16.msrb.mxu1 %v2589_v26  ;;  %v487_v9 = vadd.f32 %v2564_v58, %v486_v0  ;;  %v2232_v0 = vld [vmem:[%s3352_s3 + $0x74] sm:$0xf] }
 0x13b   : > { %1327 = vmatpush.bf16.msra.mxu0 %v2589_v26  ;;  %v1977_v4 = vor.u32 %v2232_v0, %v1974_v1  ;;  %v2065_v0 = vld [vmem:[%s3352_s3 + $0xf8] sm:$0xf0] }
 0x13c   : > { %v515_v22 = vmax.f32 %v487_v9, 0.0  ;;  %v2234_v9 = vld [vmem:[%s3352_s3 + $0x84] sm:$0xf]  ;;  %v2068_v1 = vor.u32 %v2248_v63, %v2065_v0 }
 0x13e   : > { %782 = vmatpush.bf16.msrb.mxu1 %v2599_v36  ;;  %v539_v37 = vmin.f32 %v515_v22, 6.0  ;;  %v2243_v22 = vld [vmem:[%s3352_s3 + $0xc4] sm:$0xf0] }
 0x13f   : > { %1328 = vmatpush.bf16.msra.mxu0 %v2599_v36 }
 0x140   : > { %v2700_v27 = vpack.c.bf16 %v539_v37, %v538_v43  ;;  %v2245_v37 = vld [vmem:[%s3352_s3 + $0xd4] sm:$0xf0] }
 0x141   : > { %v489_v7 = vpop.f32.mrf.mxu0  ;;  %610 = vmatmul.bf16.gmra.mxu1 %v1907_v5  ;;  %701 = vmatmul.bf16.gmra.mxu3 %v1940_v6  ;;  %v2222_v5 = vld [vmem:[%s3352_s3 + $0x24] sm:$0xf]  ;;  %v1916_v6 = vld [vmem:[%s3352_s3 + $0x28] sm:$0xf0]  ;;  %v2039_v41 = vor.u32 %v2245_v37, %v2038_v33  ;;  %v2079_v33 = vld [vmem:[%s3352_s3 + $0x110] sm:$0xf] }
 0x142   : > { %783 = vmatpush.bf16.msrb.mxu1 %v2608_v44  ;;  %v490_v8 = vadd.f32 %v2564_v58, %v489_v7  ;;  %v1980_v7 = vld [vmem:[%s3352_s3 + $0x80] sm:$0xf]  ;;  %v1919_v13 = vor.u32 %v2222_v5, %v1916_v6  ;;  %v2253_v37 = vld [vmem:[%s3352_s3 + $0x114] sm:$0xf0] }
 0x143   : > { %1329 = vmatpush.bf16.msra.mxu0 %v2608_v44 }
 0x144   : > { %v516_v16 = vmax.f32 %v490_v8, 0.0  ;;  %v2235_v8 = vld [vmem:[%s3352_s3 + $0x84] sm:$0xf0] }
 0x145   : > { %v1981_v14 = vor.u32 %v2235_v8, %v1980_v7 }
 0x146   : > { %784 = vmatpush.bf16.msrb.mxu1 %v2617_v35  ;;  %v540_v30 = vmin.f32 %v516_v16, 6.0  ;;  %v2224_v16 = vld [vmem:[%s3352_s3 + $0x34] sm:$0xf] }
 0x147   : > { %1330 = vmatpush.bf16.msra.mxu0 %v2617_v35 }
 0x149   : > { %v491_v10 = vpop.f32.mrf.mxu0 }
 0x14a   : > { %785 = vmatpush.bf16.msrb.mxu1 %v2622_v52  ;;  %v492_v17 = vadd.f32 %v2564_v58, %v491_v10  ;;  %v535_v58 = vmin.f32 %v511_v40, 6.0  ;;  %v1982_v10 = vld [vmem:[%s3352_s3 + $0x88] sm:$0xf0]  ;;  %v2238_v40 = vld [vmem:[%s3352_s3 + $0xa4] sm:$0xf] }
 0x14b   : > { %1331 = vmatpush.bf16.msra.mxu0 %v2622_v52  ;;  %v1985_v15 = vor.u32 %v2234_v9, %v1982_v10  ;;  %v2010_v46 = vor.u32 %v2238_v40, %v2007_v45  ;;  %v2013_v9 = vld [vmem:[%s3352_s3 + $0xb0] sm:$0xf] }
 0x14c   : > { %v517_v23 = vmax.f32 %v492_v17, 0.0  ;;  %v2728_v54 = vpack.c.bf16 %v535_v58, %v534_v47  ;;  %v1933_v17 = vld [vmem:[%s3352_s3 + $0x38] sm:$0xf0]  ;;  %v1997_v47 = vld [vmem:[%s3352_s3 + $0x90] sm:$0xf] }
 0x14d   : > { %v1998_v53 = vor.u32 %v2237_v48, %v1997_v47  ;;  %v2260_v48 = vld [vmem:[%s3352_s3 + $0x154] sm:$0xf] }
 0x14e   : > { %786 = vmatpush.bf16.msrb.mxu1 %v2639_v60  ;;  %v541_v31 = vmin.f32 %v517_v23, 6.0  ;;  %v1936_v23 = vor.u32 %v2224_v16, %v1933_v17  ;;  %v2251_v16 = vld [vmem:[%s3352_s3 + $0x104] sm:$0xf0]  ;;  %v2134_v50 = vor.u32 %v2260_v48, %v2131_v49  ;;  %v2254_v48 = vld [vmem:[%s3352_s3 + $0x124] sm:$0xf] }
 0x14f   : > { %1332 = vmatpush.bf16.msra.mxu0 %v2639_v60 }
 0x150   : > { %v2693_v38 = vpack.c.bf16 %v541_v31, %v540_v30  ;;  %v1944_v30 = vor.u32 %v2226_v28, %v1941_v29  ;;  %v2228_v31 = vld [vmem:[%s3352_s3 + $0x54] sm:$0xf]  ;;  %v2032_v28 = vld [vmem:[%s3352_s3 + $0xc8] sm:$0xf0] }
 0x151   : > { %615 = vmatmul.bf16.gmra.mxu1 %v1915_v24  ;;  %706 = vmatmul.bf16.gmra.mxu3 %v1948_v25  ;;  %v2002_v24 = vor.u32 %v2236_v18, %v1999_v20  ;;  %v2031_v25 = vor.u32 %v2243_v22, %v2030_v21  ;;  %v1952_v42 = vor.u32 %v2228_v31, %v1949_v32  ;;  %v2081_v22 = vld [vmem:[%s3352_s3 + $0x118] sm:$0xf0] }
 0x152   : > { %625 = vmatpush.bf16.msra.mxu2 %v2693_v38  ;;  %807 = vmatpush.bf16.msrb.mxu3 %v2693_v38 }
 0x153   : > { %898 = vmatpush.bf16.msra.mxu1 %v2693_v38 }
 0x156   : > { %626 = vmatpush.bf16.msra.mxu2 %v2700_v27  ;;  %808 = vmatpush.bf16.msrb.mxu3 %v2700_v27 }
 0x157   : > { %899 = vmatpush.bf16.msra.mxu1 %v2700_v27 }
 0x15a   : > { %627 = vmatpush.bf16.msra.mxu2 %v2705_v12  ;;  %809 = vmatpush.bf16.msrb.mxu3 %v2705_v12 }
 0x15b   : > { %900 = vmatpush.bf16.msra.mxu1 %v2705_v12 }
 0x15e   : > { %628 = vmatpush.bf16.msra.mxu2 %v2728_v54  ;;  %810 = vmatpush.bf16.msrb.mxu3 %v2728_v54 }
 0x15f   : > { %901 = vmatpush.bf16.msra.mxu1 %v2728_v54 }
 0x161   : > { %1920 = vmatmul.msk.bf16.vlgmr.msra.gmra.mxu2 %vm587_vm3, %v1903_v55  ;;  %787 = vmatmul.bf16.vlgmr.msrb.gmra.mxu1 %v1965_v56  ;;  %v2240_v56 = vld [vmem:[%s3352_s3 + $0xb4] sm:$0xf] }
 0x162   : > { %716 = vmatpush.bf16.msrb.mxu2 %v2693_v38  ;;  %961 = vmatpush.bf16.msra.mxu3 %v2573_v11 }
 0x163   : > { %1986 = vmatmul.msk.bf16.vlgmr.msrb.gmra.mxu3 %vm587_vm3, %v1969_v57  ;;  %1052 = vmatpush.bf16.msrb.mxu1 %v2573_v11  ;;  %v2015_v57 = vld [vmem:[%s3352_s3 + $0xb8] sm:$0xf0] }
 0x164   : > { %v2018_v59 = vor.u32 %v2240_v56, %v2015_v57 }
 0x166   : > { %717 = vmatpush.bf16.msrb.mxu2 %v2700_v27  ;;  %962 = vmatpush.bf16.msra.mxu3 %v2582_v19 }
 0x167   : > { %1053 = vmatpush.bf16.msrb.mxu1 %v2582_v19 }
 0x16a   : > { %718 = vmatpush.bf16.msrb.mxu2 %v2705_v12  ;;  %963 = vmatpush.bf16.msra.mxu3 %v2589_v26 }
 0x16b   : > { %1054 = vmatpush.bf16.msrb.mxu1 %v2589_v26 }
 0x16e   : > { %719 = vmatpush.bf16.msrb.mxu2 %v2728_v54  ;;  %964 = vmatpush.bf16.msra.mxu3 %v2599_v36 }
 0x16f   : > { %1055 = vmatpush.bf16.msrb.mxu1 %v2599_v36 }
 0x171   : > { %1921 = vmatmul.msk.bf16.gmra.mxu2 %vm587_vm3, %v1911_v2  ;;  %792 = vmatmul.bf16.gmra.mxu1 %v1973_v3 }
 0x172   : > { %870 = vmatpush.bf16.msra.mxu2 %v2573_v11  ;;  %965 = vmatpush.bf16.msra.mxu3 %v2608_v44 }
 0x173   : > { %1987 = vmatmul.msk.bf16.gmra.mxu3 %vm587_vm3, %v1977_v4  ;;  %1056 = vmatpush.bf16.msrb.mxu1 %v2608_v44  ;;  %v2063_v4 = vld [vmem:[%s3352_s3 + $0xf0] sm:$0xf] }
 0x176   : > { %871 = vmatpush.bf16.msra.mxu2 %v2582_v19  ;;  %966 = vmatpush.bf16.msra.mxu3 %v2617_v35 }
 0x177   : > { %1057 = vmatpush.bf16.msrb.mxu1 %v2617_v35 }
 0x17a   : > { %872 = vmatpush.bf16.msra.mxu2 %v2589_v26  ;;  %967 = vmatpush.bf16.msra.mxu3 %v2622_v52 }
 0x17b   : > { %1058 = vmatpush.bf16.msrb.mxu1 %v2622_v52 }
 0x17e   : > { %873 = vmatpush.bf16.msra.mxu2 %v2599_v36  ;;  %968 = vmatpush.bf16.msra.mxu3 %v2639_v60 }
 0x17f   : > { %1059 = vmatpush.bf16.msrb.mxu1 %v2639_v60 }
 0x181   : > { %1922 = vmatmul.msk.bf16.gmra.mxu2 %vm587_vm3, %v1919_v13  ;;  %797 = vmatmul.bf16.gmra.mxu1 %v1981_v14 }
 0x182   : > { %874 = vmatpush.bf16.msra.mxu2 %v2608_v44  ;;  %1080 = vmatpush.bf16.msrb.mxu3 %v2693_v38 }
 0x183   : > { %1988 = vmatmul.msk.bf16.gmra.mxu3 %vm587_vm3, %v1985_v15  ;;  %v2071_v15 = vld [vmem:[%s3352_s3 + $0x100] sm:$0xf] }
 0x184   : > { %v2072_v17 = vor.u32 %v2251_v16, %v2071_v15  ;;  %v2096_v16 = vld [vmem:[%s3352_s3 + $0x120] sm:$0xf] }
 0x186   : > { %875 = vmatpush.bf16.msra.mxu2 %v2617_v35  ;;  %1081 = vmatpush.bf16.msrb.mxu3 %v2700_v27 }
 0x18a   : > { %876 = vmatpush.bf16.msra.mxu2 %v2622_v52  ;;  %1082 = vmatpush.bf16.msrb.mxu3 %v2705_v12 }
 0x18e   : > { %877 = vmatpush.bf16.msra.mxu2 %v2639_v60  ;;  %1083 = vmatpush.bf16.msrb.mxu3 %v2728_v54 }
 0x191   : > { %1953 = vmatmul.msk.bf16.vlgmr.msrb.gmra.mxu2 %vm587_vm3, %v1936_v23  ;;  %2019 = vmatmul.msk.bf16.vlgmr.msra.gmra.mxu1 %vm587_vm3, %v2002_v24 }
 0x192   : > { %989 = vmatpush.bf16.msrb.mxu2 %v2693_v38  ;;  %1234 = vmatpush.bf16.msra.mxu1 %v2573_v11 }
 0x193   : > { %969 = vmatmul.bf16.vlgmr.msra.gmra.mxu3 %v2031_v25  ;;  %v2242_v25 = vld [vmem:[%s3352_s3 + $0xc4] sm:$0xf] }
 0x194   : > { %1262 = vmatpush.bf16.msra.mxu3 %v2693_v38 }
 0x196   : > { %990 = vmatpush.bf16.msrb.mxu2 %v2700_v27  ;;  %1235 = vmatpush.bf16.msra.mxu1 %v2582_v19 }
 0x198   : > { %1263 = vmatpush.bf16.msra.mxu3 %v2700_v27 }
 0x19a   : > { %991 = vmatpush.bf16.msrb.mxu2 %v2705_v12  ;;  %1236 = vmatpush.bf16.msra.mxu1 %v2589_v26 }
 0x19c   : > { %1264 = vmatpush.bf16.msra.mxu3 %v2705_v12 }
 0x19e   : > { %992 = vmatpush.bf16.msrb.mxu2 %v2728_v54  ;;  %1237 = vmatpush.bf16.msra.mxu1 %v2599_v36 }
 0x1a0   : > { %1265 = vmatpush.bf16.msra.mxu3 %v2728_v54 }
 0x1a1   : > { %1954 = vmatmul.msk.bf16.gmra.mxu2 %vm587_vm3, %v1944_v30  ;;  %2020 = vmatmul.msk.bf16.gmra.mxu1 %vm587_vm3, %v2010_v46  ;;  %v2035_v30 = vor.u32 %v2242_v25, %v2032_v28 }
 0x1a2   : > { %1238 = vmatpush.bf16.msra.mxu1 %v2608_v44 }
 0x1a3   : > { %974 = vmatmul.bf16.gmra.mxu3 %v2039_v41 }
 0x1a6   : > { %1239 = vmatpush.bf16.msra.mxu1 %v2617_v35 }
 0x1aa   : > { %1240 = vmatpush.bf16.msra.mxu1 %v2622_v52 }
 0x1ae   : > { %v2861_v43 = vpop.f32.mrf.mxu1  ;;  %1241 = vmatpush.bf16.msra.mxu1 %v2639_v60 }
 0x1b1   : > { %1955 = vmatmul.msk.bf16.gmra.mxu2 %vm587_vm3, %v1952_v42  ;;  %2021 = vmatmul.msk.bf16.gmra.mxu1 %vm587_vm3, %v2018_v59  ;;  %v2080_v42 = vor.u32 %v2253_v37, %v2079_v33  ;;  %v2139_v33 = vld [vmem:[%s3352_s3 + $0x168] sm:$0xf0]  ;;  %v2104_v37 = vld [vmem:[%s3352_s3 + $0x130] sm:$0xf] }
 0x1b3   : > { %979 = vmatmul.bf16.gmra.mxu3 %v2047_v51  ;;  %v2244_v51 = vld [vmem:[%s3352_s3 + $0xd4] sm:$0xf] }
 0x1b4   : > { %v2872_v39 = vpop.f32.mrf.mxu3 }
 0x1b6   : > { %v2874_v58 = vpop.f32.mrf.mxu1 }
 0x1bc   : > { %v2888_v34 = vpop.f32.mrf.mxu3 }
 0x1be   : > { %v2890_v55 = vpop.f32.mrf.mxu1 }
 0x1c1   : > { %878 = vmatmul.bf16.vlgmr.msra.gmra.mxu2 %v1998_v53  ;;  %v2040_v53 = vld [vmem:[%s3352_s3 + $0xd8] sm:$0xf0] }
 0x1c2   : > { %2277 = vmatpush.bf16.msra.mxu2 %v2573_v11  ;;  %v2005_v11 = vld [vmem:[%s3352_s3 + $0xa0] sm:$0xf]  ;;  %v2043_v59 = vor.u32 %v2244_v51, %v2040_v53 }
 0x1c3   : > { %2085 = vmatmul.msk.bf16.vlgmr.msrb.gmra.mxu3 %vm587_vm3, %v2068_v1  ;;  %v2129_v1 = vld [vmem:[%s3352_s3 + $0x150] sm:$0xf] }
 0x1c4   : > { %v2900_v61 = vpop.f32.mrf.mxu3 }
 0x1c6   : > { %2278 = vmatpush.bf16.msra.mxu2 %v2582_v19  ;;  %v2903_v62 = vpop.f32.mrf.mxu1  ;;  %v2239_v19 = vld [vmem:[%s3352_s3 + $0xa4] sm:$0xf0] }
 0x1c7   : > { %v2006_v3 = vor.u32 %v2239_v19, %v2005_v11  ;;  %v2261_v11 = vld [vmem:[%s3352_s3 + $0x154] sm:$0xf0] }
 0x1ca   : > { %2279 = vmatpush.bf16.msra.mxu2 %v2589_v26  ;;  %v2249_v26 = vld [vmem:[%s3352_s3 + $0xf4] sm:$0xf0] }
 0x1cb   : > { %v2064_v6 = vor.u32 %v2249_v26, %v2063_v4 }
 0x1cc   : > { %v2918_v2 = vpop.f32.mrf.mxu3 }
 0x1cd   : > { %1060 = vmatmul.bf16.vlgmr.msrb.gmra.mxu1 %v2064_v6  ;;  %v2246_v6 = vld [vmem:[%s3352_s3 + $0xe4] sm:$0xf] }
 0x1ce   : > { %2280 = vmatpush.bf16.msra.mxu2 %v2599_v36  ;;  %v2928_v5 = vpop.f32.mrf.mxu1  ;;  %v2241_v36 = vld [vmem:[%s3352_s3 + $0xb4] sm:$0xf0] }
 0x1cf   : > { %v2014_v14 = vor.u32 %v2241_v36, %v2013_v9  ;;  %v2048_v9 = vld [vmem:[%s3352_s3 + $0xe8] sm:$0xf0] }
 0x1d1   : > { %883 = vmatmul.bf16.gmra.mxu2 %v2006_v3  ;;  %v2130_v3 = vor.u32 %v2261_v11, %v2129_v1 }
 0x1d2   : > { %2281 = vmatpush.bf16.msra.mxu2 %v2608_v44  ;;  %v2250_v44 = vld [vmem:[%s3352_s3 + $0x104] sm:$0xf] }
 0x1d4   : > { %v2931_v7 = vpop.f32.mrf.mxu3 }
 0x1d6   : > { %2282 = vmatpush.bf16.msra.mxu2 %v2617_v35  ;;  %v2934_v8 = vpop.f32.mrf.mxu1  ;;  %v2073_v35 = vld [vmem:[%s3352_s3 + $0x108] sm:$0xf0] }
 0x1d7   : > { %v2076_v10 = vor.u32 %v2250_v44, %v2073_v35  ;;  %v2051_v44 = vor.u32 %v2246_v6, %v2048_v9  ;;  %v2162_v6 = vld [vmem:[%s3352_s3 + $0x180] sm:$0xf]  ;;  %v2267_v9 = vld [vmem:[%s3352_s3 + $0x184] sm:$0xf0] }
 0x1d9   : > { %2086 = vmatmul.msk.bf16.gmra.mxu3 %vm587_vm3, %v2076_v10 }
 0x1da   : > { %2283 = vmatpush.bf16.msra.mxu2 %v2622_v52 }
 0x1dc   : > { %v2949_v13 = vpop.f32.mrf.mxu3 }
 0x1dd   : > { %1065 = vmatmul.bf16.gmra.mxu1 %v2072_v17  ;;  %v2255_v17 = vld [vmem:[%s3352_s3 + $0x124] sm:$0xf0] }
 0x1de   : > { %2284 = vmatpush.bf16.msra.mxu2 %v2639_v60  ;;  %v788_v52 = vpop.f32.mrf.mxu1  ;;  %v2252_v60 = vld [vmem:[%s3352_s3 + $0x114] sm:$0xf] }
 0x1df   : > { %v2084_v24 = vor.u32 %v2252_v60, %v2081_v22  ;;  %v2259_v60 = vld [vmem:[%s3352_s3 + $0x144] sm:$0xf0] }
 0x1e1   : > { %888 = vmatmul.bf16.gmra.mxu2 %v2014_v14 }
 0x1e4   : > { %v630_v18 = vpop.f32.mrf.mxu2 }
 0x1e5   : > { %v2960_v20 = vadd.f32 %v630_v18, %v2861_v43  ;;  %v2097_v18 = vor.u32 %v2255_v17, %v2096_v16  ;;  %v2114_v16 = vld [vmem:[%s3352_s3 + $0x148] sm:$0xf0] }
 0x1e6   : > { %v812_v21 = vpop.f32.mrf.mxu3  ;;  %v790_v23 = vpop.f32.mrf.mxu1 }
 0x1e7   : > { %v813_v31 = vadd.f32 %v812_v21, %v788_v52  ;;  %1151 = vmatmul.bf16.vlgmr.msrb.gmra.mxu0 %v2097_v18  ;;  %v2112_v21 = vld [vmem:[%s3352_s3 + $0x140] sm:$0xf] }
 0x1e8   : > { %v2113_v25 = vor.u32 %v2259_v60, %v2112_v21 }
 0x1e9   : > { %2087 = vmatmul.msk.bf16.gmra.mxu3 %vm587_vm3, %v2084_v24 }
 0x1ec   : > { %v2974_v29 = vpop.f32.mrf.mxu2 }
 0x1ed   : > { %1070 = vmatmul.bf16.gmra.mxu1 %v2080_v42  ;;  %v2137_v42 = vld [vmem:[%s3352_s3 + $0x160] sm:$0xf] }
 0x1ee   : > { %v814_v32 = vpop.f32.mrf.mxu3  ;;  %v793_v43 = vpop.f32.mrf.mxu1 }
 0x1ef   : > { %v815_v41 = vadd.f32 %v814_v32, %v790_v23  ;;  %v2262_v32 = vld [vmem:[%s3352_s3 + $0x164] sm:$0xf] }
 0x1f1   : > { %2052 = vmatmul.msk.bf16.vlgmr.msrb.gmra.mxu2 %vm587_vm3, %v2035_v30  ;;  %v2304_v40 = vpack.i.bf16 %v815_v41, %v813_v31  ;;  %v2257_v41 = vld [vmem:[%s3352_s3 + $0x134] sm:$0xf0] }
 0x1f2   : > { %1171 = vmatpush.bf16.msrb.mxu2 %v2693_v38 }
 0x1f3   : > { %2305 = vrot.lane.b32.xlu0 %v2304_v40, %s2436_s24 }
 0x1f4   : > { %v635_v45 = vpop.f32.mrf.mxu2 }
 0x1f5   : > { %v2987_v46 = vadd.f32 %v635_v45, %v2890_v55 }
 0x1f6   : > { %v817_v47 = vpop.f32.mrf.mxu3  ;;  %1172 = vmatpush.bf16.msrb.mxu2 %v2700_v27  ;;  %v795_v55 = vpop.f32.mrf.mxu1 }
 0x1f7   : > { %v818_v57 = vadd.f32 %v817_v47, %v793_v43  ;;  %v2105_v43 = vor.u32 %v2257_v41, %v2104_v37 }
 0x1f9   : > { %2151 = vmatmul.msk.bf16.vlgmr.msra.gmra.mxu3 %vm587_vm3, %v2134_v50  ;;  %1156 = vmatmul.bf16.gmra.mxu0 %v2105_v43 }
 0x1fa   : > { %1173 = vmatpush.bf16.msrb.mxu2 %v2705_v12 }
 0x1fc   : > { %v3003_v56 = vpop.f32.mrf.mxu2 }
 0x1fd   : > { %1242 = vmatmul.bf16.vlgmr.msra.gmra.mxu1 %v2130_v3 }
 0x1fe   : > { %v819_v63 = vpop.f32.mrf.mxu3  ;;  %1174 = vmatpush.bf16.msrb.mxu2 %v2728_v54  ;;  %v798_v35 = vpop.f32.mrf.mxu1 }
 0x1ff   : > { %v820_v0 = vadd.f32 %v819_v63, %v795_v55 }
 0x201   : > { %v2309_v19 = vpack.i.bf16 %v820_v0, %v818_v57  ;;  %2053 = vmatmul.msk.bf16.gmra.mxu2 %vm587_vm3, %v2043_v59 }
 0x203   : > { %2310 = vrot.lane.b32.xlu0 %v2309_v19, %s2436_s24 }
 0x204   : > { %v640_v4 = vpop.f32.mrf.mxu2 }
 0x205   : > { %v3016_v26 = vadd.f32 %v640_v4, %v2928_v5 }
 0x206   : > { %v822_v10 = vpop.f32.mrf.mxu3  ;;  %v3029_v5 = vpop.f32.mrf.mxu1 }
 0x207   : > { %v3026_v14 = vadd.f32 %v822_v10, %v798_v35 }
 0x20c   : > { %v3024_v36 = vpop.f32.mrf.mxu2 }
 0x20e   : > { %v3031_v15 = vpop.f32.mrf.mxu3  ;;  %v903_v30 = vpop.f32.mrf.mxu1 }
 0x211   : > { %2054 = vmatmul.msk.bf16.gmra.mxu2 %vm587_vm3, %v2051_v44 }
 0x214   : > { %v721_v52 = vpop.f32.mrf.mxu2 }
 0x215   : > { %v722_v23 = vadd.f32 %v721_v52, %v2872_v39  ;;  %v2142_v39 = vor.u32 %v2262_v32, %v2139_v33  ;;  %v2258_v52 = vld [vmem:[%s3352_s3 + $0x144] sm:$0xf]  ;;  %v2264_v33 = vld [vmem:[%s3352_s3 + $0x174] sm:$0xf] }
 0x216   : > { %v3047_v31 = vpop.f32.mrf.mxu3  ;;  %v905_v40 = vpop.f32.mrf.mxu1  ;;  %v2117_v60 = vor.u32 %v2258_v52, %v2114_v16 }
 0x217   : > { %2152 = vmatmul.msk.bf16.gmra.mxu3 %vm587_vm3, %v2142_v39  ;;  %v2147_v39 = vld [vmem:[%s3352_s3 + $0x178] sm:$0xf0] }
 0x21c   : > { %v723_v22 = vpop.f32.mrf.mxu2 }
 0x21d   : > { %v724_v24 = vadd.f32 %v723_v22, %v2888_v34 }
 0x21e   : > { %v3071_v45 = vpop.f32.mrf.mxu3  ;;  %v908_v57 = vpop.f32.mrf.mxu1 }
 0x21f   : > { %v2314_v28 = vpack.i.bf16 %v724_v24, %v722_v23  ;;  %v2170_v24 = vld [vmem:[%s3352_s3 + $0x190] sm:$0xf] }
 0x221   : > { %1161 = vmatmul.bf16.vlgmr.msra.gmra.mxu2 %v2113_v25  ;;  %2315 = vrot.lane.b32.xlu0 %v2314_v28, %s2437_s12  ;;  %v2269_v25 = vld [vmem:[%s3352_s3 + $0x194] sm:$0xf0] }
 0x222   : > { %1353 = vmatpush.bf16.msra.mxu2 %v2693_v38  ;;  %v2263_v38 = vld [vmem:[%s3352_s3 + $0x164] sm:$0xf0]  ;;  %v2171_v32 = vor.u32 %v2269_v25, %v2170_v24 }
 0x223   : > { %v2138_v47 = vor.u32 %v2263_v38, %v2137_v42  ;;  %v2266_v38 = vld [vmem:[%s3352_s3 + $0x184] sm:$0xf] }
 0x224   : > { %v726_v34 = vpop.f32.mrf.mxu2 }
 0x225   : > { %1247 = vmatmul.bf16.gmra.mxu1 %v2138_v47  ;;  %v727_v50 = vadd.f32 %v726_v34, %v2900_v61  ;;  %v2256_v61 = vld [vmem:[%s3352_s3 + $0x134] sm:$0xf]  ;;  %v2150_v34 = vor.u32 %v2264_v33, %v2147_v39 }
 0x226   : > { %1354 = vmatpush.bf16.msra.mxu2 %v2700_v27  ;;  %v2098_v27 = vld [vmem:[%s3352_s3 + $0x128] sm:$0xf0]  ;;  %v3083_v59 = vpop.f32.mrf.mxu3  ;;  %v910_v63 = vpop.f32.mrf.mxu1 }
 0x227   : > { %v2101_v53 = vor.u32 %v2254_v48, %v2098_v27  ;;  %2153 = vmatmul.msk.bf16.gmra.mxu3 %vm587_vm3, %v2150_v34 }
 0x22a   : > { %1355 = vmatpush.bf16.msra.mxu2 %v2705_v12 }
 0x22c   : > { %v728_v49 = vpop.f32.mrf.mxu2 }
 0x22d   : > { %v729_v51 = vadd.f32 %v728_v49, %v2918_v2 }
 0x22e   : > { %1356 = vmatpush.bf16.msra.mxu2 %v2728_v54  ;;  %v3087_v0 = vpop.f32.mrf.mxu3  ;;  %v2106_v54 = vld [vmem:[%s3352_s3 + $0x138] sm:$0xf0]  ;;  %v913_v4 = vpop.f32.mrf.mxu1 }
 0x22f   : > { %v2319_v55 = vpack.i.bf16 %v729_v51, %v727_v50  ;;  %v2109_v19 = vor.u32 %v2256_v61, %v2106_v54 }
 0x231   : > { %2118 = vmatmul.msk.bf16.vlgmr.msrb.gmra.mxu2 %vm587_vm3, %v2101_v53  ;;  %2320 = vrot.lane.b32.xlu2 %v2319_v55, %s2437_s12  ;;  %v2145_v55 = vld [vmem:[%s3352_s3 + $0x170] sm:$0xf] }
 0x234   : > { %v731_v12 = vpop.f32.mrf.mxu2 }
 0x235   : > { %v3096_v1 = vadd.f32 %v731_v12, %v2931_v7  ;;  %v2163_v7 = vor.u32 %v2267_v9, %v2162_v6  ;;  %v2265_v12 = vld [vmem:[%s3352_s3 + $0x174] sm:$0xf0]  ;;  %v2268_v6 = vld [vmem:[%s3352_s3 + $0x194] sm:$0xf]  ;;  %v2172_v9 = vld [vmem:[%s3352_s3 + $0x198] sm:$0xf0] }
 0x236   : > { %v3109_v44 = vpop.f32.mrf.mxu3  ;;  %v915_v35 = vpop.f32.mrf.mxu1  ;;  %v2146_v54 = vor.u32 %v2265_v12, %v2145_v55  ;;  %v2175_v52 = vor.u32 %v2268_v6, %v2172_v9 }
 0x237   : > { %1333 = vmatmul.bf16.vlgmr.msra.gmra.mxu0 %v2163_v7 }
 0x238   : > { %1252 = vmatmul.bf16.gmra.mxu1 %v2146_v54 }
 0x23c   : > { %v733_v2 = vpop.f32.mrf.mxu2 }
 0x23d   : > { %v3099_v11 = vadd.f32 %v733_v2, %v2949_v13 }
 0x23e   : > { %v3112_v10 = vpop.f32.mrf.mxu3 }
 0x23f   : > { %v2379_v3 = vpack.i.bf16 %v3099_v11, %v3096_v1 }
 0x241   : > { %2119 = vmatmul.msk.bf16.gmra.mxu2 %vm587_vm3, %v2109_v19 }
 0x244   : > { %v879_v13 = vpop.f32.mrf.mxu2 }
 0x245   : > { %v904_v18 = vadd.f32 %v903_v30, %v879_v13 }
 0x246   : > { %v1085_v28 = vpop.f32.mrf.mxu3 }
 0x247   : > { %1338 = vmatmul.bf16.gmra.mxu0 %v2171_v32  ;;  %v2180_v32 = vld [vmem:[%s3352_s3 + $0x1a8] sm:$0xf0] }
 0x24a   : > { %v1061_v23 = vpop.f32.mrf.mxu1 }
 0x24b   : > { %v1086_v37 = vadd.f32 %v1085_v28, %v1061_v23  ;;  %v2270_v28 = vld [vmem:[%s3352_s3 + $0x1a4] sm:$0xf] }
 0x24c   : > { %v881_v17 = vpop.f32.mrf.mxu2 }
 0x24d   : > { %v906_v21 = vadd.f32 %v905_v40, %v881_v17  ;;  %v2164_v40 = vld [vmem:[%s3352_s3 + $0x188] sm:$0xf0] }
 0x24e   : > { %v1087_v42 = vpop.f32.mrf.mxu3  ;;  %v2167_v50 = vor.u32 %v2266_v38, %v2164_v40 }
 0x24f   : > { %v2324_v22 = vpack.i.bf16 %v906_v21, %v904_v18 }
 0x251   : > { %2120 = vmatmul.msk.bf16.gmra.mxu2 %vm587_vm3, %v2117_v60  ;;  %2325 = vrot.lane.b32.xlu1 %v2324_v22, %s2438_s29  ;;  %v2178_v60 = vld [vmem:[%s3352_s3 + $0x1a0] sm:$0xf] }
 0x252   : > { %v1063_v41 = vpop.f32.mrf.mxu1 }
 0x253   : > { %v1088_v43 = vadd.f32 %v1087_v42, %v1063_v41 }
 0x254   : > { %v884_v30 = vpop.f32.mrf.mxu2 }
 0x255   : > { %v2329_v47 = vpack.i.bf16 %v1088_v43, %v1086_v37  ;;  %v909_v27 = vadd.f32 %v908_v57, %v884_v30  ;;  %v2183_v37 = vor.u32 %v2270_v28, %v2180_v32 }
 0x257   : > { %2330 = vrot.lane.b32.xlu2 %v2329_v47, %s2439_s20 }
 0x25a   : > { %v1066_v53 = vpop.f32.mrf.mxu1 }
 0x25c   : > { %v886_v48 = vpop.f32.mrf.mxu2  ;;  %v1090_v61 = vpop.f32.mrf.mxu3 }
 0x25d   : > { %v911_v49 = vadd.f32 %v910_v63, %v886_v48 }
 0x25f   : > { %v2334_v51 = vpack.i.bf16 %v911_v49, %v909_v27 }
 0x261   : > { %2184 = vmatmul.msk.bf16.vlgmr.msra.gmra.mxu2 %vm587_vm3, %v2167_v50  ;;  %2335 = vrot.lane.b32.xlu1 %v2334_v51, %s2438_s29  ;;  %v1091_v51 = vadd.f32 %v1090_v61, %v1066_v53 }
 0x262   : > { %v1068_v2 = vpop.f32.mrf.mxu1 }
 0x264   : > { %v889_v57 = vpop.f32.mrf.mxu2  ;;  %v1092_v19 = vpop.f32.mrf.mxu3 }
 0x265   : > { %v3150_v63 = vadd.f32 %v913_v4, %v889_v57  ;;  %v1152_v61 = vpop.f32.mrf.mxu0 }
 0x26a   : > { %v1071_v17 = vpop.f32.mrf.mxu1 }
 0x26c   : > { %v891_v7 = vpop.f32.mrf.mxu2  ;;  %v1095_v4 = vpop.f32.mrf.mxu3 }
 0x26d   : > { %v3158_v13 = vadd.f32 %v915_v35, %v891_v7  ;;  %v3163_v18 = vadd.f32 %v1095_v4, %v1071_v17  ;;  %v2271_v35 = vld [vmem:[%s3352_s3 + $0x1a4] sm:$0xf0] }
 0x26e   : > { %v2179_v23 = vor.u32 %v2271_v35, %v2178_v60 }
 0x26f   : > { %v2394_v16 = vpack.i.bf16 %v3158_v13, %v3150_v63  ;;  %v1628_v63 = vld [vmem:[%s3353_s4 + $0x20] sm:$0xf] }
 0x270   : > { %1343 = vmatmul.bf16.gmra.mxu0 %v2179_v23  ;;  %v1653_v13 = vunpack.c.l.b16 %v1628_v63 }
 0x271   : > { %2185 = vmatmul.msk.bf16.gmra.mxu2 %vm587_vm3, %v2175_v52 }
 0x272   : > { %v1073_v22 = vpop.f32.mrf.mxu1 }
 0x274   : > { %v994_v21 = vpop.f32.mrf.mxu2  ;;  %v1097_v24 = vpop.f32.mrf.mxu3 }
 0x275   : > { %v3171_v25 = vadd.f32 %v1097_v24, %v1073_v22  ;;  %v995_v39 = vadd.f32 %v994_v21, %v3047_v31  ;;  %v1093_v31 = vadd.f32 %v1092_v19, %v1068_v2  ;;  %v1154_v19 = vpop.f32.mrf.mxu0 }
 0x277   : > { %v2404_v30 = vpack.i.bf16 %v3171_v25, %v3163_v18 }
 0x27a   : > { %v1243_v42 = vpop.f32.mrf.mxu1 }
 0x27c   : > { %v996_v33 = vpop.f32.mrf.mxu2  ;;  %v1267_v43 = vpop.f32.mrf.mxu3 }
 0x27d   : > { %v997_v34 = vadd.f32 %v996_v33, %v3071_v45  ;;  %v1268_v40 = vadd.f32 %v1267_v43, %v1243_v42  ;;  %v2359_v45 = vpack.i.bf16 %v1093_v31, %v1091_v51  ;;  %v1157_v28 = vpop.f32.mrf.mxu0 }
 0x27f   : > { %v2339_v41 = vpack.i.bf16 %v997_v34, %v995_v39 }
 0x281   : > { %2340 = vrot.lane.b32.xlu1 %v2339_v41, %s2440_s22  ;;  %2186 = vmatmul.msk.bf16.gmra.mxu2 %vm587_vm3, %v2183_v37  ;;  %v825_v41 = vadd.f32 %v3031_v15, %v3029_v5 }
 0x282   : > { %v1245_v47 = vpop.f32.mrf.mxu1 }
 0x283   : > { %v2384_v42 = vpack.i.bf16 %v825_v41, %v3026_v14 }
 0x284   : > { %v999_v38 = vpop.f32.mrf.mxu2  ;;  %v1269_v48 = vpop.f32.mrf.mxu3 }
 0x285   : > { %v1270_v27 = vadd.f32 %v1269_v48, %v1245_v47  ;;  %v1000_v35 = vadd.f32 %v999_v38, %v3083_v59  ;;  %v1159_v37 = vpop.f32.mrf.mxu0 }
 0x287   : > { %v2344_v49 = vpack.i.bf16 %v1270_v27, %v1268_v40 }
 0x289   : > { %2345 = vrot.lane.b32.xlu0 %v2344_v49, %s2441_s23 }
 0x28c   : > { %v1001_v50 = vpop.f32.mrf.mxu2 }
 0x291   : > { %2360 = vrot.lane.b32.xlu0 %v2359_v45, %s2439_s20 }
 0x294   : > { %v1004_v55 = vpop.f32.mrf.mxu2 }
 0x295   : > { %v3188_v54 = vadd.f32 %v1004_v55, %v3109_v44  ;;  %v1002_v44 = vadd.f32 %v1001_v50, %v3087_v0 }
 0x297   : > { %v2354_v24 = vpack.i.bf16 %v1002_v44, %v1000_v35  ;;  %v2306_v35 = vpop.permute.xlu0 %2305 }
 0x29a   : > { %v1272_v17 = vpop.f32.mrf.mxu3 }
 0x29c   : > { %v1006_v12 = vpop.f32.mrf.mxu2 }
 0x29d   : > { %v3191_v57 = vadd.f32 %v1006_v12, %v3112_v10 }
 0x29f   : > { %v2399_v6 = vpack.i.bf16 %v3191_v57, %v3188_v54  ;;  %v2275_v57 = vld [vmem:[%s3353_s4 + $0x18] sm:$0xff] }
 0x2a2   : > { %v1248_v7 = vpop.f32.mrf.mxu1  ;;  %v1274_v23 = vpop.f32.mrf.mxu3 }
 0x2a3   : > { %v1273_v32 = vadd.f32 %v1272_v17, %v1248_v7 }
 0x2a4   : > { %v1162_v9 = vpop.f32.mrf.mxu2 }
 0x2aa   : > { %v1250_v22 = vpop.f32.mrf.mxu1 }
 0x2ab   : > { %v1275_v33 = vadd.f32 %v1274_v23, %v1250_v22  ;;  %v3239_v22 = vpop.permute.xlu2 %2320  ;;  %v3241_v23 = vpop.permute.xlu0 %2310 }
 0x2ac   : > { %v1164_v53 = vpop.f32.mrf.mxu2  ;;  %v2313_v63 = vunpack.i.h.bf16 %v3241_v23 }
 0x2ad   : > { %v2374_v34 = vpack.i.bf16 %v1275_v33, %v1273_v32 }
 0x2b3   : > { %v2331_v32 = vpop.permute.xlu2 %2330 }
 0x2b4   : > { %v1176_v2 = vpop.f32.mrf.mxu2  ;;  %v1334_v59 = vpop.f32.mrf.mxu0 }
 0x2b5   : > { %v1177_v4 = vadd.f32 %v1176_v2, %v1152_v61 }
 0x2bc   : > { %v1178_v52 = vpop.f32.mrf.mxu2  ;;  %v1336_v48 = vpop.f32.mrf.mxu0 }
 0x2bd   : > { %v1179_v21 = vadd.f32 %v1178_v52, %v1154_v19 }
 0x2bf   : > { %v2349_v60 = vpack.i.bf16 %v1179_v21, %v1177_v4 }
 0x2c1   : > { %2350 = vrot.lane.b32.xlu2 %v2349_v60, %s2442_s25 }
 0x2c4   : > { %v1181_v10 = vpop.f32.mrf.mxu2  ;;  %v1339_v15 = vpop.f32.mrf.mxu0 }
 0x2c5   : > { %v1182_v45 = vadd.f32 %v1181_v10, %v1157_v28  ;;  %v2273_v10 = vld [vmem:[%s3353_s4 + $0x8] sm:$0xff]  ;;  %v2272_v28 = vld [vmem:[%s3353_s4] sm:$0xff] }
 0x2c9   : > { %2355 = vrot.lane.b32.xlu2 %v2354_v24, %s2440_s22  ;;  %v2326_v24 = vpop.permute.xlu1 %2325 }
 0x2cc   : > { %v1183_v39 = vpop.f32.mrf.mxu2  ;;  %v1341_v12 = vpop.f32.mrf.mxu0 }
 0x2cd   : > { %v1184_v14 = vadd.f32 %v1183_v39, %v1159_v37  ;;  %v2316_v39 = vpop.permute.xlu0 %2315 }
 0x2ce   : > { %v2318_v37 = vunpack.i.h.bf16 %v2316_v39  ;;  %v2317_v41 = vunpack.i.l.bf16 %v2316_v39 }
 0x2cf   : > { %v2369_v55 = vpack.i.bf16 %v1184_v14, %v1182_v45  ;;  %v2332_v14 = vunpack.i.l.bf16 %v2331_v32 }
 0x2d1   : > { %2375 = vrot.lane.b32.xlu2 %v2374_v34, %s2441_s23 }
 0x2d3   : > { %v3246_v33 = vpop.permute.xlu1 %2335 }
 0x2d4   : > { %v1186_v0 = vpop.f32.mrf.mxu2 }
 0x2d5   : > { %v1187_v38 = vadd.f32 %v1186_v0, %v1162_v9  ;;  %v633_v0 = vadd.f32 %v2974_v29, %v2874_v58 }
 0x2d9   : > { %2385 = vrot.lane.b32.xlu2 %v2384_v42, %s2436_s24  ;;  %v2308_v42 = vunpack.i.h.bf16 %v2306_v35 }
 0x2dc   : > { %v1188_v43 = vpop.f32.mrf.mxu2 }
 0x2dd   : > { %v1189_v40 = vadd.f32 %v1188_v43, %v1164_v53  ;;  %v1277_v53 = vpop.f32.mrf.mxu3  ;;  %v2307_v43 = vunpack.i.l.bf16 %v2306_v35 }
 0x2df   : > { %v2409_v47 = vpack.i.bf16 %v1189_v40, %v1187_v38  ;;  %v1567_v38 = vsel %vm1565_vm4, %v633_v0, %v2318_v37  ;;  %v2328_v40 = vunpack.i.h.bf16 %v2326_v24 }
 0x2e1   : > { %2405 = vrot.lane.b32.xlu2 %v2404_v30, %s2439_s20  ;;  %v1253_v30 = vpop.f32.mrf.mxu1  ;;  %s2286_s20 = smul.u32 24, %s3360_s10 }
 0x2e2   : > { %v1278_v4 = vadd.f32 %v1277_v53, %v1253_v30 }
 0x2e3   : > { %s332_s11 = scalar_lea.vmem %s3358_s9, %s2286_s20 }
 0x2e4   : > { %v1358_v27 = vpop.f32.mrf.mxu2 }
 0x2e5   : > { %v1359_v50 = vadd.f32 %v1358_v27, %v1334_v59  ;;  %v1279_v52 = vpop.f32.mrf.mxu3 }
 0x2e9   : > { %v1255_v7 = vpop.f32.mrf.mxu1 }
 0x2ea   : > { %v1280_v21 = vadd.f32 %v1279_v52, %v1255_v7  ;;  %v2323_v52 = vunpack.i.h.bf16 %v3239_v22 }
 0x2ec   : > { %v1360_v49 = vpop.f32.mrf.mxu2  ;;  %v2414_v11 = vpack.i.bf16 %v1280_v21, %v1278_v4 }
 0x2ed   : > { %v1361_v5 = vadd.f32 %v1360_v49, %v1336_v48  ;;  %v1344_v2 = vpop.f32.mrf.mxu0  ;;  %v2327_v48 = vunpack.i.l.bf16 %v2326_v24 }
 0x2ef   : > { %v2364_v51 = vpack.i.bf16 %v1361_v5, %v1359_v50  ;;  %v1574_v50 = vsel %vm1572_vm6, %v1567_v38, %v2308_v42 }
 0x2f0   : > { %v1581_v29 = vsel %vm1579_vm5, %v1574_v50, %v2328_v40 }
 0x2f1   : > { %2365 = vrot.lane.b32.xlu1 %v2364_v51, %s2443_s26  ;;  %v2333_v51 = vunpack.i.h.bf16 %v2331_v32 }
 0x2f3   : > { %v2341_v59 = vpop.permute.xlu1 %2340 }
 0x2f4   : > { %v1363_v31 = vpop.f32.mrf.mxu2  ;;  %v2343_v27 = vunpack.i.h.bf16 %v2341_v59  ;;  %v2342_v49 = vunpack.i.l.bf16 %v2341_v59 }
 0x2f5   : > { %v1364_v18 = vadd.f32 %v1363_v31, %v1339_v15  ;;  %v1346_v17 = vpop.f32.mrf.mxu0 }
 0x2f6   : > { %v1588_v31 = vsel %vm1586_vm7, %v1581_v29, %v2343_v27 }
 0x2f9   : > { %2370 = vrot.lane.b32.xlu1 %v2369_v55, %s2442_s25 }
 0x2fc   : > { %v1365_v9 = vpop.f32.mrf.mxu2 }
 0x2fd   : > { %v1366_v25 = vadd.f32 %v1365_v9, %v1341_v12  ;;  %v2346_v12 = vpop.permute.xlu0 %2345 }
 0x2fe   : > { %v2347_v30 = vunpack.i.l.bf16 %v2346_v12 }
 0x2ff   : > { %v2389_v61 = vpack.i.bf16 %v1366_v25, %v1364_v18  ;;  %v1595_v18 = vsel %vm1593_vm8, %v1588_v31, %v2333_v51  ;;  %v2348_v25 = vunpack.i.h.bf16 %v2346_v12  ;;  %v643_v31 = vadd.f32 %v3024_v36, %v2934_v8 }
 0x301   : > { %2390 = vrot.lane.b32.xlu0 %v2389_v61, %s2443_s26  ;;  %2380 = vrot.lane.b32.xlu1 %v2379_v3, %s2437_s12 }
 0x304   : > { %v1368_v19 = vpop.f32.mrf.mxu2 }
 0x305   : > { %v1369_v60 = vadd.f32 %v1368_v19, %v1344_v2 }
 0x309   : > { %2395 = vrot.lane.b32.xlu0 %v2394_v16, %s2438_s29  ;;  %2400 = vrot.lane.b32.xlu1 %v2399_v6, %s2440_s22  ;;  %v1658_v16 = vpack.c.b16 %v1653_v13, %v1653_v13  ;;  %v2274_v6 = vld [vmem:[%s3353_s4 + $0x10] sm:$0xff]  ;;  %v2312_v13 = vunpack.i.l.bf16 %v3241_v23 }
 0x30b   : > { %v1674_v54 = vsel %vm418_vm0, %v1658_v16, 0 }
 0x30c   : > { %v1370_v44 = vpop.f32.mrf.mxu2  ;;  %1679 = vmatpush.bf16.msrb.mxu1 %v1674_v54 }
 0x30d   : > { %v1371_v1 = vadd.f32 %v1370_v44, %v1346_v17  ;;  %v2322_v17 = vunpack.i.l.bf16 %v3239_v22  ;;  %v2361_v22 = vpop.permute.xlu0 %2360 }
 0x30e   : > { %v2363_v32 = vunpack.i.h.bf16 %v2361_v22 }
 0x30f   : > { %v2419_v3 = vpack.i.bf16 %v1371_v1, %v1369_v60  ;;  %v1568_v16 = vsel %vm1565_vm4, %v2987_v46, %v2322_v17 }
 0x310   : > { %1680 = vmatpush.bf16.msrb.mxu1 %v2275_v57  ;;  %v2338_v57 = vunpack.i.h.bf16 %v3246_v33  ;;  %v1575_v46 = vsel %vm1572_vm6, %v1568_v16, %v2312_v13 }
 0x311   : > { %2410 = vrot.lane.b32.xlu0 %v2409_v47, %s2442_s25  ;;  %2415 = vrot.lane.b32.xlu1 %v2414_v11, %s2441_s23  ;;  %v1566_v47 = vsel %vm1565_vm4, %v2960_v20, %v2317_v41  ;;  %v638_v11 = vadd.f32 %v3003_v56, %v2903_v62  ;;  %v2276_v56 = vld [vmem:[%s3355_s6] sm:$0xff] }
 0x312   : > { %2420 = vrot.lane.b32.xlu2 %v2419_v3, %s2443_s26  ;;  %v1573_v58 = vsel %vm1572_vm6, %v1566_v47, %v2307_v43  ;;  %1743 = vmatpush.bf16.msrb.mxu3 %v2276_v56 }
 0x313   : > { %v1580_v15 = vsel %vm1579_vm5, %v1573_v58, %v2327_v48  ;;  %v1569_v54 = vsel %vm1565_vm4, %v638_v11, %v2323_v52 }
 0x314   : > { %1681 = vmatpush.bf16.msrb.mxu1 %v2274_v6  ;;  %v1587_v20 = vsel %vm1586_vm7, %v1580_v15, %v2342_v49  ;;  %v2337_v6 = vunpack.i.l.bf16 %v3246_v33  ;;  %v1576_v23 = vsel %vm1572_vm6, %v1569_v54, %v2313_v63  ;;  %v2362_v33 = vunpack.i.l.bf16 %v2361_v22 }
 0x315   : > { %v1594_v9 = vsel %vm1593_vm8, %v1587_v20, %v2332_v14  ;;  %v1583_v24 = vsel %vm1579_vm5, %v1576_v23, %v2338_v57 }
 0x318   : > { %1682 = vmatpush.bf16.msrb.mxu1 %v2273_v10 }
 0x31b   : > { %v2351_v34 = vpop.permute.xlu2 %2350 }
 0x31c   : > { %1683 = vmatpush.bf16.msrb.mxu1 %v2272_v28  ;;  %v2353_v45 = vunpack.i.h.bf16 %v2351_v34  ;;  %v2352_v55 = vunpack.i.l.bf16 %v2351_v34  ;;  %v1582_v28 = vsel %vm1579_vm5, %v1575_v46, %v2337_v6 }
 0x31e   : > { %v1601_v53 = vsel %vm1600_vm9, %v1594_v9, %v2352_v55  ;;  %v1602_v61 = vsel %vm1600_vm9, %v1595_v18, %v2353_v45 }
 0x31f   : > { %v1608_v4 = vsel %vm1607_vm10, %v1601_v53, %v2347_v30  ;;  %v1609_v21 = vsel %vm1607_vm10, %v1602_v61, %v2348_v25 }
 0x323   : > { %v2356_v5 = vpop.permute.xlu2 %2355 }
 0x324   : > { %v2358_v10 = vunpack.i.h.bf16 %v2356_v5  ;;  %v2357_v35 = vunpack.i.l.bf16 %v2356_v5 }
 0x326   : > { %v1589_v39 = vsel %vm1586_vm7, %v1582_v28, %v2357_v35  ;;  %v1590_v34 = vsel %vm1586_vm7, %v1583_v24, %v2358_v10  ;;  %v2425_v28 = vld [vmem:[%s3354_s5] ss:$0 sm:$0xff] }
 0x327   : > { %v1596_v42 = vsel %vm1593_vm8, %v1589_v39, %v2362_v33  ;;  %v1597_v59 = vsel %vm1593_vm8, %v1590_v34, %v2363_v32 }
 0x32b   : > { %v2376_v60 = vpop.permute.xlu2 %2375 }
 0x32c   : > { %v2378_v40 = vunpack.i.h.bf16 %v2376_v60  ;;  %v2377_v47 = vunpack.i.l.bf16 %v2376_v60 }
 0x333   : > { %v2386_v0 = vpop.permute.xlu2 %2385 }
 0x334   : > { %v2388_v25 = vunpack.i.h.bf16 %v2386_v0  ;;  %v2387_v30 = vunpack.i.l.bf16 %v2386_v0 }
 0x33b   : > { %v2406_v45 = vpop.permute.xlu2 %2405 }
 0x33c   : > { %v2407_v60 = vunpack.i.l.bf16 %v2406_v45 }
 0x363   : > { %v2366_v2 = vpop.permute.xlu1 %2365 }
 0x364   : > { %v2368_v19 = vunpack.i.h.bf16 %v2366_v2  ;;  %v2367_v7 = vunpack.i.l.bf16 %v2366_v2 }
 0x366   : > { %v1614_v44 = vsel %vm587_vm3, %v1608_v4, %v2367_v7  ;;  %v1615_v1 = vsel %vm587_vm3, %v1609_v21, %v2368_v19  ;;  %v2408_v21 = vunpack.i.h.bf16 %v2406_v45 }
 0x367   : > { %v1629_v3 = vpack.c.bf16 %v1615_v1, %v1614_v44 }
 0x369   : > { %2203 = vmatmul.msk.bf16.vlgmr.msrb.gmra.mxu1 %vm1663_vm11, %v1629_v3 }
 0x36b   : > { %v2371_v62 = vpop.permute.xlu1 %2370 }
 0x36c   : > { %v2373_v37 = vunpack.i.h.bf16 %v2371_v62  ;;  %v2372_v41 = vunpack.i.l.bf16 %v2371_v62  ;;  %v2421_v4 = vpop.permute.xlu2 %2420 }
 0x36d   : > { %v2423_v57 = vunpack.i.h.bf16 %v2421_v4  ;;  %v2422_v6 = vunpack.i.l.bf16 %v2421_v4 }
 0x36e   : > { %v1603_v43 = vsel %vm1600_vm9, %v1596_v42, %v2372_v41  ;;  %v1604_v38 = vsel %vm1600_vm9, %v1597_v59, %v2373_v37 }
 0x36f   : > { %v1610_v58 = vsel %vm1607_vm10, %v1603_v43, %v2377_v47  ;;  %v1611_v29 = vsel %vm1607_vm10, %v1604_v38, %v2378_v40 }
 0x373   : > { %v2391_v48 = vpop.permute.xlu0 %2390  ;;  %v2381_v27 = vpop.permute.xlu1 %2380 }
 0x374   : > { %v2393_v49 = vunpack.i.h.bf16 %v2391_v48  ;;  %v2392_v50 = vunpack.i.l.bf16 %v2391_v48  ;;  %v2383_v14 = vunpack.i.h.bf16 %v2381_v27  ;;  %v2382_v20 = vunpack.i.l.bf16 %v2381_v27 }
 0x376   : > { %v1616_v5 = vsel %vm587_vm3, %v1610_v58, %v2392_v50  ;;  %v1617_v15 = vsel %vm587_vm3, %v1611_v29, %v2393_v49  ;;  %v1570_v55 = vsel %vm1565_vm4, %v3016_v26, %v2382_v20  ;;  %v1571_v12 = vsel %vm1565_vm4, %v643_v31, %v2383_v14 }
 0x377   : > { %v1630_v51 = vpack.c.bf16 %v1617_v15, %v1616_v5  ;;  %v1577_v2 = vsel %vm1572_vm6, %v1570_v55, %v2387_v30  ;;  %v1578_v19 = vsel %vm1572_vm6, %v1571_v12, %v2388_v25  ;;  %v2426_v30 = vld [vmem:[%s3356_s7] ss:$0 sm:$0xff] }
 0x379   : > { %2204 = vmatmul.msk.bf16.gmra.mxu1 %vm1663_vm11, %v1630_v51 }
 0x37b   : > { %v2396_v9 = vpop.permute.xlu0 %2395  ;;  %v2401_v18 = vpop.permute.xlu1 %2400 }
 0x37c   : > { %v2398_v53 = vunpack.i.h.bf16 %v2396_v9  ;;  %v2397_v61 = vunpack.i.l.bf16 %v2396_v9  ;;  %v2403_v7 = vunpack.i.h.bf16 %v2401_v18  ;;  %v2402_v8 = vunpack.i.l.bf16 %v2401_v18 }
 0x37e   : > { %v1584_v36 = vsel %vm1579_vm5, %v1577_v2, %v2397_v61  ;;  %v1585_v52 = vsel %vm1579_vm5, %v1578_v19, %v2398_v53 }
 0x37f   : > { %v1591_v26 = vsel %vm1586_vm7, %v1584_v36, %v2402_v8  ;;  %v1592_v17 = vsel %vm1586_vm7, %v1585_v52, %v2403_v7 }
 0x380   : > { %v1598_v16 = vsel %vm1593_vm8, %v1591_v26, %v2407_v60  ;;  %v1599_v54 = vsel %vm1593_vm8, %v1592_v17, %v2408_v21 }
 0x383   : > { %v2411_v44 = vpop.permute.xlu0 %2410  ;;  %v2416_v1 = vpop.permute.xlu1 %2415 }
 0x384   : > { %v2413_v11 = vunpack.i.h.bf16 %v2411_v44  ;;  %v2412_v3 = vunpack.i.l.bf16 %v2411_v44  ;;  %v2418_v63 = vunpack.i.h.bf16 %v2416_v1  ;;  %v2417_v13 = vunpack.i.l.bf16 %v2416_v1 }
 0x386   : > { %v1605_v10 = vsel %vm1600_vm9, %v1598_v16, %v2412_v3  ;;  %v1606_v35 = vsel %vm1600_vm9, %v1599_v54, %v2413_v11 }
 0x387   : > { %v1612_v22 = vsel %vm1607_vm10, %v1605_v10, %v2417_v13  ;;  %v1613_v62 = vsel %vm1607_vm10, %v1606_v35, %v2418_v63 }
 0x388   : > { %v1618_v56 = vsel %vm587_vm3, %v1612_v22, %v2422_v6  ;;  %v1619_v23 = vsel %vm587_vm3, %v1613_v62, %v2423_v57  ;;  %v1772_v22 = vld [vmem:[%s3357_s8] sm:$0xff]  ;;  %v1773_v62 = vld [vmem:[%s3357_s8 + $0x8] sm:$0xff] }
 0x389   : > { %v1631_v46 = vpack.c.bf16 %v1619_v23, %v1618_v56  ;;  %v1775_v56 = vpack.c.bf16 %v1773_v62, %v1772_v22  ;;  %v1774_v23 = vld [vmem:[%s3357_s8 + $0x10] sm:$0x1f] }
 0x38b   : > { %2205 = vmatmul.msk.bf16.gmra.mxu1 %vm1663_vm11, %v1631_v46  ;;  %v1776_v46 = vpack.c.bf16 %v1774_v23, %v1774_v23 }
 0x3e6   : > { %v1685_v24 = vpop.f32.mrf.mxu1 }
 0x3e7   : > { %v1686_v32 = vadd.f32 %v2425_v28, %v1685_v24 }
 0x3e9   : > { %v1700_v39 = vmax.f32 %v1686_v32, 0.0 }
 0x3eb   : > { %v1706_v41 = vmin.f32 %v1700_v39, 6.0 }
 0x3ee   : > { %v1687_v33 = vpop.f32.mrf.mxu1 }
 0x3ef   : > { %v1688_v34 = vadd.f32 %v2425_v28, %v1687_v33 }
 0x3f1   : > { %v1701_v37 = vmax.f32 %v1688_v34, 0.0 }
 0x3f3   : > { %v1707_v0 = vmin.f32 %v1701_v37, 6.0 }
 0x3f5   : > { %v1714_v42 = vpack.c.bf16 %v1707_v0, %v1706_v41 }
 0x3f6   : > { %v1690_v59 = vpop.f32.mrf.mxu1 }
 0x3f7   : > { %2210 = vmatmul.msk.bf16.vlgmr.msrb.gmra.mxu3 %vm1572_vm6, %v1714_v42  ;;  %v1691_v43 = vadd.f32 %v2425_v28, %v1690_v59 }
 0x3f9   : > { %v1702_v40 = vmax.f32 %v1691_v43, 0.0 }
 0x3fb   : > { %v1708_v27 = vmin.f32 %v1702_v40, 6.0 }
 0x3fe   : > { %v1692_v38 = vpop.f32.mrf.mxu1 }
 0x3ff   : > { %v1693_v47 = vadd.f32 %v2425_v28, %v1692_v38 }
 0x401   : > { %v1703_v48 = vmax.f32 %v1693_v47, 0.0 }
 0x403   : > { %v1709_v49 = vmin.f32 %v1703_v48, 6.0 }
 0x405   : > { %v1715_v50 = vpack.c.bf16 %v1709_v49, %v1708_v27 }
 0x407   : > { %2211 = vmatmul.msk.bf16.gmra.mxu3 %vm1572_vm6, %v1715_v50 }
 0x408   : > { %v1695_v58 = vpop.f32.mrf.mxu1 }
 0x409   : > { %v1696_v29 = vadd.f32 %v2425_v28, %v1695_v58 }
 0x40b   : > { %v1704_v15 = vmax.f32 %v1696_v29, 0.0 }
 0x40d   : > { %v1710_v20 = vmin.f32 %v1704_v15, 6.0 }
 0x410   : > { %v1697_v5 = vpop.f32.mrf.mxu1 }
 0x411   : > { %v1698_v51 = vadd.f32 %v2425_v28, %v1697_v5 }
 0x413   : > { %v1705_v14 = vmax.f32 %v1698_v51, 0.0 }
 0x415   : > { %v1711_v31 = vmin.f32 %v1705_v14, 6.0 }
 0x417   : > { %v1716_v45 = vpack.c.bf16 %v1711_v31, %v1710_v20 }
 0x419   : > { %2212 = vmatmul.msk.bf16.gmra.mxu3 %vm1572_vm6, %v1716_v45 }
 0x47a   : > { %v1745_v55 = vpop.f32.mrf.mxu3 }
 0x47b   : > { %v1746_v11 = vadd.f32 %v2426_v30, %v1745_v55 }
 0x47d   : > { %v1760_v16 = vmax.f32 %v1746_v11, 0.0 }
 0x47f   : > { %v1766_v6 = vmin.f32 %v1760_v16, 6.0 }
 0x482   : > { %v1747_v12 = vpop.f32.mrf.mxu3 }
 0x483   : > { %v1748_v60 = vadd.f32 %v2426_v30, %v1747_v12 }
 0x485   : > { %v1761_v63 = vmax.f32 %v1748_v60, 0.0 }
 0x487   : > { %v1767_v54 = vmin.f32 %v1761_v63, 6.0 }
 0x489   : > { %v1777_v10 = vpack.c.bf16 %v1767_v54, %v1766_v6 }
 0x48a   : > { %v1750_v9 = vpop.f32.mrf.mxu3 }
 0x48b   : > { %v1751_v8 = vadd.f32 %v2426_v30, %v1750_v9  ;;  %v1788_v35 = vsel %vm1780_vm12, %v1777_v10, 0 }
 0x48d   : > { %v1762_v4 = vmax.f32 %v1751_v8, 0.0 }
 0x48f   : > { %v1768_v3 = vmin.f32 %v1762_v4, 6.0 }
 0x492   : > { %v1752_v18 = vpop.f32.mrf.mxu3 }
 0x493   : > { %v1753_v2 = vadd.f32 %v2426_v30, %v1752_v18 }
 0x495   : > { %v1763_v52 = vmax.f32 %v1753_v2, 0.0 }
 0x497   : > { %v1769_v44 = vmin.f32 %v1763_v52, 6.0 }
 0x499   : > { %v1778_v13 = vpack.c.bf16 %v1769_v44, %v1768_v3 }
 0x49b   : > { %v1791_v57 = vsel %vm1780_vm12, %v1778_v13, 0 }
 0x49c   : > { %v1755_v25 = vpop.f32.mrf.mxu3 }
 0x49d   : > { %v1756_v53 = vadd.f32 %v2426_v30, %v1755_v25 }
 0x49f   : > { %v1764_v19 = vmax.f32 %v1756_v53, 0.0 }
 0x4a1   : > { %v1770_v26 = vmin.f32 %v1764_v19, 6.0 }
 0x4a4   : > { %v1757_v61 = vpop.f32.mrf.mxu3 }
 0x4a5   : > { %v1758_v7 = vadd.f32 %v2426_v30, %v1757_v61 }
 0x4a7   : > { %v1765_v36 = vmax.f32 %v1758_v7, 0.0 }
 0x4a9   : > { %v1771_v17 = vmin.f32 %v1765_v36, 6.0 }
 0x4ab   : > { %v1779_v21 = vpack.c.bf16 %v1771_v17, %v1770_v26 }
 0x4ad   : > { %v1794_v1 = vsel %vm1780_vm12, %v1779_v21, 0 }
 0x4ae   : > { %1801 = vmatpush.bf16.xpose.msrb.mxu0 %v1794_v1 }
 0x4b6   : > { %1802 = vmatpush.bf16.xpose.msrb.mxu0 %v1791_v57 }
 0x4be   : > { %1803 = vmatpush.bf16.xpose.msrb.mxu0 %v1788_v35 }
 0x4c5   : > { %2213 = vmatmul.msk.bf16.vlgmr.msrb.gmra.mxu0 %vm1780_vm12, %v1775_v56 }
 0x4d5   : > { %2214 = vmatmul.msk.bf16.gmra.mxu0 %vm1780_vm12, %v1776_v46 }
 0x542   : > { %v1805_v24 = vpop.f32.mrf.mxu0 }
 0x543   : > { %1814 = vst.msk [vmem:[%s332_s11] sm:$0xff] %vm1600_vm9, %v1805_v24 }
 0x54a   : > { %v1807_v28 = vpop.f32.mrf.mxu0 }
 0x54b   : > { %1815 = vst.msk [vmem:[%s332_s11 + $0x8] sm:$0xff] %vm1600_vm9, %v1807_v28 }
 0x552   : > { %v1810_v32 = vpop.f32.mrf.mxu0 }
 0x553   : > { %1817 = vst.msk [vmem:[%s332_s11 + $0x10] sm:$0x1f] %vm1816_vm13, %v1810_v32 }
 0x55a   : > { %v1812_v33 = vpop.f32.mrf.mxu0 }
 0x55b PF: > { %s19_s30 = sadd.s32 1, %s2433_s30  }
 0x55c   : > { %p16_p4 = scmp.ge.s32.totalorder %s19_s30, 8  }
 0x55e   :  { %18 = sbr.rel (!%p16_p4) target bundleno = 1 (0x1), region = 94 }

// kernel: tapor_teacher_forward.3
= control target key start
LH: loop header
LB: loop body
LE: loop exit
PB: predicated region body
PF: predicated region fallthrough
CT: control target
= control target key end

     0   :  { %s2412_s27 = smov 0   ;;  %s3248_s0 = inlined_call_operand.vmem [shape: f32[2,192,9], index: 0, kind: input, shape index: {}]   ;;  %s3249_s1 = inlined_call_operand.vmem [shape: bf16[9,8], index: 1, kind: input, shape index: {}]   ;;  %s3250_s2 = inlined_call_operand.vmem [shape: f32[1,8], index: 2, kind: input, shape index: {}]   ;;  %s3251_s3 = inlined_call_operand.vmem [shape: bf16[9,48,192], index: 3, kind: input, shape index: {}]   ;;  %s3252_s4 = inlined_call_operand.vmem [shape: bf16[72,16], index: 4, kind: input, shape index: {}]   ;;  %s3253_s5 = inlined_call_operand.vmem [shape: f32[1,16], index: 5, kind: input, shape index: {}]   ;;  %s3254_s6 = inlined_call_operand.vmem [shape: bf16[16,32], index: 6, kind: input, shape index: {}]   ;;  %s3255_s7 = inlined_call_operand.vmem [shape: f32[1,32], index: 7, kind: input, shape index: {}]   ;;  %s3256_s8 = inlined_call_operand.vmem [shape: f32[2,48,32], index: 8, kind: output, shape index: {}]  }
   0x1 LB: > { %s1806_s28 = sadd.s32 4294967295, %s2356_s27   ;;  %p1810_p0 = scmp.ge.s32.totalorder %s2356_s27, 1  ;;  %s2356_s27 = sphi %s2412_s27, %s18_s27  }
   0x2   : > { %p262_p1 = scmp.lt.s32.totalorder %s2356_s27, 3 }
   0x4   : > { %p263_p2 = pnand %p1810_p0, %p262_p1 }
   0x5   : > { %p296_p3 = scmp.lt.s32.totalorder (!%p263_p2), %s1806_s28, 1  ;;  %s2359_s21 = smov (!%p263_p2), 16  }
   0x6   : > { %266 = sbr.rel (%p263_p2) target bundleno = 1180 (0x49c), region = 52  ;;  %s2360_s15 = smov (!%p263_p2), 8  }
   0x7   : > { %s2361_s29 = smov (!%p263_p2), 24   ;;  %s2362_s30 = smov (!%p263_p2), 40  }
   0x8   : > { %s2363_s23 = smov (!%p263_p2), 32   ;;  %s2364_s24 = smov (!%p263_p2), 56  }
   0x9   : > { %s2365_s25 = smov (!%p263_p2), 48   ;;  %s2366_s26 = smov (!%p263_p2), 64  }
   0xb   : > { %v1815_v0 = vld [vmem:[%s3249_s1] sm:$0xf]  ;;  %v2148_v1 = vld [vmem:[%s3249_s1] sm:$0x10]  ;;  %vm391_vm0 = vcmask 1043456   ;;  %vm392_vm1 = vcmask 1044480  }
   0xc   : > { %v1816_v2 = vor.u32 %v2148_v1, %v1815_v0  ;;  %v2358_v3 = vmov 65535   ;;  %s3258_s28 = smov (!%p296_p3, %s1806_s28), 1  ;;  %vm354_vm2 = vcmask 72704   ;;  %v2482_v58 = vld [vmem:[%s3250_s2] ss:$0 sm:$0xff]  ;;  %vm560_vm3 = vcmask 523264  }
   0xd   : > { %v393_v4 = vsel %vm391_vm0, 4294967295, %v2358_v3  ;;  %s2208_s11 = smul.u32 192, %s3258_s28  ;;  %vm1538_vm4 = vcmask 64512   ;;  %vm1552_vm5 = vcmask 195584   ;;  %vm1545_vm6 = vcmask 130048  }
   0xe   : > { %v394_v5 = vsel %vm392_vm1, %v393_v4, 0  ;;  %vm1559_vm7 = vcmask 261120   ;;  %vm1566_vm8 = vcmask 326656   ;;  %vm1573_vm9 = vcmask 392192  }
   0xf   : > { %v396_v6 = vand.u32 %v1816_v2, %v394_v5  ;;  %s2433_s14 = scalar_lea.vmem %s3248_s0, %s2208_s11  ;;  %vm1580_vm10 = vcmask 457728   ;;  %vm1636_vm11 = vcmask 588800  }
  0x10   : > { %v307_v7 = vld [vmem:[%s2433_s14] sm:$0xff]  ;;  %v308_v8 = vld [vmem:[%s2433_s14 + $0x8] sm:$0xff]  ;;  %v309_v10 = vld [vmem:[%s2433_s14 + $0x10] sm:$0xff] }
  0x11   : > { %405 = vmatpush.bf16.msra.mxu0 %v396_v6  ;;  %v333_v9 = vpack.c.bf16 %v308_v8, %v307_v7  ;;  %v310_v11 = vld [vmem:[%s2433_s14 + $0x18] sm:$0xff]  ;;  %v311_v13 = vld [vmem:[%s2433_s14 + $0x20] sm:$0xff]  ;;  %v312_v14 = vld [vmem:[%s2433_s14 + $0x28] sm:$0xff] }
  0x12   : > { %v334_v12 = vpack.c.bf16 %v310_v11, %v309_v10  ;;  %v335_v15 = vpack.c.bf16 %v312_v14, %v311_v13  ;;  %v313_v16 = vld [vmem:[%s2433_s14 + $0x30] sm:$0xff]  ;;  %v314_v17 = vld [vmem:[%s2433_s14 + $0x38] sm:$0xff]  ;;  %v315_v19 = vld [vmem:[%s2433_s14 + $0x40] sm:$0xff] }
  0x13   : > { %v336_v18 = vpack.c.bf16 %v314_v17, %v313_v16  ;;  %v316_v20 = vld [vmem:[%s2433_s14 + $0x48] sm:$0xff]  ;;  %v317_v22 = vld [vmem:[%s2433_s14 + $0x50] sm:$0xff]  ;;  %v318_v23 = vld [vmem:[%s2433_s14 + $0x58] sm:$0xff] }
  0x14   : > { %1817 = vmatmul.msk.bf16.vlgmr.msra.gmra.mxu0 %vm354_vm2, %v333_v9  ;;  %v337_v21 = vpack.c.bf16 %v316_v20, %v315_v19  ;;  %v338_v24 = vpack.c.bf16 %v318_v23, %v317_v22  ;;  %v319_v25 = vld [vmem:[%s2433_s14 + $0x60] sm:$0xff]  ;;  %v320_v26 = vld [vmem:[%s2433_s14 + $0x68] sm:$0xff]  ;;  %v321_v28 = vld [vmem:[%s2433_s14 + $0x70] sm:$0xff] }
  0x15   : > { %v339_v27 = vpack.c.bf16 %v320_v26, %v319_v25  ;;  %v322_v29 = vld [vmem:[%s2433_s14 + $0x78] sm:$0xff]  ;;  %v323_v31 = vld [vmem:[%s2433_s14 + $0x80] sm:$0xff]  ;;  %v324_v32 = vld [vmem:[%s2433_s14 + $0x88] sm:$0xff] }
  0x16   : > { %v340_v30 = vpack.c.bf16 %v322_v29, %v321_v28  ;;  %v341_v33 = vpack.c.bf16 %v324_v32, %v323_v31  ;;  %v325_v36 = vld [vmem:[%s2433_s14 + $0x90] sm:$0xff]  ;;  %v326_v37 = vld [vmem:[%s2433_s14 + $0x98] sm:$0xff]  ;;  %v327_v41 = vld [vmem:[%s2433_s14 + $0xa0] sm:$0xff] }
  0x17   : > { %v342_v38 = vpack.c.bf16 %v326_v37, %v325_v36  ;;  %v328_v42 = vld [vmem:[%s2433_s14 + $0xa8] sm:$0xff]  ;;  %v329_v46 = vld [vmem:[%s2433_s14 + $0xb0] sm:$0xff]  ;;  %v330_v47 = vld [vmem:[%s2433_s14 + $0xb8] sm:$0xff] }
  0x18   : > { %v343_v43 = vpack.c.bf16 %v328_v42, %v327_v41  ;;  %v344_v48 = vpack.c.bf16 %v330_v47, %v329_v46 }
  0x24   : > { %1818 = vmatmul.msk.bf16.gmra.mxu0 %vm354_vm2, %v334_v12 }
  0x34   : > { %1819 = vmatmul.msk.bf16.gmra.mxu0 %vm354_vm2, %v335_v15 }
  0x44   : > { %1820 = vmatmul.msk.bf16.gmra.mxu0 %vm354_vm2, %v336_v18 }
  0x54   : > { %1821 = vmatmul.msk.bf16.gmra.mxu0 %vm354_vm2, %v337_v21 }
  0x64   : > { %1822 = vmatmul.msk.bf16.gmra.mxu0 %vm354_vm2, %v338_v24 }
  0x74   : > { %1823 = vmatmul.msk.bf16.gmra.mxu0 %vm354_vm2, %v339_v27 }
  0x84   : > { %1824 = vmatmul.msk.bf16.gmra.mxu0 %vm354_vm2, %v340_v30 }
  0x91   : > { %v2461_v34 = vpop.f32.mrf.mxu0 }
  0x94   : > { %1825 = vmatmul.msk.bf16.gmra.mxu0 %vm354_vm2, %v341_v33 }
  0x99   : > { %v2464_v35 = vpop.f32.mrf.mxu0 }
  0x9a   : > { %v410_v42 = vadd.f32 %v2482_v58, %v2464_v35 }
  0xa1   : > { %v2468_v39 = vpop.f32.mrf.mxu0 }
  0xa2   : > { %v413_v37 = vadd.f32 %v2482_v58, %v2468_v39 }
  0xa4   : > { %1826 = vmatmul.msk.bf16.gmra.mxu0 %vm354_vm2, %v342_v38  ;;  %v469_v39 = vmax.f32 %v413_v37, 0.0 }
  0xa9   : > { %v2471_v40 = vpop.f32.mrf.mxu0 }
  0xaa   : > { %v415_v31 = vadd.f32 %v2482_v58, %v2471_v40 }
  0xb1   : > { %v417_v44 = vpop.f32.mrf.mxu0 }
  0xb2   : > { %v418_v28 = vadd.f32 %v2482_v58, %v417_v44 }
  0xb4   : > { %1827 = vmatmul.msk.bf16.gmra.mxu0 %vm354_vm2, %v343_v43  ;;  %v471_v38 = vmax.f32 %v418_v28, 0.0  ;;  %v470_v43 = vmax.f32 %v415_v31, 0.0 }
  0xb6   : > { %v495_v47 = vmin.f32 %v471_v38, 6.0 }
  0xb9   : > { %v419_v45 = vpop.f32.mrf.mxu0 }
  0xba   : > { %v420_v23 = vadd.f32 %v2482_v58, %v419_v45  ;;  %v408_v45 = vadd.f32 %v2482_v58, %v2461_v34 }
  0xbc   : > { %v472_v32 = vmax.f32 %v420_v23, 0.0 }
  0xbe   : > { %v496_v40 = vmin.f32 %v472_v32, 6.0 }
  0xc0   : > { %v2535_v35 = vpack.c.bf16 %v496_v40, %v495_v47 }
  0xc1   : > { %v422_v49 = vpop.f32.mrf.mxu0 }
  0xc2   : > { %v423_v20 = vadd.f32 %v2482_v58, %v422_v49  ;;  %v494_v49 = vmin.f32 %v470_v43, 6.0 }
  0xc4   : > { %1828 = vmatmul.msk.bf16.gmra.mxu0 %vm354_vm2, %v344_v48  ;;  %v473_v29 = vmax.f32 %v423_v20, 0.0  ;;  %v468_v48 = vmax.f32 %v410_v42, 0.0  ;;  %v2160_v20 = vld [vmem:[%s3251_s3 + $0x54] sm:$0xf0] }
  0xc6   : > { %v497_v41 = vmin.f32 %v473_v29, 6.0  ;;  %v492_v34 = vmin.f32 %v468_v48, 6.0  ;;  %v2149_v48 = vld [vmem:[%s3251_s3 + $0x4] sm:$0xf] }
  0xc9   : > { %v424_v50 = vpop.f32.mrf.mxu0 }
  0xca   : > { %v425_v16 = vadd.f32 %v2482_v58, %v424_v50  ;;  %v467_v50 = vmax.f32 %v408_v45, 0.0 }
  0xcc   : > { %v474_v24 = vmax.f32 %v425_v16, 0.0 }
  0xce   : > { %v498_v33 = vmin.f32 %v474_v24, 6.0 }
  0xd0   : > { %v2526_v44 = vpack.c.bf16 %v498_v33, %v497_v41 }
  0xd1   : > { %v427_v51 = vpop.f32.mrf.mxu0 }
  0xd2   : > { %v428_v13 = vadd.f32 %v2482_v58, %v427_v51  ;;  %v493_v51 = vmin.f32 %v469_v39, 6.0 }
  0xd4   : > { %v475_v21 = vmax.f32 %v428_v13, 0.0  ;;  %v1847_v13 = vld [vmem:[%s3251_s3 + $0x20] sm:$0xf] }
  0xd6   : > { %v499_v30 = vmin.f32 %v475_v21, 6.0 }
  0xd9   : > { %v429_v52 = vpop.f32.mrf.mxu0 }
  0xda   : > { %v430_v8 = vadd.f32 %v2482_v58, %v429_v52  ;;  %v2540_v52 = vpack.c.bf16 %v494_v49, %v493_v51  ;;  %v1833_v49 = vld [vmem:[%s3251_s3 + $0x8] sm:$0xf0]  ;;  %v2162_v51 = vld [vmem:[%s3251_s3 + $0x64] sm:$0xf0] }
  0xdc   : > { %v476_v17 = vmax.f32 %v430_v8, 0.0 }
  0xde   : > { %v500_v25 = vmin.f32 %v476_v17, 6.0 }
  0xe0   : > { %v2517_v36 = vpack.c.bf16 %v500_v25, %v499_v30 }
  0xe1   : > { %v432_v53 = vpop.f32.mrf.mxu0 }
  0xe2   : > { %v433_v4 = vadd.f32 %v2482_v58, %v432_v53  ;;  %v491_v53 = vmin.f32 %v467_v50, 6.0  ;;  %v1897_v50 = vld [vmem:[%s3251_s3 + $0x60] sm:$0xf] }
  0xe4   : > { %v477_v14 = vmax.f32 %v433_v4, 0.0  ;;  %v2158_v4 = vld [vmem:[%s3251_s3 + $0x44] sm:$0xf0] }
  0xe6   : > { %v501_v22 = vmin.f32 %v477_v14, 6.0  ;;  %v2154_v14 = vld [vmem:[%s3251_s3 + $0x24] sm:$0xf0] }
  0xe7   : > { %v1848_v24 = vor.u32 %v2154_v14, %v1847_v13 }
  0xe9   : > { %v434_v54 = vpop.f32.mrf.mxu0 }
  0xea   : > { %v435_v1 = vadd.f32 %v2482_v58, %v434_v54 }
  0xec   : > { %v478_v9 = vmax.f32 %v435_v1, 0.0  ;;  %v1839_v1 = vld [vmem:[%s3251_s3 + $0x10] sm:$0xf] }
  0xee   : > { %v502_v18 = vmin.f32 %v478_v9, 6.0 }
  0xf0   : > { %v2507_v26 = vpack.c.bf16 %v502_v18, %v501_v22  ;;  %v1880_v18 = vld [vmem:[%s3251_s3 + $0x50] sm:$0xf] }
  0xf1   : > { %v437_v55 = vpop.f32.mrf.mxu0  ;;  %v1881_v25 = vor.u32 %v2160_v20, %v1880_v18  ;;  %v2167_v18 = vld [vmem:[%s3251_s3 + $0x94] sm:$0xf]  ;;  %v1932_v20 = vld [vmem:[%s3251_s3 + $0x98] sm:$0xf0] }
  0xf2   : > { %v438_v62 = vadd.f32 %v2482_v58, %v437_v55  ;;  %v1831_v55 = vld [vmem:[%s3251_s3] sm:$0xf] }
  0xf4   : > { %v479_v5 = vmax.f32 %v438_v62, 0.0 }
  0xf6   : > { %v503_v15 = vmin.f32 %v479_v5, 6.0 }
  0xf9   : > { %v439_v56 = vpop.f32.mrf.mxu0 }
  0xfa   : > { %v440_v60 = vadd.f32 %v2482_v58, %v439_v56  ;;  %v2150_v56 = vld [vmem:[%s3251_s3 + $0x4] sm:$0xf0] }
  0xfc   : > { %v480_v2 = vmax.f32 %v440_v60, 0.0  ;;  %v2557_v60 = vpack.c.bf16 %v492_v34, %v491_v53  ;;  %v2161_v34 = vld [vmem:[%s3251_s3 + $0x64] sm:$0xf]  ;;  %v1899_v53 = vld [vmem:[%s3251_s3 + $0x68] sm:$0xf0] }
  0xfe   : > { %v504_v10 = vmin.f32 %v480_v2, 6.0  ;;  %v2152_v2 = vld [vmem:[%s3251_s3 + $0x14] sm:$0xf0] }
  0xff   : > { %v1840_v5 = vor.u32 %v2152_v2, %v1839_v1  ;;  %v1907_v1 = vld [vmem:[%s3251_s3 + $0x78] sm:$0xf0] }
 0x100   : > { %v2500_v19 = vpack.c.bf16 %v504_v10, %v503_v15 }
 0x101   : > { %v442_v57 = vpop.f32.mrf.mxu0 }
 0x102   : > { %v443_v59 = vadd.f32 %v2482_v58, %v442_v57  ;;  %v1864_v57 = vld [vmem:[%s3251_s3 + $0x30] sm:$0xf] }
 0x104   : > { %v481_v63 = vmax.f32 %v443_v59, 0.0  ;;  %v2156_v59 = vld [vmem:[%s3251_s3 + $0x34] sm:$0xf0] }
 0x105   : > { %v1865_v62 = vor.u32 %v2156_v59, %v1864_v57  ;;  %v1902_v57 = vor.u32 %v2161_v34, %v1899_v53  ;;  %v2151_v59 = vld [vmem:[%s3251_s3 + $0x14] sm:$0xf] }
 0x106   : > { %v505_v6 = vmin.f32 %v481_v63, 6.0 }
 0x109   : > { %v444_v61 = vpop.f32.mrf.mxu0 }
 0x10a   : > { %v445_v0 = vadd.f32 %v2482_v58, %v444_v61  ;;  %v1832_v61 = vor.u32 %v2150_v56, %v1831_v55  ;;  %v1836_v55 = vor.u32 %v2149_v48, %v1833_v49  ;;  %v1898_v56 = vor.u32 %v2162_v51, %v1897_v50  ;;  %v1998_v48 = vld [vmem:[%s3251_s3 + $0xf8] sm:$0xf0]  ;;  %v1996_v50 = vld [vmem:[%s3251_s3 + $0xf0] sm:$0xf]  ;;  %v2180_v51 = vld [vmem:[%s3251_s3 + $0xf4] sm:$0xf0] }
 0x10c   : > { %v482_v3 = vmax.f32 %v445_v0, 0.0 }
 0x10e   : > { %v506_v7 = vmin.f32 %v482_v3, 6.0  ;;  %v1872_v3 = vld [vmem:[%s3251_s3 + $0x40] sm:$0xf] }
 0x110   : > { %v2491_v11 = vpack.c.bf16 %v506_v7, %v505_v6  ;;  %v1873_v6 = vor.u32 %v2158_v4, %v1872_v3 }
 0x111   : > { %v2493_v12 = vpop.f32.mrf.mxu0 }
 0x112   : > { %570 = vmatpush.bf16.msra.mxu1 %v2491_v11  ;;  %661 = vmatpush.bf16.msra.mxu3 %v2491_v11  ;;  %v448_v41 = vadd.f32 %v2482_v58, %v2493_v12 }
 0x113   : > { %1116 = vmatpush.bf16.msrb.mxu0 %v2491_v11 }
 0x116   : > { %571 = vmatpush.bf16.msra.mxu1 %v2500_v19  ;;  %662 = vmatpush.bf16.msra.mxu3 %v2500_v19 }
 0x117   : > { %1117 = vmatpush.bf16.msrb.mxu0 %v2500_v19 }
 0x119   : > { %v2509_v27 = vpop.f32.mrf.mxu0 }
 0x11a   : > { %572 = vmatpush.bf16.msra.mxu1 %v2507_v26  ;;  %663 = vmatpush.bf16.msra.mxu3 %v2507_v26  ;;  %v450_v32 = vadd.f32 %v2482_v58, %v2509_v27 }
 0x11b   : > { %1118 = vmatpush.bf16.msrb.mxu0 %v2507_v26 }
 0x11c   : > { %v484_v40 = vmax.f32 %v450_v32, 0.0 }
 0x11e   : > { %573 = vmatpush.bf16.msra.mxu1 %v2517_v36  ;;  %664 = vmatpush.bf16.msra.mxu3 %v2517_v36 }
 0x11f   : > { %1119 = vmatpush.bf16.msrb.mxu0 %v2517_v36 }
 0x121   : > { %v2530_v46 = vpop.f32.mrf.mxu0 }
 0x122   : > { %574 = vmatpush.bf16.msra.mxu1 %v2526_v44  ;;  %665 = vmatpush.bf16.msra.mxu3 %v2526_v44  ;;  %v453_v28 = vadd.f32 %v2482_v58, %v2530_v46  ;;  %v483_v46 = vmax.f32 %v448_v41, 0.0  ;;  %v1882_v41 = vld [vmem:[%s3251_s3 + $0x58] sm:$0xf0] }
 0x123   : > { %1120 = vmatpush.bf16.msrb.mxu0 %v2526_v44 }
 0x124   : > { %v485_v42 = vmax.f32 %v453_v28, 0.0  ;;  %v507_v47 = vmin.f32 %v483_v46, 6.0  ;;  %v2157_v28 = vld [vmem:[%s3251_s3 + $0x44] sm:$0xf] }
 0x126   : > { %575 = vmatpush.bf16.msra.mxu1 %v2535_v35  ;;  %666 = vmatpush.bf16.msra.mxu3 %v2535_v35  ;;  %v509_v39 = vmin.f32 %v485_v42, 6.0 }
 0x127   : > { %1121 = vmatpush.bf16.msrb.mxu0 %v2535_v35 }
 0x129   : > { %v454_v54 = vpop.f32.mrf.mxu0 }
 0x12a   : > { %576 = vmatpush.bf16.msra.mxu1 %v2540_v52  ;;  %667 = vmatpush.bf16.msra.mxu3 %v2540_v52  ;;  %v455_v21 = vadd.f32 %v2482_v58, %v454_v54 }
 0x12b   : > { %1122 = vmatpush.bf16.msrb.mxu0 %v2540_v52 }
 0x12c   : > { %v486_v33 = vmax.f32 %v455_v21, 0.0  ;;  %v1963_v21 = vld [vmem:[%s3251_s3 + $0xc0] sm:$0xf] }
 0x12e   : > { %577 = vmatpush.bf16.msra.mxu1 %v2557_v60  ;;  %668 = vmatpush.bf16.msra.mxu3 %v2557_v60  ;;  %v510_v45 = vmin.f32 %v486_v33, 6.0 }
 0x12f   : > { %1123 = vmatpush.bf16.msrb.mxu0 %v2557_v60 }
 0x130   : > { %v2623_v12 = vpack.c.bf16 %v510_v45, %v509_v39  ;;  %v1948_v45 = vld [vmem:[%s3251_s3 + $0xb8] sm:$0xf0] }
 0x131   : > { %v457_v63 = vpop.f32.mrf.mxu0  ;;  %578 = vmatmul.bf16.vlgmr.msra.gmra.mxu1 %v1832_v61  ;;  %669 = vmatmul.bf16.vlgmr.msra.gmra.mxu3 %v1865_v62  ;;  %v1841_v61 = vld [vmem:[%s3251_s3 + $0x18] sm:$0xf0]  ;;  %v1905_v62 = vld [vmem:[%s3251_s3 + $0x70] sm:$0xf] }
 0x132   : > { %752 = vmatpush.bf16.msrb.mxu1 %v2491_v11  ;;  %v458_v15 = vadd.f32 %v2482_v58, %v457_v63  ;;  %v2164_v63 = vld [vmem:[%s3251_s3 + $0x74] sm:$0xf0]  ;;  %v1844_v2 = vor.u32 %v2151_v59, %v1841_v61  ;;  %v1938_v61 = vld [vmem:[%s3251_s3 + $0xa0] sm:$0xf] }
 0x133   : > { %1298 = vmatpush.bf16.msra.mxu0 %v2491_v11  ;;  %v1906_v3 = vor.u32 %v2164_v63, %v1905_v62  ;;  %v2170_v62 = vld [vmem:[%s3251_s3 + $0xa4] sm:$0xf0]  ;;  %v2181_v63 = vld [vmem:[%s3251_s3 + $0x104] sm:$0xf] }
 0x134   : > { %v487_v29 = vmax.f32 %v458_v15, 0.0 }
 0x136   : > { %753 = vmatpush.bf16.msrb.mxu1 %v2500_v19  ;;  %v511_v43 = vmin.f32 %v487_v29, 6.0  ;;  %v1874_v29 = vld [vmem:[%s3251_s3 + $0x48] sm:$0xf0] }
 0x137   : > { %1299 = vmatpush.bf16.msra.mxu0 %v2500_v19  ;;  %v1877_v32 = vor.u32 %v2157_v28, %v1874_v29 }
 0x139   : > { %v459_v0 = vpop.f32.mrf.mxu0 }
 0x13a   : > { %754 = vmatpush.bf16.msrb.mxu1 %v2507_v26  ;;  %v460_v9 = vadd.f32 %v2482_v58, %v459_v0  ;;  %v2163_v0 = vld [vmem:[%s3251_s3 + $0x74] sm:$0xf] }
 0x13b   : > { %1300 = vmatpush.bf16.msra.mxu0 %v2507_v26  ;;  %v1910_v4 = vor.u32 %v2163_v0, %v1907_v1  ;;  %v2006_v0 = vld [vmem:[%s3251_s3 + $0x108] sm:$0xf0] }
 0x13c   : > { %v488_v22 = vmax.f32 %v460_v9, 0.0  ;;  %v2165_v9 = vld [vmem:[%s3251_s3 + $0x84] sm:$0xf] }
 0x13e   : > { %755 = vmatpush.bf16.msrb.mxu1 %v2517_v36  ;;  %v512_v37 = vmin.f32 %v488_v22, 6.0  ;;  %v2174_v22 = vld [vmem:[%s3251_s3 + $0xc4] sm:$0xf0] }
 0x13f   : > { %1301 = vmatpush.bf16.msra.mxu0 %v2517_v36 }
 0x140   : > { %v2618_v27 = vpack.c.bf16 %v512_v37, %v511_v43 }
 0x141   : > { %v462_v7 = vpop.f32.mrf.mxu0  ;;  %583 = vmatmul.bf16.gmra.mxu1 %v1840_v5  ;;  %674 = vmatmul.bf16.gmra.mxu3 %v1873_v6  ;;  %v2153_v5 = vld [vmem:[%s3251_s3 + $0x24] sm:$0xf]  ;;  %v1849_v6 = vld [vmem:[%s3251_s3 + $0x28] sm:$0xf0] }
 0x142   : > { %756 = vmatpush.bf16.msrb.mxu1 %v2526_v44  ;;  %v463_v8 = vadd.f32 %v2482_v58, %v462_v7  ;;  %v1913_v7 = vld [vmem:[%s3251_s3 + $0x80] sm:$0xf]  ;;  %v1852_v13 = vor.u32 %v2153_v5, %v1849_v6  ;;  %v2009_v5 = vor.u32 %v2181_v63, %v2006_v0 }
 0x143   : > { %1302 = vmatpush.bf16.msra.mxu0 %v2526_v44 }
 0x144   : > { %v489_v16 = vmax.f32 %v463_v8, 0.0  ;;  %v2166_v8 = vld [vmem:[%s3251_s3 + $0x84] sm:$0xf0] }
 0x145   : > { %v1914_v14 = vor.u32 %v2166_v8, %v1913_v7 }
 0x146   : > { %757 = vmatpush.bf16.msrb.mxu1 %v2535_v35  ;;  %v513_v30 = vmin.f32 %v489_v16, 6.0  ;;  %v2155_v16 = vld [vmem:[%s3251_s3 + $0x34] sm:$0xf] }
 0x147   : > { %1303 = vmatpush.bf16.msra.mxu0 %v2535_v35 }
 0x149   : > { %v464_v10 = vpop.f32.mrf.mxu0 }
 0x14a   : > { %758 = vmatpush.bf16.msrb.mxu1 %v2540_v52  ;;  %v465_v17 = vadd.f32 %v2482_v58, %v464_v10  ;;  %v508_v58 = vmin.f32 %v484_v40, 6.0  ;;  %v1915_v10 = vld [vmem:[%s3251_s3 + $0x88] sm:$0xf0]  ;;  %v2171_v40 = vld [vmem:[%s3251_s3 + $0xb4] sm:$0xf] }
 0x14b   : > { %1304 = vmatpush.bf16.msra.mxu0 %v2540_v52  ;;  %v1918_v15 = vor.u32 %v2165_v9, %v1915_v10  ;;  %v1946_v10 = vld [vmem:[%s3251_s3 + $0xb0] sm:$0xf] }
 0x14c   : > { %v490_v23 = vmax.f32 %v465_v17, 0.0  ;;  %v2646_v54 = vpack.c.bf16 %v508_v58, %v507_v47  ;;  %v1866_v17 = vld [vmem:[%s3251_s3 + $0x38] sm:$0xf0]  ;;  %v1930_v58 = vld [vmem:[%s3251_s3 + $0x90] sm:$0xf] }
 0x14d   : > { %v2168_v47 = vld [vmem:[%s3251_s3 + $0x94] sm:$0xf0] }
 0x14e   : > { %759 = vmatpush.bf16.msrb.mxu1 %v2557_v60  ;;  %v514_v31 = vmin.f32 %v490_v23, 6.0  ;;  %v1869_v23 = vor.u32 %v2155_v16, %v1866_v17  ;;  %v1931_v34 = vor.u32 %v2168_v47, %v1930_v58 }
 0x14f   : > { %1305 = vmatpush.bf16.msra.mxu0 %v2557_v60 }
 0x150   : > { %v2611_v38 = vpack.c.bf16 %v514_v31, %v513_v30  ;;  %v2169_v30 = vld [vmem:[%s3251_s3 + $0xa4] sm:$0xf]  ;;  %v1940_v31 = vld [vmem:[%s3251_s3 + $0xa8] sm:$0xf0] }
 0x151   : > { %588 = vmatmul.bf16.gmra.mxu1 %v1848_v24  ;;  %679 = vmatmul.bf16.gmra.mxu3 %v1881_v25  ;;  %v1935_v24 = vor.u32 %v2167_v18, %v1932_v20  ;;  %v1964_v25 = vor.u32 %v2174_v22, %v1963_v21  ;;  %v1943_v37 = vor.u32 %v2169_v30, %v1940_v31  ;;  %v2012_v21 = vld [vmem:[%s3251_s3 + $0x110] sm:$0xf]  ;;  %v2184_v22 = vld [vmem:[%s3251_s3 + $0x114] sm:$0xf0]  ;;  %v2191_v30 = vld [vmem:[%s3251_s3 + $0x154] sm:$0xf] }
 0x152   : > { %598 = vmatpush.bf16.msra.mxu2 %v2611_v38  ;;  %780 = vmatpush.bf16.msrb.mxu3 %v2611_v38  ;;  %v2064_v31 = vld [vmem:[%s3251_s3 + $0x158] sm:$0xf0] }
 0x153   : > { %871 = vmatpush.bf16.msra.mxu1 %v2611_v38 }
 0x156   : > { %599 = vmatpush.bf16.msra.mxu2 %v2618_v27  ;;  %781 = vmatpush.bf16.msrb.mxu3 %v2618_v27 }
 0x157   : > { %872 = vmatpush.bf16.msra.mxu1 %v2618_v27 }
 0x15a   : > { %600 = vmatpush.bf16.msra.mxu2 %v2623_v12  ;;  %782 = vmatpush.bf16.msrb.mxu3 %v2623_v12 }
 0x15b   : > { %873 = vmatpush.bf16.msra.mxu1 %v2623_v12 }
 0x15e   : > { %601 = vmatpush.bf16.msra.mxu2 %v2646_v54  ;;  %783 = vmatpush.bf16.msrb.mxu3 %v2646_v54 }
 0x15f   : > { %874 = vmatpush.bf16.msra.mxu1 %v2646_v54 }
 0x161   : > { %1853 = vmatmul.msk.bf16.vlgmr.msra.gmra.mxu2 %vm560_vm3, %v1836_v55  ;;  %760 = vmatmul.bf16.vlgmr.msrb.gmra.mxu1 %v1898_v56  ;;  %v1997_v56 = vor.u32 %v2180_v51, %v1996_v50 }
 0x162   : > { %689 = vmatpush.bf16.msrb.mxu2 %v2611_v38  ;;  %934 = vmatpush.bf16.msra.mxu3 %v2491_v11 }
 0x163   : > { %1919 = vmatmul.msk.bf16.vlgmr.msrb.gmra.mxu3 %vm560_vm3, %v1902_v57  ;;  %1025 = vmatpush.bf16.msrb.mxu1 %v2491_v11 }
 0x166   : > { %690 = vmatpush.bf16.msrb.mxu2 %v2618_v27  ;;  %935 = vmatpush.bf16.msra.mxu3 %v2500_v19 }
 0x167   : > { %1026 = vmatpush.bf16.msrb.mxu1 %v2500_v19 }
 0x16a   : > { %691 = vmatpush.bf16.msrb.mxu2 %v2623_v12  ;;  %936 = vmatpush.bf16.msra.mxu3 %v2507_v26 }
 0x16b   : > { %1027 = vmatpush.bf16.msrb.mxu1 %v2507_v26 }
 0x16e   : > { %692 = vmatpush.bf16.msrb.mxu2 %v2646_v54  ;;  %937 = vmatpush.bf16.msra.mxu3 %v2517_v36 }
 0x16f   : > { %1028 = vmatpush.bf16.msrb.mxu1 %v2517_v36 }
 0x171   : > { %1854 = vmatmul.msk.bf16.gmra.mxu2 %vm560_vm3, %v1844_v2  ;;  %765 = vmatmul.bf16.gmra.mxu1 %v1906_v3  ;;  %v1939_v2 = vor.u32 %v2170_v62, %v1938_v61  ;;  %v2004_v3 = vld [vmem:[%s3251_s3 + $0x100] sm:$0xf] }
 0x172   : > { %843 = vmatpush.bf16.msra.mxu2 %v2491_v11  ;;  %938 = vmatpush.bf16.msra.mxu3 %v2526_v44 }
 0x173   : > { %1920 = vmatmul.msk.bf16.gmra.mxu3 %vm560_vm3, %v1910_v4  ;;  %1029 = vmatpush.bf16.msrb.mxu1 %v2526_v44  ;;  %v2182_v4 = vld [vmem:[%s3251_s3 + $0x104] sm:$0xf0] }
 0x174   : > { %v2005_v7 = vor.u32 %v2182_v4, %v2004_v3  ;;  %v2177_v3 = vld [vmem:[%s3251_s3 + $0xe4] sm:$0xf]  ;;  %v1981_v4 = vld [vmem:[%s3251_s3 + $0xe8] sm:$0xf0] }
 0x176   : > { %844 = vmatpush.bf16.msra.mxu2 %v2500_v19  ;;  %939 = vmatpush.bf16.msra.mxu3 %v2535_v35 }
 0x177   : > { %1030 = vmatpush.bf16.msrb.mxu1 %v2535_v35 }
 0x17a   : > { %845 = vmatpush.bf16.msra.mxu2 %v2507_v26  ;;  %940 = vmatpush.bf16.msra.mxu3 %v2540_v52 }
 0x17b   : > { %1031 = vmatpush.bf16.msrb.mxu1 %v2540_v52 }
 0x17e   : > { %846 = vmatpush.bf16.msra.mxu2 %v2517_v36  ;;  %941 = vmatpush.bf16.msra.mxu3 %v2557_v60 }
 0x17f   : > { %1032 = vmatpush.bf16.msrb.mxu1 %v2557_v60 }
 0x181   : > { %1855 = vmatmul.msk.bf16.gmra.mxu2 %vm560_vm3, %v1852_v13  ;;  %770 = vmatmul.bf16.gmra.mxu1 %v1914_v14  ;;  %v2172_v13 = vld [vmem:[%s3251_s3 + $0xb4] sm:$0xf0]  ;;  %v2183_v14 = vld [vmem:[%s3251_s3 + $0x114] sm:$0xf] }
 0x182   : > { %847 = vmatpush.bf16.msra.mxu2 %v2526_v44  ;;  %1053 = vmatpush.bf16.msrb.mxu3 %v2611_v38  ;;  %v1947_v17 = vor.u32 %v2172_v13, %v1946_v10  ;;  %v2188_v13 = vld [vmem:[%s3251_s3 + $0x134] sm:$0xf0] }
 0x183   : > { %1921 = vmatmul.msk.bf16.gmra.mxu3 %vm560_vm3, %v1918_v15  ;;  %v2014_v15 = vld [vmem:[%s3251_s3 + $0x118] sm:$0xf0] }
 0x184   : > { %v2017_v18 = vor.u32 %v2183_v14, %v2014_v15 }
 0x186   : > { %848 = vmatpush.bf16.msra.mxu2 %v2535_v35  ;;  %1054 = vmatpush.bf16.msrb.mxu3 %v2618_v27 }
 0x18a   : > { %849 = vmatpush.bf16.msra.mxu2 %v2540_v52  ;;  %1055 = vmatpush.bf16.msrb.mxu3 %v2623_v12 }
 0x18e   : > { %850 = vmatpush.bf16.msra.mxu2 %v2557_v60  ;;  %1056 = vmatpush.bf16.msrb.mxu3 %v2646_v54 }
 0x191   : > { %1886 = vmatmul.msk.bf16.vlgmr.msrb.gmra.mxu2 %vm560_vm3, %v1869_v23  ;;  %1952 = vmatmul.msk.bf16.vlgmr.msra.gmra.mxu1 %vm560_vm3, %v1935_v24  ;;  %v2013_v23 = vor.u32 %v2184_v22, %v2012_v21 }
 0x192   : > { %962 = vmatpush.bf16.msrb.mxu2 %v2611_v38  ;;  %1207 = vmatpush.bf16.msra.mxu1 %v2491_v11  ;;  %v1971_v11 = vld [vmem:[%s3251_s3 + $0xd0] sm:$0xf] }
 0x193   : > { %942 = vmatmul.bf16.vlgmr.msra.gmra.mxu3 %v1964_v25 }
 0x194   : > { %1235 = vmatpush.bf16.msra.mxu3 %v2611_v38 }
 0x196   : > { %963 = vmatpush.bf16.msrb.mxu2 %v2618_v27  ;;  %1208 = vmatpush.bf16.msra.mxu1 %v2500_v19  ;;  %v2176_v19 = vld [vmem:[%s3251_s3 + $0xd4] sm:$0xf0] }
 0x197   : > { %v1972_v33 = vor.u32 %v2176_v19, %v1971_v11  ;;  %v2173_v11 = vld [vmem:[%s3251_s3 + $0xc4] sm:$0xf]  ;;  %v1965_v19 = vld [vmem:[%s3251_s3 + $0xc8] sm:$0xf0] }
 0x198   : > { %1236 = vmatpush.bf16.msra.mxu3 %v2618_v27 }
 0x19a   : > { %964 = vmatpush.bf16.msrb.mxu2 %v2623_v12  ;;  %1209 = vmatpush.bf16.msra.mxu1 %v2507_v26  ;;  %v2159_v26 = vld [vmem:[%s3251_s3 + $0x54] sm:$0xf] }
 0x19b   : > { %v1885_v42 = vor.u32 %v2159_v26, %v1882_v41 }
 0x19c   : > { %1237 = vmatpush.bf16.msra.mxu3 %v2623_v12 }
 0x19e   : > { %965 = vmatpush.bf16.msrb.mxu2 %v2646_v54  ;;  %1210 = vmatpush.bf16.msra.mxu1 %v2517_v36  ;;  %v1979_v36 = vld [vmem:[%s3251_s3 + $0xe0] sm:$0xf] }
 0x1a0   : > { %1238 = vmatpush.bf16.msra.mxu3 %v2646_v54 }
 0x1a1   : > { %1887 = vmatmul.msk.bf16.gmra.mxu2 %vm560_vm3, %v1877_v32  ;;  %1953 = vmatmul.msk.bf16.gmra.mxu1 %vm560_vm3, %v1943_v37  ;;  %v1968_v37 = vor.u32 %v2173_v11, %v1965_v19  ;;  %v2185_v11 = vld [vmem:[%s3251_s3 + $0x124] sm:$0xf]  ;;  %v2031_v19 = vld [vmem:[%s3251_s3 + $0x128] sm:$0xf0] }
 0x1a2   : > { %1211 = vmatpush.bf16.msra.mxu1 %v2526_v44  ;;  %v2178_v44 = vld [vmem:[%s3251_s3 + $0xe4] sm:$0xf0] }
 0x1a3   : > { %947 = vmatmul.bf16.gmra.mxu3 %v1972_v33 }
 0x1a6   : > { %1212 = vmatpush.bf16.msra.mxu1 %v2535_v35  ;;  %v1980_v35 = vor.u32 %v2178_v44, %v1979_v36  ;;  %v2062_v36 = vld [vmem:[%s3251_s3 + $0x150] sm:$0xf]  ;;  %v2192_v44 = vld [vmem:[%s3251_s3 + $0x154] sm:$0xf0] }
 0x1aa   : > { %1213 = vmatpush.bf16.msra.mxu1 %v2540_v52  ;;  %v1951_v52 = vor.u32 %v2171_v40, %v1948_v45  ;;  %v2063_v40 = vor.u32 %v2192_v44, %v2062_v36  ;;  %v2045_v44 = vld [vmem:[%s3251_s3 + $0x140] sm:$0xf] }
 0x1ae   : > { %v579_v43 = vpop.f32.mrf.mxu1  ;;  %1214 = vmatpush.bf16.msra.mxu1 %v2557_v60  ;;  %v2179_v60 = vld [vmem:[%s3251_s3 + $0xf4] sm:$0xf] }
 0x1af   : > { %v2001_v53 = vor.u32 %v2179_v60, %v1998_v48  ;;  %v1973_v60 = vld [vmem:[%s3251_s3 + $0xd8] sm:$0xf0] }
 0x1b1   : > { %1888 = vmatmul.msk.bf16.gmra.mxu2 %vm560_vm3, %v1885_v42  ;;  %1954 = vmatmul.msk.bf16.gmra.mxu1 %vm560_vm3, %v1951_v52 }
 0x1b3   : > { %952 = vmatmul.bf16.gmra.mxu3 %v1980_v35  ;;  %v2067_v35 = vor.u32 %v2191_v30, %v2064_v31 }
 0x1b4   : > { %v2801_v46 = vpop.f32.mrf.mxu3 }
 0x1b6   : > { %v581_v39 = vpop.f32.mrf.mxu1 }
 0x1bc   : > { %v2815_v49 = vpop.f32.mrf.mxu3 }
 0x1be   : > { %v2823_v55 = vpop.f32.mrf.mxu1 }
 0x1c1   : > { %851 = vmatmul.bf16.vlgmr.msra.gmra.mxu2 %v1931_v34  ;;  %1033 = vmatmul.bf16.vlgmr.msrb.gmra.mxu1 %v1997_v56 }
 0x1c2   : > { %1144 = vmatpush.bf16.msra.mxu2 %v2611_v38 }
 0x1c3   : > { %2018 = vmatmul.msk.bf16.vlgmr.msrb.gmra.mxu3 %vm560_vm3, %v2001_v53 }
 0x1c4   : > { %v2827_v57 = vpop.f32.mrf.mxu3 }
 0x1c6   : > { %1145 = vmatpush.bf16.msra.mxu2 %v2618_v27  ;;  %v2830_v59 = vpop.f32.mrf.mxu1 }
 0x1ca   : > { %1146 = vmatpush.bf16.msra.mxu2 %v2623_v12 }
 0x1cc   : > { %v2845_v1 = vpop.f32.mrf.mxu3 }
 0x1ce   : > { %1147 = vmatpush.bf16.msra.mxu2 %v2646_v54  ;;  %v2854_v6 = vpop.f32.mrf.mxu1 }
 0x1d1   : > { %856 = vmatmul.bf16.gmra.mxu2 %v1939_v2  ;;  %1038 = vmatmul.bf16.gmra.mxu1 %v2005_v7  ;;  %v1984_v7 = vor.u32 %v2177_v3, %v1981_v4 }
 0x1d3   : > { %2019 = vmatmul.msk.bf16.gmra.mxu3 %vm560_vm3, %v2009_v5 }
 0x1d4   : > { %v2857_v8 = vpop.f32.mrf.mxu3 }
 0x1d6   : > { %v2859_v9 = vpop.f32.mrf.mxu1 }
 0x1dc   : > { %v2873_v16 = vpop.f32.mrf.mxu3 }
 0x1de   : > { %v761_v20 = vpop.f32.mrf.mxu1 }
 0x1e1   : > { %861 = vmatmul.bf16.gmra.mxu2 %v1947_v17  ;;  %1043 = vmatmul.bf16.gmra.mxu1 %v2013_v23  ;;  %v2193_v17 = vld [vmem:[%s3251_s3 + $0x164] sm:$0xf]  ;;  %v2070_v23 = vld [vmem:[%s3251_s3 + $0x160] sm:$0xf] }
 0x1e3   : > { %2020 = vmatmul.msk.bf16.gmra.mxu3 %vm560_vm3, %v2017_v18  ;;  %v2072_v18 = vld [vmem:[%s3251_s3 + $0x168] sm:$0xf0] }
 0x1e4   : > { %v603_v24 = vpop.f32.mrf.mxu2 }
 0x1e5   : > { %v2882_v25 = vadd.f32 %v603_v24, %v579_v43  ;;  %v2194_v24 = vld [vmem:[%s3251_s3 + $0x164] sm:$0xf0] }
 0x1e6   : > { %v785_v28 = vpop.f32.mrf.mxu3  ;;  %v763_v29 = vpop.f32.mrf.mxu1 }
 0x1e7   : > { %v786_v26 = vadd.f32 %v785_v28, %v761_v20  ;;  %v2075_v20 = vor.u32 %v2193_v17, %v2072_v18  ;;  %v2071_v28 = vor.u32 %v2194_v24, %v2070_v23  ;;  %v2195_v18 = vld [vmem:[%s3251_s3 + $0x174] sm:$0xf]  ;;  %v2197_v24 = vld [vmem:[%s3251_s3 + $0x184] sm:$0xf] }
 0x1ec   : > { %v605_v32 = vpop.f32.mrf.mxu2 }
 0x1ed   : > { %v2896_v33 = vadd.f32 %v605_v32, %v581_v39 }
 0x1ee   : > { %v787_v41 = vpop.f32.mrf.mxu3  ;;  %v766_v43 = vpop.f32.mrf.mxu1 }
 0x1ef   : > { %v788_v42 = vadd.f32 %v787_v41, %v763_v29 }
 0x1f1   : > { %1985 = vmatmul.msk.bf16.vlgmr.msrb.gmra.mxu2 %vm560_vm3, %v1968_v37  ;;  %v2227_v45 = vpack.i.bf16 %v788_v42, %v786_v26  ;;  %1215 = vmatmul.bf16.vlgmr.msra.gmra.mxu1 %v2063_v40  ;;  %v2034_v37 = vor.u32 %v2185_v11, %v2031_v19  ;;  %v2190_v42 = vld [vmem:[%s3251_s3 + $0x144] sm:$0xf0]  ;;  %v2187_v40 = vld [vmem:[%s3251_s3 + $0x134] sm:$0xf] }
 0x1f2   : > { %1326 = vmatpush.bf16.msrb.mxu2 %v2611_v38  ;;  %v2175_v38 = vld [vmem:[%s3251_s3 + $0xd4] sm:$0xf] }
 0x1f3   : > { %2084 = vmatmul.msk.bf16.vlgmr.msra.gmra.mxu3 %vm560_vm3, %v2067_v35  ;;  %2228 = vrot.lane.b32.xlu0 %v2227_v45, %s2359_s21  ;;  %v1976_v51 = vor.u32 %v2175_v38, %v1973_v60  ;;  %v2046_v35 = vor.u32 %v2190_v42, %v2045_v44  ;;  %v2039_v45 = vld [vmem:[%s3251_s3 + $0x138] sm:$0xf0]  ;;  %v2078_v42 = vld [vmem:[%s3251_s3 + $0x170] sm:$0xf] }
 0x1f4   : > { %v608_v52 = vpop.f32.mrf.mxu2  ;;  %v2042_v38 = vor.u32 %v2187_v40, %v2039_v45 }
 0x1f5   : > { %v2909_v39 = vadd.f32 %v608_v52, %v2823_v55  ;;  %v2186_v55 = vld [vmem:[%s3251_s3 + $0x124] sm:$0xf0] }
 0x1f6   : > { %v790_v58 = vpop.f32.mrf.mxu3  ;;  %1327 = vmatpush.bf16.msrb.mxu2 %v2618_v27  ;;  %v768_v47 = vpop.f32.mrf.mxu1 }
 0x1f7   : > { %v791_v50 = vadd.f32 %v790_v58, %v766_v43 }
 0x1fa   : > { %1328 = vmatpush.bf16.msrb.mxu2 %v2623_v12  ;;  %v2029_v12 = vld [vmem:[%s3251_s3 + $0x120] sm:$0xf] }
 0x1fb   : > { %v2030_v61 = vor.u32 %v2186_v55, %v2029_v12  ;;  %v2189_v55 = vld [vmem:[%s3251_s3 + $0x144] sm:$0xf] }
 0x1fc   : > { %v2919_v48 = vpop.f32.mrf.mxu2 }
 0x1fd   : > { %1124 = vmatmul.bf16.vlgmr.msrb.gmra.mxu0 %v2030_v61 }
 0x1fe   : > { %v792_v34 = vpop.f32.mrf.mxu3  ;;  %1329 = vmatpush.bf16.msrb.mxu2 %v2646_v54  ;;  %v771_v27 = vpop.f32.mrf.mxu1 }
 0x1ff   : > { %v793_v53 = vadd.f32 %v792_v34, %v768_v47 }
 0x201   : > { %v2232_v56 = vpack.i.bf16 %v793_v53, %v791_v50  ;;  %1986 = vmatmul.msk.bf16.gmra.mxu2 %vm560_vm3, %v1976_v51  ;;  %1220 = vmatmul.bf16.gmra.mxu1 %v2071_v28  ;;  %v2095_v50 = vld [vmem:[%s3251_s3 + $0x180] sm:$0xf]  ;;  %v2198_v51 = vld [vmem:[%s3251_s3 + $0x184] sm:$0xf0]  ;;  %v2097_v28 = vld [vmem:[%s3251_s3 + $0x188] sm:$0xf0] }
 0x202   : > { %v2096_v34 = vor.u32 %v2198_v51, %v2095_v50 }
 0x203   : > { %2233 = vrot.lane.b32.xlu0 %v2232_v56, %s2359_s21  ;;  %2085 = vmatmul.msk.bf16.gmra.mxu3 %vm560_vm3, %v2075_v20  ;;  %v2047_v56 = vld [vmem:[%s3251_s3 + $0x148] sm:$0xf0]  ;;  %v2080_v20 = vld [vmem:[%s3251_s3 + $0x178] sm:$0xf0] }
 0x204   : > { %v613_v62 = vpop.f32.mrf.mxu2  ;;  %v2050_v3 = vor.u32 %v2189_v55, %v2047_v56 }
 0x205   : > { %v2931_v54 = vadd.f32 %v613_v62, %v2854_v6  ;;  %v2037_v6 = vld [vmem:[%s3251_s3 + $0x130] sm:$0xf] }
 0x206   : > { %v795_v63 = vpop.f32.mrf.mxu3  ;;  %v2935_v2 = vpop.f32.mrf.mxu1  ;;  %v2038_v14 = vor.u32 %v2188_v13, %v2037_v6  ;;  %v2103_v6 = vld [vmem:[%s3251_s3 + $0x190] sm:$0xf]  ;;  %v2200_v13 = vld [vmem:[%s3251_s3 + $0x194] sm:$0xf0] }
 0x207   : > { %v2933_v0 = vadd.f32 %v795_v63, %v771_v27 }
 0x20c   : > { %v2943_v5 = vpop.f32.mrf.mxu2 }
 0x20d   : > { %1129 = vmatmul.bf16.gmra.mxu0 %v2038_v14 }
 0x20e   : > { %v2945_v10 = vpop.f32.mrf.mxu3  ;;  %v2953_v15 = vpop.f32.mrf.mxu1 }
 0x211   : > { %1987 = vmatmul.msk.bf16.gmra.mxu2 %vm560_vm3, %v1984_v7 }
 0x214   : > { %v694_v21 = vpop.f32.mrf.mxu2 }
 0x215   : > { %v695_v31 = vadd.f32 %v694_v21, %v2801_v46  ;;  %v2083_v21 = vor.u32 %v2195_v18, %v2080_v20 }
 0x216   : > { %v2963_v22 = vpop.f32.mrf.mxu3  ;;  %v2971_v29 = vpop.f32.mrf.mxu1 }
 0x217   : > { %2086 = vmatmul.msk.bf16.gmra.mxu3 %vm560_vm3, %v2083_v21 }
 0x21c   : > { %v696_v30 = vpop.f32.mrf.mxu2 }
 0x21d   : > { %v697_v32 = vadd.f32 %v696_v30, %v2815_v49  ;;  %1134 = vmatmul.bf16.gmra.mxu0 %v2046_v35  ;;  %v2196_v35 = vld [vmem:[%s3251_s3 + $0x174] sm:$0xf0] }
 0x21e   : > { %v2981_v26 = vpop.f32.mrf.mxu3  ;;  %v2983_v36 = vpop.f32.mrf.mxu1  ;;  %v2079_v45 = vor.u32 %v2196_v35, %v2078_v42 }
 0x21f   : > { %v2237_v41 = vpack.i.bf16 %v697_v32, %v695_v31  ;;  %v2100_v32 = vor.u32 %v2197_v24, %v2097_v28 }
 0x220   : > { %1225 = vmatmul.bf16.gmra.mxu1 %v2079_v45 }
 0x221   : > { %2051 = vmatmul.msk.bf16.vlgmr.msra.gmra.mxu2 %vm560_vm3, %v2034_v37  ;;  %2238 = vrot.lane.b32.xlu0 %v2237_v41, %s2360_s15 }
 0x224   : > { %v699_v46 = vpop.f32.mrf.mxu2 }
 0x225   : > { %v700_v58 = vadd.f32 %v699_v46, %v2827_v57 }
 0x226   : > { %v2993_v49 = vpop.f32.mrf.mxu3  ;;  %v2995_v43 = vpop.f32.mrf.mxu1 }
 0x22c   : > { %v701_v52 = vpop.f32.mrf.mxu2 }
 0x22d   : > { %v702_v47 = vadd.f32 %v701_v52, %v2845_v1  ;;  %1306 = vmatmul.bf16.vlgmr.msra.gmra.mxu0 %v2096_v34 }
 0x22e   : > { %v3005_v60 = vpop.f32.mrf.mxu3  ;;  %v3013_v27 = vpop.f32.mrf.mxu1 }
 0x22f   : > { %v2242_v53 = vpack.i.bf16 %v702_v47, %v700_v58  ;;  %v2199_v58 = vld [vmem:[%s3251_s3 + $0x194] sm:$0xf]  ;;  %v2105_v47 = vld [vmem:[%s3251_s3 + $0x198] sm:$0xf0] }
 0x230   : > { %v2108_v34 = vor.u32 %v2199_v58, %v2105_v47 }
 0x231   : > { %2052 = vmatmul.msk.bf16.gmra.mxu2 %vm560_vm3, %v2042_v38  ;;  %2243 = vrot.lane.b32.xlu2 %v2242_v53, %s2360_s15 }
 0x234   : > { %v704_v57 = vpop.f32.mrf.mxu2 }
 0x235   : > { %v3028_v62 = vadd.f32 %v704_v57, %v2857_v8  ;;  %v2104_v8 = vor.u32 %v2200_v13, %v2103_v6  ;;  %v2111_v6 = vld [vmem:[%s3251_s3 + $0x1a0] sm:$0xf] }
 0x236   : > { %v3017_v1 = vpop.f32.mrf.mxu3  ;;  %v3019_v12 = vpop.f32.mrf.mxu1 }
 0x23c   : > { %v706_v61 = vpop.f32.mrf.mxu2 }
 0x23d   : > { %v3031_v63 = vadd.f32 %v706_v61, %v2873_v16  ;;  %1311 = vmatmul.bf16.gmra.mxu0 %v2104_v8  ;;  %v2201_v8 = vld [vmem:[%s3251_s3 + $0x1a4] sm:$0xf] }
 0x23e   : > { %v3033_v4 = vpop.f32.mrf.mxu3  ;;  %v1034_v14 = vpop.f32.mrf.mxu1 }
 0x23f   : > { %v2302_v7 = vpack.i.bf16 %v3031_v63, %v3028_v62 }
 0x241   : > { %2053 = vmatmul.msk.bf16.gmra.mxu2 %vm560_vm3, %v2050_v3 }
 0x244   : > { %v852_v16 = vpop.f32.mrf.mxu2 }
 0x245   : > { %v877_v30 = vadd.f32 %v2953_v15, %v852_v16 }
 0x246   : > { %v1058_v17 = vpop.f32.mrf.mxu3  ;;  %v1036_v23 = vpop.f32.mrf.mxu1 }
 0x247   : > { %v1059_v19 = vadd.f32 %v1058_v17, %v1034_v14 }
 0x24c   : > { %v854_v11 = vpop.f32.mrf.mxu2 }
 0x24d   : > { %v879_v31 = vadd.f32 %v2971_v29, %v854_v11 }
 0x24e   : > { %v1060_v37 = vpop.f32.mrf.mxu3  ;;  %v1039_v40 = vpop.f32.mrf.mxu1 }
 0x24f   : > { %v1061_v41 = vadd.f32 %v1060_v37, %v1036_v23  ;;  %v2247_v44 = vpack.i.bf16 %v879_v31, %v877_v30 }
 0x251   : > { %v2252_v46 = vpack.i.bf16 %v1061_v41, %v1059_v19  ;;  %2117 = vmatmul.msk.bf16.vlgmr.msrb.gmra.mxu2 %vm560_vm3, %v2100_v32  ;;  %2248 = vrot.lane.b32.xlu1 %v2247_v44, %s2361_s29 }
 0x253   : > { %2253 = vrot.lane.b32.xlu2 %v2252_v46, %s2362_s30 }
 0x254   : > { %v857_v15 = vpop.f32.mrf.mxu2 }
 0x255   : > { %v882_v50 = vadd.f32 %v2983_v36, %v857_v15  ;;  %v2202_v36 = vld [vmem:[%s3251_s3 + $0x1a4] sm:$0xf0] }
 0x256   : > { %v1063_v29 = vpop.f32.mrf.mxu3  ;;  %v1041_v52 = vpop.f32.mrf.mxu1  ;;  %v2112_v13 = vor.u32 %v2202_v36, %v2111_v6 }
 0x257   : > { %v1064_v46 = vadd.f32 %v1063_v29, %v1039_v40 }
 0x258   : > { %1316 = vmatmul.bf16.gmra.mxu0 %v2112_v13 }
 0x25c   : > { %v859_v38 = vpop.f32.mrf.mxu2 }
 0x25d   : > { %v884_v51 = vadd.f32 %v2995_v43, %v859_v38 }
 0x25e   : > { %v1065_v53 = vpop.f32.mrf.mxu3  ;;  %v1044_v55 = vpop.f32.mrf.mxu1 }
 0x25f   : > { %v2257_v57 = vpack.i.bf16 %v884_v51, %v882_v50  ;;  %v1066_v45 = vadd.f32 %v1065_v53, %v1041_v52 }
 0x261   : > { %2118 = vmatmul.msk.bf16.gmra.mxu2 %vm560_vm3, %v2108_v34  ;;  %2258 = vrot.lane.b32.xlu1 %v2257_v57, %s2361_s29  ;;  %v2282_v58 = vpack.i.bf16 %v1066_v45, %v1064_v46 }
 0x264   : > { %v862_v56 = vpop.f32.mrf.mxu2 }
 0x265   : > { %v3079_v61 = vadd.f32 %v3013_v27, %v862_v56  ;;  %v2113_v27 = vld [vmem:[%s3251_s3 + $0x1a8] sm:$0xf0] }
 0x266   : > { %v1068_v3 = vpop.f32.mrf.mxu3  ;;  %v1046_v14 = vpop.f32.mrf.mxu1  ;;  %v2116_v18 = vor.u32 %v2201_v8, %v2113_v27 }
 0x267   : > { %v3087_v43 = vadd.f32 %v1068_v3, %v1044_v55 }
 0x26c   : > { %v864_v16 = vpop.f32.mrf.mxu2 }
 0x26d   : > { %v3096_v17 = vadd.f32 %v3019_v12, %v864_v16 }
 0x26e   : > { %v1070_v20 = vpop.f32.mrf.mxu3  ;;  %v1216_v28 = vpop.f32.mrf.mxu1 }
 0x26f   : > { %v3098_v21 = vadd.f32 %v1070_v20, %v1046_v14  ;;  %v2317_v23 = vpack.i.bf16 %v3096_v17, %v3079_v61  ;;  %v1601_v61 = vld [vmem:[%s3252_s4 + $0x20] sm:$0xf] }
 0x270   : > { %v1626_v17 = vunpack.c.l.b16 %v1601_v61 }
 0x271   : > { %v2327_v24 = vpack.i.bf16 %v3098_v21, %v3087_v43  ;;  %2119 = vmatmul.msk.bf16.gmra.mxu2 %vm560_vm3, %v2116_v18 }
 0x274   : > { %v967_v11 = vpop.f32.mrf.mxu2 }
 0x275   : > { %v968_v12 = vadd.f32 %v967_v11, %v2963_v22  ;;  %v798_v11 = vadd.f32 %v2945_v10, %v2935_v2 }
 0x276   : > { %v1240_v19 = vpop.f32.mrf.mxu3  ;;  %v1218_v30 = vpop.f32.mrf.mxu1 }
 0x277   : > { %v1241_v32 = vadd.f32 %v1240_v19, %v1216_v28  ;;  %v2307_v19 = vpack.i.bf16 %v798_v11, %v2933_v0 }
 0x27a   : > { %v1125_v22 = vpop.f32.mrf.mxu0 }
 0x27c   : > { %v969_v31 = vpop.f32.mrf.mxu2 }
 0x27d   : > { %v970_v37 = vadd.f32 %v969_v31, %v2981_v26 }
 0x27e   : > { %v1242_v41 = vpop.f32.mrf.mxu3  ;;  %v1221_v57 = vpop.f32.mrf.mxu1 }
 0x27f   : > { %v1243_v44 = vadd.f32 %v1242_v41, %v1218_v30  ;;  %v2262_v42 = vpack.i.bf16 %v970_v37, %v968_v12 }
 0x281   : > { %v2267_v35 = vpack.i.bf16 %v1243_v44, %v1241_v32  ;;  %2263 = vrot.lane.b32.xlu1 %v2262_v42, %s2363_s23 }
 0x282   : > { %v1127_v26 = vpop.f32.mrf.mxu0 }
 0x283   : > { %2268 = vrot.lane.b32.xlu0 %v2267_v35, %s2364_s24 }
 0x284   : > { %v972_v15 = vpop.f32.mrf.mxu2 }
 0x285   : > { %v973_v13 = vadd.f32 %v972_v15, %v2993_v49 }
 0x286   : > { %v1245_v56 = vpop.f32.mrf.mxu3  ;;  %v1223_v14 = vpop.f32.mrf.mxu1 }
 0x287   : > { %v1246_v16 = vadd.f32 %v1245_v56, %v1221_v57 }
 0x28a   : > { %v1130_v29 = vpop.f32.mrf.mxu0 }
 0x28b   : > { %2283 = vrot.lane.b32.xlu0 %v2282_v58, %s2362_s30 }
 0x28c   : > { %v974_v47 = vpop.f32.mrf.mxu2 }
 0x28d   : > { %v975_v43 = vadd.f32 %v974_v47, %v3005_v60 }
 0x28e   : > { %v1247_v8 = vpop.f32.mrf.mxu3 }
 0x28f   : > { %v2277_v27 = vpack.i.bf16 %v975_v43, %v973_v13  ;;  %v1248_v18 = vadd.f32 %v1247_v8, %v1223_v14  ;;  %v2204_v43 = vld [vmem:[%s3252_s4 + $0x8] sm:$0xff]  ;;  %v2229_v13 = vpop.permute.xlu0 %2228 }
 0x290   : > { %v2231_v11 = vunpack.i.h.bf16 %v2229_v13 }
 0x291   : > { %v2297_v21 = vpack.i.bf16 %v1248_v18, %v1246_v16 }
 0x292   : > { %v1132_v53 = vpop.f32.mrf.mxu0 }
 0x294   : > { %v977_v38 = vpop.f32.mrf.mxu2 }
 0x295   : > { %v3111_v51 = vadd.f32 %v977_v38, %v3017_v1 }
 0x297   : > { %v3156_v14 = vpop.permute.xlu0 %2233 }
 0x298   : > { %v2235_v61 = vunpack.i.l.bf16 %v3156_v14 }
 0x29a   : > { %v1250_v47 = vpop.f32.mrf.mxu3 }
 0x29c   : > { %v979_v50 = vpop.f32.mrf.mxu2 }
 0x29d   : > { %v980_v34 = vadd.f32 %v979_v50, %v3033_v4  ;;  %v1135_v4 = vpop.f32.mrf.mxu0  ;;  %v1226_v58 = vpop.f32.mrf.mxu1 }
 0x29f   : > { %v2322_v40 = vpack.i.bf16 %v980_v34, %v3111_v51  ;;  %v2239_v18 = vpop.permute.xlu0 %2238 }
 0x2a2   : > { %v1252_v51 = vpop.f32.mrf.mxu3 }
 0x2a4   : > { %v1149_v52 = vpop.f32.mrf.mxu2 }
 0x2a5   : > { %v1150_v3 = vadd.f32 %v1149_v52, %v1125_v22  ;;  %v1137_v28 = vpop.f32.mrf.mxu0  ;;  %v1228_v50 = vpop.f32.mrf.mxu1  ;;  %v1251_v52 = vadd.f32 %v1250_v47, %v1226_v58 }
 0x2ac   : > { %v1151_v55 = vpop.f32.mrf.mxu2 }
 0x2ad   : > { %v1152_v6 = vadd.f32 %v1151_v55, %v1127_v26  ;;  %v1307_v49 = vpop.f32.mrf.mxu0 }
 0x2af   : > { %v2272_v36 = vpack.i.bf16 %v1152_v6, %v1150_v3  ;;  %v2206_v6 = vld [vmem:[%s3252_s4 + $0x18] sm:$0xff] }
 0x2b1   : > { %2273 = vrot.lane.b32.xlu2 %v2272_v36, %s2365_s25  ;;  %v2205_v36 = vld [vmem:[%s3252_s4 + $0x10] sm:$0xff] }
 0x2b4   : > { %v1154_v1 = vpop.f32.mrf.mxu2 }
 0x2b5   : > { %v1309_v31 = vpop.f32.mrf.mxu0  ;;  %v1155_v35 = vadd.f32 %v1154_v1, %v1130_v29  ;;  %v2203_v1 = vld [vmem:[%s3252_s4] sm:$0xff] }
 0x2b9   : > { %2278 = vrot.lane.b32.xlu2 %v2277_v27, %s2363_s23 }
 0x2bc   : > { %v1156_v20 = vpop.f32.mrf.mxu2 }
 0x2bd   : > { %v1312_v44 = vpop.f32.mrf.mxu0  ;;  %v1157_v2 = vadd.f32 %v1156_v20, %v1132_v53  ;;  %v1253_v53 = vadd.f32 %v1252_v51, %v1228_v50 }
 0x2bf   : > { %v2292_v0 = vpack.i.bf16 %v1157_v2, %v1155_v35  ;;  %v2337_v63 = vpack.i.bf16 %v1253_v53, %v1251_v52 }
 0x2c1   : > { %2298 = vrot.lane.b32.xlu2 %v2297_v21, %s2364_s24  ;;  %v2241_v21 = vunpack.i.h.bf16 %v2239_v18 }
 0x2c3   : > { %v2249_v8 = vpop.permute.xlu1 %2248 }
 0x2c4   : > { %v1159_v60 = vpop.f32.mrf.mxu2 }
 0x2c5   : > { %v1314_v46 = vpop.f32.mrf.mxu0  ;;  %v1160_v56 = vadd.f32 %v1159_v60, %v1135_v4  ;;  %v2244_v4 = vpop.permute.xlu2 %2243 }
 0x2c6   : > { %v2245_v52 = vunpack.i.l.bf16 %v2244_v4 }
 0x2c9   : > { %2308 = vrot.lane.b32.xlu2 %v2307_v19, %s2359_s21  ;;  %v2230_v19 = vunpack.i.l.bf16 %v2229_v13 }
 0x2cc   : > { %v1161_v30 = vpop.f32.mrf.mxu2 }
 0x2cd   : > { %v1162_v29 = vadd.f32 %v1161_v30, %v1137_v28  ;;  %v2254_v27 = vpop.permute.xlu2 %2253  ;;  %v2240_v28 = vunpack.i.l.bf16 %v2239_v18  ;;  %v2251_v30 = vunpack.i.h.bf16 %v2249_v8 }
 0x2ce   : > { %v2255_v35 = vunpack.i.l.bf16 %v2254_v27 }
 0x2cf   : > { %v2332_v62 = vpack.i.bf16 %v1162_v29, %v1160_v56  ;;  %v2246_v29 = vunpack.i.h.bf16 %v2244_v4 }
 0x2d1   : > { %2328 = vrot.lane.b32.xlu2 %v2327_v24, %s2362_s30 }
 0x2d3   : > { %v3158_v16 = vpop.permute.xlu1 %2258 }
 0x2d4   : > { %v1331_v32 = vpop.f32.mrf.mxu2 }
 0x2d5   : > { %v1332_v37 = vadd.f32 %v1331_v32, %v1307_v49  ;;  %v1317_v38 = vpop.f32.mrf.mxu0  ;;  %v1540_v49 = vsel %vm1538_vm4, %v2896_v33, %v2241_v21  ;;  %v2250_v32 = vunpack.i.l.bf16 %v2249_v8  ;;  %v2256_v33 = vunpack.i.h.bf16 %v2254_v27 }
 0x2dc   : > { %v1333_v12 = vpop.f32.mrf.mxu2 }
 0x2dd   : > { %v1334_v41 = vadd.f32 %v1333_v12, %v1309_v31  ;;  %v1319_v34 = vpop.f32.mrf.mxu0  ;;  %v1539_v31 = vsel %vm1538_vm4, %v2882_v25, %v2240_v28 }
 0x2df   : > { %v2287_v42 = vpack.i.bf16 %v1334_v41, %v1332_v37  ;;  %v1547_v41 = vsel %vm1545_vm6, %v1540_v49, %v2231_v11 }
 0x2e1   : > { %2288 = vrot.lane.b32.xlu1 %v2287_v42, %s2366_s26  ;;  %v1554_v42 = vsel %vm1552_vm5, %v1547_v41, %v2251_v30 }
 0x2e4   : > { %v1336_v10 = vpop.f32.mrf.mxu2 }
 0x2e5   : > { %v1337_v15 = vadd.f32 %v1336_v10, %v1312_v44  ;;  %v1546_v44 = vsel %vm1545_vm6, %v1539_v31, %v2230_v19 }
 0x2e6   : > { %v1553_v10 = vsel %vm1552_vm5, %v1546_v44, %v2250_v32 }
 0x2e9   : > { %2293 = vrot.lane.b32.xlu1 %v2292_v0, %s2365_s25 }
 0x2ec   : > { %v1338_v45 = vpop.f32.mrf.mxu2 }
 0x2ed   : > { %v1339_v24 = vadd.f32 %v1338_v45, %v1314_v46 }
 0x2ef   : > { %v2312_v22 = vpack.i.bf16 %v1339_v24, %v1337_v15 }
 0x2f1   : > { %2313 = vrot.lane.b32.xlu0 %v2312_v22, %s2366_s26  ;;  %2303 = vrot.lane.b32.xlu1 %v2302_v7, %s2360_s15 }
 0x2f3   : > { %v2264_v60 = vpop.permute.xlu1 %2263 }
 0x2f4   : > { %v1341_v26 = vpop.f32.mrf.mxu2  ;;  %v2266_v12 = vunpack.i.h.bf16 %v2264_v60  ;;  %v2265_v37 = vunpack.i.l.bf16 %v2264_v60 }
 0x2f5   : > { %v1342_v57 = vadd.f32 %v1341_v26, %v1317_v38  ;;  %v2269_v15 = vpop.permute.xlu0 %2268 }
 0x2f6   : > { %v1560_v25 = vsel %vm1559_vm7, %v1553_v10, %v2265_v37  ;;  %v1561_v0 = vsel %vm1559_vm7, %v1554_v42, %v2266_v12  ;;  %v2271_v47 = vunpack.i.h.bf16 %v2269_v15  ;;  %v2270_v22 = vunpack.i.l.bf16 %v2269_v15 }
 0x2f7   : > { %v1567_v24 = vsel %vm1566_vm8, %v1560_v25, %v2255_v35  ;;  %v1568_v58 = vsel %vm1566_vm8, %v1561_v0, %v2256_v33  ;;  %v616_v0 = vadd.f32 %v2943_v5, %v2859_v9 }
 0x2f9   : > { %2318 = vrot.lane.b32.xlu0 %v2317_v23, %s2361_s29  ;;  %2323 = vrot.lane.b32.xlu1 %v2322_v40, %s2363_s23  ;;  %v1631_v23 = vpack.c.b16 %v1626_v17, %v1626_v17  ;;  %v1541_v17 = vsel %vm1538_vm4, %v2909_v39, %v2245_v52  ;;  %s2209_s23 = smul.u32 48, %s3258_s28 }
 0x2fa   : > { %v1548_v39 = vsel %vm1545_vm6, %v1541_v17, %v2235_v61 }
 0x2fb   : > { %v1647_v40 = vsel %vm391_vm0, %v1631_v23, 0 }
 0x2fc   : > { %v1343_v55 = vpop.f32.mrf.mxu2  ;;  %1652 = vmatpush.bf16.msrb.mxu1 %v1647_v40  ;;  %v2261_v40 = vunpack.i.h.bf16 %v3158_v16 }
 0x2fd   : > { %v1344_v3 = vadd.f32 %v1343_v55, %v1319_v34 }
 0x2ff   : > { %v2342_v7 = vpack.i.bf16 %v1344_v3, %v1342_v57 }
 0x300   : > { %1653 = vmatpush.bf16.msrb.mxu1 %v2206_v6  ;;  %v2260_v6 = vunpack.i.l.bf16 %v3158_v16 }
 0x301   : > { %2333 = vrot.lane.b32.xlu0 %v2332_v62, %s2365_s25  ;;  %2338 = vrot.lane.b32.xlu1 %v2337_v63, %s2364_s24  ;;  %v611_v62 = vadd.f32 %v2919_v48, %v2830_v59  ;;  %v2207_v48 = vld [vmem:[%s3254_s6] sm:$0xff] }
 0x302   : > { %2343 = vrot.lane.b32.xlu2 %v2342_v7, %s2366_s26  ;;  %v2236_v7 = vunpack.i.h.bf16 %v3156_v14  ;;  %v1555_v14 = vsel %vm1552_vm5, %v1548_v39, %v2260_v6  ;;  %1716 = vmatpush.bf16.msrb.mxu3 %v2207_v48  ;;  %s305_s26 = scalar_lea.vmem %s3256_s8, %s2209_s23 }
 0x303   : > { %v1542_v23 = vsel %vm1538_vm4, %v611_v62, %v2246_v29 }
 0x304   : > { %1654 = vmatpush.bf16.msrb.mxu1 %v2205_v36  ;;  %v1549_v13 = vsel %vm1545_vm6, %v1542_v23, %v2236_v7 }
 0x305   : > { %v1556_v4 = vsel %vm1552_vm5, %v1549_v13, %v2261_v40 }
 0x308   : > { %1655 = vmatpush.bf16.msrb.mxu1 %v2204_v43 }
 0x30b   : > { %v2274_v20 = vpop.permute.xlu2 %2273 }
 0x30c   : > { %1656 = vmatpush.bf16.msrb.mxu1 %v2203_v1  ;;  %v2276_v46 = vunpack.i.h.bf16 %v2274_v20  ;;  %v2275_v45 = vunpack.i.l.bf16 %v2274_v20  ;;  %v2284_v1 = vpop.permute.xlu0 %2283 }
 0x30d   : > { %v2286_v8 = vunpack.i.h.bf16 %v2284_v1  ;;  %v2285_v27 = vunpack.i.l.bf16 %v2284_v1 }
 0x30e   : > { %v1574_v38 = vsel %vm1573_vm9, %v1567_v24, %v2275_v45  ;;  %v1575_v26 = vsel %vm1573_vm9, %v1568_v58, %v2276_v46 }
 0x30f   : > { %v1581_v53 = vsel %vm1580_vm10, %v1574_v38, %v2270_v22  ;;  %v1582_v57 = vsel %vm1580_vm10, %v1575_v26, %v2271_v47 }
 0x313   : > { %v2279_v2 = vpop.permute.xlu2 %2278 }
 0x314   : > { %v2281_v36 = vunpack.i.h.bf16 %v2279_v2  ;;  %v2280_v43 = vunpack.i.l.bf16 %v2279_v2 }
 0x316   : > { %v1562_v16 = vsel %vm1559_vm7, %v1555_v14, %v2280_v43  ;;  %v1563_v18 = vsel %vm1559_vm7, %v1556_v4, %v2281_v36  ;;  %v2348_v14 = vld [vmem:[%s3253_s5] ss:$0 sm:$0xff] }
 0x317   : > { %v1569_v11 = vsel %vm1566_vm8, %v1562_v16, %v2285_v27  ;;  %v1570_v60 = vsel %vm1566_vm8, %v1563_v18, %v2286_v8 }
 0x31b   : > { %v2299_v55 = vpop.permute.xlu2 %2298 }
 0x31c   : > { %v2301_v30 = vunpack.i.h.bf16 %v2299_v55  ;;  %v2300_v31 = vunpack.i.l.bf16 %v2299_v55 }
 0x323   : > { %v2309_v28 = vpop.permute.xlu2 %2308 }
 0x324   : > { %v2311_v47 = vunpack.i.h.bf16 %v2309_v28  ;;  %v2310_v22 = vunpack.i.l.bf16 %v2309_v28 }
 0x32b   : > { %v2329_v46 = vpop.permute.xlu2 %2328 }
 0x32c   : > { %v2330_v55 = vunpack.i.l.bf16 %v2329_v46 }
 0x353   : > { %v2289_v50 = vpop.permute.xlu1 %2288 }
 0x354   : > { %v2291_v51 = vunpack.i.h.bf16 %v2289_v50  ;;  %v2290_v34 = vunpack.i.l.bf16 %v2289_v50 }
 0x356   : > { %v1587_v56 = vsel %vm560_vm3, %v1581_v53, %v2290_v34  ;;  %v1588_v3 = vsel %vm560_vm3, %v1582_v57, %v2291_v51  ;;  %v2331_v57 = vunpack.i.h.bf16 %v2329_v46 }
 0x357   : > { %v1602_v63 = vpack.c.bf16 %v1588_v3, %v1587_v56 }
 0x359   : > { %2136 = vmatmul.msk.bf16.vlgmr.msrb.gmra.mxu1 %vm1636_vm11, %v1602_v63 }
 0x35b   : > { %v2294_v59 = vpop.permute.xlu1 %2293 }
 0x35c   : > { %v2296_v20 = vunpack.i.h.bf16 %v2294_v59  ;;  %v2295_v21 = vunpack.i.l.bf16 %v2294_v59  ;;  %v2344_v53 = vpop.permute.xlu2 %2343 }
 0x35d   : > { %v2346_v40 = vunpack.i.h.bf16 %v2344_v53  ;;  %v2345_v6 = vunpack.i.l.bf16 %v2344_v53 }
 0x35e   : > { %v1576_v19 = vsel %vm1573_vm9, %v1569_v11, %v2295_v21  ;;  %v1577_v49 = vsel %vm1573_vm9, %v1570_v60, %v2296_v20 }
 0x35f   : > { %v1583_v44 = vsel %vm1580_vm10, %v1576_v19, %v2300_v31  ;;  %v1584_v42 = vsel %vm1580_vm10, %v1577_v49, %v2301_v30 }
 0x363   : > { %v2314_v32 = vpop.permute.xlu0 %2313  ;;  %v2304_v12 = vpop.permute.xlu1 %2303 }
 0x364   : > { %v2316_v37 = vunpack.i.h.bf16 %v2314_v32  ;;  %v2315_v41 = vunpack.i.l.bf16 %v2314_v32  ;;  %v2306_v35 = vunpack.i.h.bf16 %v2304_v12  ;;  %v2305_v25 = vunpack.i.l.bf16 %v2304_v12 }
 0x366   : > { %v1589_v2 = vsel %vm560_vm3, %v1583_v44, %v2315_v41  ;;  %v1590_v10 = vsel %vm560_vm3, %v1584_v42, %v2316_v37  ;;  %v1543_v45 = vsel %vm1538_vm4, %v2931_v54, %v2305_v25  ;;  %v1544_v15 = vsel %vm1538_vm4, %v616_v0, %v2306_v35 }
 0x367   : > { %v1603_v33 = vpack.c.bf16 %v1590_v10, %v1589_v2  ;;  %v1550_v50 = vsel %vm1545_vm6, %v1543_v45, %v2310_v22  ;;  %v1551_v51 = vsel %vm1545_vm6, %v1544_v15, %v2311_v47  ;;  %v2349_v45 = vld [vmem:[%s3255_s7] ss:$0 sm:$0xff] }
 0x369   : > { %2137 = vmatmul.msk.bf16.gmra.mxu1 %vm1636_vm11, %v1603_v33 }
 0x36b   : > { %v2319_v24 = vpop.permute.xlu0 %2318  ;;  %v2324_v58 = vpop.permute.xlu1 %2323 }
 0x36c   : > { %v2321_v38 = vunpack.i.h.bf16 %v2319_v24  ;;  %v2320_v26 = vunpack.i.l.bf16 %v2319_v24  ;;  %v2326_v34 = vunpack.i.h.bf16 %v2324_v58  ;;  %v2325_v9 = vunpack.i.l.bf16 %v2324_v58 }
 0x36e   : > { %v1557_v5 = vsel %vm1552_vm5, %v1550_v50, %v2320_v26  ;;  %v1558_v29 = vsel %vm1552_vm5, %v1551_v51, %v2321_v38 }
 0x36f   : > { %v1564_v54 = vsel %vm1559_vm7, %v1557_v5, %v2325_v9  ;;  %v1565_v52 = vsel %vm1559_vm7, %v1558_v29, %v2326_v34 }
 0x370   : > { %v1571_v17 = vsel %vm1566_vm8, %v1564_v54, %v2330_v55  ;;  %v1572_v23 = vsel %vm1566_vm8, %v1565_v52, %v2331_v57 }
 0x373   : > { %v2334_v56 = vpop.permute.xlu0 %2333  ;;  %v2339_v3 = vpop.permute.xlu1 %2338 }
 0x374   : > { %v2336_v62 = vunpack.i.h.bf16 %v2334_v56  ;;  %v2335_v63 = vunpack.i.l.bf16 %v2334_v56  ;;  %v2341_v7 = vunpack.i.h.bf16 %v2339_v3  ;;  %v2340_v61 = vunpack.i.l.bf16 %v2339_v3 }
 0x376   : > { %v1578_v36 = vsel %vm1573_vm9, %v1571_v17, %v2335_v63  ;;  %v1579_v43 = vsel %vm1573_vm9, %v1572_v23, %v2336_v62 }
 0x377   : > { %v1585_v1 = vsel %vm1580_vm10, %v1578_v36, %v2340_v61  ;;  %v1586_v59 = vsel %vm1580_vm10, %v1579_v43, %v2341_v7 }
 0x378   : > { %v1591_v48 = vsel %vm560_vm3, %v1585_v1, %v2345_v6  ;;  %v1592_v13 = vsel %vm560_vm3, %v1586_v59, %v2346_v40 }
 0x379   : > { %v1604_v39 = vpack.c.bf16 %v1592_v13, %v1591_v48 }
 0x37b   : > { %2138 = vmatmul.msk.bf16.gmra.mxu1 %vm1636_vm11, %v1604_v39 }
 0x3d6   : > { %v1658_v4 = vpop.f32.mrf.mxu1 }
 0x3d7   : > { %v1659_v8 = vadd.f32 %v2348_v14, %v1658_v4 }
 0x3d9   : > { %v1673_v16 = vmax.f32 %v1659_v8, 0.0 }
 0x3db   : > { %v1679_v21 = vmin.f32 %v1673_v16, 6.0 }
 0x3de   : > { %v1660_v27 = vpop.f32.mrf.mxu1 }
 0x3df   : > { %v1661_v18 = vadd.f32 %v2348_v14, %v1660_v27 }
 0x3e1   : > { %v1674_v20 = vmax.f32 %v1661_v18, 0.0 }
 0x3e3   : > { %v1680_v28 = vmin.f32 %v1674_v20, 6.0 }
 0x3e5   : > { %v1687_v11 = vpack.c.bf16 %v1680_v28, %v1679_v21 }
 0x3e6   : > { %v1663_v60 = vpop.f32.mrf.mxu1 }
 0x3e7   : > { %2143 = vmatmul.msk.bf16.vlgmr.msrb.gmra.mxu3 %vm1545_vm6, %v1687_v11  ;;  %v1664_v19 = vadd.f32 %v2348_v14, %v1663_v60 }
 0x3e9   : > { %v1675_v30 = vmax.f32 %v1664_v19, 0.0 }
 0x3eb   : > { %v1681_v12 = vmin.f32 %v1675_v30, 6.0 }
 0x3ee   : > { %v1665_v49 = vpop.f32.mrf.mxu1 }
 0x3ef   : > { %v1666_v31 = vadd.f32 %v2348_v14, %v1665_v49 }
 0x3f1   : > { %v1676_v32 = vmax.f32 %v1666_v31, 0.0 }
 0x3f3   : > { %v1682_v37 = vmin.f32 %v1676_v32, 6.0 }
 0x3f5   : > { %v1688_v41 = vpack.c.bf16 %v1682_v37, %v1681_v12 }
 0x3f7   : > { %2144 = vmatmul.msk.bf16.gmra.mxu3 %vm1545_vm6, %v1688_v41 }
 0x3f8   : > { %v1668_v44 = vpop.f32.mrf.mxu1 }
 0x3f9   : > { %v1669_v42 = vadd.f32 %v2348_v14, %v1668_v44 }
 0x3fb   : > { %v1677_v10 = vmax.f32 %v1669_v42, 0.0 }
 0x3fd   : > { %v1683_v25 = vmin.f32 %v1677_v10, 6.0 }
 0x400   : > { %v1670_v2 = vpop.f32.mrf.mxu1 }
 0x401   : > { %v1671_v33 = vadd.f32 %v2348_v14, %v1670_v2 }
 0x403   : > { %v1678_v35 = vmax.f32 %v1671_v33, 0.0 }
 0x405   : > { %v1684_v0 = vmin.f32 %v1678_v35, 6.0 }
 0x407   : > { %v1689_v46 = vpack.c.bf16 %v1684_v0, %v1683_v25 }
 0x409   : > { %2145 = vmatmul.msk.bf16.gmra.mxu3 %vm1545_vm6, %v1689_v46 }
 0x46a   : > { %v1718_v15 = vpop.f32.mrf.mxu3 }
 0x46b   : > { %v1719_v24 = vadd.f32 %v2349_v45, %v1718_v15 }
 0x46d   : > { %v1733_v58 = vmax.f32 %v1719_v24, 0.0 }
 0x46f   : > { %v1739_v47 = vmin.f32 %v1733_v58, 6.0 }
 0x471   : > { %1745 = vst.msk [vmem:[%s305_s26] sm:$0xff] %vm1559_vm7, %v1739_v47 }
 0x472   : > { %v1720_v22 = vpop.f32.mrf.mxu3 }
 0x473   : > { %v1721_v38 = vadd.f32 %v2349_v45, %v1720_v22 }
 0x475   : > { %v1734_v26 = vmax.f32 %v1721_v38, 0.0 }
 0x477   : > { %v1740_v50 = vmin.f32 %v1734_v26, 6.0 }
 0x479   : > { %1746 = vst.msk [vmem:[%s305_s26 + $0x8] sm:$0xff] %vm1559_vm7, %v1740_v50 }
 0x47a   : > { %v1723_v51 = vpop.f32.mrf.mxu3 }
 0x47b   : > { %v1724_v34 = vadd.f32 %v2349_v45, %v1723_v51 }
 0x47d   : > { %v1735_v9 = vmax.f32 %v1724_v34, 0.0 }
 0x47f   : > { %v1741_v5 = vmin.f32 %v1735_v9, 6.0 }
 0x481   : > { %1747 = vst.msk [vmem:[%s305_s26 + $0x10] sm:$0xff] %vm1559_vm7, %v1741_v5 }
 0x482   : > { %v1725_v29 = vpop.f32.mrf.mxu3 }
 0x483   : > { %v1726_v54 = vadd.f32 %v2349_v45, %v1725_v29 }
 0x485   : > { %v1736_v52 = vmax.f32 %v1726_v54, 0.0 }
 0x487   : > { %v1742_v53 = vmin.f32 %v1736_v52, 6.0 }
 0x489   : > { %1748 = vst.msk [vmem:[%s305_s26 + $0x18] sm:$0xff] %vm1559_vm7, %v1742_v53 }
 0x48c   : > { %v1728_v57 = vpop.f32.mrf.mxu3 }
 0x48d   : > { %v1729_v55 = vadd.f32 %v2349_v45, %v1728_v57 }
 0x48f   : > { %v1737_v56 = vmax.f32 %v1729_v55, 0.0 }
 0x491   : > { %v1743_v3 = vmin.f32 %v1737_v56, 6.0 }
 0x493   : > { %1749 = vst.msk [vmem:[%s305_s26 + $0x20] sm:$0xff] %vm1559_vm7, %v1743_v3 }
 0x494   : > { %v1730_v62 = vpop.f32.mrf.mxu3 }
 0x495   : > { %v1731_v63 = vadd.f32 %v2349_v45, %v1730_v62 }
 0x497   : > { %v1738_v7 = vmax.f32 %v1731_v63, 0.0 }
 0x499   : > { %v1744_v61 = vmin.f32 %v1738_v7, 6.0 }
 0x49b   : > { %1750 = vst.msk [vmem:[%s305_s26 + $0x28] sm:$0xff] %vm1559_vm7, %v1744_v61 }
 0x49c PF: > { %s18_s27 = sadd.s32 1, %s2356_s27  }
 0x49d   : > { %p15_p4 = scmp.ge.s32.totalorder %s18_s27, 4  }
 0x49f   :  { %17 = sbr.rel (!%p15_p4) target bundleno = 1 (0x1), region = 90 }

// kernel: tapor_teacher_forward.5
= control target key start
LH: loop header
LB: loop body
LE: loop exit
PB: predicated region body
PF: predicated region fallthrough
CT: control target
= control target key end

     0   :  { %s3633_s6 = smov 1   ;;  %s3634_s10 = smov 2   ;;  %s4436_s0 = inlined_call_operand.smem [shape: u32[33], index: -1, kind: input, shape index: {}] }
   0x1   :  { %s3689_s5 = sld [smem:[%s4436_s0]]   ;;  %s3635_s14 = smov 3  }
   0x2   :  { %s3694_s9 = sld [smem:[%s4436_s0 + %s3633_s6]]   ;;  %s3636_s18 = smov 4  }
   0x3   :  { %s3699_s13 = sld [smem:[%s4436_s0 + %s3634_s10]]   ;;  %s3637_s22 = smov 5  }
   0x4   :  { %s3704_s17 = sld [smem:[%s4436_s0 + %s3635_s14]]   ;;  %s3638_s26 = smov 6  }
   0x5   :  { %s3709_s21 = sld [smem:[%s4436_s0 + %s3636_s18]]   ;;  %s3639_s30 = smov 7  }
   0x6   :  { %s3714_s25 = sld [smem:[%s4436_s0 + %s3637_s22]]   ;;  %s3640_s4 = smov 8  }
   0x7   :  { %s3719_s29 = sld [smem:[%s4436_s0 + %s3638_s26]]   ;;  %s3641_s10 = smov 9  }
   0x8   :  { %s3724_s3 = sld [smem:[%s4436_s0 + %s3639_s30]]   ;;  %s3642_s15 = smov 10  }
   0x9   :  { %s3729_s8 = sld [smem:[%s4436_s0 + %s3640_s4]]   ;;  %s3643_s20 = smov 11  }
   0xa   :  { %s3734_s14 = sld [smem:[%s4436_s0 + %s3641_s10]]   ;;  %s3644_s26 = smov 12  }
   0xb   :  { %s3739_s19 = sld [smem:[%s4436_s0 + %s3642_s15]]   ;;  %s3645_s1 = smov 13  }
   0xc   :  { %s3744_s24 = sld [smem:[%s4436_s0 + %s3643_s20]]   ;;  %s3646_s7 = smov 14  }
   0xd   :  { %s3749_s30 = sld [smem:[%s4436_s0 + %s3644_s26]]   ;;  %s3647_s15 = smov 15  }
   0xe   :  { %s3754_s6 = sld [smem:[%s4436_s0 + %s3645_s1]]   ;;  %s3648_s22 = smov 16  }
   0xf   :  { %s3759_s12 = sld [smem:[%s4436_s0 + %s3646_s7]]   ;;  %s3649_s28 = smov 17  }
  0x10   :  { %s3764_s20 = sld [smem:[%s4436_s0 + %s3647_s15]]   ;;  %s3650_s7 = smov 18  }
  0x11   :  { %s3769_s27 = sld [smem:[%s4436_s0 + %s3648_s22]]   ;;  %s3651_s15 = smov 19  }
  0x12   :  { %4446 = sst [smem:[#allocation2_spill]] %s3744_s24  ;;  %s3652_s22 = smov 20  }
  0x13   :  { %s3774_s4 = sld [smem:[%s4436_s0 + %s3649_s28]]   ;;  %s3653_s28 = smov 21  }
  0x15   :  { %4447 = sst [smem:[#allocation3_spill]] %s3759_s12 }
  0x16   :  { %4448 = sst [smem:[#allocation4_spill]] %s3764_s20 }
  0x17   :  { %4449 = sst [smem:[#allocation5_spill]] %s3769_s27 }
  0x18   :  { %s3779_s12 = sld [smem:[%s4436_s0 + %s3650_s7]]   ;;  %s3654_s7 = smov 22  }
  0x19   :  { %4450 = sst [smem:[#allocation6_spill]] %s3774_s4 }
  0x1a   :  { %s3784_s20 = sld [smem:[%s4436_s0 + %s3651_s15]]   ;;  %s3655_s15 = smov 23  }
  0x1b   :  { %s3789_s27 = sld [smem:[%s4436_s0 + %s3652_s22]]   ;;  %s3656_s22 = smov 24  }
  0x1c   :  { %s3794_s4 = sld [smem:[%s4436_s0 + %s3653_s28]]   ;;  %s3657_s28 = smov 25  }
  0x1e   :  { %4451 = sst [smem:[#allocation7_spill]] %s3779_s12 }
  0x1f   :  { %s3799_s12 = sld [smem:[%s4436_s0 + %s3654_s7]]   ;;  %s3658_s7 = smov 26  }
  0x20   :  { %4452 = sst [smem:[#allocation8_spill]] %s3784_s20 }
  0x21   :  { %4453 = sst [smem:[#allocation9_spill]] %s3789_s27 }
  0x22   :  { %4454 = sst [smem:[#allocation10_spill]] %s3794_s4 }
  0x23   :  { %s3804_s20 = sld [smem:[%s4436_s0 + %s3655_s15]]   ;;  %s3659_s15 = smov 27  }
  0x24   :  { %s3809_s27 = sld [smem:[%s4436_s0 + %s3656_s22]]   ;;  %s3660_s22 = smov 28  }
  0x25   :  { %4455 = sst [smem:[#allocation11_spill]] %s3799_s12 }
  0x26   :  { %s3814_s4 = sld [smem:[%s4436_s0 + %s3657_s28]]   ;;  %s3661_s28 = smov 29  }
  0x27   :  { %s3819_s12 = sld [smem:[%s4436_s0 + %s3658_s7]]   ;;  %s3662_s7 = smov 30  }
  0x29   :  { %4456 = sst [smem:[#allocation12_spill]] %s3804_s20 }
  0x2a   :  { %4457 = sst [smem:[#allocation13_spill]] %s3809_s27 }
  0x2b   :  { %s3824_s20 = sld [smem:[%s4436_s0 + %s3659_s15]]   ;;  %s3663_s15 = smov 31  }
  0x2c   :  { %4458 = sst [smem:[#allocation14_spill]] %s3814_s4 }
  0x2d   :  { %4459 = sst [smem:[#allocation15_spill]] %s3819_s12 }
  0x2e   :  { %s3829_s27 = sld [smem:[%s4436_s0 + %s3660_s22]]   ;;  %s3664_s22 = smov 32  }
  0x2f   :  { %s3834_s4 = sld [smem:[%s4436_s0 + %s3661_s28]]   ;;  %s3851_s28 = smov 0  }
  0x30   :  { %s3839_s12 = sld [smem:[%s4436_s0 + %s3662_s7]]  }
  0x31   :  { %4460 = sst [smem:[#allocation16_spill]] %s3824_s20 }
  0x32   :  { %s3844_s20 = sld [smem:[%s4436_s0 + %s3663_s15]]  }
  0x33   :  { %s3849_s24 = sld [smem:[%s4436_s0 + %s3664_s22]]  }
  0x34 LB: > { %s3170_s1 = sadd.s32 4294967295, %s3631_s28   ;;  %p3174_p0 = scmp.ge.s32.totalorder %s3631_s28, 1  ;;  %s3631_s28 = sphi %s3851_s28, %s76_s28  }
  0x35   : > { %p914_p1 = scmp.lt.s32.totalorder %s3631_s28, 3 }
  0x37   : > { %p915_p2 = pnand %p3174_p0, %p914_p1 }
  0x38   : > { %p1021_p3 = scmp.lt.s32.totalorder (!%p915_p2), %s3170_s1, 1  ;;  %s3665_s10 = smov (!%p915_p2), 116  }
  0x39   : > { %918 = sbr.rel (%p915_p2) target bundleno = 4233 (0x1089), region = 132  ;;  %s3666_s11 = smov (!%p915_p2), 68  }
  0x3a   : > { %s3667_s15 = smov (!%p915_p2), 80   ;;  %s3668_s16 = smov (!%p915_p2), 56  }
  0x3b   : > { %s3669_s18 = smov (!%p915_p2), 44   ;;  %s3670_s22 = smov (!%p915_p2), 92  }
  0x3c   : > { %s3671_s23 = smov (!%p915_p2), 104   ;;  %s3672_s26 = smov (!%p915_p2), 32  }
  0x3e   : > { %v3374_v0 = vld [vmem:[%s3699_s13 + $0x10] sm:$0xff]  ;;  %v3373_v1 = vld [vmem:[%s3699_s13 + $0x8] sm:$0xff]  ;;  %s4479_s1 = smov (!%p1021_p3, %s3170_s1), 1  ;;  %v3372_v2 = vld [vmem:[%s3699_s13] sm:$0xff]  ;;  %vm1090_vm0 = vcmask 392192   ;;  %vm1123_vm1 = vcmask 389120  }
  0x3f   : > { %1102 = vmatpush.bf16.msra.mxu0 %v3374_v0  ;;  %s3864_s0 = smul.u32 24, %s4479_s1  ;;  %v3214_v8 = vld [vmem:[%s3709_s21 + $0x20] sm:$0xf]  ;;  %v3380_v9 = vld [vmem:[%s3709_s21 + $0x24] sm:$0xf0]  ;;  %vm1307_vm2 = vcmask 1041408  }
  0x40   : > { %v3379_v10 = vld [vmem:[%s3709_s21 + $0x24] sm:$0xf]  ;;  %v3215_v11 = vor.u32 %v3380_v9, %v3214_v8  ;;  %v3216_v12 = vld [vmem:[%s3709_s21 + $0x28] sm:$0xf0]  ;;  %v3206_v14 = vld [vmem:[%s3709_s21 + $0x10] sm:$0xf] }
  0x41   : > { %s1025_s2 = scalar_lea.vmem %s3689_s5, %s3864_s0  ;;  %v3219_v13 = vor.u32 %v3379_v10, %v3216_v12  ;;  %v3378_v15 = vld [vmem:[%s3709_s21 + $0x14] sm:$0xf0]  ;;  %v3377_v16 = vld [vmem:[%s3709_s21 + $0x14] sm:$0xf]  ;;  %v3208_v18 = vld [vmem:[%s3709_s21 + $0x18] sm:$0xf0]  ;;  %s1035_s7 = scalar_lea.vmem %s3829_s27, %s3864_s0 }
  0x42   : > { %v1057_v3 = vld [vmem:[%s1025_s2] sm:$0xff]  ;;  %v1058_v4 = vld [vmem:[%s1025_s2 + $0x8] sm:$0xff]  ;;  %v1059_v6 = vld [vmem:[%s1025_s2 + $0x10] sm:$0x1f]  ;;  %1186 = vmatpush.bf16.msra.mxu1 %v3215_v11  ;;  %v3207_v17 = vor.u32 %v3378_v15, %v3206_v14  ;;  %v3211_v19 = vor.u32 %v3377_v16, %v3208_v18  ;;  %s3673_s2 = smov 20   ;;  %vm1308_vm3 = vcmask 1042432  }
  0x43   : > { %1103 = vmatpush.bf16.msra.mxu0 %v3373_v1  ;;  %v1066_v5 = vpack.c.bf16 %v1058_v4, %v1057_v3  ;;  %v1067_v7 = vpack.c.bf16 %v1059_v6, %v1059_v6  ;;  %1204 = vmatpush.bf16.msra.mxu2 %v3219_v13  ;;  %v3198_v20 = vld [vmem:[%s3709_s21] sm:$0xf]  ;;  %v3376_v21 = vld [vmem:[%s3709_s21 + $0x4] sm:$0xf0]  ;;  %v3375_v22 = vld [vmem:[%s3709_s21 + $0x4] sm:$0xf] }
  0x44   : > { %v3199_v23 = vor.u32 %v3376_v21, %v3198_v20  ;;  %v3200_v24 = vld [vmem:[%s3709_s21 + $0x8] sm:$0xf0]  ;;  %v3494_v26 = vld [vmem:[%s3704_s17] ss:$0 sm:$0xff]  ;;  %vm1225_vm4 = vcmask 97280   ;;  %vm1259_vm5 = vcmask 171008  }
  0x45   : > { %v3203_v25 = vor.u32 %v3375_v22, %v3200_v24  ;;  %v1139_v43 = vld [vmem:[%s3714_s25] sm:$0x3]  ;;  %vm1266_vm6 = vcmask 167936   ;;  %vm1528_vm7 = vcmask 64512   ;;  %vm1706_vm8 = vcmask 195584  }
  0x46   : > { %1187 = vmatpush.bf16.msra.mxu1 %v3207_v17  ;;  %v1142_v44 = vperm.slane %v1139_v43, 1  ;;  %v1141_v45 = vperm.slane %v1139_v43, 0  ;;  %vm1710_vm9 = vcmask 293888   ;;  %vm1935_vm11 = vcmask 261120  }
  0x47   : > { %1104 = vmatpush.bf16.msra.mxu0 %v3372_v2  ;;  %1205 = vmatpush.bf16.msra.mxu2 %v3211_v19 }
  0x4a   : > { %3194 = vmatmul.msk.bf16.vlgmr.msra.gmra.mxu0 %vm1090_vm0, %v1066_v5  ;;  %1188 = vmatpush.bf16.msra.mxu1 %v3199_v23 }
  0x4b   : > { %1206 = vmatpush.bf16.msra.mxu2 %v3203_v25 }
  0x5a   : > { %3195 = vmatmul.msk.bf16.gmra.mxu0 %vm1090_vm0, %v1067_v7 }
  0xc7   : > { %v1106_v27 = vpop.f32.mrf.mxu0 }
  0xc8   : > { %v1107_v28 = vadd.f32 %v3494_v26, %v1106_v27 }
  0xca   : > { %v1115_v29 = vmax.f32 %v1107_v28, 0.0 }
  0xcc   : > { %v3886_v30 = vadd.f32 %v1115_v29, %v1057_v3  ;;  %v3675_v3 = vmov 65535  }
  0xce   : > { %1121 = vst.msk [vmem:[%s1035_s7] sm:$0xff] %vm1090_vm0, %v3886_v30 }
  0xcf   : > { %v1108_v31 = vpop.f32.mrf.mxu0 }
  0xd0   : > { %v1109_v32 = vadd.f32 %v3494_v26, %v1108_v31 }
  0xd2   : > { %v1116_v33 = vmax.f32 %v1109_v32, 0.0 }
  0xd4   : > { %v3890_v34 = vadd.f32 %v1116_v33, %v1058_v4  ;;  %v1309_v4 = vsel %vm1307_vm2, 4294967295, %v3675_v3 }
  0xd5   : > { %v3949_v5 = vsel %vm1308_vm3, %v1309_v4, 0 }
  0xd6   : > { %1122 = vst.msk [vmem:[%s1035_s7 + $0x8] sm:$0xff] %vm1090_vm0, %v3890_v34  ;;  %v1137_v35 = vpack.c.bf16 %v3890_v34, %v3886_v30 }
  0xd7   : > { %v1111_v36 = vpop.f32.mrf.mxu0 }
  0xd8   : > { %v1112_v37 = vadd.f32 %v3494_v26, %v1111_v36  ;;  %3220 = vmatmul.msk.bf16.vlgmr.msra.gmra.mxu1 %vm1090_vm0, %v1137_v35  ;;  %3222 = vmatmul.msk.bf16.vlgmr.msra.gmra.mxu2 %vm1090_vm0, %v1137_v35 }
  0xda   : > { %v1117_v38 = vmax.f32 %v1112_v37, 0.0 }
  0xdc   : > { %v3898_v39 = vadd.f32 %v1117_v38, %v1059_v6 }
  0xde   : > { %1124 = vst.msk [vmem:[%s1035_s7 + $0x10] sm:$0x1f] %vm1123_vm1, %v3898_v39  ;;  %v1138_v41 = vpack.c.bf16 %v3898_v39, %v3898_v39  ;;  %s3674_s7 = smov 124  }
  0xdf   : > { %v1113_v40 = vpop.f32.mrf.mxu0 }
  0xe8   : > { %3221 = vmatmul.msk.bf16.gmra.mxu1 %vm1090_vm0, %v1138_v41  ;;  %3223 = vmatmul.msk.bf16.gmra.mxu2 %vm1090_vm0, %v1138_v41 }
 0x155   : > { %v1190_v42 = vpop.f32.mrf.mxu1 }
 0x156   : > { %v1191_v49 = vadd.f32 %v1190_v42, %v1141_v45 }
 0x15b   : > { %v1208_v46 = vpop.f32.mrf.mxu2 }
 0x15c   : > { %v1209_v47 = vadd.f32 %v1208_v46, %v1142_v44 }
 0x15d   : > { %v1192_v48 = vpop.f32.mrf.mxu1 }
 0x15e   : > { %v1193_v50 = vadd.f32 %v1192_v48, %v1141_v45 }
 0x160   : > { %v3907_v51 = vpack.c.bf16 %v1193_v50, %v1191_v49 }
 0x162   : > { %1332 = vrot.lane.b32.xlu2 %v3907_v51, %s3665_s10 }
 0x163   : > { %v1210_v52 = vpop.f32.mrf.mxu2 }
 0x164   : > { %v1211_v53 = vadd.f32 %v1210_v52, %v1142_v44 }
 0x165   : > { %v1195_v54 = vpop.f32.mrf.mxu1 }
 0x166   : > { %v3911_v55 = vpack.c.bf16 %v1211_v53, %v1209_v47  ;;  %v1196_v56 = vadd.f32 %v1195_v54, %v1141_v45 }
 0x168   : > { %v3913_v57 = vpack.c.bf16 %v1196_v56, %v1196_v56 }
 0x16a   : > { %1338 = vrot.lane.b32.xlu1 %v3913_v57, %s3666_s11  ;;  %1223 = vrot.lane.b32.xlu0 %v3913_v57, %s3667_s15 }
 0x16b   : > { %1446 = vrot.lane.b32.xlu2 %v3913_v57, %s3668_s16  ;;  %v1213_v58 = vpop.f32.mrf.mxu2 }
 0x16c   : > { %v1214_v61 = vadd.f32 %v1213_v58, %v1142_v44 }
 0x16d   : > { %v1197_v59 = vpop.f32.mrf.mxu1 }
 0x16e   : > { %v3945_v62 = vpack.c.bf16 %v1214_v61, %v1214_v61 }
 0x172   : > { %1336 = vrot.lane.b32.xlu1 %v3907_v51, %s3666_s11  ;;  %1221 = vrot.lane.b32.xlu0 %v3907_v51, %s3667_s15 }
 0x173   : > { %1444 = vrot.lane.b32.xlu2 %v3907_v51, %s3668_s16  ;;  %v1215_v60 = vpop.f32.mrf.mxu2 }
 0x17a   : > { %1565 = vrot.lane.b32.xlu1 %v3913_v57, %s3669_s18  ;;  %1334 = vrot.lane.b32.xlu0 %v3913_v57, %s3665_s10 }
 0x17b   : > { %1559 = vrot.lane.b32.xlu2 %v3907_v51, %s3670_s22 }
 0x182   : > { %1440 = vrot.lane.b32.xlu1 %v3907_v51, %s3671_s23  ;;  %1563 = vrot.lane.b32.xlu0 %v3907_v51, %s3669_s18 }
 0x183   : > { %1298 = vrot.lane.b32.xlu2 %v3913_v57, %s3672_s26 }
 0x18a   : > { %1561 = vrot.lane.b32.xlu1 %v3913_v57, %s3670_s22  ;;  %1442 = vrot.lane.b32.xlu0 %v3913_v57, %s3671_s23 }
 0x192   : > { %1296 = vrot.lane.b32.xlu1 %v3907_v51, %s3672_s26  ;;  %1408 = vrot.lane.b32.xlu0 %v3907_v51, %s3673_s2  ;;  %s3676_s26 = smov 8  }
 0x19a   : > { %1410 = vrot.lane.b32.xlu1 %v3913_v57, %s3673_s2  ;;  %s3677_s2 = smov 12  }
 0x1a2   : > { %1637 = vrot.lane.b32.xlu1 %v3945_v62, %s3674_s7 }
 0x1bc   : > { %v1333_v63 = vpop.permute.xlu2 %1332 }
 0x1c5   : > { %v1447_v0 = vpop.permute.xlu2 %1446 }
 0x1c6   : > { %v1458_v15 = vsel %vm1225_vm4, %v1447_v0, 0 }
 0x1cd   : > { %v1445_v1 = vpop.permute.xlu2 %1444 }
 0x1ce   : > { %v1455_v19 = vsel %vm1225_vm4, %v1445_v1, 0 }
 0x1d5   : > { %v1560_v2 = vpop.permute.xlu2 %1559 }
 0x1dc   : > { %v1339_v6 = vpop.permute.xlu1 %1338  ;;  %v1224_v7 = vpop.permute.xlu0 %1223 }
 0x1dd   : > { %v1299_v8 = vpop.permute.xlu2 %1298  ;;  %v1236_v9 = vsel %vm1225_vm4, %v1224_v7, 0  ;;  %v1350_v14 = vsel %vm1225_vm4, %v1339_v6, 0 }
 0x1de   : > { %v1312_v10 = vand.u32 %v3949_v5, %v1299_v8  ;;  %1244 = vmatpush.bf16.xpose.msrb.mxu1 %v1236_v9  ;;  %3403 = vmatpush.bf16.xpose.msra.mxu3 %v1236_v9 }
 0x1e0   : > { %1320 = vmatpush.bf16.msrb.mxu0 %v1312_v10 }
 0x1e4   : > { %v1337_v11 = vpop.permute.xlu1 %1336  ;;  %v1222_v12 = vpop.permute.xlu0 %1221 }
 0x1e5   : > { %v1233_v13 = vsel %vm1225_vm4, %v1222_v12, 0  ;;  %v1347_v18 = vsel %vm1225_vm4, %v1337_v11, 0 }
 0x1e6   : > { %1245 = vmatpush.bf16.xpose.msrb.mxu1 %v1233_v13  ;;  %3404 = vmatpush.bf16.xpose.msra.mxu3 %v1233_v13 }
 0x1ec   : > { %v1566_v16 = vpop.permute.xlu1 %1565  ;;  %v1335_v17 = vpop.permute.xlu0 %1334 }
 0x1ed   : > { %3224 = vmatmul.msk.bf16.vlgmr.msrb.gmra.mxu1 %vm1225_vm4, %v3907_v51  ;;  %3225 = vmatmul.msk.bf16.vlgmr.msra.gmra.mxu3 %vm1225_vm4, %v3913_v57  ;;  %v1577_v20 = vsel %vm1225_vm4, %v1566_v16, 0 }
 0x1ee   : > { %1358 = vmatpush.bf16.xpose.msra.mxu1 %v1350_v14  ;;  %1466 = vmatpush.bf16.xpose.msrb.mxu3 %v1458_v15 }
 0x1f4   : > { %v1441_v21 = vpop.permute.xlu1 %1440  ;;  %v1564_v22 = vpop.permute.xlu0 %1563 }
 0x1f5   : > { %v1574_v23 = vsel %vm1225_vm4, %v1564_v22, 0 }
 0x1f6   : > { %1359 = vmatpush.bf16.xpose.msra.mxu1 %v1347_v18  ;;  %1467 = vmatpush.bf16.xpose.msrb.mxu3 %v1455_v19 }
 0x1fc   : > { %v1562_v24 = vpop.permute.xlu1 %1561  ;;  %v1443_v26 = vpop.permute.xlu0 %1442 }
 0x1fd   : > { %3228 = vmatmul.msk.bf16.vlgmr.msra.gmra.mxu1 %vm1225_vm4, %v1333_v63  ;;  %3232 = vmatmul.msk.bf16.vlgmr.msrb.gmra.mxu3 %vm1225_vm4, %v1441_v21 }
 0x1fe   : > { %1585 = vmatpush.bf16.xpose.msrb.mxu1 %v1577_v20 }
 0x204   : > { %v1297_v25 = vpop.permute.xlu1 %1296  ;;  %v1409_v29 = vpop.permute.xlu0 %1408 }
 0x205   : > { %1321 = vmatpush.bf16.msrb.mxu0 %v1297_v25 }
 0x206   : > { %1586 = vmatpush.bf16.xpose.msrb.mxu1 %v1574_v23 }
 0x20c   : > { %v1411_v27 = vpop.permute.xlu1 %1410 }
 0x20d   : > { %v1420_v28 = vand.u32 %v1411_v27, %v3949_v5  ;;  %3229 = vmatmul.msk.bf16.gmra.mxu1 %vm1225_vm4, %v1335_v17  ;;  %3233 = vmatmul.msk.bf16.gmra.mxu3 %vm1225_vm4, %v1443_v26 }
 0x20f   : > { %1428 = vmatpush.bf16.msrb.mxu2 %v1420_v28 }
 0x213   : > { %1429 = vmatpush.bf16.msrb.mxu2 %v1409_v29 }
 0x214   : > { %v1638_v31 = vpop.permute.xlu1 %1637 }
 0x215   : > { %v1647_v32 = vand.u32 %v1638_v31, %v3949_v5 }
 0x217   : > { %1655 = vmatpush.bf16.msra.mxu2 %v1647_v32 }
 0x21d   : > { %3236 = vmatmul.msk.bf16.vlgmr.msrb.gmra.mxu1 %vm1225_vm4, %v1560_v2 }
 0x22d   : > { %3237 = vmatmul.msk.bf16.gmra.mxu1 %vm1225_vm4, %v1562_v24 }
 0x26a   : > { %v1247_v33 = vpop.f32.mrf.mxu1 }
 0x26b   : > { %v1256_v35 = vmul.f32 0.28867513, %v1247_v33 }
 0x26d   : > { %v1260_v36 = vsel %vm1259_vm5, %v1256_v35, -inf }
 0x26e   : > { %1261 = vmax.xlane.f32.xlu1 %v1260_v36 }
 0x270   : > { %v1252_v37 = vpop.f32.mrf.mxu3 }
 0x271   : > { %v1258_v38 = vmul.f32 0.28867513, %v1252_v37 }
 0x272   : > { %v1249_v40 = vpop.f32.mrf.mxu1 }
 0x273   : > { %v1257_v41 = vmul.f32 0.28867513, %v1249_v40  ;;  %v1267_v42 = vsel %vm1266_vm6, %v1258_v38, -inf }
 0x274   : > { %1268 = vmax.xlane.f32.xlu0 %v1267_v42 }
 0x275   : > { %v1263_v43 = vsel %vm1259_vm5, %v1257_v41, -inf }
 0x276   : > { %1264 = vmax.xlane.f32.xlu2 %v1263_v43 }
 0x278   : > { %v1254_v44 = vpop.f32.mrf.mxu3 }
 0x27a   : > { %v1361_v45 = vpop.f32.mrf.mxu1 }
 0x27b   : > { %v1370_v46 = vmul.f32 0.28867513, %v1361_v45 }
 0x27d   : > { %v1373_v47 = vsel %vm1259_vm5, %v1370_v46, -inf }
 0x27e   : > { %1374 = vmax.xlane.f32.xlu2 %v1373_v47 }
 0x280   : > { %v1469_v48 = vpop.f32.mrf.mxu3 }
 0x281   : > { %v1478_v49 = vmul.f32 0.28867513, %v1469_v48 }
 0x282   : > { %v1363_v50 = vpop.f32.mrf.mxu1 }
 0x283   : > { %v1481_v52 = vsel %vm1259_vm5, %v1478_v49, -inf  ;;  %v3977_v53 = vmul.f32 0.28867513, %v1363_v50 }
 0x284   : > { %1482 = vmax.xlane.f32.xlu0 %v1481_v52 }
 0x285   : > { %v1376_v61 = vsel %vm1259_vm5, %v3977_v53, -inf }
 0x288   : > { %v1471_v54 = vpop.f32.mrf.mxu3 }
 0x289   : > { %v3979_v56 = vmul.f32 0.28867513, %v1471_v54 }
 0x28a   : > { %v1366_v58 = vpop.f32.mrf.mxu1 }
 0x28b   : > { %v3981_v59 = vmul.f32 0.28867513, %v1366_v58  ;;  %v1484_v60 = vsel %vm1259_vm5, %v3979_v56, -inf }
 0x28c   : > { %1485 = vmax.xlane.f32.xlu1 %v1484_v60  ;;  %1377 = vmax.xlane.f32.xlu0 %v1376_v61 }
 0x28d   : > { %v1379_v63 = vsel %vm1266_vm6, %v3981_v59, -inf }
 0x28e   : > { %1380 = vmax.xlane.f32.xlu2 %v1379_v63 }
 0x290   : > { %v1474_v0 = vpop.f32.mrf.mxu3 }
 0x291   : > { %v3989_v1 = vmul.f32 0.28867513, %v1474_v0 }
 0x292   : > { %v1368_v2 = vpop.f32.mrf.mxu1 }
 0x293   : > { %v1487_v3 = vsel %vm1266_vm6, %v3989_v1, -inf }
 0x296   : > { %1488 = vmax.xlane.f32.xlu2 %v1487_v3 }
 0x298   : > { %v1476_v4 = vpop.f32.mrf.mxu3 }
 0x29a   : > { %v1588_v6 = vpop.f32.mrf.mxu1 }
 0x29b   : > { %v3993_v7 = vmul.f32 0.28867513, %v1588_v6 }
 0x29d   : > { %v1600_v8 = vsel %vm1259_vm5, %v3993_v7, -inf }
 0x29e   : > { %1601 = vmax.xlane.f32.xlu1 %v1600_v8 }
 0x2a0   : > { %1524 = vrot.lane.b32.xlu0 %v3913_v57, %s3676_s26 }
 0x2a2   : > { %v1590_v9 = vpop.f32.mrf.mxu1 }
 0x2a3   : > { %v3999_v10 = vmul.f32 0.28867513, %v1590_v9 }
 0x2a5   : > { %v1603_v11 = vsel %vm1259_vm5, %v3999_v10, -inf }
 0x2a6   : > { %1604 = vmax.xlane.f32.xlu2 %v1603_v11 }
 0x2aa   : > { %v1593_v12 = vpop.f32.mrf.mxu1 }
 0x2ab   : > { %v4003_v13 = vmul.f32 0.28867513, %v1593_v12 }
 0x2ad   : > { %v1606_v14 = vsel %vm1266_vm6, %v4003_v13, -inf }
 0x2ae   : > { %1607 = vmax.xlane.f32.xlu2 %v1606_v14 }
 0x2b2   : > { %v1595_v15 = vpop.f32.mrf.mxu1 }
 0x2b7   : > { %1635 = vrot.lane.b32.xlu1 %v3911_v55, %s3674_s7  ;;  %s4444_s7 = smov 24  }
 0x2e1   : > { %v1262_v16 = vpop.xlane.xlu1 %1261 }
 0x2e2   : > { %v1270_v57 = vsub.f32 %v1256_v35, %v1262_v16 }
 0x2e4   : > { %v1273_v17 = vmul.f32 1.442695, %v1270_v57 }
 0x2e6   : > { %3509 = vpow2.f32 %v1273_v17 }
 0x2e7   : > { %v1269_v18 = vpop.xlane.xlu0 %1268 }
 0x2e8   : > { %v1272_v19 = vsub.f32 %v1258_v38, %v1269_v18 }
 0x2e9   : > { %v1265_v20 = vpop.xlane.xlu2 %1264 }
 0x2ea   : > { %v1277_v21 = vmul.f32 1.442695, %v1272_v19  ;;  %v1271_v22 = vsub.f32 %v1257_v41, %v1265_v20 }
 0x2ec   : > { %v4009_v23 = vpop.eup %3509  ;;  %3511 = vpow2.f32 %v1277_v21  ;;  %v1275_v25 = vmul.f32 1.442695, %v1271_v22 }
 0x2ed   : > { %v1279_v24 = vsel %vm1259_vm5, %v4009_v23, 0.0 }
 0x2ee   : > { %1280 = vadd.xlane.f32.xlu2 %v1279_v24  ;;  %3513 = vpow2.f32 %v1275_v25 }
 0x2f1   : > { %v1375_v26 = vpop.xlane.xlu2 %1374 }
 0x2f2   : > { %v4013_v27 = vpop.eup %3511  ;;  %v1382_v28 = vsub.f32 %v1370_v46, %v1375_v26 }
 0x2f3   : > { %v1285_v29 = vsel %vm1266_vm6, %v4013_v27, 0.0 }
 0x2f4   : > { %v1385_v31 = vmul.f32 1.442695, %v1382_v28  ;;  %1286 = vadd.xlane.f32.xlu0 %v1285_v29  ;;  %v4017_v33 = vpop.eup %3513 }
 0x2f5   : > { %v1282_v37 = vsel %vm1259_vm5, %v4017_v33, 0.0 }
 0x2f6   : > { %3515 = vpow2.f32 %v1385_v31 }
 0x2f7   : > { %v1483_v32 = vpop.xlane.xlu0 %1482 }
 0x2f8   : > { %v1490_v35 = vsub.f32 %v1478_v49, %v1483_v32 }
 0x2fa   : > { %v1493_v36 = vmul.f32 1.442695, %v1490_v35 }
 0x2fc   : > { %v4021_v38 = vpop.eup %3515  ;;  %3517 = vpow2.f32 %v1493_v36  ;;  %1283 = vadd.xlane.f32.xlu0 %v1282_v37 }
 0x2fd   : > { %v1391_v40 = vsel %vm1259_vm5, %v4021_v38, 0.0 }
 0x2fe   : > { %1392 = vadd.xlane.f32.xlu2 %v1391_v40 }
 0x2ff   : > { %v1486_v41 = vpop.xlane.xlu1 %1485  ;;  %v1378_v42 = vpop.xlane.xlu0 %1377 }
 0x300   : > { %v1491_v43 = vsub.f32 %v3979_v56, %v1486_v41  ;;  %v1383_v44 = vsub.f32 %v3977_v53, %v1378_v42 }
 0x301   : > { %v1381_v45 = vpop.xlane.xlu2 %1380 }
 0x302   : > { %v4027_v46 = vpop.eup %3517  ;;  %v1495_v47 = vmul.f32 1.442695, %v1491_v43  ;;  %v1387_v48 = vmul.f32 1.442695, %v1383_v44  ;;  %v1384_v49 = vsub.f32 %v3981_v59, %v1381_v45 }
 0x303   : > { %v1499_v50 = vsel %vm1259_vm5, %v4027_v46, 0.0 }
 0x304   : > { %3519 = vpow2.f32 %v1495_v47  ;;  %v1389_v52 = vmul.f32 1.442695, %v1384_v49  ;;  %1500 = vadd.xlane.f32.xlu0 %v1499_v50 }
 0x305   : > { %3521 = vpow2.f32 %v1387_v48 }
 0x306   : > { %3523 = vpow2.f32 %v1389_v52 }
 0x309   : > { %v1489_v61 = vpop.xlane.xlu2 %1488 }
 0x30a   : > { %v4032_v54 = vpop.eup %3519  ;;  %v1492_v57 = vsub.f32 %v3989_v1, %v1489_v61 }
 0x30b   : > { %v4034_v56 = vpop.eup %3521  ;;  %v1502_v53 = vsel %vm1259_vm5, %v4032_v54, 0.0 }
 0x30c   : > { %v4038_v58 = vpop.eup %3523  ;;  %1503 = vadd.xlane.f32.xlu2 %v1502_v53  ;;  %v1394_v59 = vsel %vm1259_vm5, %v4034_v56, 0.0  ;;  %v1497_v17 = vmul.f32 1.442695, %v1492_v57 }
 0x30d   : > { %1395 = vadd.xlane.f32.xlu0 %v1394_v59  ;;  %v1397_v60 = vsel %vm1266_vm6, %v4038_v58, 0.0 }
 0x30e   : > { %1398 = vadd.xlane.f32.xlu1 %v1397_v60 }
 0x311   : > { %v1602_v63 = vpop.xlane.xlu1 %1601 }
 0x312   : > { %v1609_v0 = vsub.f32 %v3993_v7, %v1602_v63  ;;  %v1525_v18 = vpop.permute.xlu0 %1524 }
 0x314   : > { %v1612_v2 = vmul.f32 1.442695, %v1609_v0 }
 0x316   : > { %3525 = vpow2.f32 %v1612_v2 }
 0x319   : > { %v1605_v3 = vpop.xlane.xlu2 %1604 }
 0x31a   : > { %v1610_v4 = vsub.f32 %v3999_v10, %v1605_v3 }
 0x31c   : > { %v4046_v6 = vpop.eup %3525  ;;  %v1614_v8 = vmul.f32 1.442695, %v1610_v4 }
 0x31d   : > { %v1618_v9 = vsel %vm1259_vm5, %v4046_v6, 0.0 }
 0x31e   : > { %3527 = vpow2.f32 %v1614_v8  ;;  %1619 = vadd.xlane.f32.xlu1 %v1618_v9 }
 0x321   : > { %v1608_v10 = vpop.xlane.xlu2 %1607 }
 0x322   : > { %v1611_v14 = vsub.f32 %v4003_v13, %v1608_v10 }
 0x324   : > { %v4050_v11 = vpop.eup %3527  ;;  %1526 = vrot.lane.b32.xlu2 %v3945_v62, %s3676_s26  ;;  %v1616_v15 = vmul.f32 1.442695, %v1611_v14 }
 0x325   : > { %v1621_v7 = vsel %vm1259_vm5, %v4050_v11, 0.0 }
 0x326   : > { %1622 = vadd.xlane.f32.xlu0 %v1621_v7  ;;  %3529 = vpow2.f32 %v1616_v15 }
 0x327   : > { %3531 = vpow2.f32 %v1497_v17 }
 0x329   : > { %v1636_v12 = vpop.permute.xlu1 %1635 }
 0x32a   : > { %1656 = vmatpush.bf16.msra.mxu2 %v1636_v12 }
 0x32c   : > { %v4061_v16 = vpop.eup %3529 }
 0x32d   : > { %v1624_v62 = vsel %vm1266_vm6, %v4061_v16, 0.0 }
 0x337   : > { %1522 = vrot.lane.b32.xlu1 %v3911_v55, %s3676_s26  ;;  %v4066_v55 = vpop.eup %3531 }
 0x33a   : > { %1520 = vrot.lane.b32.xlu0 %v3907_v51, %s3676_s26  ;;  %v1505_v51 = vsel %vm1266_vm6, %v4066_v55, 0.0  ;;  %s4442_s26 = smov 36  }
 0x34d   : > { %1625 = vadd.xlane.f32.xlu2 %v1624_v62 }
 0x361   : > { %v1281_v19 = vpop.xlane.xlu2 %1280 }
 0x362   : > { %3533 = vrcp.f32 %v1281_v19 }
 0x364   : > { %1506 = vadd.xlane.f32.xlu0 %v1505_v51 }
 0x367   : > { %v1287_v13 = vpop.xlane.xlu0 %1286 }
 0x368   : > { %v3534_v21 = vpop.eup %3533 }
 0x369   : > { %v1291_v24 = vmul.f32 %v3534_v21, %v4009_v23 }
 0x36f   : > { %v1284_v20 = vpop.xlane.xlu0 %1283 }
 0x370   : > { %3535 = vrcp.f32 %v1284_v20 }
 0x371   : > { %v1393_v25 = vpop.xlane.xlu2 %1392  ;;  %3537 = vrcp.f32 %v1287_v13 }
 0x372   : > { %3539 = vrcp.f32 %v1393_v25 }
 0x376   : > { %v3536_v22 = vpop.eup %3535 }
 0x377   : > { %v1292_v1 = vmul.f32 %v3536_v22, %v4017_v33  ;;  %v1501_v26 = vpop.xlane.xlu0 %1500  ;;  %v3538_v32 = vpop.eup %3537 }
 0x378   : > { %v3540_v35 = vpop.eup %3539  ;;  %v1293_v36 = vmul.f32 %v3538_v32, %v4013_v27 }
 0x379   : > { %v1294_v28 = vpack.c.bf16 %v1292_v1, %v1291_v24  ;;  %v1403_v23 = vmul.f32 %v3540_v35, %v4021_v38 }
 0x37a   : > { %v1295_v43 = vpack.c.bf16 %v1293_v36, %v1293_v36 }
 0x37b   : > { %3226 = vmatmul.msk.bf16.vlgmr.msrb.gmra.mxu0 %vm1259_vm5, %v1294_v28  ;;  %v3382_v28 = vld [vmem:[%s3719_s29 + $0x8] sm:$0xff] }
 0x37f   : > { %v1504_v29 = vpop.xlane.xlu2 %1503 }
 0x380   : > { %v1396_v31 = vpop.xlane.xlu0 %1395 }
 0x381   : > { %3541 = vrcp.f32 %v1396_v31  ;;  %v1399_v44 = vpop.xlane.xlu1 %1398 }
 0x382   : > { %3543 = vrcp.f32 %v1399_v44 }
 0x387   : > { %v3542_v37 = vpop.eup %3541  ;;  %v1527_v40 = vpop.permute.xlu2 %1526 }
 0x388   : > { %v1404_v33 = vmul.f32 %v3542_v37, %v4034_v56  ;;  %v1530_v41 = vsel %vm1528_vm7, %v1525_v18, %v1527_v40  ;;  %v3544_v27 = vpop.eup %3543 }
 0x389   : > { %v1539_v42 = vand.u32 %v1530_v41, %v3949_v5  ;;  %v1405_v47 = vmul.f32 %v3544_v27, %v4038_v58 }
 0x38a   : > { %v1406_v45 = vpack.c.bf16 %v1404_v33, %v1403_v23 }
 0x38b   : > { %3227 = vmatmul.msk.bf16.gmra.mxu0 %vm1259_vm5, %v1295_v43  ;;  %v1407_v38 = vpack.c.bf16 %v1405_v47, %v1405_v47 }
 0x38c   : > { %3230 = vmatmul.msk.bf16.vlgmr.msrb.gmra.mxu2 %vm1259_vm5, %v1406_v45  ;;  %1547 = vmatpush.bf16.msra.mxu0 %v1539_v42 }
 0x391   : > { %v1620_v49 = vpop.xlane.xlu1 %1619 }
 0x399   : > { %v1623_v48 = vpop.xlane.xlu0 %1622 }
 0x39a   : > { %3545 = vrcp.f32 %v1623_v48 }
 0x39b   : > { %3547 = vrcp.f32 %v1620_v49 }
 0x39c   : > { %3231 = vmatmul.msk.bf16.gmra.mxu2 %vm1259_vm5, %v1407_v38  ;;  %3549 = vrcp.f32 %v1504_v29  ;;  %v3381_v29 = vld [vmem:[%s3719_s29] sm:$0xff] }
 0x39d   : > { %3551 = vrcp.f32 %v1501_v26  ;;  %v3383_v26 = vld [vmem:[%s3719_s29 + $0x10] sm:$0xff] }
 0x39e   : > { %1755 = vmatpush.bf16.msra.mxu3 %v3383_v26 }
 0x3a0   : > { %v3546_v5 = vpop.eup %3545 }
 0x3a1   : > { %v3548_v50 = vpop.eup %3547  ;;  %v1631_v52 = vmul.f32 %v3546_v5, %v4050_v11 }
 0x3a2   : > { %v3550_v56 = vpop.eup %3549  ;;  %v1630_v53 = vmul.f32 %v3548_v50, %v4046_v6  ;;  %1756 = vmatpush.bf16.msra.mxu3 %v3382_v28 }
 0x3a3   : > { %v3552_v59 = vpop.eup %3551  ;;  %v1512_v58 = vmul.f32 %v3550_v56, %v4032_v54 }
 0x3a4   : > { %v1633_v60 = vpack.c.bf16 %v1631_v52, %v1630_v53  ;;  %v1511_v0 = vmul.f32 %v3552_v59, %v4027_v46  ;;  %v3495_v59 = vld [vmem:[%s3724_s3] ss:$0 sm:$0xff] }
 0x3a6   : > { %v1514_v3 = vpack.c.bf16 %v1512_v58, %v1511_v0  ;;  %1757 = vmatpush.bf16.msra.mxu3 %v3381_v29 }
 0x3a9   : > { %v1523_v61 = vpop.permute.xlu1 %1522 }
 0x3ac   : > { %3238 = vmatmul.msk.bf16.vlgmr.msra.gmra.mxu2 %vm1259_vm5, %v1633_v60  ;;  %v1521_v63 = vpop.permute.xlu0 %1520 }
 0x3ad   : > { %v1529_v2 = vsel %vm1528_vm7, %v1521_v63, %v1523_v61 }
 0x3ae   : > { %1548 = vmatpush.bf16.msra.mxu0 %v1529_v2 }
 0x3b1   : > { %3234 = vmatmul.msk.bf16.vlgmr.msra.gmra.mxu0 %vm1259_vm5, %v1514_v3 }
 0x3c0   : > { %v1626_v4 = vpop.xlane.xlu2 %1625 }
 0x3c1   : > { %3553 = vrcp.f32 %v1626_v4 }
 0x3c7   : > { %v3554_v8 = vpop.eup %3553 }
 0x3c8   : > { %v1632_v6 = vmul.f32 %v3554_v8, %v4061_v16 }
 0x3ca   : > { %v1634_v9 = vpack.c.bf16 %v1632_v6, %v1632_v6 }
 0x3cc   : > { %3239 = vmatmul.msk.bf16.gmra.mxu2 %vm1259_vm5, %v1634_v9 }
 0x3d7   : > { %v1507_v54 = vpop.xlane.xlu0 %1506 }
 0x3d8   : > { %3555 = vrcp.f32 %v1507_v54 }
 0x3de   : > { %v3556_v11 = vpop.eup %3555 }
 0x3df   : > { %v1513_v7 = vmul.f32 %v3556_v11, %v4066_v55  ;;  %v3680_v11 = vmov 48.0  }
 0x3e0   : > { %3557 = vrcp.f32 %v3680_v11 }
 0x3e1   : > { %v1515_v46 = vpack.c.bf16 %v1513_v7, %v1513_v7 }
 0x3e3   : > { %3235 = vmatmul.msk.bf16.gmra.mxu0 %vm1259_vm5, %v1515_v46 }
 0x3e6   : > { %v3558_v7 = vpop.eup %3557 }
 0x3e7   : > { %v1781_v46 = vmul.f32 48.0, %v3558_v7  ;;  %vm1785_vm10 = vweird.f32 %v3558_v7 }
 0x3f8   : > { %v1323_v12 = vpop.f32.mrf.mxu0 }
 0x400   : > { %v1325_v10 = vpop.f32.mrf.mxu0 }
 0x408   : > { %v1328_v14 = vpop.f32.mrf.mxu0 }
 0x40f   : > { %v1431_v15 = vpop.f32.mrf.mxu2 }
 0x410   : > { %v1330_v62 = vpop.f32.mrf.mxu0 }
 0x417   : > { %v1433_v57 = vpop.f32.mrf.mxu2 }
 0x418   : > { %v3464_v17 = vpack.i.bf16 %v1433_v57, %v1431_v15 }
 0x41a   : > { %3465 = vrot.lane.b32.xlu1 %v3464_v17, %s3677_s2 }
 0x41f   : > { %v1436_v16 = vpop.f32.mrf.mxu2 }
 0x427   : > { %v1438_v18 = vpop.f32.mrf.mxu2 }
 0x42e   : > { %v1550_v51 = vpop.f32.mrf.mxu0 }
 0x42f   : > { %v1658_v13 = vpop.f32.mrf.mxu2 }
 0x436   : > { %v1552_v19 = vpop.f32.mrf.mxu0 }
 0x437   : > { %v3469_v55 = vpack.i.bf16 %v1552_v19, %v1550_v51  ;;  %v1660_v20 = vpop.f32.mrf.mxu2 }
 0x438   : > { %v3474_v21 = vpack.i.bf16 %v1660_v20, %v1658_v13  ;;  %v3387_v13 = vld [vmem:[%s3749_s30] sm:$0xff] }
 0x439   : > { %3470 = vrot.lane.b32.xlu1 %v3469_v55, %s4444_s7 }
 0x441   : > { %3475 = vrot.lane.b32.xlu1 %v3474_v21, %s4442_s26 }
 0x449   : > { %1674 = vrot.lane.b32.xlu1 %v1436_v16, %s3677_s2  ;;  %v3388_v16 = vld [vmem:[%s3749_s30 + $0x8] sm:$0xff] }
 0x44a   : > { %1951 = vmatpush.bf16.msra.mxu1 %v3388_v16 }
 0x44e   : > { %1952 = vmatpush.bf16.msra.mxu1 %v3387_v13 }
 0x44f   : > { %v1663_v22 = vpop.f32.mrf.mxu2 }
 0x450   : > { %1698 = vrot.lane.b32.xlu2 %v1663_v22, %s4442_s26  ;;  %s3406_s26 = smul.u32 48, %s4479_s1 }
 0x457   : > { %v1665_v24 = vpop.f32.mrf.mxu2 }
 0x460   : > { %v1555_v1 = vpop.f32.mrf.mxu0 }
 0x461   : > { %1686 = vrot.lane.b32.xlu1 %v1555_v1, %s4444_s7  ;;  %s1030_s7 = scalar_lea.vmem %s3694_s9, %s3406_s26  ;;  %s4468_s26 = sld [smem:[#allocation6_spill]] }
 0x462   : > { %v1125_v19 = vld [vmem:[%s1030_s7] sm:$0xff]  ;;  %v1126_v55 = vld [vmem:[%s1030_s7 + $0x8] sm:$0xff]  ;;  %v1127_v1 = vld [vmem:[%s1030_s7 + $0x10] sm:$0xff] }
 0x463   : > { %v1916_v21 = vpack.c.bf16 %v1126_v55, %v1125_v19 }
 0x465   : > { %3276 = vmatmul.msk.bf16.vlgmr.msra.gmra.mxu1 %vm1935_vm11, %v1916_v21 }
 0x468   : > { %v1557_v25 = vpop.f32.mrf.mxu0 }
 0x469   : > { %v1128_v25 = vld [vmem:[%s1030_s7 + $0x18] sm:$0xff] }
 0x46a   : > { %v1917_v26 = vpack.c.bf16 %v1128_v25, %v1127_v1 }
 0x475   : > { %3277 = vmatmul.msk.bf16.gmra.mxu1 %vm1935_vm11, %v1917_v26 }
 0x48c   : > { %v3466_v31 = vpop.permute.xlu1 %3465 }
 0x48d   : > { %v3468_v35 = vunpack.i.h.bf16 %v3466_v31  ;;  %v3467_v36 = vunpack.i.l.bf16 %v3466_v31 }
 0x48f   : > { %v1704_v33 = vsel %vm1225_vm4, %v1325_v10, %v3468_v35  ;;  %v1703_v41 = vsel %vm1225_vm4, %v1323_v12, %v3467_v36  ;;  %v1782_v12 = vsub.f32 1.0, %v1781_v46  ;;  %v1129_v36 = vld [vmem:[%s1030_s7 + $0x20] sm:$0xff] }
 0x4aa   : > { %v1699_v50 = vpop.permute.xlu2 %1698 }
 0x4ab   : > { %v3471_v32 = vpop.permute.xlu1 %3470 }
 0x4ac   : > { %v3473_v37 = vunpack.i.h.bf16 %v3471_v32  ;;  %v3472_v40 = vunpack.i.l.bf16 %v3471_v32 }
 0x4ae   : > { %v1708_v44 = vsel %vm1706_vm8, %v1704_v33, %v3473_v37  ;;  %v1707_v45 = vsel %vm1706_vm8, %v1703_v41, %v3472_v40  ;;  %v1130_v37 = vld [vmem:[%s1030_s7 + $0x28] sm:$0xff]  ;;  %s4461_s7 = sld [smem:[#allocation2_spill]] }
 0x4af   : > { %v1918_v40 = vpack.c.bf16 %v1130_v37, %v1129_v36  ;;  %v3385_v33 = vld [vmem:[%s3739_s19 + $0x8] sm:$0xff] }
 0x4b1   : > { %3278 = vmatmul.msk.bf16.gmra.mxu1 %vm1935_vm11, %v1918_v40 }
 0x4b3   : > { %v3476_v23 = vpop.permute.xlu1 %3475 }
 0x4b4   : > { %v3478_v42 = vunpack.i.h.bf16 %v3476_v23  ;;  %v3477_v43 = vunpack.i.l.bf16 %v3476_v23  ;;  %v3386_v23 = vld [vmem:[%s3739_s19 + $0x10] sm:$0xff] }
 0x4b5   : > { %1899 = vmatpush.bf16.msrb.mxu0 %v3386_v23 }
 0x4b6   : > { %v1711_v27 = vsel %vm1710_vm9, %v1707_v45, %v3477_v43  ;;  %v1712_v47 = vsel %vm1710_vm9, %v1708_v44, %v3478_v42  ;;  %v3384_v44 = vld [vmem:[%s3739_s19] sm:$0xff] }
 0x4b7   : > { %v1720_v48 = vpack.c.bf16 %v1712_v47, %v1711_v27 }
 0x4b9   : > { %3252 = vmatmul.msk.bf16.vlgmr.msra.gmra.mxu3 %vm1090_vm0, %v1720_v48  ;;  %1900 = vmatpush.bf16.msrb.mxu0 %v3385_v33 }
 0x4bb   : > { %v1675_v38 = vpop.permute.xlu1 %1674 }
 0x4bc   : > { %v1705_v49 = vsel %vm1225_vm4, %v1328_v14, %v1675_v38 }
 0x4bd   : > { %1901 = vmatpush.bf16.msrb.mxu0 %v3384_v44 }
 0x4d3   : > { %v1687_v5 = vpop.permute.xlu1 %1686 }
 0x4d4   : > { %v1709_v52 = vsel %vm1706_vm8, %v1705_v49, %v1687_v5 }
 0x4d5   : > { %v1713_v56 = vsel %vm1710_vm9, %v1709_v52, %v1699_v50 }
 0x4d6   : > { %v1721_v53 = vpack.c.bf16 %v1713_v56, %v1713_v56 }
 0x4d8   : > { %3253 = vmatmul.msk.bf16.gmra.mxu3 %vm1090_vm0, %v1721_v53 }
 0x53c   : > { %v1759_v60 = vpop.f32.mrf.mxu3 }
 0x53d   : > { %v1760_v58 = vadd.f32 %v3495_v59, %v1759_v60 }
 0x53f   : > { %v1768_v61 = vadd.f32 %v1760_v58, %v3886_v30 }
 0x541   : > { %v1771_v63 = vsel %vm1090_vm0, %v1768_v61, 0.0 }
 0x542   : > { %1772 = vadd.xlane.f32.xlu0 %v1771_v63 }
 0x544   : > { %v1761_v0 = vpop.f32.mrf.mxu3 }
 0x545   : > { %v1762_v2 = vadd.f32 %v3495_v59, %v1761_v0  ;;  %v3496_v0 = vld [vmem:[%s3729_s8] ss:$0 sm:$0xff] }
 0x547   : > { %v1769_v3 = vadd.f32 %v1762_v2, %v3890_v34  ;;  %v1783_v34 = vmul.f32 %v3558_v7, %v1782_v12 }
 0x549   : > { %v1774_v4 = vsel %vm1090_vm0, %v1769_v3, 0.0  ;;  %v1784_v10 = vadd.f32 %v3558_v7, %v1783_v34 }
 0x54a   : > { %1775 = vadd.xlane.f32.xlu1 %v1774_v4 }
 0x54b   : > { %v4120_v14 = vsel %vm1785_vm10, %v3558_v7, %v1784_v10 }
 0x55b   : > { %v1764_v8 = vpop.f32.mrf.mxu3 }
 0x55c   : > { %v1765_v6 = vadd.f32 %v3495_v59, %v1764_v8  ;;  %v1954_v59 = vpop.f32.mrf.mxu1 }
 0x55e   : > { %v1770_v9 = vadd.f32 %v1765_v6, %v3898_v39  ;;  %v3497_v6 = vld [vmem:[%s3734_s14] ss:$0 sm:$0xff] }
 0x560   : > { %v1777_v54 = vsel %vm1123_vm1, %v1770_v9, 0.0 }
 0x561   : > { %1778 = vadd.xlane.f32.xlu0 %v1777_v54 }
 0x563   : > { %v1766_v30 = vpop.f32.mrf.mxu3 }
 0x564   : > { %v1956_v4 = vpop.f32.mrf.mxu1 }
 0x5b5   : > { %v1773_v15 = vpop.xlane.xlu0 %1772 }
 0x5b6   : > { %v1787_v39 = vmul.f32 %v4120_v14, %v1773_v15  ;;  %v1959_v15 = vpop.f32.mrf.mxu1 }
 0x5b8   : > { %v4124_v62 = vsub.f32 %v1768_v61, %v1787_v39  ;;  %v3498_v39 = vld [vmem:[%s3754_s6] ss:$0 sm:$0xff] }
 0x5b9   : > { %v1955_v25 = vadd.f32 %v3498_v39, %v1954_v59 }
 0x5ba   : > { %v1793_v57 = vmul.f32 %v4124_v62, %v4124_v62 }
 0x5bc   : > { %v1796_v17 = vsel %vm1090_vm0, %v1793_v57, 0.0 }
 0x5bd   : > { %v1776_v18 = vpop.xlane.xlu1 %1775  ;;  %1797 = vadd.xlane.f32.xlu0 %v1796_v17  ;;  %v1960_v17 = vadd.f32 %v3498_v39, %v1959_v15 }
 0x5be   : > { %v1788_v51 = vmul.f32 %v4120_v14, %v1776_v18  ;;  %v1961_v18 = vpop.f32.mrf.mxu1 }
 0x5c0   : > { %v1791_v20 = vsub.f32 %v1769_v3, %v1788_v51  ;;  %v1962_v51 = vadd.f32 %v3498_v39, %v1961_v18 }
 0x5c2   : > { %v1794_v22 = vmul.f32 %v1791_v20, %v1791_v20  ;;  %v4160_v19 = vpack.c.bf16 %v1962_v51, %v1960_v17 }
 0x5c4   : > { %v1799_v24 = vsel %vm1090_vm0, %v1794_v22, 0.0  ;;  %2092 = vrot.lane.b32.xlu1 %v4160_v19, %s3665_s10  ;;  %v1984_v23 = vsel %vm1225_vm4, %v4160_v19, 0 }
 0x5c5   : > { %1800 = vadd.xlane.f32.xlu2 %v1799_v24 }
 0x5c6   : > { %v1964_v22 = vpop.f32.mrf.mxu1 }
 0x5cc   : > { %2053 = vrot.lane.b32.xlu1 %v4160_v19, %s3667_s15 }
 0x5d4   : > { %v1779_v28 = vpop.xlane.xlu0 %1778 }
 0x5d5   : > { %v1789_v29 = vmul.f32 %v4120_v14, %v1779_v28  ;;  %v1957_v28 = vadd.f32 %v3498_v39, %v1956_v4 }
 0x5d7   : > { %v4137_v31 = vsub.f32 %v1770_v9, %v1789_v29  ;;  %v4172_v36 = vpack.c.bf16 %v1957_v28, %v1955_v25 }
 0x5d9   : > { %v1795_v32 = vmul.f32 %v4137_v31, %v4137_v31  ;;  %2090 = vrot.lane.b32.xlu1 %v4172_v36, %s3665_s10  ;;  %v1981_v33 = vsel %vm1225_vm4, %v4172_v36, 0 }
 0x5db   : > { %v1802_v35 = vsel %vm1123_vm1, %v1795_v32, 0.0  ;;  %v1965_v32 = vadd.f32 %v3498_v39, %v1964_v22 }
 0x5dc   : > { %1803 = vadd.xlane.f32.xlu0 %v1802_v35  ;;  %v1966_v35 = vpop.f32.mrf.mxu1 }
 0x5dd   : > { %v1967_v37 = vadd.f32 %v3498_v39, %v1966_v35 }
 0x630   : > { %v1798_v41 = vpop.xlane.xlu0 %1797 }
 0x631   : > { %v1805_v42 = vmul.f32 %v1798_v41, %v4120_v14 }
 0x633   : > { %v1808_v43 = vadd.f32 1e-05, %v1805_v42  ;;  %v3499_v42 = vld [vmem:[%s4461_s7] ss:$0 sm:$0xff]  ;;  %s4469_s7 = sld [smem:[#allocation9_spill]] }
 0x635   : > { %3559 = vrsqrt.f32 %v1808_v43  ;;  %vm1817_vm13 = vweird.f32 %v1808_v43 }
 0x638   : > { %v1801_v45 = vpop.xlane.xlu2 %1800 }
 0x639   : > { %v1806_v27 = vmul.f32 %v1801_v45, %v4120_v14 }
 0x63b   : > { %v3560_v47 = vpop.eup %3559  ;;  %v1809_v48 = vadd.f32 1e-05, %v1806_v27 }
 0x63c   : > { %v1812_v38 = vmul.f32 %v3560_v47, %v1808_v43  ;;  %vm1818_vm12 = vweird.f32 %v3560_v47 }
 0x63d   : > { %3561 = vrsqrt.f32 %v1809_v48  ;;  %vm1819_vm14 = vmor %vm1817_vm13, %vm1818_vm12  ;;  %vm1827_vm2 = vweird.f32 %v1809_v48 }
 0x63e   : > { %v1813_v49 = vmul.f32 %v3560_v47, %v1812_v38 }
 0x640   : > { %v1814_v5 = vmul.f32 0.5, %v1813_v49 }
 0x642   : > { %v1815_v50 = vsub.f32 1.5, %v1814_v5 }
 0x643   : > { %v3562_v52 = vpop.eup %3561 }
 0x644   : > { %v1816_v56 = vmul.f32 %v3560_v47, %v1815_v50  ;;  %v1822_v53 = vmul.f32 %v3562_v52, %v1809_v48  ;;  %vm1828_vm15 = vweird.f32 %v3562_v52 }
 0x645   : > { %vm1829_vm3 = vmor %vm1827_vm2, %vm1828_vm15 }
 0x646   : > { %v1823_v60 = vmul.f32 %v3562_v52, %v1822_v53  ;;  %v1820_v58 = vsel %vm1819_vm14, %v3560_v47, %v1816_v56  ;;  %v2093_v47 = vpop.permute.xlu1 %2092 }
 0x647   : > { %v1841_v2 = vmul.f32 %v1820_v58, %v4124_v62 }
 0x648   : > { %v1824_v61 = vmul.f32 0.5, %v1823_v60 }
 0x649   : > { %v1848_v9 = vmul.f32 %v3496_v0, %v1841_v2 }
 0x64a   : > { %v1825_v63 = vsub.f32 1.5, %v1824_v61 }
 0x64b   : > { %v4152_v12 = vadd.f32 %v3497_v6, %v1848_v9 }
 0x64c   : > { %v1826_v3 = vmul.f32 %v3562_v52, %v1825_v63 }
 0x64e   : > { %v1830_v8 = vsel %vm1829_vm3, %v3562_v52, %v1826_v3  ;;  %v2054_v5 = vpop.permute.xlu1 %2053  ;;  %v2106_v52 = vsel %vm1225_vm4, %v2093_v47, 0  ;;  %vm2720_vm3 = vcmask 523264  }
 0x64f   : > { %v1842_v54 = vmul.f32 %v1830_v8, %v1791_v20  ;;  %v1804_v30 = vpop.xlane.xlu0 %1803 }
 0x650   : > { %v1807_v11 = vmul.f32 %v1804_v30, %v4120_v14 }
 0x651   : > { %v1849_v7 = vmul.f32 %v3496_v0, %v1842_v54 }
 0x652   : > { %v1810_v46 = vadd.f32 1e-05, %v1807_v11 }
 0x653   : > { %v4154_v34 = vadd.f32 %v3497_v6, %v1849_v7 }
 0x654   : > { %3563 = vrsqrt.f32 %v1810_v46  ;;  %vm1837_vm6 = vweird.f32 %v1810_v46 }
 0x655   : > { %v1864_v10 = vpack.c.bf16 %v4154_v34, %v4152_v12 }
 0x656   : > { %v2091_v59 = vpop.permute.xlu1 %2090 }
 0x657   : > { %3266 = vmatmul.msk.bf16.vlgmr.msrb.gmra.mxu0 %vm1090_vm0, %v1864_v10  ;;  %v2103_v58 = vsel %vm1225_vm4, %v2091_v59, 0 }
 0x65a   : > { %v3564_v62 = vpop.eup %3563 }
 0x65b   : > { %v1832_v57 = vmul.f32 %v3564_v62, %v1810_v46  ;;  %vm1838_vm5 = vweird.f32 %v3564_v62 }
 0x65c   : > { %vm1839_vm7 = vmor %vm1837_vm6, %vm1838_vm5 }
 0x65d   : > { %v1833_v16 = vmul.f32 %v3564_v62, %v1832_v57 }
 0x65f   : > { %v1834_v13 = vmul.f32 0.5, %v1833_v16 }
 0x661   : > { %v1835_v55 = vsub.f32 1.5, %v1834_v13 }
 0x663   : > { %v1836_v20 = vmul.f32 %v3564_v62, %v1835_v55 }
 0x665   : > { %v1840_v21 = vsel %vm1839_vm7, %v3564_v62, %v1836_v20 }
 0x666   : > { %v1843_v24 = vmul.f32 %v1840_v21, %v4137_v31  ;;  %v4174_v31 = vpack.c.bf16 %v1967_v37, %v1965_v32 }
 0x668   : > { %v1850_v1 = vmul.f32 %v3496_v0, %v1843_v24  ;;  %2094 = vrot.lane.b32.xlu0 %v4174_v31, %s3665_s10  ;;  %v1987_v40 = vsel %vm1225_vm4, %v4174_v31, 0  ;;  %2055 = vrot.lane.b32.xlu2 %v4174_v31, %s3667_s15 }
 0x669   : > { %1994 = vmatpush.bf16.xpose.msrb.mxu2 %v1987_v40 }
 0x66a   : > { %v4165_v26 = vadd.f32 %v3497_v6, %v1850_v1 }
 0x66c   : > { %v1865_v29 = vpack.c.bf16 %v4165_v26, %v4165_v26 }
 0x66e   : > { %3267 = vmatmul.msk.bf16.gmra.mxu0 %vm1090_vm0, %v1865_v29 }
 0x671   : > { %1995 = vmatpush.bf16.xpose.msrb.mxu2 %v1984_v23 }
 0x679   : > { %1996 = vmatpush.bf16.xpose.msrb.mxu2 %v1981_v33 }
 0x6c2   : > { %v2056_v48 = vpop.permute.xlu2 %2055 }
 0x6c3   : > { %2071 = vmatpush.bf16.msrb.mxu3 %v2056_v48 }
 0x6c7   : > { %2072 = vmatpush.bf16.msrb.mxu3 %v2054_v5 }
 0x6d4   : > { %v1903_v41 = vpop.f32.mrf.mxu0 }
 0x6d5   : > { %v1904_v44 = vadd.f32 %v3499_v42, %v1903_v41 }
 0x6da   : > { %v2095_v38 = vpop.permute.xlu0 %2094 }
 0x6db   : > { %v2109_v49 = vsel %vm1225_vm4, %v2095_v38, 0 }
 0x6dc   : > { %v1905_v43 = vpop.f32.mrf.mxu0  ;;  %2116 = vmatpush.bf16.xpose.msra.mxu0 %v2109_v49 }
 0x6dd   : > { %v1906_v45 = vadd.f32 %v3499_v42, %v1905_v43 }
 0x6df   : > { %v4189_v27 = vpack.c.bf16 %v1906_v45, %v1904_v44 }
 0x6e1   : > { %2086 = vrot.lane.b32.xlu2 %v4189_v27, %s3665_s10  ;;  %3279 = vmatmul.msk.bf16.vlgmr.msrb.gmra.mxu2 %vm1225_vm4, %v4189_v27 }
 0x6e4   : > { %2117 = vmatpush.bf16.xpose.msra.mxu0 %v2106_v52 }
 0x6e9   : > { %2212 = vrot.lane.b32.xlu2 %v4174_v31, %s3671_s23 }
 0x6eb   : > { %v1908_v50 = vpop.f32.mrf.mxu0 }
 0x6ec   : > { %v1909_v56 = vadd.f32 %v3499_v42, %v1908_v50  ;;  %2118 = vmatpush.bf16.xpose.msra.mxu0 %v2103_v58 }
 0x6ee   : > { %v4199_v53 = vpack.c.bf16 %v1909_v56, %v1909_v56 }
 0x6f1   : > { %2210 = vrot.lane.b32.xlu2 %v4160_v19, %s3671_s23  ;;  %3280 = vmatmul.msk.bf16.gmra.mxu2 %vm1225_vm4, %v4199_v53 }
 0x6f3   : > { %v1910_v60 = vpop.f32.mrf.mxu0 }
 0x6f9   : > { %2088 = vrot.lane.b32.xlu2 %v4199_v53, %s3665_s10  ;;  %s3407_s10 = smul.u32 96, %s4479_s1  ;;  %s4462_s1 = sld [smem:[#allocation3_spill]] }
 0x701   : > { %2328 = vrot.lane.b32.xlu2 %v4160_v19, %s3670_s22 }
 0x73b   : > { %v2087_v61 = vpop.permute.xlu2 %2086 }
 0x73c   : > { %3283 = vmatmul.msk.bf16.vlgmr.msra.gmra.mxu0 %vm1225_vm4, %v2087_v61 }
 0x743   : > { %v2213_v63 = vpop.permute.xlu2 %2212 }
 0x744   : > { %v2227_v33 = vsel %vm1225_vm4, %v2213_v63, 0 }
 0x74b   : > { %v2211_v0 = vpop.permute.xlu2 %2210 }
 0x74c   : > { %v2224_v41 = vsel %vm1225_vm4, %v2211_v0, 0 }
 0x753   : > { %v2089_v2 = vpop.permute.xlu2 %2088 }
 0x754   : > { %3284 = vmatmul.msk.bf16.gmra.mxu0 %vm1225_vm4, %v2089_v2 }
 0x75b   : > { %v2329_v37 = vpop.permute.xlu2 %2328 }
 0x75c   : > { %v2342_v40 = vsel %vm1225_vm4, %v2329_v37, 0 }
 0x764   : > { %v1998_v3 = vpop.f32.mrf.mxu2 }
 0x765   : > { %v2007_v4 = vmul.f32 0.28867513, %v1998_v3 }
 0x767   : > { %v2010_v8 = vsel %vm1090_vm0, %v2007_v4, -inf }
 0x768   : > { %2011 = vmax.xlane.f32.xlu0 %v2010_v8 }
 0x76c   : > { %v2000_v6 = vpop.f32.mrf.mxu2 }
 0x76d   : > { %v2008_v9 = vmul.f32 0.28867513, %v2000_v6 }
 0x76f   : > { %v2013_v54 = vsel %vm1090_vm0, %v2008_v9, -inf }
 0x770   : > { %2014 = vmax.xlane.f32.xlu0 %v2013_v54 }
 0x774   : > { %v2003_v30 = vpop.f32.mrf.mxu2 }
 0x775   : > { %v2009_v11 = vmul.f32 0.28867513, %v2003_v30 }
 0x777   : > { %v2016_v7 = vsel %vm1123_vm1, %v2009_v11, -inf }
 0x778   : > { %2017 = vmax.xlane.f32.xlu1 %v2016_v7 }
 0x77c   : > { %v2005_v46 = vpop.f32.mrf.mxu2 }
 0x784   : > { %2330 = vrot.lane.b32.xlu0 %v4174_v31, %s3670_s22 }
 0x791   : > { %2051 = vrot.lane.b32.xlu1 %v4172_v36, %s3667_s15  ;;  %s4250_s15 = scalar_lea.vmem %s3844_s20, %s3407_s10  ;;  %s4470_s10 = sld [smem:[#allocation8_spill]] }
 0x7b9   : > { %v2120_v10 = vpop.f32.mrf.mxu0 }
 0x7ba   : > { %v4238_v42 = vmul.f32 0.28867513, %v2120_v10 }
 0x7bc   : > { %v2132_v43 = vsel %vm1090_vm0, %v4238_v42, -inf }
 0x7c1   : > { %v2122_v15 = vpop.f32.mrf.mxu0 }
 0x7c2   : > { %v2130_v45 = vmul.f32 0.28867513, %v2122_v15 }
 0x7c4   : > { %v2135_v48 = vsel %vm1090_vm0, %v2130_v45, -inf }
 0x7d1   : > { %v2125_v39 = vpop.f32.mrf.mxu0 }
 0x7d2   : > { %v2131_v44 = vmul.f32 0.28867513, %v2125_v39 }
 0x7d4   : > { %v2138_v47 = vsel %vm1123_vm1, %v2131_v44, -inf }
 0x7d9   : > { %v2127_v62 = vpop.f32.mrf.mxu0 }
 0x7db   : > { %v2012_v57 = vpop.xlane.xlu0 %2011 }
 0x7dc   : > { %v2019_v17 = vsub.f32 %v2007_v4, %v2012_v57 }
 0x7de   : > { %v2022_v16 = vmul.f32 1.442695, %v2019_v17 }
 0x7e0   : > { %3565 = vpow2.f32 %v2022_v16 }
 0x7e3   : > { %v2015_v18 = vpop.xlane.xlu0 %2014 }
 0x7e4   : > { %v2020_v51 = vsub.f32 %v2008_v9, %v2015_v18 }
 0x7e6   : > { %v3566_v13 = vpop.eup %3565  ;;  %v2024_v55 = vmul.f32 1.442695, %v2020_v51 }
 0x7e7   : > { %v2028_v20 = vsel %vm1090_vm0, %v3566_v13, 0.0 }
 0x7e8   : > { %3567 = vpow2.f32 %v2024_v55  ;;  %2029 = vadd.xlane.f32.xlu2 %v2028_v20 }
 0x7eb   : > { %v2018_v21 = vpop.xlane.xlu1 %2017 }
 0x7ec   : > { %v2021_v22 = vsub.f32 %v2009_v11, %v2018_v21 }
 0x7ee   : > { %v3568_v24 = vpop.eup %3567  ;;  %v2026_v1 = vmul.f32 1.442695, %v2021_v22 }
 0x7ef   : > { %v2031_v25 = vsel %vm1090_vm0, %v3568_v24, 0.0 }
 0x7f0   : > { %3569 = vpow2.f32 %v2026_v1  ;;  %2032 = vadd.xlane.f32.xlu0 %v2031_v25 }
 0x7f6   : > { %v3570_v28 = vpop.eup %3569  ;;  %v2331_v29 = vpop.permute.xlu0 %2330 }
 0x7f7   : > { %v2345_v32 = vsel %vm1225_vm4, %v2331_v29, 0  ;;  %v2034_v35 = vsel %vm1123_vm1, %v3570_v28, 0.0 }
 0x7f8   : > { %2035 = vadd.xlane.f32.xlu1 %v2034_v35  ;;  %2352 = vmatpush.bf16.xpose.msrb.mxu0 %v2345_v32 }
 0x800   : > { %2326 = vrot.lane.b32.xlu2 %v4172_v36, %s3670_s22  ;;  %2353 = vmatpush.bf16.xpose.msrb.mxu0 %v2342_v40 }
 0x803   : > { %v2052_v23 = vpop.permute.xlu1 %2051 }
 0x804   : > { %2073 = vmatpush.bf16.msrb.mxu3 %v2052_v23  ;;  %2208 = vrot.lane.b32.xlu0 %v4172_v36, %s3671_s23 }
 0x808   : > { %2234 = vmatpush.bf16.xpose.msra.mxu3 %v2227_v33  ;;  %2206 = vrot.lane.b32.xlu2 %v4199_v53, %s3671_s23 }
 0x80c   : > { %2204 = vrot.lane.b32.xlu0 %v4189_v27, %s3671_s23  ;;  %s4466_s23 = sld [smem:[#allocation7_spill]] }
 0x810   : > { %2235 = vmatpush.bf16.xpose.msra.mxu3 %v2224_v41 }
 0x811   : > { %2322 = vrot.lane.b32.xlu1 %v4189_v27, %s3670_s22 }
 0x814   : > { %2324 = vrot.lane.b32.xlu0 %v4199_v53, %s3670_s22  ;;  %s1045_s22 = scalar_lea.vmem %s3839_s12, %s3864_s0 }
 0x831   : > { %2133 = vmax.xlane.f32.xlu2 %v2132_v43 }
 0x83b   : > { %2139 = vmax.xlane.f32.xlu1 %v2138_v47 }
 0x83e   : > { %2136 = vmax.xlane.f32.xlu0 %v2135_v48 }
 0x852   : > { %2175 = vrot.lane.b32.xlu0 %v4174_v31, %s3666_s11 }
 0x854   : > { %2171 = vrot.lane.b32.xlu1 %v4172_v36, %s3666_s11 }
 0x85b   : > { %v2030_v27 = vpop.xlane.xlu2 %2029 }
 0x85c   : > { %3571 = vrcp.f32 %v2030_v27 }
 0x862   : > { %v3572_v38 = vpop.eup %3571 }
 0x863   : > { %v2040_v49 = vmul.f32 %v3572_v38, %v3566_v13  ;;  %v2327_v5 = vpop.permute.xlu2 %2326  ;;  %v2033_v50 = vpop.xlane.xlu0 %2032 }
 0x864   : > { %v2339_v52 = vsel %vm1225_vm4, %v2327_v5, 0  ;;  %3573 = vrcp.f32 %v2033_v50 }
 0x865   : > { %2043 = vst.msk [vmem:[%s4250_s15] sm:$0xff] %vm1090_vm0, %v2040_v49  ;;  %2354 = vmatpush.bf16.xpose.msrb.mxu0 %v2339_v52 }
 0x86a   : > { %v3574_v56 = vpop.eup %3573 }
 0x86b   : > { %v2041_v53 = vmul.f32 %v3574_v56, %v3568_v24  ;;  %v2036_v59 = vpop.xlane.xlu1 %2035  ;;  %v2207_v6 = vpop.permute.xlu2 %2206 }
 0x86c   : > { %3575 = vrcp.f32 %v2036_v59 }
 0x86d   : > { %2044 = vst.msk [vmem:[%s4250_s15 + $0x8] sm:$0xff] %vm1090_vm0, %v2041_v53  ;;  %v2046_v60 = vpack.c.bf16 %v2041_v53, %v2040_v49 }
 0x86f   : > { %3281 = vmatmul.msk.bf16.vlgmr.msrb.gmra.mxu3 %vm1090_vm0, %v2046_v60 }
 0x872   : > { %v3576_v58 = vpop.eup %3575 }
 0x873   : > { %v2042_v61 = vmul.f32 %v3576_v58, %v3570_v28 }
 0x875   : > { %2045 = vst.msk [vmem:[%s4250_s15 + $0x10] sm:$0x1f] %vm1123_vm1, %v2042_v61  ;;  %v2047_v2 = vpack.c.bf16 %v2042_v61, %v2042_v61 }
 0x876   : > { %v2209_v63 = vpop.permute.xlu0 %2208 }
 0x877   : > { %v2221_v0 = vsel %vm1225_vm4, %v2209_v63, 0 }
 0x878   : > { %2236 = vmatpush.bf16.xpose.msra.mxu3 %v2221_v0 }
 0x87e   : > { %v2205_v4 = vpop.permute.xlu0 %2204 }
 0x87f   : > { %3282 = vmatmul.msk.bf16.gmra.mxu3 %vm1090_vm0, %v2047_v2 }
 0x883   : > { %v2323_v3 = vpop.permute.xlu1 %2322 }
 0x884   : > { %3297 = vmatmul.msk.bf16.vlgmr.msrb.gmra.mxu0 %vm1225_vm4, %v2323_v3 }
 0x886   : > { %v2325_v8 = vpop.permute.xlu0 %2324 }
 0x88f   : > { %3290 = vmatmul.msk.bf16.vlgmr.msra.gmra.mxu3 %vm1225_vm4, %v2205_v4 }
 0x894   : > { %3298 = vmatmul.msk.bf16.gmra.mxu0 %vm1225_vm4, %v2325_v8 }
 0x89f   : > { %3291 = vmatmul.msk.bf16.gmra.mxu3 %vm1225_vm4, %v2207_v6 }
 0x8a4   : > { %v2134_v33 = vpop.xlane.xlu2 %2133 }
 0x8a5   : > { %v2141_v43 = vsub.f32 %v4238_v42, %v2134_v33 }
 0x8ae   : > { %v2140_v39 = vpop.xlane.xlu1 %2139 }
 0x8af   : > { %v2143_v16 = vsub.f32 %v2131_v44, %v2140_v39 }
 0x8b1   : > { %v2137_v9 = vpop.xlane.xlu0 %2136  ;;  %v2148_v51 = vmul.f32 1.442695, %v2143_v16 }
 0x8b2   : > { %v2142_v54 = vsub.f32 %v2130_v45, %v2137_v9  ;;  %v2144_v45 = vmul.f32 1.442695, %v2141_v43 }
 0x8b4   : > { %v2146_v30 = vmul.f32 1.442695, %v2142_v54 }
 0x8b6   : > { %3577 = vpow2.f32 %v2146_v30 }
 0x8b7   : > { %3579 = vpow2.f32 %v2148_v51 }
 0x8bc   : > { %v3578_v11 = vpop.eup %3577 }
 0x8bd   : > { %v2153_v7 = vsel %vm1090_vm0, %v3578_v11, 0.0  ;;  %v3580_v22 = vpop.eup %3579 }
 0x8be   : > { %2154 = vadd.xlane.f32.xlu1 %v2153_v7  ;;  %v2156_v25 = vsel %vm1123_vm1, %v3580_v22, 0.0 }
 0x8c4   : > { %v2176_v46 = vpop.permute.xlu0 %2175 }
 0x8c5   : > { %2191 = vmatpush.bf16.msra.mxu2 %v2176_v46 }
 0x8c6   : > { %v2172_v40 = vpop.permute.xlu1 %2171 }
 0x8f2   : > { %v4267_v10 = vpop.f32.mrf.mxu3 }
 0x8fa   : > { %v4269_v15 = vpop.f32.mrf.mxu3 }
 0x901   : > { %v2356_v62 = vpop.f32.mrf.mxu0 }
 0x902   : > { %v2365_v57 = vmul.f32 0.28867513, %v2356_v62  ;;  %v4271_v17 = vpop.f32.mrf.mxu3 }
 0x904   : > { %v2368_v18 = vsel %vm1090_vm0, %v2365_v57, -inf }
 0x905   : > { %2369 = vmax.xlane.f32.xlu2 %v2368_v18 }
 0x909   : > { %v2358_v13 = vpop.f32.mrf.mxu0 }
 0x90a   : > { %v2366_v55 = vmul.f32 0.28867513, %v2358_v13  ;;  %v2082_v20 = vpop.f32.mrf.mxu3 }
 0x90c   : > { %v2371_v21 = vsel %vm1090_vm0, %v2366_v55, -inf }
 0x90d   : > { %2372 = vmax.xlane.f32.xlu0 %v2371_v21 }
 0x911   : > { %v2361_v24 = vpop.f32.mrf.mxu0 }
 0x912   : > { %v2238_v1 = vpop.f32.mrf.mxu3  ;;  %v4294_v0 = vmul.f32 0.28867513, %v2361_v24 }
 0x913   : > { %v2247_v59 = vmul.f32 0.28867513, %v2238_v1 }
 0x914   : > { %v2374_v8 = vsel %vm1123_vm1, %v4294_v0, -inf }
 0x915   : > { %2157 = vadd.xlane.f32.xlu0 %v2156_v25  ;;  %v2250_v58 = vsel %vm1090_vm0, %v2247_v59, -inf }
 0x919   : > { %v2363_v28 = vpop.f32.mrf.mxu0 }
 0x91a   : > { %v2240_v29 = vpop.f32.mrf.mxu3 }
 0x91b   : > { %v2248_v32 = vmul.f32 0.28867513, %v2240_v29 }
 0x91d   : > { %2173 = vrot.lane.b32.xlu2 %v4160_v19, %s3666_s11  ;;  %v2253_v35 = vsel %vm1090_vm0, %v2248_v32, -inf  ;;  %s4463_s11 = smov 24  }
 0x91e   : > { %2254 = vmax.xlane.f32.xlu0 %v2253_v35 }
 0x922   : > { %v2243_v37 = vpop.f32.mrf.mxu3 }
 0x923   : > { %v2249_v9 = vmul.f32 0.28867513, %v2243_v37 }
 0x925   : > { %v2256_v54 = vsel %vm1123_vm1, %v2249_v9, -inf }
 0x92a   : > { %v2245_v23 = vpop.f32.mrf.mxu3 }
 0x931   : > { %v2155_v41 = vpop.xlane.xlu1 %2154 }
 0x932   : > { %3581 = vrcp.f32 %v2155_v41  ;;  %2411 = vrot.lane.b32.xlu0 %v4174_v31, %s3669_s18 }
 0x933   : > { %3583 = vpow2.f32 %v2144_v45 }
 0x938   : > { %v3582_v44 = vpop.eup %3581 }
 0x939   : > { %v2163_v47 = vmul.f32 %v3582_v44, %v3578_v11  ;;  %v3584_v48 = vpop.eup %3583 }
 0x93a   : > { %2293 = vrot.lane.b32.xlu0 %v4174_v31, %s3668_s16  ;;  %v2150_v27 = vsel %vm1090_vm0, %v3584_v48, 0.0 }
 0x93b   : > { %3286 = vst.msk [vmem:[%s4250_s15 + $0x20] sm:$0xff] %vm1090_vm0, %v2163_v47 }
 0x942   : > { %2407 = vrot.lane.b32.xlu0 %v4172_v36, %s3669_s18 }
 0x946   : > { %2151 = vadd.xlane.f32.xlu2 %v2150_v27 }
 0x94a   : > { %2289 = vrot.lane.b32.xlu0 %v4172_v36, %s3668_s16 }
 0x978   : > { %v2370_v42 = vpop.xlane.xlu2 %2369 }
 0x979   : > { %v2377_v38 = vsub.f32 %v2365_v57, %v2370_v42 }
 0x97b   : > { %v2380_v49 = vmul.f32 1.442695, %v2377_v38 }
 0x97d   : > { %3585 = vpow2.f32 %v2380_v49 }
 0x980   : > { %v2174_v5 = vpop.permute.xlu2 %2173  ;;  %v2373_v50 = vpop.xlane.xlu0 %2372 }
 0x981   : > { %v2378_v31 = vsub.f32 %v2366_v55, %v2373_v50  ;;  %2192 = vmatpush.bf16.msra.mxu2 %v2174_v5 }
 0x983   : > { %v3586_v52 = vpop.eup %3585  ;;  %v2382_v56 = vmul.f32 1.442695, %v2378_v31 }
 0x984   : > { %v2386_v53 = vsel %vm1090_vm0, %v3586_v52, 0.0 }
 0x985   : > { %3587 = vpow2.f32 %v2382_v56  ;;  %2387 = vadd.xlane.f32.xlu2 %v2386_v53  ;;  %2193 = vmatpush.bf16.msra.mxu2 %v2172_v40 }
 0x988   : > { %v2158_v60 = vpop.xlane.xlu0 %2157 }
 0x989   : > { %3589 = vrcp.f32 %v2158_v60 }
 0x98b   : > { %v3588_v36 = vpop.eup %3587 }
 0x98c   : > { %v2389_v61 = vsel %vm1090_vm0, %v3588_v36, 0.0 }
 0x98d   : > { %2251 = vmax.xlane.f32.xlu2 %v2250_v58  ;;  %2390 = vadd.xlane.f32.xlu1 %v2389_v61 }
 0x98f   : > { %v3590_v63 = vpop.eup %3589 }
 0x990   : > { %v2164_v2 = vmul.f32 %v3590_v63, %v3580_v22 }
 0x991   : > { %v2255_v3 = vpop.xlane.xlu0 %2254 }
 0x992   : > { %3287 = vst.msk [vmem:[%s4250_s15 + $0x28] sm:$0x1f] %vm1123_vm1, %v2164_v2  ;;  %v2260_v4 = vsub.f32 %v2248_v32, %v2255_v3  ;;  %v2170_v18 = vpack.c.bf16 %v2164_v2, %v2164_v2 }
 0x994   : > { %v2264_v6 = vmul.f32 1.442695, %v2260_v4 }
 0x995   : > { %2375 = vmax.xlane.f32.xlu2 %v2374_v8 }
 0x996   : > { %3591 = vpow2.f32 %v2264_v6 }
 0x99c   : > { %v3592_v30 = vpop.eup %3591 }
 0x99d   : > { %2257 = vmax.xlane.f32.xlu2 %v2256_v54  ;;  %v2271_v7 = vsel %vm1090_vm0, %v3592_v30, 0.0 }
 0x9a4   : > { %v2412_v11 = vpop.permute.xlu0 %2411 }
 0x9a5   : > { %2272 = vadd.xlane.f32.xlu2 %v2271_v7  ;;  %2427 = vmatpush.bf16.msrb.mxu2 %v2412_v11 }
 0x9ac   : > { %v2294_v46 = vpop.permute.xlu0 %2293 }
 0x9ad   : > { %2309 = vmatpush.bf16.msrb.mxu1 %v2294_v46 }
 0x9b4   : > { %v2408_v41 = vpop.permute.xlu0 %2407 }
 0x9b9   : > { %v2152_v39 = vpop.xlane.xlu2 %2151 }
 0x9ba   : > { %3593 = vrcp.f32 %v2152_v39 }
 0x9bc   : > { %v2290_v27 = vpop.permute.xlu0 %2289 }
 0x9bd   : > { %2291 = vrot.lane.b32.xlu2 %v4160_v19, %s3668_s16  ;;  %s4464_s16 = smov 36  }
 0x9c0   : > { %v3594_v62 = vpop.eup %3593 }
 0x9c1   : > { %v2162_v57 = vmul.f32 %v3594_v62, %v3584_v48 }
 0x9c3   : > { %3285 = vst.msk [vmem:[%s4250_s15 + $0x18] sm:$0xff] %vm1090_vm0, %v2162_v57  ;;  %v2169_v16 = vpack.c.bf16 %v2163_v47, %v2162_v57  ;;  %v3391_v57 = vld [vmem:[%s4462_s1 + $0x10] sm:$0xff] }
 0x9c4   : > { %2526 = vmatpush.bf16.msrb.mxu3 %v3391_v57 }
 0x9c5   : > { %3288 = vmatmul.msk.bf16.vlgmr.msra.gmra.mxu2 %vm1090_vm0, %v2169_v16 }
 0x9d5   : > { %3289 = vmatmul.msk.bf16.gmra.mxu2 %vm1090_vm0, %v2170_v18  ;;  %v3390_v18 = vld [vmem:[%s4462_s1 + $0x8] sm:$0xff] }
 0x9d6   : > { %2527 = vmatpush.bf16.msrb.mxu3 %v3390_v18 }
 0x9f8   : > { %v2388_v51 = vpop.xlane.xlu2 %2387 }
 0x9f9   : > { %3595 = vrcp.f32 %v2388_v51 }
 0x9ff   : > { %v3596_v13 = vpop.eup %3595 }
 0xa00   : > { %v4308_v55 = vmul.f32 %v3596_v13, %v3586_v52  ;;  %v2252_v20 = vpop.xlane.xlu2 %2251  ;;  %v2391_v21 = vpop.xlane.xlu1 %2390  ;;  %v3389_v13 = vld [vmem:[%s4462_s1] sm:$0xff] }
 0xa01   : > { %v2259_v22 = vsub.f32 %v2247_v59, %v2252_v20  ;;  %3597 = vrcp.f32 %v2391_v21  ;;  %2528 = vmatpush.bf16.msrb.mxu3 %v3389_v13 }
 0xa02   : > { %3299 = vst.msk [vmem:[%s4250_s15 + $0x48] sm:$0xff] %vm1090_vm0, %v4308_v55 }
 0xa03   : > { %v2262_v24 = vmul.f32 1.442695, %v2259_v22 }
 0xa05   : > { %3599 = vpow2.f32 %v2262_v24 }
 0xa07   : > { %v3598_v1 = vpop.eup %3597 }
 0xa08   : > { %v2399_v25 = vmul.f32 %v3598_v1, %v3588_v36  ;;  %v2376_v28 = vpop.xlane.xlu2 %2375 }
 0xa09   : > { %v2379_v42 = vsub.f32 %v4294_v0, %v2376_v28 }
 0xa0a   : > { %3300 = vst.msk [vmem:[%s4250_s15 + $0x50] sm:$0xff] %vm1090_vm0, %v2399_v25  ;;  %v2405_v29 = vpack.c.bf16 %v2399_v25, %v4308_v55 }
 0xa0b   : > { %v3600_v32 = vpop.eup %3599  ;;  %v2384_v38 = vmul.f32 1.442695, %v2379_v42 }
 0xa0c   : > { %v2268_v35 = vsel %vm1090_vm0, %v3600_v32, 0.0 }
 0xa0d   : > { %2269 = vadd.xlane.f32.xlu1 %v2268_v35 }
 0xa10   : > { %v2258_v37 = vpop.xlane.xlu2 %2257 }
 0xa11   : > { %v2261_v40 = vsub.f32 %v2249_v9, %v2258_v37 }
 0xa13   : > { %v2266_v23 = vmul.f32 1.442695, %v2261_v40 }
 0xa15   : > { %3601 = vpow2.f32 %v2266_v23 }
 0xa18   : > { %v2273_v33 = vpop.xlane.xlu2 %2272 }
 0xa19   : > { %3603 = vrcp.f32 %v2273_v33 }
 0xa1a   : > { %3605 = vpow2.f32 %v2384_v38 }
 0xa1b   : > { %v3602_v43 = vpop.eup %3601 }
 0xa1c   : > { %v2274_v44 = vsel %vm1123_vm1, %v3602_v43, 0.0 }
 0xa1d   : > { %2275 = vadd.xlane.f32.xlu0 %v2274_v44 }
 0xa1f   : > { %v3604_v45 = vpop.eup %3603 }
 0xa20   : > { %v2281_v47 = vmul.f32 %v3604_v45, %v3592_v30  ;;  %v2292_v48 = vpop.permute.xlu2 %2291  ;;  %v3606_v5 = vpop.eup %3605 }
 0xa21   : > { %2310 = vmatpush.bf16.msrb.mxu1 %v2292_v48  ;;  %v2392_v50 = vsel %vm1123_vm1, %v3606_v5, 0.0 }
 0xa22   : > { %3293 = vst.msk [vmem:[%s4250_s15 + $0x38] sm:$0xff] %vm1090_vm0, %v2281_v47 }
 0xa25   : > { %2311 = vmatpush.bf16.msrb.mxu1 %v2290_v27 }
 0xa26   : > { %2409 = vrot.lane.b32.xlu1 %v4160_v19, %s3669_s18  ;;  %s4465_s18 = sld [smem:[#allocation4_spill]] }
 0xa2c   : > { %v3500_v27 = vld [vmem:[%s4465_s18] ss:$0 sm:$0xff]  ;;  %s4474_s18 = sld [smem:[#allocation12_spill]] }
 0xa48   : > { %v2195_v49 = vpop.f32.mrf.mxu2 }
 0xa50   : > { %v2197_v31 = vpop.f32.mrf.mxu2  ;;  %2393 = vadd.xlane.f32.xlu1 %v2392_v50 }
 0xa51   : > { %v3479_v52 = vpack.i.bf16 %v2197_v31, %v2195_v49 }
 0xa53   : > { %3480 = vrot.lane.b32.xlu2 %v3479_v52, %s3677_s2 }
 0xa58   : > { %v2200_v56 = vpop.f32.mrf.mxu2 }
 0xa60   : > { %v2202_v53 = vpop.f32.mrf.mxu2 }
 0xa80   : > { %v2270_v59 = vpop.xlane.xlu1 %2269 }
 0xa81   : > { %3607 = vrcp.f32 %v2270_v59 }
 0xa87   : > { %v3608_v19 = vpop.eup %3607 }
 0xa88   : > { %v2280_v60 = vmul.f32 %v3608_v19, %v3600_v32 }
 0xa8a   : > { %3292 = vst.msk [vmem:[%s4250_s15 + $0x30] sm:$0xff] %vm1090_vm0, %v2280_v60  ;;  %v2287_v36 = vpack.c.bf16 %v2281_v47, %v2280_v60 }
 0xa8c   : > { %3295 = vmatmul.msk.bf16.vlgmr.msrb.gmra.mxu1 %vm1090_vm0, %v2287_v36 }
 0xa90   : > { %v2276_v58 = vpop.xlane.xlu0 %2275 }
 0xa91   : > { %3609 = vrcp.f32 %v2276_v58 }
 0xa97   : > { %v3610_v61 = vpop.eup %3609 }
 0xa98   : > { %v2410_v63 = vpop.permute.xlu1 %2409  ;;  %v2282_v0 = vmul.f32 %v3610_v61, %v3602_v43 }
 0xa99   : > { %2428 = vmatpush.bf16.msrb.mxu2 %v2410_v63 }
 0xa9a   : > { %3294 = vst.msk [vmem:[%s4250_s15 + $0x40] sm:$0x1f] %vm1123_vm1, %v2282_v0  ;;  %v2288_v2 = vpack.c.bf16 %v2282_v0, %v2282_v0 }
 0xa9c   : > { %3296 = vmatmul.msk.bf16.gmra.mxu1 %vm1090_vm0, %v2288_v2 }
 0xa9d   : > { %2429 = vmatpush.bf16.msrb.mxu2 %v2408_v41 }
 0xaa0   : > { %3302 = vmatmul.msk.bf16.vlgmr.msrb.gmra.mxu2 %vm1090_vm0, %v2405_v29 }
 0xaad   : > { %v3481_v55 = vpop.permute.xlu2 %3480 }
 0xaae   : > { %v3483_v21 = vunpack.i.h.bf16 %v3481_v55  ;;  %v3482_v22 = vunpack.i.l.bf16 %v3481_v55 }
 0xab0   : > { %v2477_v28 = vsel %vm1225_vm4, %v4269_v15, %v3483_v21  ;;  %v2476_v29 = vsel %vm1225_vm4, %v4267_v10, %v3482_v22 }
 0xac3   : > { %v2394_v3 = vpop.xlane.xlu1 %2393 }
 0xac4   : > { %3611 = vrcp.f32 %v2394_v3 }
 0xaca   : > { %v3612_v4 = vpop.eup %3611 }
 0xacb   : > { %v2400_v8 = vmul.f32 %v3612_v4, %v3606_v5 }
 0xacd   : > { %3301 = vst.msk [vmem:[%s4250_s15 + $0x58] sm:$0x1f] %vm1123_vm1, %v2400_v8  ;;  %v2406_v6 = vpack.c.bf16 %v2400_v8, %v2400_v8  ;;  %s4471_s15 = sld [smem:[#allocation10_spill]] }
 0xacf   : > { %3303 = vmatmul.msk.bf16.gmra.mxu2 %vm1090_vm0, %v2406_v6 }
 0xb09   : > { %v2313_v9 = vpop.f32.mrf.mxu1 }
 0xb11   : > { %v2315_v54 = vpop.f32.mrf.mxu1 }
 0xb12   : > { %v3484_v30 = vpack.i.bf16 %v2315_v54, %v2313_v9 }
 0xb14   : > { %3485 = vrot.lane.b32.xlu2 %v3484_v30, %s4463_s11  ;;  %v3394_v30 = vld [vmem:[%s4466_s23 + $0x10] sm:$0xff] }
 0xb15   : > { %2666 = vmatpush.bf16.msra.mxu1 %v3394_v30  ;;  %v3504_v30 = vld [vmem:[%s4471_s15] ss:$0 sm:$0xff]  ;;  %s1055_s15 = scalar_lea.vmem %s3849_s24, %s3864_s0 }
 0xb19   : > { %v2318_v11 = vpop.f32.mrf.mxu1 }
 0xb1a   : > { %2459 = vrot.lane.b32.xlu1 %v2318_v11, %s4463_s11  ;;  %v3393_v11 = vld [vmem:[%s4466_s23 + $0x8] sm:$0xff]  ;;  %s4472_s11 = sld [smem:[#allocation13_spill]] }
 0xb1b   : > { %2667 = vmatpush.bf16.msra.mxu1 %v3393_v11 }
 0xb21   : > { %v2320_v7 = vpop.f32.mrf.mxu1 }
 0xb23   : > { %v2431_v46 = vpop.f32.mrf.mxu2 }
 0xb2b   : > { %v2433_v39 = vpop.f32.mrf.mxu2 }
 0xb2c   : > { %v3489_v62 = vpack.i.bf16 %v2433_v39, %v2431_v46 }
 0xb2e   : > { %3490 = vrot.lane.b32.xlu2 %v3489_v62, %s4464_s16  ;;  %v3392_v62 = vld [vmem:[%s4466_s23] sm:$0xff] }
 0xb2f   : > { %2668 = vmatpush.bf16.msra.mxu1 %v3392_v62 }
 0xb36   : > { %2447 = vrot.lane.b32.xlu2 %v2200_v56, %s3677_s2  ;;  %s4467_s2 = sld [smem:[#allocation5_spill]] }
 0xb52   : > { %v2436_v16 = vpop.f32.mrf.mxu2 }
 0xb53   : > { %2471 = vrot.lane.b32.xlu0 %v2436_v16, %s4464_s16  ;;  %s4473_s16 = sld [smem:[#allocation11_spill]] }
 0xb5a   : > { %v2438_v51 = vpop.f32.mrf.mxu2 }
 0xb6e   : > { %v3486_v20 = vpop.permute.xlu2 %3485 }
 0xb6f   : > { %v3488_v24 = vunpack.i.h.bf16 %v3486_v20  ;;  %v3487_v1 = vunpack.i.l.bf16 %v3486_v20 }
 0xb71   : > { %v2480_v37 = vsel %vm1706_vm8, %v2477_v28, %v3488_v24  ;;  %v2479_v40 = vsel %vm1706_vm8, %v2476_v29, %v3487_v1 }
 0xb88   : > { %v3491_v25 = vpop.permute.xlu2 %3490 }
 0xb89   : > { %v3493_v32 = vunpack.i.h.bf16 %v3491_v25  ;;  %v3492_v35 = vunpack.i.l.bf16 %v3491_v25 }
 0xb8b   : > { %v2482_v23 = vsel %vm1710_vm9, %v2479_v40, %v3492_v35  ;;  %v2483_v33 = vsel %vm1710_vm9, %v2480_v37, %v3493_v32  ;;  %v3501_v35 = vld [vmem:[%s4467_s2] ss:$0 sm:$0xff]  ;;  %s4475_s2 = sld [smem:[#allocation15_spill]] }
 0xb8c   : > { %v2491_v41 = vpack.c.bf16 %v2483_v33, %v2482_v23  ;;  %v2460_v43 = vpop.permute.xlu1 %2459  ;;  %v3502_v33 = vld [vmem:[%s4468_s26] ss:$0 sm:$0xff]  ;;  %s4476_s26 = sld [smem:[#allocation14_spill]] }
 0xb8e   : > { %3316 = vmatmul.msk.bf16.vlgmr.msrb.gmra.mxu3 %vm1090_vm0, %v2491_v41 }
 0xb90   : > { %v2448_v15 = vpop.permute.xlu2 %2447 }
 0xb91   : > { %v2478_v10 = vsel %vm1225_vm4, %v4271_v17, %v2448_v15 }
 0xb92   : > { %v2481_v44 = vsel %vm1706_vm8, %v2478_v10, %v2460_v43 }
 0xbc5   : > { %v2472_v45 = vpop.permute.xlu0 %2471 }
 0xbc6   : > { %v2484_v47 = vsel %vm1710_vm9, %v2481_v44, %v2472_v45 }
 0xbc7   : > { %v2492_v48 = vpack.c.bf16 %v2484_v47, %v2484_v47 }
 0xbc9   : > { %3317 = vmatmul.msk.bf16.gmra.mxu3 %vm1090_vm0, %v2492_v48 }
 0xc11   : > { %v2530_v42 = vpop.f32.mrf.mxu3 }
 0xc12   : > { %v2531_v38 = vadd.f32 %v3500_v27, %v2530_v42 }
 0xc14   : > { %2539 = vst.msk [vmem:[%s1045_s22] sm:$0xff] %vm1090_vm0, %v2531_v38  ;;  %v2542_v49 = vadd.f32 %v2531_v38, %v4152_v12 }
 0xc16   : > { %v2545_v5 = vsel %vm1090_vm0, %v2542_v49, 0.0 }
 0xc17   : > { %2546 = vadd.xlane.f32.xlu2 %v2545_v5 }
 0xc19   : > { %v2532_v17 = vpop.f32.mrf.mxu3 }
 0xc1a   : > { %v2533_v50 = vadd.f32 %v3500_v27, %v2532_v17 }
 0xc1c   : > { %2540 = vst.msk [vmem:[%s1045_s22 + $0x8] sm:$0xff] %vm1090_vm0, %v2533_v50  ;;  %v2543_v31 = vadd.f32 %v2533_v50, %v4154_v34 }
 0xc1e   : > { %v2548_v52 = vsel %vm1090_vm0, %v2543_v31, 0.0 }
 0xc1f   : > { %2549 = vadd.xlane.f32.xlu0 %v2548_v52 }
 0xc4c   : > { %v2535_v56 = vpop.f32.mrf.mxu3 }
 0xc4d   : > { %v2536_v53 = vadd.f32 %v3500_v27, %v2535_v56 }
 0xc4f   : > { %2541 = vst.msk [vmem:[%s1045_s22 + $0x10] sm:$0x1f] %vm1123_vm1, %v2536_v53  ;;  %v2544_v59 = vadd.f32 %v2536_v53, %v4165_v26  ;;  %s1040_s22 = scalar_lea.vmem %s3834_s4, %s3864_s0 }
 0xc51   : > { %v2551_v12 = vsel %vm1123_vm1, %v2544_v59, 0.0 }
 0xc52   : > { %2552 = vadd.xlane.f32.xlu1 %v2551_v12  ;;  %v3398_v12 = vld [vmem:[%s4469_s7 + $0x18] sm:$0xff] }
 0xc53   : > { %2731 = vmatpush.bf16.msra.mxu0 %v3398_v12  ;;  %v3505_v12 = vld [vmem:[%s4473_s16] ss:$0 sm:$0xff] }
 0xc54   : > { %v2537_v19 = vpop.f32.mrf.mxu3 }
 0xc55   : > { %v3397_v19 = vld [vmem:[%s4469_s7 + $0x10] sm:$0xff] }
 0xc57   : > { %2732 = vmatpush.bf16.msra.mxu0 %v3397_v19 }
 0xc8a   : > { %v2547_v60 = vpop.xlane.xlu2 %2546 }
 0xc8b   : > { %v2554_v36 = vmul.f32 %v2547_v60, %v4120_v14  ;;  %v3396_v60 = vld [vmem:[%s4469_s7 + $0x8] sm:$0xff] }
 0xc8c   : > { %2733 = vmatpush.bf16.msra.mxu0 %v3396_v60 }
 0xc8d   : > { %v2557_v58 = vsub.f32 %v2542_v49, %v2554_v36  ;;  %v3395_v36 = vld [vmem:[%s4469_s7] sm:$0xff] }
 0xc8f   : > { %v2560_v61 = vmul.f32 %v2557_v58, %v2557_v58 }
 0xc90   : > { %2734 = vmatpush.bf16.msra.mxu0 %v3395_v36  ;;  %v3506_v36 = vld [vmem:[%s4474_s18] ss:$0 sm:$0xff] }
 0xc91   : > { %v2563_v34 = vsel %vm1090_vm0, %v2560_v61, 0.0  ;;  %v3503_v61 = vld [vmem:[%s4470_s10] ss:$0 sm:$0xff]  ;;  %s4477_s10 = sld [smem:[#allocation16_spill]] }
 0xc92   : > { %2564 = vadd.xlane.f32.xlu2 %v2563_v34  ;;  %v2550_v63 = vpop.xlane.xlu0 %2549 }
 0xc93   : > { %v2555_v0 = vmul.f32 %v2550_v63, %v4120_v14 }
 0xc95   : > { %v2558_v2 = vsub.f32 %v2543_v31, %v2555_v0 }
 0xc97   : > { %v2561_v3 = vmul.f32 %v2558_v2, %v2558_v2 }
 0xc99   : > { %v2566_v26 = vsel %vm1090_vm0, %v2561_v3, 0.0 }
 0xc9a   : > { %2567 = vadd.xlane.f32.xlu2 %v2566_v26 }
 0xcc5   : > { %v2553_v4 = vpop.xlane.xlu1 %2552 }
 0xcc6   : > { %v2556_v8 = vmul.f32 %v2553_v4, %v4120_v14 }
 0xcc8   : > { %v4374_v6 = vsub.f32 %v2544_v59, %v2556_v8 }
 0xcca   : > { %v2562_v9 = vmul.f32 %v4374_v6, %v4374_v6 }
 0xccc   : > { %v2569_v54 = vsel %vm1123_vm1, %v2562_v9, 0.0 }
 0xccd   : > { %2570 = vadd.xlane.f32.xlu2 %v2569_v54 }
 0xd05   : > { %v2565_v7 = vpop.xlane.xlu2 %2564 }
 0xd06   : > { %v2572_v46 = vmul.f32 %v2565_v7, %v4120_v14 }
 0xd08   : > { %v2575_v39 = vadd.f32 1e-05, %v2572_v46 }
 0xd0a   : > { %3613 = vrsqrt.f32 %v2575_v39  ;;  %vm2584_vm9 = vweird.f32 %v2575_v39 }
 0xd0d   : > { %v2568_v57 = vpop.xlane.xlu2 %2567 }
 0xd0e   : > { %v2573_v16 = vmul.f32 %v2568_v57, %v4120_v14 }
 0xd10   : > { %v3614_v18 = vpop.eup %3613  ;;  %v2576_v51 = vadd.f32 1e-05, %v2573_v16 }
 0xd11   : > { %v2579_v13 = vmul.f32 %v3614_v18, %v2575_v39  ;;  %vm2585_vm4 = vweird.f32 %v3614_v18 }
 0xd12   : > { %3615 = vrsqrt.f32 %v2576_v51  ;;  %vm2586_vm10 = vmor %vm2584_vm9, %vm2585_vm4  ;;  %vm2594_vm12 = vweird.f32 %v2576_v51 }
 0xd13   : > { %v2580_v55 = vmul.f32 %v3614_v18, %v2579_v13 }
 0xd15   : > { %v2581_v20 = vmul.f32 0.5, %v2580_v55 }
 0xd17   : > { %v2582_v21 = vsub.f32 1.5, %v2581_v20 }
 0xd18   : > { %v3616_v22 = vpop.eup %3615 }
 0xd19   : > { %v2583_v24 = vmul.f32 %v3614_v18, %v2582_v21  ;;  %v2589_v1 = vmul.f32 %v3616_v22, %v2576_v51  ;;  %vm2595_vm11 = vweird.f32 %v3616_v22 }
 0xd1a   : > { %vm2596_vm13 = vmor %vm2594_vm12, %vm2595_vm11 }
 0xd1b   : > { %v2590_v25 = vmul.f32 %v3616_v22, %v2589_v1  ;;  %v2587_v28 = vsel %vm2586_vm10, %v3614_v18, %v2583_v24 }
 0xd1c   : > { %v2608_v37 = vmul.f32 %v2587_v28, %v2557_v58 }
 0xd1d   : > { %v2591_v29 = vmul.f32 0.5, %v2590_v25 }
 0xd1e   : > { %v2615_v41 = vmul.f32 %v3501_v35, %v2608_v37 }
 0xd1f   : > { %v2592_v32 = vsub.f32 1.5, %v2591_v29 }
 0xd20   : > { %v2622_v43 = vadd.f32 %v3502_v33, %v2615_v41 }
 0xd21   : > { %v2593_v40 = vmul.f32 %v3616_v22, %v2592_v32 }
 0xd23   : > { %v2597_v23 = vsel %vm2596_vm13, %v3616_v22, %v2593_v40 }
 0xd24   : > { %v2609_v15 = vmul.f32 %v2597_v23, %v2558_v2 }
 0xd26   : > { %v2616_v10 = vmul.f32 %v3501_v35, %v2609_v15 }
 0xd28   : > { %v2623_v44 = vadd.f32 %v3502_v33, %v2616_v10 }
 0xd2a   : > { %v2631_v45 = vpack.c.bf16 %v2623_v44, %v2622_v43 }
 0xd2c   : > { %3330 = vmatmul.msk.bf16.vlgmr.msra.gmra.mxu1 %vm1090_vm0, %v2631_v45 }
 0xd40   : > { %v2571_v47 = vpop.xlane.xlu2 %2570 }
 0xd41   : > { %v2574_v48 = vmul.f32 %v2571_v47, %v4120_v14 }
 0xd43   : > { %v2577_v27 = vadd.f32 1e-05, %v2574_v48 }
 0xd45   : > { %3617 = vrsqrt.f32 %v2577_v27  ;;  %vm2604_vm15 = vweird.f32 %v2577_v27 }
 0xd4b   : > { %v3618_v42 = vpop.eup %3617 }
 0xd4c   : > { %v2599_v38 = vmul.f32 %v3618_v42, %v2577_v27  ;;  %vm2605_vm14 = vweird.f32 %v3618_v42  ;;  %v3399_v27 = vld [vmem:[%s4472_s11] sm:$0xff] }
 0xd4d   : > { %vm2606_vm2 = vmor %vm2604_vm15, %vm2605_vm14  ;;  %vm2912_vm14 = vcmask 1043456  }
 0xd4e   : > { %v2600_v49 = vmul.f32 %v3618_v42, %v2599_v38 }
 0xd50   : > { %v2601_v5 = vmul.f32 0.5, %v2600_v49 }
 0xd52   : > { %v2602_v17 = vsub.f32 1.5, %v2601_v5 }
 0xd54   : > { %v2603_v50 = vmul.f32 %v3618_v42, %v2602_v17 }
 0xd56   : > { %v2607_v31 = vsel %vm2606_vm2, %v3618_v42, %v2603_v50 }
 0xd57   : > { %v2610_v52 = vmul.f32 %v2607_v31, %v4374_v6 }
 0xd59   : > { %v2617_v56 = vmul.f32 %v3501_v35, %v2610_v52 }
 0xd5b   : > { %v2624_v53 = vadd.f32 %v3502_v33, %v2617_v56 }
 0xd5d   : > { %v2632_v59 = vpack.c.bf16 %v2624_v53, %v2624_v53 }
 0xd5f   : > { %3331 = vmatmul.msk.bf16.gmra.mxu1 %vm1090_vm0, %v2632_v59 }
 0xda9   : > { %v2670_v58 = vpop.f32.mrf.mxu1 }
 0xdaa   : > { %v2671_v34 = vadd.f32 %v3503_v61, %v2670_v58 }
 0xdac   : > { %v2679_v2 = vmax.f32 %v2671_v34, 0.0 }
 0xdb1   : > { %v2672_v63 = vpop.f32.mrf.mxu1 }
 0xdb2   : > { %v2673_v0 = vadd.f32 %v3503_v61, %v2672_v63 }
 0xdb4   : > { %v2680_v3 = vmax.f32 %v2673_v0, 0.0 }
 0xdb6   : > { %v2690_v26 = vpack.c.bf16 %v2680_v3, %v2679_v2 }
 0xdb8   : > { %3348 = vmatmul.msk.bf16.vlgmr.msra.gmra.mxu0 %vm2720_vm3, %v2690_v26 }
 0xddc   : > { %v2675_v4 = vpop.f32.mrf.mxu1 }
 0xddd   : > { %v2676_v8 = vadd.f32 %v3503_v61, %v2675_v4 }
 0xddf   : > { %v2681_v6 = vmax.f32 %v2676_v8, 0.0 }
 0xde1   : > { %v2691_v9 = vpack.c.bf16 %v2681_v6, %v2681_v6 }
 0xde3   : > { %3349 = vmatmul.msk.bf16.gmra.mxu0 %vm2720_vm3, %v2691_v9 }
 0xde4   : > { %v2677_v54 = vpop.f32.mrf.mxu1 }
 0xe35   : > { %v2736_v11 = vpop.f32.mrf.mxu0 }
 0xe36   : > { %v2737_v7 = vadd.f32 %v3504_v30, %v2736_v11 }
 0xe38   : > { %v2745_v46 = vadd.f32 %v2737_v7, %v2622_v43  ;;  %v3401_v43 = vld [vmem:[%s4472_s11 + $0x10] sm:$0xff] }
 0xe39   : > { %2872 = vmatpush.bf16.msra.mxu2 %v3401_v43  ;;  %v3508_v43 = vld [vmem:[%s4477_s10] ss:$0 sm:$0xff] }
 0xe3a   : > { %v2748_v39 = vsel %vm1090_vm0, %v2745_v46, 0.0 }
 0xe3b   : > { %2749 = vadd.xlane.f32.xlu0 %v2748_v39 }
 0xe3d   : > { %v2738_v62 = vpop.f32.mrf.mxu0 }
 0xe3e   : > { %v2739_v57 = vadd.f32 %v3504_v30, %v2738_v62 }
 0xe40   : > { %v2746_v16 = vadd.f32 %v2739_v57, %v2623_v44  ;;  %v3400_v44 = vld [vmem:[%s4472_s11 + $0x8] sm:$0xff] }
 0xe41   : > { %2873 = vmatpush.bf16.msra.mxu2 %v3400_v44 }
 0xe42   : > { %v2751_v18 = vsel %vm1090_vm0, %v2746_v16, 0.0 }
 0xe43   : > { %2752 = vadd.xlane.f32.xlu1 %v2751_v18 }
 0xe45   : > { %2874 = vmatpush.bf16.msra.mxu2 %v3399_v27 }
 0xe60   : > { %v2741_v51 = vpop.f32.mrf.mxu0 }
 0xe61   : > { %v2742_v13 = vadd.f32 %v3504_v30, %v2741_v51 }
 0xe63   : > { %v2747_v55 = vadd.f32 %v2742_v13, %v2624_v53 }
 0xe65   : > { %v2754_v20 = vsel %vm1123_vm1, %v2747_v55, 0.0 }
 0xe66   : > { %2755 = vadd.xlane.f32.xlu2 %v2754_v20 }
 0xe68   : > { %v2743_v21 = vpop.f32.mrf.mxu0 }
 0xeae   : > { %v2750_v22 = vpop.xlane.xlu0 %2749 }
 0xeaf   : > { %v2757_v24 = vmul.f32 %v2750_v22, %v4120_v14 }
 0xeb1   : > { %v2760_v1 = vsub.f32 %v2745_v46, %v2757_v24  ;;  %v3402_v24 = vld [vmem:[%s4475_s2] sm:$0xff] }
 0xeb3   : > { %v2763_v25 = vmul.f32 %v2760_v1, %v2760_v1 }
 0xeb5   : > { %v2766_v28 = vsel %vm1090_vm0, %v2763_v25, 0.0  ;;  %v3507_v25 = vld [vmem:[%s4476_s26] ss:$0 sm:$0xff] }
 0xeb6   : > { %v2753_v29 = vpop.xlane.xlu1 %2752  ;;  %2767 = vadd.xlane.f32.xlu0 %v2766_v28 }
 0xeb7   : > { %v2758_v32 = vmul.f32 %v2753_v29, %v4120_v14 }
 0xeb9   : > { %v2761_v35 = vsub.f32 %v2746_v16, %v2758_v32 }
 0xebb   : > { %v2764_v37 = vmul.f32 %v2761_v35, %v2761_v35 }
 0xebd   : > { %v2769_v40 = vsel %vm1090_vm0, %v2764_v37, 0.0 }
 0xebe   : > { %2770 = vadd.xlane.f32.xlu1 %v2769_v40 }
 0xed9   : > { %v2756_v23 = vpop.xlane.xlu2 %2755 }
 0xeda   : > { %v2759_v33 = vmul.f32 %v2756_v23, %v4120_v14 }
 0xedc   : > { %v4404_v41 = vsub.f32 %v2747_v55, %v2759_v33  ;;  %v2890_v55 = vld [vmem:[%s4475_s2 + $0x8] sm:$0xf] }
 0xedd   : > { %v2902_v20 = vunpack.c.l.b16 %v2890_v55 }
 0xede   : > { %v2765_v15 = vmul.f32 %v4404_v41, %v4404_v41 }
 0xedf   : > { %v2904_v21 = vpack.c.b16 %v2902_v20, %v2902_v20 }
 0xee0   : > { %v2772_v10 = vsel %vm1123_vm1, %v2765_v15, 0.0 }
 0xee1   : > { %2773 = vadd.xlane.f32.xlu2 %v2772_v10  ;;  %v2914_v22 = vsel %vm2912_vm14, %v2904_v21, 0 }
 0xee2   : > { %2922 = vmatpush.bf16.msra.mxu3 %v2914_v22 }
 0xee6   : > { %2923 = vmatpush.bf16.msra.mxu3 %v3402_v24 }
 0xf29   : > { %v2768_v45 = vpop.xlane.xlu0 %2767 }
 0xf2a   : > { %v2775_v47 = vmul.f32 %v2768_v45, %v4120_v14 }
 0xf2c   : > { %v2778_v48 = vadd.f32 1e-05, %v2775_v47 }
 0xf2e   : > { %3619 = vrsqrt.f32 %v2778_v48  ;;  %vm2787_vm6 = vweird.f32 %v2778_v48 }
 0xf31   : > { %v2771_v42 = vpop.xlane.xlu1 %2770 }
 0xf32   : > { %v2776_v38 = vmul.f32 %v2771_v42, %v4120_v14 }
 0xf34   : > { %v3620_v49 = vpop.eup %3619  ;;  %v2779_v5 = vadd.f32 1e-05, %v2776_v38 }
 0xf35   : > { %v2782_v17 = vmul.f32 %v3620_v49, %v2778_v48  ;;  %vm2788_vm5 = vweird.f32 %v3620_v49 }
 0xf36   : > { %3621 = vrsqrt.f32 %v2779_v5  ;;  %vm2789_vm7 = vmor %vm2787_vm6, %vm2788_vm5  ;;  %vm2797_vm9 = vweird.f32 %v2779_v5 }
 0xf37   : > { %v2783_v50 = vmul.f32 %v3620_v49, %v2782_v17 }
 0xf39   : > { %v2784_v31 = vmul.f32 0.5, %v2783_v50 }
 0xf3b   : > { %v2785_v52 = vsub.f32 1.5, %v2784_v31 }
 0xf3c   : > { %v3622_v56 = vpop.eup %3621 }
 0xf3d   : > { %v2786_v53 = vmul.f32 %v3620_v49, %v2785_v52  ;;  %v2792_v59 = vmul.f32 %v3622_v56, %v2779_v5  ;;  %vm2798_vm4 = vweird.f32 %v3622_v56 }
 0xf3e   : > { %vm2799_vm10 = vmor %vm2797_vm9, %vm2798_vm4 }
 0xf3f   : > { %v2790_v19 = vsel %vm2789_vm7, %v3620_v49, %v2786_v53  ;;  %v2793_v60 = vmul.f32 %v3622_v56, %v2792_v59 }
 0xf40   : > { %v2811_v58 = vmul.f32 %v2790_v19, %v2760_v1 }
 0xf41   : > { %v2794_v61 = vmul.f32 0.5, %v2793_v60 }
 0xf42   : > { %v2818_v34 = vmul.f32 %v3505_v12, %v2811_v58 }
 0xf43   : > { %v2795_v63 = vsub.f32 1.5, %v2794_v61 }
 0xf44   : > { %v2825_v0 = vadd.f32 %v3506_v36, %v2818_v34 }
 0xf45   : > { %v2796_v2 = vmul.f32 %v3622_v56, %v2795_v63 }
 0xf46   : > { %2828 = vst.msk [vmem:[%s1040_s22] sm:$0xff] %vm1090_vm0, %v2825_v0 }
 0xf47   : > { %v2800_v3 = vsel %vm2799_vm10, %v3622_v56, %v2796_v2 }
 0xf48   : > { %v2812_v26 = vmul.f32 %v2800_v3, %v2761_v35 }
 0xf4a   : > { %v2819_v4 = vmul.f32 %v3505_v12, %v2812_v26 }
 0xf4c   : > { %v2826_v8 = vadd.f32 %v3506_v36, %v2819_v4 }
 0xf4e   : > { %v2837_v6 = vpack.c.bf16 %v2826_v8, %v2825_v0  ;;  %2829 = vst.msk [vmem:[%s1040_s22 + $0x8] sm:$0xff] %vm1090_vm0, %v2826_v8 }
 0xf50   : > { %3362 = vmatmul.msk.bf16.vlgmr.msra.gmra.mxu2 %vm1090_vm0, %v2837_v6 }
 0xf54   : > { %v2774_v9 = vpop.xlane.xlu2 %2773 }
 0xf55   : > { %v2777_v54 = vmul.f32 %v2774_v9, %v4120_v14 }
 0xf57   : > { %v2780_v30 = vadd.f32 1e-05, %v2777_v54 }
 0xf59   : > { %3623 = vrsqrt.f32 %v2780_v30  ;;  %vm2807_vm12 = vweird.f32 %v2780_v30 }
 0xf5f   : > { %v3624_v11 = vpop.eup %3623 }
 0xf60   : > { %v2802_v7 = vmul.f32 %v3624_v11, %v2780_v30  ;;  %vm2808_vm11 = vweird.f32 %v3624_v11 }
 0xf61   : > { %vm2809_vm13 = vmor %vm2807_vm12, %vm2808_vm11 }
 0xf62   : > { %v2803_v46 = vmul.f32 %v3624_v11, %v2802_v7 }
 0xf64   : > { %v2804_v39 = vmul.f32 0.5, %v2803_v46 }
 0xf66   : > { %v2805_v62 = vsub.f32 1.5, %v2804_v39 }
 0xf68   : > { %v2806_v57 = vmul.f32 %v3624_v11, %v2805_v62 }
 0xf6a   : > { %v2810_v16 = vsel %vm2809_vm13, %v3624_v11, %v2806_v57 }
 0xf6b   : > { %v2813_v18 = vmul.f32 %v2810_v16, %v4404_v41 }
 0xf6d   : > { %v2820_v51 = vmul.f32 %v3505_v12, %v2813_v18 }
 0xf6f   : > { %v2827_v13 = vadd.f32 %v3506_v36, %v2820_v51 }
 0xf71   : > { %2830 = vst.msk [vmem:[%s1040_s22 + $0x10] sm:$0x1f] %vm1123_vm1, %v2827_v13  ;;  %v2838_v14 = vpack.c.bf16 %v2827_v13, %v2827_v13  ;;  %vm2937_vm1 = vcmask 20480  }
 0xf73   : > { %3363 = vmatmul.msk.bf16.gmra.mxu2 %vm1090_vm0, %v2838_v14  ;;  %vm2934_vm0 = vcmask 23552  }
 0xfd3   : > { %v2876_v1 = vpop.f32.mrf.mxu2 }
 0xfd4   : > { %v2877_v28 = vadd.f32 %v3507_v25, %v2876_v1 }
 0xfd6   : > { %v2885_v35 = vmax.f32 %v2877_v28, 0.0 }
 0xfdb   : > { %v2878_v29 = vpop.f32.mrf.mxu2 }
 0xfdc   : > { %v2879_v32 = vadd.f32 %v3507_v25, %v2878_v29 }
 0xfde   : > { %v2886_v37 = vmax.f32 %v2879_v32, 0.0 }
 0xfe0   : > { %v2891_v40 = vpack.c.bf16 %v2886_v37, %v2885_v35 }
 0xfe2   : > { %3368 = vmatmul.msk.bf16.vlgmr.msra.gmra.mxu3 %vm1706_vm8, %v2891_v40 }
 0xff6   : > { %v2881_v23 = vpop.f32.mrf.mxu2 }
 0xff7   : > { %v2882_v33 = vadd.f32 %v3507_v25, %v2881_v23 }
 0xff9   : > { %v2887_v41 = vmax.f32 %v2882_v33, 0.0 }
 0xffb   : > { %v2892_v15 = vpack.c.bf16 %v2887_v41, %v2887_v41 }
 0xffd   : > { %3369 = vmatmul.msk.bf16.gmra.mxu3 %vm1706_vm8, %v2892_v15 }
 0xffe   : > { %v2883_v10 = vpop.f32.mrf.mxu2 }
0x1065   : > { %v2925_v44 = vpop.f32.mrf.mxu3 }
0x1066   : > { %v2926_v45 = vadd.f32 %v3508_v43, %v2925_v44 }
0x1068   : > { %2935 = vst.msk [vmem:[%s1055_s15] sm:$0xff] %vm2934_vm0, %v2926_v45 }
0x106d   : > { %v2927_v47 = vpop.f32.mrf.mxu3 }
0x106e   : > { %v2928_v48 = vadd.f32 %v3508_v43, %v2927_v47 }
0x1070   : > { %2936 = vst.msk [vmem:[%s1055_s15 + $0x8] sm:$0xff] %vm2934_vm0, %v2928_v48 }
0x1080   : > { %v2930_v27 = vpop.f32.mrf.mxu3 }
0x1081   : > { %v2931_v42 = vadd.f32 %v3508_v43, %v2930_v27 }
0x1083   : > { %2938 = vst.msk [vmem:[%s1055_s15 + $0x10] sm:$0x1f] %vm2937_vm1, %v2931_v42 }
0x1088   : > { %v2932_v38 = vpop.f32.mrf.mxu3 }
0x1089 PF: > { %s76_s28 = sadd.s32 1, %s3631_s28  }
0x108a   : > { %p73_p4 = scmp.ge.s32.totalorder %s76_s28, 4  }
0x108c   :  { %75 = sbr.rel (!%p73_p4) target bundleno = 52 (0x34), region = 248 }

</bundles_post_ra>
